<compile_context>
chip_gen: v7x
topology: tpu7x:2x2x1
jax: 0.10.0
libtpu: 0.0.40
codegen_flags: <defaults>
</compile_context>

<pallas_src>
import functools
import math

import jax
import jax.numpy as jnp
from jax.experimental import pallas as pl
from jax.experimental.pallas import tpu as pltpu

CFG = dict(
    batch=2,
    num_frames=4,
    img=16,
    in_ch=3,
    cnn_filters=[8, 32],
    latent_dim=16,
    d_model=32,
    n_heads=8,
    dff=2048,
    kernel=(3, 4, 4),
    stride=(1, 2, 2),
    pad=(1, 1, 1),
)

# 2 -> keep both v7x TensorCores busy on the conv GEMMs; set to 1 on v5e/v6e.
CONV_GRID_STEPS = 2
VMEM_LIMIT = 32 * 1024 * 1024


# --------------------------------------------------------------------------
# Conv GEMM kernel: (Cout, K) @ (K, M) + b, lane-dense (Cout, M) output,
# M tiled on a "parallel" grid axis.
# --------------------------------------------------------------------------
def _conv_gemm_kernel(w_ref, a_ref, b_ref, o_ref, *, act):
    y = jnp.dot(w_ref[...], a_ref[...], preferred_element_type=jnp.float32)
    y = y + b_ref[...]
    if act == "leaky_relu":
        y = jnp.where(y >= 0, y, 0.01 * y)
    elif act == "sigmoid":
        # exact sigmoid: this lands directly in the model output
        y = 1.0 / (1.0 + jnp.exp(-y))
    o_ref[...] = y.astype(o_ref.dtype)


def conv_gemm(w2d, a_t, b, act, out_dtype):
    """w2d:(Cout,K) bf16, a_t:(K,M) bf16, b:(Cout,) f32 -> (Cout, M)."""
    Cout, K = w2d.shape
    M = a_t.shape[1]
    steps = CONV_GRID_STEPS
    if steps < 1 or M % steps != 0 or (M // steps) % 128 != 0:
        steps = 1
    tm = M // steps
    return pl.pallas_call(
        functools.partial(_conv_gemm_kernel, act=act),
        out_shape=jax.ShapeDtypeStruct((Cout, M), out_dtype),
        grid=(steps,),
        in_specs=[
            pl.BlockSpec((Cout, K), lambda i: (0, 0)),
            pl.BlockSpec((K, tm), lambda i: (0, i)),
            pl.BlockSpec((Cout, 1), lambda i: (0, 0)),
        ],
        out_specs=pl.BlockSpec((Cout, tm), lambda i: (0, i)),
        compiler_params=pltpu.CompilerParams(
            dimension_semantics=("parallel",),
            vmem_limit_bytes=VMEM_LIMIT),
    )(w2d, a_t, b.reshape(Cout, 1).astype(jnp.float32))


# --------------------------------------------------------------------------
# Small fused linear kernel (whole-array, single invocation)
# --------------------------------------------------------------------------
def _linear_kernel(x_ref, w_ref, b_ref, o_ref, *, act):
    y = jnp.dot(x_ref[...], w_ref[...], preferred_element_type=jnp.float32)
    y = y + b_ref[...]
    if act == "leaky_relu":
        y = jnp.where(y >= 0, y, 0.01 * y)
    o_ref[...] = y


def pallas_linear(x, w, b, act="none"):
    """act(x @ w + b); x:(M,K) bf16, w:(K,N) bf16, b:(N,) f32 -> (M,N) f32."""
    M, N = x.shape[0], w.shape[1]
    return pl.pallas_call(
        functools.partial(_linear_kernel, act=act),
        out_shape=jax.ShapeDtypeStruct((M, N), jnp.float32),
    )(x, w, b.reshape(1, N).astype(jnp.float32))


# --------------------------------------------------------------------------
# In-kernel helpers
# --------------------------------------------------------------------------
def _layernorm(x, g, b):
    mu = jnp.mean(x, axis=-1, keepdims=True)
    var = jnp.mean((x - mu) ** 2, axis=-1, keepdims=True)
    return (x - mu) * jax.lax.rsqrt(var + 1e-5) * g + b


def _mha_flat(q, k, v, rep, rep_t, hm_big, amask_big, scale):
    """Flattened all-head attention (bf16 MXU ops, f32 accumulation).

    q:(Mq,d) k/v:(Mkv,d) f32.
    rep:(H*Mq,Mq) bf16 row-replication (rep[h*Mq+m, m]=1), rep_t its transpose.
    hm_big:(H*Mq,d) f32 per-row head-column 0/1 mask.
    amask_big:(H*Mq,Mkv) f32 additive mask.
    """
    kb = k.astype(jnp.bfloat16)
    vb = v.astype(jnp.bfloat16)
    # replicate query rows per head and zero the other heads' columns
    qf = jnp.dot(rep, q.astype(jnp.bfloat16),
                 preferred_element_type=jnp.float32) * hm_big      # (H*Mq, d)
    s = jax.lax.dot_general(qf.astype(jnp.bfloat16), kb,
                            (((1,), (1,)), ((), ())),
                            preferred_element_type=jnp.float32)    # (H*Mq, Mkv)
    s = s * scale + amask_big
    mx = jnp.max(s, axis=-1, keepdims=True)
    p = jnp.exp(s - mx)
    p = p * pl.reciprocal(jnp.sum(p, axis=-1, keepdims=True), approx=True)
    o = jnp.dot(p.astype(jnp.bfloat16), vb,
                preferred_element_type=jnp.float32) * hm_big       # (H*Mq, d)
    # combine heads (each output column is owned by exactly one head)
    return jnp.dot(rep_t, o.astype(jnp.bfloat16),
                   preferred_element_type=jnp.float32)             # (Mq, d)


# --------------------------------------------------------------------------
# Fused ENCODER stack kernel: layer index is an "arbitrary" grid axis,
# activation stays resident in the revisited output block.
# --------------------------------------------------------------------------
def _enc_stack_kernel(x_ref, wqkv_ref, bqkv_ref, wo_ref, bo_ref, ln1_ref,
                      wf1_ref, bf1_ref, wf2_ref, bf2_ref, ln2_ref,
                      rep_ref, rept_ref, hmb_ref, am_ref, o_ref, *, scale, d):
    l = pl.program_id(0)

    @pl.when(l == 0)
    def _():
        o_ref[...] = x_ref[...]

    x = o_ref[...]
    xb = x.astype(jnp.bfloat16)
    qkv = jnp.dot(xb, wqkv_ref[...],
                  preferred_element_type=jnp.float32) + bqkv_ref[...]
    q, k, v = qkv[:, :d], qkv[:, d:2 * d], qkv[:, 2 * d:]
    a = _mha_flat(q, k, v, rep_ref[...], rept_ref[...], hmb_ref[...],
                  am_ref[...], scale)
    a = jnp.dot(a.astype(jnp.bfloat16), wo_ref[...],
                preferred_element_type=jnp.float32) + bo_ref[...]
    h1 = _layernorm(x + a, ln1_ref[0], ln1_ref[1])
    f = jnp.dot(h1.astype(jnp.bfloat16), wf1_ref[...],
                preferred_element_type=jnp.float32) + bf1_ref[...]
    f = jnp.maximum(f, 0.0)
    f = jnp.dot(f.astype(jnp.bfloat16), wf2_ref[...],
                preferred_element_type=jnp.float32) + bf2_ref[...]
    o_ref[...] = _layernorm(h1 + f, ln2_ref[0], ln2_ref[1])


def encoder_stack(x, p, rep, rep_t, hm_big, amask_big, scale):
    M, d = x.shape
    L = p["wqkv"].shape[0]
    dff = p["wf1"].shape[-1]
    HM = rep.shape[0]

    def const(*s):
        return pl.BlockSpec(s, lambda l: (0,) * len(s))

    def perl(*s):
        return pl.BlockSpec((None,) + s, lambda l: (l,) + (0,) * len(s))

    return pl.pallas_call(
        functools.partial(_enc_stack_kernel, scale=scale, d=d),
        out_shape=jax.ShapeDtypeStruct((M, d), jnp.float32),
        grid=(L,),
        in_specs=[
            const(M, d),
            perl(d, 3 * d), perl(1, 3 * d), perl(d, d), perl(1, d),
            perl(2, 1, d),
            perl(d, dff), perl(1, dff), perl(dff, d), perl(1, d),
            perl(2, 1, d),
            const(HM, M), const(M, HM), const(HM, d), const(HM, M),
        ],
        out_specs=pl.BlockSpec((M, d), lambda l: (0, 0)),
        compiler_params=pltpu.CompilerParams(
            dimension_semantics=("arbitrary",),
            vmem_limit_bytes=VMEM_LIMIT),
    )(x, p["wqkv"], p["bqkv"], p["wo"], p["bo"], p["ln1"],
      p["wf1"], p["bf1"], p["wf2"], p["bf2"], p["ln2"],
      rep, rep_t, hm_big, amask_big)


# --------------------------------------------------------------------------
# Fused DECODER stack kernel (dec_fc1 + LeakyReLU + frame broadcast fused
# into the layer-0 prologue via a small selection matmul).
# --------------------------------------------------------------------------
def _dec_stack_kernel(z_ref, w1_ref, b1_ref, selb_ref, mem_ref,
                      sa_wqkv_ref, sa_bqkv_ref, sa_wo_ref, sa_bo_ref, ln1_ref,
                      ca_wq_ref, ca_bq_ref, ca_wkv_ref, ca_bkv_ref,
                      ca_wo_ref, ca_bo_ref, ln2_ref,
                      wf1_ref, bf1_ref, wf2_ref, bf2_ref, ln3_ref,
                      rep_ref, rept_ref, hmb_ref, sm_ref, cm_ref,
                      o_ref, *, scale, d):
    l = pl.program_id(0)

    @pl.when(l == 0)
    def _():
        t = jnp.dot(z_ref[...].astype(jnp.bfloat16), w1_ref[...],
                    preferred_element_type=jnp.float32) + b1_ref[...]
        t = jnp.where(t >= 0, t, 0.01 * t)                 # LeakyReLU(fc1(z))
        o_ref[...] = jnp.dot(selb_ref[...], t.astype(jnp.bfloat16),
                             preferred_element_type=jnp.float32)

    x = o_ref[...]
    xb = x.astype(jnp.bfloat16)
    # masked (causal + batch-block) self-attention
    qkv = jnp.dot(xb, sa_wqkv_ref[...],
                  preferred_element_type=jnp.float32) + sa_bqkv_ref[...]
    q, k, v = qkv[:, :d], qkv[:, d:2 * d], qkv[:, 2 * d:]
    a = _mha_flat(q, k, v, rep_ref[...], rept_ref[...], hmb_ref[...],
                  sm_ref[...], scale)
    a = jnp.dot(a.astype(jnp.bfloat16), sa_wo_ref[...],
                preferred_element_type=jnp.float32) + sa_bo_ref[...]
    h1 = _layernorm(x + a, ln1_ref[0], ln1_ref[1])
    # cross-attention over encoder memory (batch-block mask only)
    memb = mem_ref[...].astype(jnp.bfloat16)
    qc = jnp.dot(h1.astype(jnp.bfloat16), ca_wq_ref[...],
                 preferred_element_type=jnp.float32) + ca_bq_ref[...]
    kv = jnp.dot(memb, ca_wkv_ref[...],
                 preferred_element_type=jnp.float32) + ca_bkv_ref[...]
    kc, vc = kv[:, :d], kv[:, d:]
    c = _mha_flat(qc, kc, vc, rep_ref[...], rept_ref[...], hmb_ref[...],
                  cm_ref[...], scale)
    c = jnp.dot(c.astype(jnp.bfloat16), ca_wo_ref[...],
                preferred_element_type=jnp.float32) + ca_bo_ref[...]
    h2 = _layernorm(h1 + c, ln2_ref[0], ln2_ref[1])
    # FFN
    f = jnp.dot(h2.astype(jnp.bfloat16), wf1_ref[...],
                preferred_element_type=jnp.float32) + bf1_ref[...]
    f = jnp.maximum(f, 0.0)
    f = jnp.dot(f.astype(jnp.bfloat16), wf2_ref[...],
                preferred_element_type=jnp.float32) + bf2_ref[...]
    o_ref[...] = _layernorm(h2 + f, ln3_ref[0], ln3_ref[1])


def decoder_stack(z, w1, b1, selb, mem, p, rep, rep_t, hm_big, smask, cmask,
                  scale):
    Md, d = mem.shape
    L = p["sa_wqkv"].shape[0]
    dff = p["wf1"].shape[-1]
    HM = rep.shape[0]
    B, lat = z.shape

    def const(*s):
        return pl.BlockSpec(s, lambda l: (0,) * len(s))

    def perl(*s):
        return pl.BlockSpec((None,) + s, lambda l: (l,) + (0,) * len(s))

    return pl.pallas_call(
        functools.partial(_dec_stack_kernel, scale=scale, d=d),
        out_shape=jax.ShapeDtypeStruct((Md, d), jnp.float32),
        grid=(L,),
        in_specs=[
            const(B, lat), const(lat, d), const(1, d), const(Md, B),
            const(Md, d),
            perl(d, 3 * d), perl(1, 3 * d), perl(d, d), perl(1, d),
            perl(2, 1, d),
            perl(d, d), perl(1, d), perl(d, 2 * d), perl(1, 2 * d),
            perl(d, d), perl(1, d),
            perl(2, 1, d),
            perl(d, dff), perl(1, dff), perl(dff, d), perl(1, d),
            perl(2, 1, d),
            const(HM, Md), const(Md, HM), const(HM, d),
            const(HM, Md), const(HM, Md),
        ],
        out_specs=pl.BlockSpec((Md, d), lambda l: (0, 0)),
        compiler_params=pltpu.CompilerParams(
            dimension_semantics=("arbitrary",),
            vmem_limit_bytes=VMEM_LIMIT),
    )(z, w1, b1, selb, mem,
      p["sa_wqkv"], p["sa_bqkv"], p["sa_wo"], p["sa_bo"], p["ln1"],
      p["ca_wq"], p["ca_bq"], p["ca_wkv"], p["ca_bkv"], p["ca_wo"], p["ca_bo"],
      p["ln2"],
      p["wf1"], p["bf1"], p["wf2"], p["bf2"], p["ln3"],
      rep, rep_t, hm_big, smask, cmask)


# --------------------------------------------------------------------------
# Conv3d / ConvTranspose3d: fused patch gather (XLA) + Pallas GEMM.
# --------------------------------------------------------------------------
# TODO(synk): the patch gather could be moved fully inside the Pallas conv
# kernel (memory_space=pl.ANY + index_map over (Do,Ho,Wo) blocks) to remove
# one HBM pass; kept as a single fused XLA gather here.
def conv_patches_cb(x_cb, ksize, win_stride, padding, lhs_dilation=(1, 1, 1)):
    """x_cb:(C,B,D,H,W) -> A^T:(C*kd*kh*kw, B*Do*Ho*Wo) (channel-major taps)."""
    kd, kh, kw = ksize
    patches = jax.lax.conv_general_dilated_patches(
        x_cb,
        filter_shape=(kd, kh, kw),
        window_strides=win_stride,
        padding=[(padding[0], padding[0]), (padding[1], padding[1]),
                 (padding[2], padding[2])],
        lhs_dilation=lhs_dilation,
        dimension_numbers=("CNDHW", "OIDHW", "CNDHW"),
    )                                          # (C*kd*kh*kw, B, Do, Ho, Wo)
    K, Bsz, Do, Ho, Wo = patches.shape
    return patches.reshape(K, Bsz * Do * Ho * Wo), (Do, Ho, Wo)


def conv3d_cb(x_cb, w2d, b, stride, padding, act, out_dtype):
    """x_cb:(Cin,B,D,H,W) bf16; w2d:(Cout,Cin*kd*kh*kw) bf16."""
    Cout = w2d.shape[0]
    Bsz = x_cb.shape[1]
    a_t, (Do, Ho, Wo) = conv_patches_cb(x_cb, CFG["kernel"], stride, padding)
    out = conv_gemm(w2d, a_t, b, act, out_dtype)
    return out.reshape(Cout, Bsz, Do, Ho, Wo)


def conv_transpose3d_cb(x_cb, w2d_flipped, b, stride, padding, act, out_dtype):
    """ConvTranspose3d as a dilated-input conv with the pre-flipped weight."""
    kd, kh, kw = CFG["kernel"]
    sd, sh, sw = stride
    pd, ph, pw = padding
    Cout = w2d_flipped.shape[0]
    Bsz = x_cb.shape[1]
    # TODO(synk): a stride-phase (sub-pixel) decomposition would remove the
    # zero-valued MACs introduced by lhs_dilation (~4x fewer GEMM FLOPs).
    a_t, (Do, Ho, Wo) = conv_patches_cb(
        x_cb, CFG["kernel"], (1, 1, 1),
        (kd - 1 - pd, kh - 1 - ph, kw - 1 - pw),
        lhs_dilation=(sd, sh, sw))
    out = conv_gemm(w2d_flipped, a_t, b, act, out_dtype)
    return out.reshape(Cout, Bsz, Do, Ho, Wo)


# --------------------------------------------------------------------------
# Deterministic parameter initialization (kaiming-style normals)
# --------------------------------------------------------------------------
def _kaiming(key, shape, fan_in):
    return jax.random.normal(key, shape, jnp.float32) * jnp.sqrt(2.0 / fan_in)


def init_params(key):
    keys = iter(jax.random.split(key, 64))
    nk = lambda: next(keys)
    d, dff, lat = CFG["d_model"], CFG["dff"], CFG["latent_dim"]
    kd, kh, kw = CFG["kernel"]
    F = CFG["num_frames"]
    L = 2  # transformer layers

    out_size = CFG["img"]
    for _ in CFG["cnn_filters"]:
        out_size = (out_size - kh + 2 * CFG["pad"][1]) // CFG["stride"][1] + 1

    p = {}

    # CNN encoder Conv3d weights, pre-flattened to (Cout, Cin*kd*kh*kw) bf16
    enc_conv = []
    cin = CFG["in_ch"]
    for f in CFG["cnn_filters"]:
        fan_in = cin * kd * kh * kw
        w = _kaiming(nk(), (f, cin, kd, kh, kw), fan_in)
        enc_conv.append((w.reshape(f, -1).astype(jnp.bfloat16),
                         jnp.zeros((f,), jnp.float32)))
        cin = f
    p["enc_conv"] = enc_conv

    flat = cin * out_size * out_size
    p["fc_middle"] = (_kaiming(nk(), (flat, d), flat).astype(jnp.bfloat16),
                      jnp.zeros((d,), jnp.float32))
    p["fc_middle2"] = (_kaiming(nk(), (d * F, d), d * F),
                       jnp.zeros((d,), jnp.float32))
    # fc_mu | fc_logvar fused into one (d, 2*lat) GEMM
    p["fc_mulv"] = (_kaiming(nk(), (d, 2 * lat), d),
                    jnp.zeros((2 * lat,), jnp.float32))

    def kW(shape, fan_in):
        return jnp.stack([_kaiming(nk(), shape, fan_in)
                          for _ in range(L)]).astype(jnp.bfloat16)

    def zb(shape):
        return jnp.zeros((L,) + shape, jnp.float32)

    def ln():
        return jnp.concatenate([jnp.ones((L, 1, 1, d), jnp.float32),
                                jnp.zeros((L, 1, 1, d), jnp.float32)], axis=1)

    p["enc_stack"] = dict(
        wqkv=kW((d, 3 * d), d), bqkv=zb((1, 3 * d)),
        wo=kW((d, d), d), bo=zb((1, d)), ln1=ln(),
        wf1=kW((d, dff), d), bf1=zb((1, dff)),
        wf2=kW((dff, d), dff), bf2=zb((1, d)), ln2=ln(),
    )
    p["dec_stack"] = dict(
        sa_wqkv=kW((d, 3 * d), d), sa_bqkv=zb((1, 3 * d)),
        sa_wo=kW((d, d), d), sa_bo=zb((1, d)), ln1=ln(),
        ca_wq=kW((d, d), d), ca_bq=zb((1, d)),
        ca_wkv=kW((d, 2 * d), d), ca_bkv=zb((1, 2 * d)),
        ca_wo=kW((d, d), d), ca_bo=zb((1, d)), ln2=ln(),
        wf1=kW((d, dff), d), bf1=zb((1, dff)),
        wf2=kW((dff, d), dff), bf2=zb((1, d)), ln3=ln(),
    )

    p["dec_fc1"] = (_kaiming(nk(), (lat, d), lat).astype(jnp.bfloat16),
                    jnp.zeros((1, d), jnp.float32))
    p["dec_fc3"] = (
        _kaiming(nk(), (d, CFG["cnn_filters"][-1] * out_size ** 2), d)
        .astype(jnp.bfloat16),
        jnp.zeros((CFG["cnn_filters"][-1] * out_size ** 2,), jnp.float32))

    # Decoder ConvTranspose3d weights: torch layout (Cin, Cout, kd, kh, kw),
    # stored pre-flipped & transposed as (Cout, Cin*kd*kh*kw) bf16.
    ct_filters = list(CFG["cnn_filters"][:-1])
    ct_filters.reverse()
    ct_filters.append(3)
    dec_conv = []
    cin = CFG["cnn_filters"][-1]
    for f in ct_filters:
        fan_in = cin * kd * kh * kw
        w = _kaiming(nk(), (cin, f, kd, kh, kw), fan_in)
        w_conv = jnp.flip(w, axis=(2, 3, 4)).transpose(1, 0, 2, 3, 4)
        dec_conv.append((w_conv.reshape(f, -1).astype(jnp.bfloat16),
                         jnp.zeros((f,), jnp.float32)))
        cin = f
    p["dec_conv"] = dec_conv
    return p


# --------------------------------------------------------------------------
# Full VideoBERT forward (eval mode: dropout is a no-op)
# --------------------------------------------------------------------------
def videobert_forward(params, x, eps_key):
    B = x.shape[0]
    F = x.shape[2]
    d = CFG["d_model"]
    H = CFG["n_heads"]
    Dh = d // H
    lat = CFG["latent_dim"]
    scale = 1.0 / math.sqrt(Dh)

    out_size = CFG["img"]
    for _ in CFG["cnn_filters"]:
        out_size = (out_size - CFG["kernel"][1]
                    + 2 * CFG["pad"][1]) // CFG["stride"][1] + 1

    # ---- CNN encoder (channels-leading layout, bf16 GEMM operands) ----
    h = x.astype(jnp.bfloat16).transpose(1, 0, 2, 3, 4)       # (C, B, D, H, W)
    for (w2d, b) in params["enc_conv"]:
        h = conv3d_cb(h, w2d, b, CFG["stride"], CFG["pad"],
                      act="leaky_relu", out_dtype=jnp.bfloat16)

    # match torch's cnn_encoded.view(B, F, -1) memory order
    h = h.transpose(1, 0, 2, 3, 4).reshape(B * F, -1)         # (B*F, 512) bf16

    wm, bm = params["fc_middle"]
    h = pallas_linear(h, wm, bm, act="leaky_relu").reshape(B, F, d)

    # special token: torch.zeros(...) - (-99) == +99
    special = jnp.full((B, 1, d), 99.0, jnp.float32)
    h = jnp.concatenate([special, h], axis=1)                 # (B, S, d)
    S = F + 1
    xe = h.reshape(B * S, d)

    # ---- encoder attention constants (batch folded into sequence) ----
    Me = B * S
    bid_e = jnp.repeat(jnp.arange(B), S)
    enc_mask = jnp.where(bid_e[:, None] == bid_e[None, :],
                         0.0, -1e30).astype(jnp.float32)
    rep_e = (jnp.arange(Me)[None, :]
             == (jnp.arange(H * Me) % Me)[:, None]).astype(jnp.bfloat16)
    hmb_e = (jnp.arange(d)[None, :] // Dh
             == (jnp.arange(H * Me) // Me)[:, None]).astype(jnp.float32)
    am_e = jnp.tile(enc_mask, (H, 1))

    xe = encoder_stack(xe, params["enc_stack"], rep_e, rep_e.T, hmb_e, am_e,
                       scale)

    encoded_features = xe.reshape(B, S, d)[:, 1:, :]          # (B, F, d)

    # TODO(synk): fc_middle2 + fc_mu|fc_logvar could be fused into the last
    # encoder-layer epilogue; kept as tiny XLA dots here.
    enc = encoded_features.reshape(B, F * d)
    w2, b2 = params["fc_middle2"]
    enc = jnp.dot(enc, w2, preferred_element_type=jnp.float32) + b2
    enc = jnp.where(enc >= 0, enc, 0.01 * enc)
    wmv, bmv = params["fc_mulv"]
    mulv = jnp.dot(enc, wmv, preferred_element_type=jnp.float32) + bmv
    mu, logvar = mulv[:, :lat], mulv[:, lat:]

    eps = jax.random.normal(eps_key, mu.shape, jnp.float32)
    z = mu + eps * jnp.exp(0.5 * logvar)
    kl = -0.5 * jnp.mean(jnp.sum(1.0 + logvar - mu ** 2 - jnp.exp(logvar),
                                 axis=1))

    # ---- VideoBERTDecoder (fused stack; dec_fc1 prologue fused in-kernel) --
    mem = encoded_features.reshape(B * F, d)
    Md = B * F
    bid_d = jnp.repeat(jnp.arange(B), F)
    fid = jnp.tile(jnp.arange(F), B)
    same_b = bid_d[:, None] == bid_d[None, :]
    self_mask = jnp.where(same_b & (fid[None, :] <= fid[:, None]),
                          0.0, -1e30).astype(jnp.float32)
    cross_mask = jnp.where(same_b, 0.0, -1e30).astype(jnp.float32)
    rep_d = (jnp.arange(Md)[None, :]
             == (jnp.arange(H * Md) % Md)[:, None]).astype(jnp.bfloat16)
    hmb_d = (jnp.arange(d)[None, :] // Dh
             == (jnp.arange(H * Md) // Md)[:, None]).astype(jnp.float32)
    sm_d = jnp.tile(self_mask, (H, 1))
    cm_d = jnp.tile(cross_mask, (H, 1))
    selb = (jnp.arange(Md)[:, None] // F
            == jnp.arange(B)[None, :]).astype(jnp.bfloat16)

    w1, b1 = params["dec_fc1"]
    t = decoder_stack(z, w1, b1, selb, mem, params["dec_stack"],
                      rep_d, rep_d.T, hmb_d, sm_d, cm_d, scale)

    t = jnp.where(t >= 0, t, 0.01 * t)                        # LeakyReLU
    w3, b3 = params["dec_fc3"]
    t = pallas_linear(t.astype(jnp.bfloat16), w3, b3, act="leaky_relu")
    t = t.reshape(B, CFG["cnn_filters"][-1], F, out_size, out_size)

    # conv-transpose stack in channels-leading layout
    t = t.transpose(1, 0, 2, 3, 4).astype(jnp.bfloat16)       # (C, B, D, H, W)
    (wt1, bt1), (wt2, bt2) = params["dec_conv"]
    t = conv_transpose3d_cb(t, wt1, bt1, CFG["stride"], CFG["pad"],
                            act="leaky_relu", out_dtype=jnp.bfloat16)
    t = conv_transpose3d_cb(t, wt2, bt2, CFG["stride"], CFG["pad"],
                            act="sigmoid", out_dtype=jnp.float32)
    predicted = t.transpose(1, 0, 2, 3, 4)                    # (B, 3, F, img, img)
    return predicted, kl, z, mu


if __name__ == "__main__":
    key = jax.random.PRNGKey(0)
    pkey, xkey, skey = jax.random.split(key, 3)
    params = init_params(pkey)
    x = jax.random.normal(
        xkey, (CFG["batch"], CFG["in_ch"], CFG["num_frames"],
               CFG["img"], CFG["img"]), jnp.float32)

    fwd = jax.jit(videobert_forward)
    predicted_frames, kl, z, mu = fwd(params, x, skey)
    jax.block_until_ready(predicted_frames)
    jax.block_until_ready(kl)

    assert predicted_frames.shape == (CFG["batch"], 3, CFG["num_frames"],
                                      CFG["img"], CFG["img"])
    assert z.shape == (CFG["batch"], CFG["latent_dim"])
    assert mu.shape == (CFG["batch"], CFG["latent_dim"])
    assert bool(jnp.all(jnp.isfinite(predicted_frames)))
    print("KERNEL_OK")
</pallas_src>

<mosaic_0001>
module attributes {stable_mosaic.version = 11 : i64} {
  func.func @_conv_gemm_kernel(%arg0: i32, %arg1: memref<8x144xbf16, #tpu.memory_space<vmem>>, %arg2: memref<144x256xbf16, #tpu.memory_space<vmem>>, %arg3: memref<8x1xf32, #tpu.memory_space<vmem>>, %arg4: memref<8x256xbf16, #tpu.memory_space<vmem>>) attributes {dimension_semantics = [#tpu.dimension_semantics<parallel>], iteration_bounds = array<i64: 2>, scalar_prefetch = 0 : i64, scratch_operands = 0 : i64, tpu.core_type = #tpu.core_type<tc>, window_params = [{pipeline_mode = #tpu.pipeline_mode<synchronous>, transform_indices = @transform_0, window_bounds = array<i64: 8, 144>}, {transform_indices = @transform_1, window_bounds = array<i64: 144, 256>}, {pipeline_mode = #tpu.pipeline_mode<synchronous>, transform_indices = @transform_2, window_bounds = array<i64: 8, 1>}, {transform_indices = @transform_3, window_bounds = array<i64: 8, 256>}]} {
    %c0 = arith.constant 0 : index
    %c0_0 = arith.constant 0 : index
    %0 = vector.load %arg1[%c0, %c0_0] : memref<8x144xbf16, #tpu.memory_space<vmem>>, vector<8x144xbf16>
    %c0_1 = arith.constant 0 : index
    %c0_2 = arith.constant 0 : index
    %1 = vector.load %arg2[%c0_1, %c0_2] : memref<144x256xbf16, #tpu.memory_space<vmem>>, vector<144x256xbf16>
    %cst = arith.constant dense<0.000000e+00> : vector<8x256xf32>
    %2 = tpu.matmul %0, %1, %cst {dimension_numbers = #tpu.dot_dimension_numbers<[1], [0], [0], [1], [0, 0, 1, 1], [], []>} : vector<8x144xbf16>, vector<144x256xbf16>, vector<8x256xf32> -> vector<8x256xf32>
    %c0_3 = arith.constant 0 : index
    %c0_4 = arith.constant 0 : index
    %3 = vector.load %arg3[%c0_3, %c0_4] : memref<8x1xf32, #tpu.memory_space<vmem>>, vector<8x1xf32>
    %4 = vector.broadcast %3 : vector<8x1xf32> to vector<8x256xf32>
    %5 = arith.addf %2, %4 : vector<8x256xf32>
    %cst_5 = arith.constant 0.000000e+00 : f32
    %6 = vector.broadcast %cst_5 : f32 to vector<8x256xf32>
    %7 = arith.cmpf oge, %5, %6 : vector<8x256xf32>
    %cst_6 = arith.constant 0.00999999977 : f32
    %8 = vector.broadcast %cst_6 : f32 to vector<8x256xf32>
    %9 = arith.mulf %8, %5 : vector<8x256xf32>
    %10 = arith.select %7, %5, %9 : vector<8x256xi1>, vector<8x256xf32>
    %11 = arith.truncf %10 : vector<8x256xf32> to vector<8x256xbf16>
    %c0_7 = arith.constant 0 : index
    %c0_8 = arith.constant 0 : index
    %12 = vector.load %arg4[%c0_7, %c0_8] : memref<8x256xbf16, #tpu.memory_space<vmem>>, vector<8x256xbf16>
    tpu.vector_store %arg4[%c0_7, %c0_8], %11 {strides = array<i32>} : memref<8x256xbf16, #tpu.memory_space<vmem>>, vector<8x256xbf16>,
    return
  }
  func.func @transform_0(%arg0: i32) -> (i32, i32) {
    %c0_i32 = arith.constant 0 : i32
    %c0_i32_0 = arith.constant 0 : i32
    %c0_i32_1 = arith.constant 0 : i32
    return %c0_i32, %c0_i32_0 : i32, i32
  }
  func.func @transform_1(%arg0: i32) -> (i32, i32) {
    %c0_i32 = arith.constant 0 : i32
    %c0_i32_0 = arith.constant 0 : i32
    return %c0_i32, %arg0 : i32, i32
  }
  func.func @transform_2(%arg0: i32) -> (i32, i32) {
    %c0_i32 = arith.constant 0 : i32
    %c0_i32_0 = arith.constant 0 : i32
    %c0_i32_1 = arith.constant 0 : i32
    return %c0_i32, %c0_i32_0 : i32, i32
  }
  func.func @transform_3(%arg0: i32) -> (i32, i32) {
    %c0_i32 = arith.constant 0 : i32
    %c0_i32_0 = arith.constant 0 : i32
    return %c0_i32, %arg0 : i32, i32
  }
}

module attributes {stable_mosaic.version = 11 : i64} {
  func.func @_conv_gemm_kernel(%arg0: i32, %arg1: memref<32x384xbf16, #tpu.memory_space<vmem>>, %arg2: memref<384x128xbf16, #tpu.memory_space<vmem>>, %arg3: memref<32x1xf32, #tpu.memory_space<vmem>>, %arg4: memref<32x128xbf16, #tpu.memory_space<vmem>>) attributes {dimension_semantics = [#tpu.dimension_semantics<parallel>], iteration_bounds = array<i64: 1>, scalar_prefetch = 0 : i64, scratch_operands = 0 : i64, tpu.core_type = #tpu.core_type<tc>, window_params = [{pipeline_mode = #tpu.pipeline_mode<synchronous>, transform_indices = @transform_0, window_bounds = array<i64: 32, 384>}, {transform_indices = @transform_1, window_bounds = array<i64: 384, 128>}, {pipeline_mode = #tpu.pipeline_mode<synchronous>, transform_indices = @transform_2, window_bounds = array<i64: 32, 1>}, {transform_indices = @transform_3, window_bounds = array<i64: 32, 128>}]} {
    %c0 = arith.constant 0 : index
    %c0_0 = arith.constant 0 : index
    %0 = vector.load %arg1[%c0, %c0_0] : memref<32x384xbf16, #tpu.memory_space<vmem>>, vector<32x384xbf16>
    %c0_1 = arith.constant 0 : index
    %c0_2 = arith.constant 0 : index
    %1 = vector.load %arg2[%c0_1, %c0_2] : memref<384x128xbf16, #tpu.memory_space<vmem>>, vector<384x128xbf16>
    %cst = arith.constant dense<0.000000e+00> : vector<32x128xf32>
    %2 = tpu.matmul %0, %1, %cst {dimension_numbers = #tpu.dot_dimension_numbers<[1], [0], [0], [1], [0, 0, 1, 1], [], []>} : vector<32x384xbf16>, vector<384x128xbf16>, vector<32x128xf32> -> vector<32x128xf32>
    %c0_3 = arith.constant 0 : index
    %c0_4 = arith.constant 0 : index
    %3 = vector.load %arg3[%c0_3, %c0_4] : memref<32x1xf32, #tpu.memory_space<vmem>>, vector<32x1xf32>
    %4 = vector.broadcast %3 : vector<32x1xf32> to vector<32x128xf32>
    %5 = arith.addf %2, %4 : vector<32x128xf32>
    %cst_5 = arith.constant 0.000000e+00 : f32
    %6 = vector.broadcast %cst_5 : f32 to vector<32x128xf32>
    %7 = arith.cmpf oge, %5, %6 : vector<32x128xf32>
    %cst_6 = arith.constant 0.00999999977 : f32
    %8 = vector.broadcast %cst_6 : f32 to vector<32x128xf32>
    %9 = arith.mulf %8, %5 : vector<32x128xf32>
    %10 = arith.select %7, %5, %9 : vector<32x128xi1>, vector<32x128xf32>
    %11 = arith.truncf %10 : vector<32x128xf32> to vector<32x128xbf16>
    %c0_7 = arith.constant 0 : index
    %c0_8 = arith.constant 0 : index
    %12 = vector.load %arg4[%c0_7, %c0_8] : memref<32x128xbf16, #tpu.memory_space<vmem>>, vector<32x128xbf16>
    tpu.vector_store %arg4[%c0_7, %c0_8], %11 {strides = array<i32>} : memref<32x128xbf16, #tpu.memory_space<vmem>>, vector<32x128xbf16>,
    return
  }
  func.func @transform_0(%arg0: i32) -> (i32, i32) {
    %c0_i32 = arith.constant 0 : i32
    %c0_i32_0 = arith.constant 0 : i32
    %c0_i32_1 = arith.constant 0 : i32
    return %c0_i32, %c0_i32_0 : i32, i32
  }
  func.func @transform_1(%arg0: i32) -> (i32, i32) {
    %c0_i32 = arith.constant 0 : i32
    %c0_i32_0 = arith.constant 0 : i32
    return %c0_i32, %arg0 : i32, i32
  }
  func.func @transform_2(%arg0: i32) -> (i32, i32) {
    %c0_i32 = arith.constant 0 : i32
    %c0_i32_0 = arith.constant 0 : i32
    %c0_i32_1 = arith.constant 0 : i32
    return %c0_i32, %c0_i32_0 : i32, i32
  }
  func.func @transform_3(%arg0: i32) -> (i32, i32) {
    %c0_i32 = arith.constant 0 : i32
    %c0_i32_0 = arith.constant 0 : i32
    return %c0_i32, %arg0 : i32, i32
  }
}

module attributes {stable_mosaic.version = 11 : i64} {
  func.func @_linear_kernel(%arg0: memref<8x512xbf16, #tpu.memory_space<vmem>>, %arg1: memref<512x32xbf16, #tpu.memory_space<vmem>>, %arg2: memref<1x32xf32, #tpu.memory_space<vmem>>, %arg3: memref<8x32xf32, #tpu.memory_space<vmem>>) attributes {dimension_semantics = [], scalar_prefetch = 0 : i64, scratch_operands = 0 : i64, tpu.core_type = #tpu.core_type<tc>} {
    %c0 = arith.constant 0 : index
    %c0_0 = arith.constant 0 : index
    %0 = vector.load %arg0[%c0, %c0_0] : memref<8x512xbf16, #tpu.memory_space<vmem>>, vector<8x512xbf16>
    %c0_1 = arith.constant 0 : index
    %c0_2 = arith.constant 0 : index
    %1 = vector.load %arg1[%c0_1, %c0_2] : memref<512x32xbf16, #tpu.memory_space<vmem>>, vector<512x32xbf16>
    %cst = arith.constant dense<0.000000e+00> : vector<8x32xf32>
    %2 = tpu.matmul %0, %1, %cst {dimension_numbers = #tpu.dot_dimension_numbers<[1], [0], [0], [1], [0, 0, 1, 1], [], []>} : vector<8x512xbf16>, vector<512x32xbf16>, vector<8x32xf32> -> vector<8x32xf32>
    %c0_3 = arith.constant 0 : index
    %c0_4 = arith.constant 0 : index
    %3 = vector.load %arg2[%c0_3, %c0_4] : memref<1x32xf32, #tpu.memory_space<vmem>>, vector<1x32xf32>
    %4 = vector.broadcast %3 : vector<1x32xf32> to vector<8x32xf32>
    %5 = arith.addf %2, %4 : vector<8x32xf32>
    %cst_5 = arith.constant 0.000000e+00 : f32
    %6 = vector.broadcast %cst_5 : f32 to vector<8x32xf32>
    %7 = arith.cmpf oge, %5, %6 : vector<8x32xf32>
    %cst_6 = arith.constant 0.00999999977 : f32
    %8 = vector.broadcast %cst_6 : f32 to vector<8x32xf32>
    %9 = arith.mulf %8, %5 : vector<8x32xf32>
    %10 = arith.select %7, %5, %9 : vector<8x32xi1>, vector<8x32xf32>
    %c0_7 = arith.constant 0 : index
    %c0_8 = arith.constant 0 : index
    %11 = vector.load %arg3[%c0_7, %c0_8] : memref<8x32xf32, #tpu.memory_space<vmem>>, vector<8x32xf32>
    tpu.vector_store %arg3[%c0_7, %c0_8], %10 {strides = array<i32>} : memref<8x32xf32, #tpu.memory_space<vmem>>, vector<8x32xf32>,
    return
  }
}

module attributes {stable_mosaic.version = 11 : i64} {
  func.func @_enc_stack_kernel(%arg0: i32, %arg1: memref<10x32xf32, #tpu.memory_space<vmem>>, %arg2: memref<1x32x96xbf16, #tpu.memory_space<vmem>>, %arg3: memref<1x1x96xf32, #tpu.memory_space<vmem>>, %arg4: memref<1x32x32xbf16, #tpu.memory_space<vmem>>, %arg5: memref<1x1x32xf32, #tpu.memory_space<vmem>>, %arg6: memref<1x2x1x32xf32, #tpu.memory_space<vmem>>, %arg7: memref<1x32x2048xbf16, #tpu.memory_space<vmem>>, %arg8: memref<1x1x2048xf32, #tpu.memory_space<vmem>>, %arg9: memref<1x2048x32xbf16, #tpu.memory_space<vmem>>, %arg10: memref<1x1x32xf32, #tpu.memory_space<vmem>>, %arg11: memref<1x2x1x32xf32, #tpu.memory_space<vmem>>, %arg12: memref<80x10xbf16, #tpu.memory_space<vmem>>, %arg13: memref<10x80xbf16, #tpu.memory_space<vmem>>, %arg14: memref<80x32xf32, #tpu.memory_space<vmem>>, %arg15: memref<80x10xf32, #tpu.memory_space<vmem>>, %arg16: memref<10x32xf32, #tpu.memory_space<vmem>>) attributes {dimension_semantics = [#tpu.dimension_semantics<arbitrary>], iteration_bounds = array<i64: 2>, scalar_prefetch = 0 : i64, scratch_operands = 0 : i64, tpu.core_type = #tpu.core_type<tc>, window_params = [{pipeline_mode = #tpu.pipeline_mode<synchronous>, transform_indices = @transform_0, window_bounds = array<i64: 10, 32>}, {transform_indices = @transform_1, window_bounds = array<i64: 1, 32, 96>}, {transform_indices = @transform_2, window_bounds = array<i64: 1, 1, 96>}, {transform_indices = @transform_3, window_bounds = array<i64: 1, 32, 32>}, {transform_indices = @transform_4, window_bounds = array<i64: 1, 1, 32>}, {transform_indices = @transform_5, window_bounds = array<i64: 1, 2, 1, 32>}, {transform_indices = @transform_6, window_bounds = array<i64: 1, 32, 2048>}, {transform_indices = @transform_7, window_bounds = array<i64: 1, 1, 2048>}, {transform_indices = @transform_8, window_bounds = array<i64: 1, 2048, 32>}, {transform_indices = @transform_9, window_bounds = array<i64: 1, 1, 32>}, {transform_indices = @transform_10, window_bounds = array<i64: 1, 2, 1, 32>}, {pipeline_mode = #tpu.pipeline_mode<synchronous>, transform_indices = @transform_11, window_bounds = array<i64: 80, 10>}, {pipeline_mode = #tpu.pipeline_mode<synchronous>, transform_indices = @transform_12, window_bounds = array<i64: 10, 80>}, {pipeline_mode = #tpu.pipeline_mode<synchronous>, transform_indices = @transform_13, window_bounds = array<i64: 80, 32>}, {pipeline_mode = #tpu.pipeline_mode<synchronous>, transform_indices = @transform_14, window_bounds = array<i64: 80, 10>}, {pipeline_mode = #tpu.pipeline_mode<synchronous>, transform_indices = @transform_15, window_bounds = array<i64: 10, 32>}]} {
    %c0_i32 = arith.constant 0 : i32
    %0 = arith.cmpi eq, %arg0, %c0_i32 : i32
    %1 = arith.extui %0 : i1 to i32
    %c0_i32_0 = arith.constant 0 : i32
    %2 = arith.cmpi ne, %1, %c0_i32_0 : i32
    scf.if %2 {
      %c0_72 = arith.constant 0 : index
      %c0_73 = arith.constant 0 : index
      %125 = vector.load %arg1[%c0_72, %c0_73] : memref<10x32xf32, #tpu.memory_space<vmem>>, vector<10x32xf32>
      %c0_74 = arith.constant 0 : index
      %c0_75 = arith.constant 0 : index
      %126 = vector.load %arg16[%c0_74, %c0_75] : memref<10x32xf32, #tpu.memory_space<vmem>>, vector<10x32xf32>
      tpu.vector_store %arg16[%c0_74, %c0_75], %125 {strides = array<i32>} : memref<10x32xf32, #tpu.memory_space<vmem>>, vector<10x32xf32>,
    } else {
    }
    %c0 = arith.constant 0 : index
    %c0_1 = arith.constant 0 : index
    %3 = vector.load %arg16[%c0, %c0_1] : memref<10x32xf32, #tpu.memory_space<vmem>>, vector<10x32xf32>
    %4 = arith.truncf %3 : vector<10x32xf32> to vector<10x32xbf16>
    %c0_2 = arith.constant 0 : index
    %c0_3 = arith.constant 0 : index
    %c0_4 = arith.constant 0 : index
    %5 = vector.load %arg2[%c0_2, %c0_3, %c0_4] : memref<1x32x96xbf16, #tpu.memory_space<vmem>>, vector<1x32x96xbf16>
    %6 = vector.shape_cast %5 : vector<1x32x96xbf16> to vector<32x96xbf16>
    %cst = arith.constant dense<0.000000e+00> : vector<10x96xf32>
    %7 = tpu.matmul %4, %6, %cst {dimension_numbers = #tpu.dot_dimension_numbers<[1], [0], [0], [1], [0, 0, 1, 1], [], []>} : vector<10x32xbf16>, vector<32x96xbf16>, vector<10x96xf32> -> vector<10x96xf32>
    %c0_5 = arith.constant 0 : index
    %c0_6 = arith.constant 0 : index
    %c0_7 = arith.constant 0 : index
    %8 = vector.load %arg3[%c0_5, %c0_6, %c0_7] : memref<1x1x96xf32, #tpu.memory_space<vmem>>, vector<1x1x96xf32>
    %9 = vector.shape_cast %8 : vector<1x1x96xf32> to vector<1x96xf32>
    %10 = vector.broadcast %9 : vector<1x96xf32> to vector<10x96xf32>
    %11 = arith.addf %7, %10 : vector<10x96xf32>
    %12 = vector.extract_strided_slice %11 {offsets = [0, 0], sizes = [10, 32], strides = [1, 1]} : vector<10x96xf32> to vector<10x32xf32>
    %13 = vector.extract_strided_slice %11 {offsets = [0, 32], sizes = [10, 32], strides = [1, 1]} : vector<10x96xf32> to vector<10x32xf32>
    %14 = vector.extract_strided_slice %11 {offsets = [0, 64], sizes = [10, 32], strides = [1, 1]} : vector<10x96xf32> to vector<10x32xf32>
    %c0_8 = arith.constant 0 : index
    %c0_9 = arith.constant 0 : index
    %15 = vector.load %arg12[%c0_8, %c0_9] : memref<80x10xbf16, #tpu.memory_space<vmem>>, vector<80x10xbf16>
    %c0_10 = arith.constant 0 : index
    %c0_11 = arith.constant 0 : index
    %16 = vector.load %arg13[%c0_10, %c0_11] : memref<10x80xbf16, #tpu.memory_space<vmem>>, vector<10x80xbf16>
    %c0_12 = arith.constant 0 : index
    %c0_13 = arith.constant 0 : index
    %17 = vector.load %arg14[%c0_12, %c0_13] : memref<80x32xf32, #tpu.memory_space<vmem>>, vector<80x32xf32>
    %c0_14 = arith.constant 0 : index
    %c0_15 = arith.constant 0 : index
    %18 = vector.load %arg15[%c0_14, %c0_15] : memref<80x10xf32, #tpu.memory_space<vmem>>, vector<80x10xf32>
    %19 = arith.truncf %13 : vector<10x32xf32> to vector<10x32xbf16>
    %20 = arith.truncf %14 : vector<10x32xf32> to vector<10x32xbf16>
    %21 = arith.truncf %12 : vector<10x32xf32> to vector<10x32xbf16>
    %cst_16 = arith.constant dense<0.000000e+00> : vector<80x32xf32>
    %22 = tpu.matmul %15, %21, %cst_16 {dimension_numbers = #tpu.dot_dimension_numbers<[1], [0], [0], [1], [0, 0, 1, 1], [], []>} : vector<80x10xbf16>, vector<10x32xbf16>, vector<80x32xf32> -> vector<80x32xf32>
    %23 = arith.mulf %22, %17 : vector<80x32xf32>
    %24 = arith.truncf %23 : vector<80x32xf32> to vector<80x32xbf16>
    %cst_17 = arith.constant dense<0.000000e+00> : vector<80x10xf32>
    %25 = tpu.matmul %24, %19, %cst_17 {dimension_numbers = #tpu.dot_dimension_numbers<[1], [1], [0], [0], [0, 0, 1, 0], [], []>} : vector<80x32xbf16>, vector<10x32xbf16>, vector<80x10xf32> -> vector<80x10xf32>
    %cst_18 = arith.constant 5.000000e-01 : f32
    %26 = vector.broadcast %cst_18 : f32 to vector<80x10xf32>
    %27 = arith.mulf %25, %26 : vector<80x10xf32>
    %28 = arith.addf %27, %18 : vector<80x10xf32>
    %cst_19 = arith.constant dense<0xFF800000> : vector<80xf32>
    %29 = vector.multi_reduction <maximumf>, %28, %cst_19 [1] : vector<80x10xf32> to vector<80xf32>
    %30 = vector.shape_cast %29 : vector<80xf32> to vector<80x1xf32>
    %31 = vector.broadcast %30 : vector<80x1xf32> to vector<80x10xf32>
    %32 = arith.subf %28, %31 : vector<80x10xf32>
    %33 = math.exp %32 : vector<80x10xf32>
    %cst_20 = arith.constant dense<0.000000e+00> : vector<80xf32>
    %34 = vector.multi_reduction <add>, %33, %cst_20 [1] : vector<80x10xf32> to vector<80xf32>
    %35 = vector.shape_cast %34 : vector<80xf32> to vector<80x1xf32>
    %36 = tpu.reciprocal %35 {approx = true} : vector<80x1xf32> -> vector<80x1xf32>
    %37 = vector.broadcast %36 : vector<80x1xf32> to vector<80x10xf32>
    %38 = arith.mulf %33, %37 : vector<80x10xf32>
    %39 = arith.truncf %38 : vector<80x10xf32> to vector<80x10xbf16>
    %cst_21 = arith.constant dense<0.000000e+00> : vector<80x32xf32>
    %40 = tpu.matmul %39, %20, %cst_21 {dimension_numbers = #tpu.dot_dimension_numbers<[1], [0], [0], [1], [0, 0, 1, 1], [], []>} : vector<80x10xbf16>, vector<10x32xbf16>, vector<80x32xf32> -> vector<80x32xf32>
    %41 = arith.mulf %40, %17 : vector<80x32xf32>
    %42 = arith.truncf %41 : vector<80x32xf32> to vector<80x32xbf16>
    %cst_22 = arith.constant dense<0.000000e+00> : vector<10x32xf32>
    %43 = tpu.matmul %16, %42, %cst_22 {dimension_numbers = #tpu.dot_dimension_numbers<[1], [0], [0], [1], [0, 0, 1, 1], [], []>} : vector<10x80xbf16>, vector<80x32xbf16>, vector<10x32xf32> -> vector<10x32xf32>
    %44 = arith.truncf %43 : vector<10x32xf32> to vector<10x32xbf16>
    %c0_23 = arith.constant 0 : index
    %c0_24 = arith.constant 0 : index
    %c0_25 = arith.constant 0 : index
    %45 = vector.load %arg4[%c0_23, %c0_24, %c0_25] : memref<1x32x32xbf16, #tpu.memory_space<vmem>>, vector<1x32x32xbf16>
    %46 = vector.shape_cast %45 : vector<1x32x32xbf16> to vector<32x32xbf16>
    %cst_26 = arith.constant dense<0.000000e+00> : vector<10x32xf32>
    %47 = tpu.matmul %44, %46, %cst_26 {dimension_numbers = #tpu.dot_dimension_numbers<[1], [0], [0], [1], [0, 0, 1, 1], [], []>} : vector<10x32xbf16>, vector<32x32xbf16>, vector<10x32xf32> -> vector<10x32xf32>
    %c0_27 = arith.constant 0 : index
    %c0_28 = arith.constant 0 : index
    %c0_29 = arith.constant 0 : index
    %48 = vector.load %arg5[%c0_27, %c0_28, %c0_29] : memref<1x1x32xf32, #tpu.memory_space<vmem>>, vector<1x1x32xf32>
    %49 = vector.shape_cast %48 : vector<1x1x32xf32> to vector<1x32xf32>
    %50 = vector.broadcast %49 : vector<1x32xf32> to vector<10x32xf32>
    %51 = arith.addf %47, %50 : vector<10x32xf32>
    %52 = arith.addf %3, %51 : vector<10x32xf32>
    %c0_30 = arith.constant 0 : index
    %c0_31 = arith.constant 0 : index
    %c0_32 = arith.constant 0 : index
    %c0_33 = arith.constant 0 : index
    %53 = vector.load %arg6[%c0_30, %c0_31, %c0_32, %c0_33] : memref<1x2x1x32xf32, #tpu.memory_space<vmem>>, vector<1x1x1x32xf32>
    %54 = vector.shape_cast %53 : vector<1x1x1x32xf32> to vector<1x32xf32>
    %c0_34 = arith.constant 0 : index
    %c1 = arith.constant 1 : index
    %c0_35 = arith.constant 0 : index
    %c0_36 = arith.constant 0 : index
    %55 = vector.load %arg6[%c0_34, %c1, %c0_35, %c0_36] : memref<1x2x1x32xf32, #tpu.memory_space<vmem>>, vector<1x1x1x32xf32>
    %56 = vector.shape_cast %55 : vector<1x1x1x32xf32> to vector<1x32xf32>
    %cst_37 = arith.constant dense<0.000000e+00> : vector<10xf32>
    %57 = vector.multi_reduction <add>, %52, %cst_37 [1] : vector<10x32xf32> to vector<10xf32>
    %58 = vector.shape_cast %57 : vector<10xf32> to vector<10x1xf32>
    %cst_38 = arith.constant 3.200000e+01 : f32
    %59 = vector.broadcast %cst_38 : f32 to vector<10x1xf32>
    %60 = arith.divf %58, %59 : vector<10x1xf32>
    %61 = vector.broadcast %60 : vector<10x1xf32> to vector<10x32xf32>
    %62 = arith.subf %52, %61 : vector<10x32xf32>
    %63 = arith.mulf %62, %62 : vector<10x32xf32>
    %cst_39 = arith.constant dense<0.000000e+00> : vector<10xf32>
    %64 = vector.multi_reduction <add>, %63, %cst_39 [1] : vector<10x32xf32> to vector<10xf32>
    %65 = vector.shape_cast %64 : vector<10xf32> to vector<10x1xf32>
    %cst_40 = arith.constant 3.200000e+01 : f32
    %66 = vector.broadcast %cst_40 : f32 to vector<10x1xf32>
    %67 = arith.divf %65, %66 : vector<10x1xf32>
    %68 = vector.broadcast %60 : vector<10x1xf32> to vector<10x32xf32>
    %69 = arith.subf %52, %68 : vector<10x32xf32>
    %cst_41 = arith.constant 9.99999974E-6 : f32
    %70 = vector.broadcast %cst_41 : f32 to vector<10x1xf32>
    %71 = arith.addf %67, %70 : vector<10x1xf32>
    %72 = math.rsqrt %71 : vector<10x1xf32>
    %73 = vector.broadcast %72 : vector<10x1xf32> to vector<10x32xf32>
    %74 = arith.mulf %69, %73 : vector<10x32xf32>
    %75 = vector.broadcast %54 : vector<1x32xf32> to vector<10x32xf32>
    %76 = arith.mulf %74, %75 : vector<10x32xf32>
    %77 = vector.broadcast %56 : vector<1x32xf32> to vector<10x32xf32>
    %78 = arith.addf %76, %77 : vector<10x32xf32>
    %79 = arith.truncf %78 : vector<10x32xf32> to vector<10x32xbf16>
    %c0_42 = arith.constant 0 : index
    %c0_43 = arith.constant 0 : index
    %c0_44 = arith.constant 0 : index
    %80 = vector.load %arg7[%c0_42, %c0_43, %c0_44] : memref<1x32x2048xbf16, #tpu.memory_space<vmem>>, vector<1x32x2048xbf16>
    %81 = vector.shape_cast %80 : vector<1x32x2048xbf16> to vector<32x2048xbf16>
    %cst_45 = arith.constant dense<0.000000e+00> : vector<10x2048xf32>
    %82 = tpu.matmul %79, %81, %cst_45 {dimension_numbers = #tpu.dot_dimension_numbers<[1], [0], [0], [1], [0, 0, 1, 1], [], []>} : vector<10x32xbf16>, vector<32x2048xbf16>, vector<10x2048xf32> -> vector<10x2048xf32>
    %c0_46 = arith.constant 0 : index
    %c0_47 = arith.constant 0 : index
    %c0_48 = arith.constant 0 : index
    %83 = vector.load %arg8[%c0_46, %c0_47, %c0_48] : memref<1x1x2048xf32, #tpu.memory_space<vmem>>, vector<1x1x2048xf32>
    %84 = vector.shape_cast %83 : vector<1x1x2048xf32> to vector<1x2048xf32>
    %85 = vector.broadcast %84 : vector<1x2048xf32> to vector<10x2048xf32>
    %86 = arith.addf %82, %85 : vector<10x2048xf32>
    %cst_49 = arith.constant 0.000000e+00 : f32
    %87 = vector.broadcast %cst_49 : f32 to vector<10x2048xf32>
    %88 = arith.maximumf %86, %87 : vector<10x2048xf32>
    %89 = arith.truncf %88 : vector<10x2048xf32> to vector<10x2048xbf16>
    %c0_50 = arith.constant 0 : index
    %c0_51 = arith.constant 0 : index
    %c0_52 = arith.constant 0 : index
    %90 = vector.load %arg9[%c0_50, %c0_51, %c0_52] : memref<1x2048x32xbf16, #tpu.memory_space<vmem>>, vector<1x2048x32xbf16>
    %91 = vector.shape_cast %90 : vector<1x2048x32xbf16> to vector<2048x32xbf16>
    %cst_53 = arith.constant dense<0.000000e+00> : vector<10x32xf32>
    %92 = tpu.matmul %89, %91, %cst_53 {dimension_numbers = #tpu.dot_dimension_numbers<[1], [0], [0], [1], [0, 0, 1, 1], [], []>} : vector<10x2048xbf16>, vector<2048x32xbf16>, vector<10x32xf32> -> vector<10x32xf32>
    %c0_54 = arith.constant 0 : index
    %c0_55 = arith.constant 0 : index
    %c0_56 = arith.constant 0 : index
    %93 = vector.load %arg10[%c0_54, %c0_55, %c0_56] : memref<1x1x32xf32, #tpu.memory_space<vmem>>, vector<1x1x32xf32>
    %94 = vector.shape_cast %93 : vector<1x1x32xf32> to vector<1x32xf32>
    %95 = vector.broadcast %94 : vector<1x32xf32> to vector<10x32xf32>
    %96 = arith.addf %92, %95 : vector<10x32xf32>
    %97 = arith.addf %78, %96 : vector<10x32xf32>
    %c0_57 = arith.constant 0 : index
    %c0_58 = arith.constant 0 : index
    %c0_59 = arith.constant 0 : index
    %c0_60 = arith.constant 0 : index
    %98 = vector.load %arg11[%c0_57, %c0_58, %c0_59, %c0_60] : memref<1x2x1x32xf32, #tpu.memory_space<vmem>>, vector<1x1x1x32xf32>
    %99 = vector.shape_cast %98 : vector<1x1x1x32xf32> to vector<1x32xf32>
    %c0_61 = arith.constant 0 : index
    %c1_62 = arith.constant 1 : index
    %c0_63 = arith.constant 0 : index
    %c0_64 = arith.constant 0 : index
    %100 = vector.load %arg11[%c0_61, %c1_62, %c0_63, %c0_64] : memref<1x2x1x32xf32, #tpu.memory_space<vmem>>, vector<1x1x1x32xf32>
    %101 = vector.shape_cast %100 : vector<1x1x1x32xf32> to vector<1x32xf32>
    %cst_65 = arith.constant dense<0.000000e+00> : vector<10xf32>
    %102 = vector.multi_reduction <add>, %97, %cst_65 [1] : vector<10x32xf32> to vector<10xf32>
    %103 = vector.shape_cast %102 : vector<10xf32> to vector<10x1xf32>
    %cst_66 = arith.constant 3.200000e+01 : f32
    %104 = vector.broadcast %cst_66 : f32 to vector<10x1xf32>
    %105 = arith.divf %103, %104 : vector<10x1xf32>
    %106 = vector.broadcast %105 : vector<10x1xf32> to vector<10x32xf32>
    %107 = arith.subf %97, %106 : vector<10x32xf32>
    %108 = arith.mulf %107, %107 : vector<10x32xf32>
    %cst_67 = arith.constant dense<0.000000e+00> : vector<10xf32>
    %109 = vector.multi_reduction <add>, %108, %cst_67 [1] : vector<10x32xf32> to vector<10xf32>
    %110 = vector.shape_cast %109 : vector<10xf32> to vector<10x1xf32>
    %cst_68 = arith.constant 3.200000e+01 : f32
    %111 = vector.broadcast %cst_68 : f32 to vector<10x1xf32>
    %112 = arith.divf %110, %111 : vector<10x1xf32>
    %113 = vector.broadcast %105 : vector<10x1xf32> to vector<10x32xf32>
    %114 = arith.subf %97, %113 : vector<10x32xf32>
    %cst_69 = arith.constant 9.99999974E-6 : f32
    %115 = vector.broadcast %cst_69 : f32 to vector<10x1xf32>
    %116 = arith.addf %112, %115 : vector<10x1xf32>
    %117 = math.rsqrt %116 : vector<10x1xf32>
    %118 = vector.broadcast %117 : vector<10x1xf32> to vector<10x32xf32>
    %119 = arith.mulf %114, %118 : vector<10x32xf32>
    %120 = vector.broadcast %99 : vector<1x32xf32> to vector<10x32xf32>
    %121 = arith.mulf %119, %120 : vector<10x32xf32>
    %122 = vector.broadcast %101 : vector<1x32xf32> to vector<10x32xf32>
    %123 = arith.addf %121, %122 : vector<10x32xf32>
    %c0_70 = arith.constant 0 : index
    %c0_71 = arith.constant 0 : index
    %124 = vector.load %arg16[%c0_70, %c0_71] : memref<10x32xf32, #tpu.memory_space<vmem>>, vector<10x32xf32>
    tpu.vector_store %arg16[%c0_70, %c0_71], %123 {strides = array<i32>} : memref<10x32xf32, #tpu.memory_space<vmem>>, vector<10x32xf32>,
    return
  }
  func.func @transform_0(%arg0: i32) -> (i32, i32) {
    %c0_i32 = arith.constant 0 : i32
    %c0_i32_0 = arith.constant 0 : i32
    %c0_i32_1 = arith.constant 0 : i32
    return %c0_i32, %c0_i32_0 : i32, i32
  }
  func.func @transform_1(%arg0: i32) -> (i32, i32, i32) {
    %c0_i32 = arith.constant 0 : i32
    %c0_i32_0 = arith.constant 0 : i32
    %c0_i32_1 = arith.constant 0 : i32
    return %arg0, %c0_i32, %c0_i32_0 : i32, i32, i32
  }
  func.func @transform_2(%arg0: i32) -> (i32, i32, i32) {
    %c0_i32 = arith.constant 0 : i32
    %c0_i32_0 = arith.constant 0 : i32
    %c0_i32_1 = arith.constant 0 : i32
    return %arg0, %c0_i32, %c0_i32_0 : i32, i32, i32
  }
  func.func @transform_3(%arg0: i32) -> (i32, i32, i32) {
    %c0_i32 = arith.constant 0 : i32
    %c0_i32_0 = arith.constant 0 : i32
    %c0_i32_1 = arith.constant 0 : i32
    return %arg0, %c0_i32, %c0_i32_0 : i32, i32, i32
  }
  func.func @transform_4(%arg0: i32) -> (i32, i32, i32) {
    %c0_i32 = arith.constant 0 : i32
    %c0_i32_0 = arith.constant 0 : i32
    %c0_i32_1 = arith.constant 0 : i32
    return %arg0, %c0_i32, %c0_i32_0 : i32, i32, i32
  }
  func.func @transform_5(%arg0: i32) -> (i32, i32, i32, i32) {
    %c0_i32 = arith.constant 0 : i32
    %c0_i32_0 = arith.constant 0 : i32
    %c0_i32_1 = arith.constant 0 : i32
    %c0_i32_2 = arith.constant 0 : i32
    return %arg0, %c0_i32, %c0_i32_0, %c0_i32_1 : i32, i32, i32, i32
  }
  func.func @transform_6(%arg0: i32) -> (i32, i32, i32) {
    %c0_i32 = arith.constant 0 : i32
    %c0_i32_0 = arith.constant 0 : i32
    %c0_i32_1 = arith.constant 0 : i32
    return %arg0, %c0_i32, %c0_i32_0 : i32, i32, i32
  }
  func.func @transform_7(%arg0: i32) -> (i32, i32, i32) {
    %c0_i32 = arith.constant 0 : i32
    %c0_i32_0 = arith.constant 0 : i32
    %c0_i32_1 = arith.constant 0 : i32
    return %arg0, %c0_i32, %c0_i32_0 : i32, i32, i32
  }
  func.func @transform_8(%arg0: i32) -> (i32, i32, i32) {
    %c0_i32 = arith.constant 0 : i32
    %c0_i32_0 = arith.constant 0 : i32
    %c0_i32_1 = arith.constant 0 : i32
    return %arg0, %c0_i32, %c0_i32_0 : i32, i32, i32
  }
  func.func @transform_9(%arg0: i32) -> (i32, i32, i32) {
    %c0_i32 = arith.constant 0 : i32
    %c0_i32_0 = arith.constant 0 : i32
    %c0_i32_1 = arith.constant 0 : i32
    return %arg0, %c0_i32, %c0_i32_0 : i32, i32, i32
  }
  func.func @transform_10(%arg0: i32) -> (i32, i32, i32, i32) {
    %c0_i32 = arith.constant 0 : i32
    %c0_i32_0 = arith.constant 0 : i32
    %c0_i32_1 = arith.constant 0 : i32
    %c0_i32_2 = arith.constant 0 : i32
    return %arg0, %c0_i32, %c0_i32_0, %c0_i32_1 : i32, i32, i32, i32
  }
  func.func @transform_11(%arg0: i32) -> (i32, i32) {
    %c0_i32 = arith.constant 0 : i32
    %c0_i32_0 = arith.constant 0 : i32
    %c0_i32_1 = arith.constant 0 : i32
    return %c0_i32, %c0_i32_0 : i32, i32
  }
  func.func @transform_12(%arg0: i32) -> (i32, i32) {
    %c0_i32 = arith.constant 0 : i32
    %c0_i32_0 = arith.constant 0 : i32
    %c0_i32_1 = arith.constant 0 : i32
    return %c0_i32, %c0_i32_0 : i32, i32
  }
  func.func @transform_13(%arg0: i32) -> (i32, i32) {
    %c0_i32 = arith.constant 0 : i32
    %c0_i32_0 = arith.constant 0 : i32
    %c0_i32_1 = arith.constant 0 : i32
    return %c0_i32, %c0_i32_0 : i32, i32
  }
  func.func @transform_14(%arg0: i32) -> (i32, i32) {
    %c0_i32 = arith.constant 0 : i32
    %c0_i32_0 = arith.constant 0 : i32
    %c0_i32_1 = arith.constant 0 : i32
    return %c0_i32, %c0_i32_0 : i32, i32
  }
  func.func @transform_15(%arg0: i32) -> (i32, i32) {
    %c0_i32 = arith.constant 0 : i32
    %c0_i32_0 = arith.constant 0 : i32
    %c0_i32_1 = arith.constant 0 : i32
    return %c0_i32, %c0_i32_0 : i32, i32
  }
}

module attributes {stable_mosaic.version = 11 : i64} {
  func.func @_dec_stack_kernel(%arg0: i32, %arg1: memref<2x16xf32, #tpu.memory_space<vmem>>, %arg2: memref<16x32xbf16, #tpu.memory_space<vmem>>, %arg3: memref<1x32xf32, #tpu.memory_space<vmem>>, %arg4: memref<8x2xbf16, #tpu.memory_space<vmem>>, %arg5: memref<8x32xf32, #tpu.memory_space<vmem>>, %arg6: memref<1x32x96xbf16, #tpu.memory_space<vmem>>, %arg7: memref<1x1x96xf32, #tpu.memory_space<vmem>>, %arg8: memref<1x32x32xbf16, #tpu.memory_space<vmem>>, %arg9: memref<1x1x32xf32, #tpu.memory_space<vmem>>, %arg10: memref<1x2x1x32xf32, #tpu.memory_space<vmem>>, %arg11: memref<1x32x32xbf16, #tpu.memory_space<vmem>>, %arg12: memref<1x1x32xf32, #tpu.memory_space<vmem>>, %arg13: memref<1x32x64xbf16, #tpu.memory_space<vmem>>, %arg14: memref<1x1x64xf32, #tpu.memory_space<vmem>>, %arg15: memref<1x32x32xbf16, #tpu.memory_space<vmem>>, %arg16: memref<1x1x32xf32, #tpu.memory_space<vmem>>, %arg17: memref<1x2x1x32xf32, #tpu.memory_space<vmem>>, %arg18: memref<1x32x2048xbf16, #tpu.memory_space<vmem>>, %arg19: memref<1x1x2048xf32, #tpu.memory_space<vmem>>, %arg20: memref<1x2048x32xbf16, #tpu.memory_space<vmem>>, %arg21: memref<1x1x32xf32, #tpu.memory_space<vmem>>, %arg22: memref<1x2x1x32xf32, #tpu.memory_space<vmem>>, %arg23: memref<64x8xbf16, #tpu.memory_space<vmem>>, %arg24: memref<8x64xbf16, #tpu.memory_space<vmem>>, %arg25: memref<64x32xf32, #tpu.memory_space<vmem>>, %arg26: memref<64x8xf32, #tpu.memory_space<vmem>>, %arg27: memref<64x8xf32, #tpu.memory_space<vmem>>, %arg28: memref<8x32xf32, #tpu.memory_space<vmem>>) attributes {dimension_semantics = [#tpu.dimension_semantics<arbitrary>], iteration_bounds = array<i64: 2>, scalar_prefetch = 0 : i64, scratch_operands = 0 : i64, tpu.core_type = #tpu.core_type<tc>, window_params = [{pipeline_mode = #tpu.pipeline_mode<synchronous>, transform_indices = @transform_0, window_bounds = array<i64: 2, 16>}, {pipeline_mode = #tpu.pipeline_mode<synchronous>, transform_indices = @transform_1, window_bounds = array<i64: 16, 32>}, {pipeline_mode = #tpu.pipeline_mode<synchronous>, transform_indices = @transform_2, window_bounds = array<i64: 1, 32>}, {pipeline_mode = #tpu.pipeline_mode<synchronous>, transform_indices = @transform_3, window_bounds = array<i64: 8, 2>}, {pipeline_mode = #tpu.pipeline_mode<synchronous>, transform_indices = @transform_4, window_bounds = array<i64: 8, 32>}, {transform_indices = @transform_5, window_bounds = array<i64: 1, 32, 96>}, {transform_indices = @transform_6, window_bounds = array<i64: 1, 1, 96>}, {transform_indices = @transform_7, window_bounds = array<i64: 1, 32, 32>}, {transform_indices = @transform_8, window_bounds = array<i64: 1, 1, 32>}, {transform_indices = @transform_9, window_bounds = array<i64: 1, 2, 1, 32>}, {transform_indices = @transform_10, window_bounds = array<i64: 1, 32, 32>}, {transform_indices = @transform_11, window_bounds = array<i64: 1, 1, 32>}, {transform_indices = @transform_12, window_bounds = array<i64: 1, 32, 64>}, {transform_indices = @transform_13, window_bounds = array<i64: 1, 1, 64>}, {transform_indices = @transform_14, window_bounds = array<i64: 1, 32, 32>}, {transform_indices = @transform_15, window_bounds = array<i64: 1, 1, 32>}, {transform_indices = @transform_16, window_bounds = array<i64: 1, 2, 1, 32>}, {transform_indices = @transform_17, window_bounds = array<i64: 1, 32, 2048>}, {transform_indices = @transform_18, window_bounds = array<i64: 1, 1, 2048>}, {transform_indices = @transform_19, window_bounds = array<i64: 1, 2048, 32>}, {transform_indices = @transform_20, window_bounds = array<i64: 1, 1, 32>}, {transform_indices = @transform_21, window_bounds = array<i64: 1, 2, 1, 32>}, {pipeline_mode = #tpu.pipeline_mode<synchronous>, transform_indices = @transform_22, window_bounds = array<i64: 64, 8>}, {pipeline_mode = #tpu.pipeline_mode<synchronous>, transform_indices = @transform_23, window_bounds = array<i64: 8, 64>}, {pipeline_mode = #tpu.pipeline_mode<synchronous>, transform_indices = @transform_24, window_bounds = array<i64: 64, 32>}, {pipeline_mode = #tpu.pipeline_mode<synchronous>, transform_indices = @transform_25, window_bounds = array<i64: 64, 8>}, {pipeline_mode = #tpu.pipeline_mode<synchronous>, transform_indices = @transform_26, window_bounds = array<i64: 64, 8>}, {pipeline_mode = #tpu.pipeline_mode<synchronous>, transform_indices = @transform_27, window_bounds = array<i64: 8, 32>}]} {
    %c0_i32 = arith.constant 0 : i32
    %0 = arith.cmpi eq, %arg0, %c0_i32 : i32
    %1 = arith.extui %0 : i1 to i32
    %c0_i32_0 = arith.constant 0 : i32
    %2 = arith.cmpi ne, %1, %c0_i32_0 : i32
    scf.if %2 {
      %c0_123 = arith.constant 0 : index
      %c0_124 = arith.constant 0 : index
      %208 = vector.load %arg1[%c0_123, %c0_124] : memref<2x16xf32, #tpu.memory_space<vmem>>, vector<2x16xf32>
      %209 = arith.truncf %208 : vector<2x16xf32> to vector<2x16xbf16>
      %c0_125 = arith.constant 0 : index
      %c0_126 = arith.constant 0 : index
      %210 = vector.load %arg2[%c0_125, %c0_126] : memref<16x32xbf16, #tpu.memory_space<vmem>>, vector<16x32xbf16>
      %cst_127 = arith.constant dense<0.000000e+00> : vector<2x32xf32>
      %211 = tpu.matmul %209, %210, %cst_127 {dimension_numbers = #tpu.dot_dimension_numbers<[1], [0], [0], [1], [0, 0, 1, 1], [], []>} : vector<2x16xbf16>, vector<16x32xbf16>, vector<2x32xf32> -> vector<2x32xf32>
      %c0_128 = arith.constant 0 : index
      %c0_129 = arith.constant 0 : index
      %212 = vector.load %arg3[%c0_128, %c0_129] : memref<1x32xf32, #tpu.memory_space<vmem>>, vector<1x32xf32>
      %213 = vector.broadcast %212 : vector<1x32xf32> to vector<2x32xf32>
      %214 = arith.addf %211, %213 : vector<2x32xf32>
      %cst_130 = arith.constant 0.000000e+00 : f32
      %215 = vector.broadcast %cst_130 : f32 to vector<2x32xf32>
      %216 = arith.cmpf oge, %214, %215 : vector<2x32xf32>
      %cst_131 = arith.constant 0.00999999977 : f32
      %217 = vector.broadcast %cst_131 : f32 to vector<2x32xf32>
      %218 = arith.mulf %217, %214 : vector<2x32xf32>
      %219 = arith.select %216, %214, %218 : vector<2x32xi1>, vector<2x32xf32>
      %c0_132 = arith.constant 0 : index
      %c0_133 = arith.constant 0 : index
      %220 = vector.load %arg4[%c0_132, %c0_133] : memref<8x2xbf16, #tpu.memory_space<vmem>>, vector<8x2xbf16>
      %221 = arith.truncf %219 : vector<2x32xf32> to vector<2x32xbf16>
      %cst_134 = arith.constant dense<0.000000e+00> : vector<8x32xf32>
      %222 = tpu.matmul %220, %221, %cst_134 {dimension_numbers = #tpu.dot_dimension_numbers<[1], [0], [0], [1], [0, 0, 1, 1], [], []>} : vector<8x2xbf16>, vector<2x32xbf16>, vector<8x32xf32> -> vector<8x32xf32>
      %c0_135 = arith.constant 0 : index
      %c0_136 = arith.constant 0 : index
      %223 = vector.load %arg28[%c0_135, %c0_136] : memref<8x32xf32, #tpu.memory_space<vmem>>, vector<8x32xf32>
      tpu.vector_store %arg28[%c0_135, %c0_136], %222 {strides = array<i32>} : memref<8x32xf32, #tpu.memory_space<vmem>>, vector<8x32xf32>,
    } else {
    }
    %c0 = arith.constant 0 : index
    %c0_1 = arith.constant 0 : index
    %3 = vector.load %arg28[%c0, %c0_1] : memref<8x32xf32, #tpu.memory_space<vmem>>, vector<8x32xf32>
    %4 = arith.truncf %3 : vector<8x32xf32> to vector<8x32xbf16>
    %c0_2 = arith.constant 0 : index
    %c0_3 = arith.constant 0 : index
    %c0_4 = arith.constant 0 : index
    %5 = vector.load %arg6[%c0_2, %c0_3, %c0_4] : memref<1x32x96xbf16, #tpu.memory_space<vmem>>, vector<1x32x96xbf16>
    %6 = vector.shape_cast %5 : vector<1x32x96xbf16> to vector<32x96xbf16>
    %cst = arith.constant dense<0.000000e+00> : vector<8x96xf32>
    %7 = tpu.matmul %4, %6, %cst {dimension_numbers = #tpu.dot_dimension_numbers<[1], [0], [0], [1], [0, 0, 1, 1], [], []>} : vector<8x32xbf16>, vector<32x96xbf16>, vector<8x96xf32> -> vector<8x96xf32>
    %c0_5 = arith.constant 0 : index
    %c0_6 = arith.constant 0 : index
    %c0_7 = arith.constant 0 : index
    %8 = vector.load %arg7[%c0_5, %c0_6, %c0_7] : memref<1x1x96xf32, #tpu.memory_space<vmem>>, vector<1x1x96xf32>
    %9 = vector.shape_cast %8 : vector<1x1x96xf32> to vector<1x96xf32>
    %10 = vector.broadcast %9 : vector<1x96xf32> to vector<8x96xf32>
    %11 = arith.addf %7, %10 : vector<8x96xf32>
    %12 = vector.extract_strided_slice %11 {offsets = [0, 0], sizes = [8, 32], strides = [1, 1]} : vector<8x96xf32> to vector<8x32xf32>
    %13 = vector.extract_strided_slice %11 {offsets = [0, 32], sizes = [8, 32], strides = [1, 1]} : vector<8x96xf32> to vector<8x32xf32>
    %14 = vector.extract_strided_slice %11 {offsets = [0, 64], sizes = [8, 32], strides = [1, 1]} : vector<8x96xf32> to vector<8x32xf32>
    %c0_8 = arith.constant 0 : index
    %c0_9 = arith.constant 0 : index
    %15 = vector.load %arg23[%c0_8, %c0_9] : memref<64x8xbf16, #tpu.memory_space<vmem>>, vector<64x8xbf16>
    %c0_10 = arith.constant 0 : index
    %c0_11 = arith.constant 0 : index
    %16 = vector.load %arg24[%c0_10, %c0_11] : memref<8x64xbf16, #tpu.memory_space<vmem>>, vector<8x64xbf16>
    %c0_12 = arith.constant 0 : index
    %c0_13 = arith.constant 0 : index
    %17 = vector.load %arg25[%c0_12, %c0_13] : memref<64x32xf32, #tpu.memory_space<vmem>>, vector<64x32xf32>
    %c0_14 = arith.constant 0 : index
    %c0_15 = arith.constant 0 : index
    %18 = vector.load %arg26[%c0_14, %c0_15] : memref<64x8xf32, #tpu.memory_space<vmem>>, vector<64x8xf32>
    %19 = arith.truncf %13 : vector<8x32xf32> to vector<8x32xbf16>
    %20 = arith.truncf %14 : vector<8x32xf32> to vector<8x32xbf16>
    %21 = arith.truncf %12 : vector<8x32xf32> to vector<8x32xbf16>
    %cst_16 = arith.constant dense<0.000000e+00> : vector<64x32xf32>
    %22 = tpu.matmul %15, %21, %cst_16 {dimension_numbers = #tpu.dot_dimension_numbers<[1], [0], [0], [1], [0, 0, 1, 1], [], []>} : vector<64x8xbf16>, vector<8x32xbf16>, vector<64x32xf32> -> vector<64x32xf32>
    %23 = arith.mulf %22, %17 : vector<64x32xf32>
    %24 = arith.truncf %23 : vector<64x32xf32> to vector<64x32xbf16>
    %cst_17 = arith.constant dense<0.000000e+00> : vector<64x8xf32>
    %25 = tpu.matmul %24, %19, %cst_17 {dimension_numbers = #tpu.dot_dimension_numbers<[1], [1], [0], [0], [0, 0, 1, 0], [], []>} : vector<64x32xbf16>, vector<8x32xbf16>, vector<64x8xf32> -> vector<64x8xf32>
    %cst_18 = arith.constant 5.000000e-01 : f32
    %26 = vector.broadcast %cst_18 : f32 to vector<64x8xf32>
    %27 = arith.mulf %25, %26 : vector<64x8xf32>
    %28 = arith.addf %27, %18 : vector<64x8xf32>
    %cst_19 = arith.constant dense<0xFF800000> : vector<64xf32>
    %29 = vector.multi_reduction <maximumf>, %28, %cst_19 [1] : vector<64x8xf32> to vector<64xf32>
    %30 = vector.shape_cast %29 : vector<64xf32> to vector<64x1xf32>
    %31 = vector.broadcast %30 : vector<64x1xf32> to vector<64x8xf32>
    %32 = arith.subf %28, %31 : vector<64x8xf32>
    %33 = math.exp %32 : vector<64x8xf32>
    %cst_20 = arith.constant dense<0.000000e+00> : vector<64xf32>
    %34 = vector.multi_reduction <add>, %33, %cst_20 [1] : vector<64x8xf32> to vector<64xf32>
    %35 = vector.shape_cast %34 : vector<64xf32> to vector<64x1xf32>
    %36 = tpu.reciprocal %35 {approx = true} : vector<64x1xf32> -> vector<64x1xf32>
    %37 = vector.broadcast %36 : vector<64x1xf32> to vector<64x8xf32>
    %38 = arith.mulf %33, %37 : vector<64x8xf32>
    %39 = arith.truncf %38 : vector<64x8xf32> to vector<64x8xbf16>
    %cst_21 = arith.constant dense<0.000000e+00> : vector<64x32xf32>
    %40 = tpu.matmul %39, %20, %cst_21 {dimension_numbers = #tpu.dot_dimension_numbers<[1], [0], [0], [1], [0, 0, 1, 1], [], []>} : vector<64x8xbf16>, vector<8x32xbf16>, vector<64x32xf32> -> vector<64x32xf32>
    %41 = arith.mulf %40, %17 : vector<64x32xf32>
    %42 = arith.truncf %41 : vector<64x32xf32> to vector<64x32xbf16>
    %cst_22 = arith.constant dense<0.000000e+00> : vector<8x32xf32>
    %43 = tpu.matmul %16, %42, %cst_22 {dimension_numbers = #tpu.dot_dimension_numbers<[1], [0], [0], [1], [0, 0, 1, 1], [], []>} : vector<8x64xbf16>, vector<64x32xbf16>, vector<8x32xf32> -> vector<8x32xf32>
    %44 = arith.truncf %43 : vector<8x32xf32> to vector<8x32xbf16>
    %c0_23 = arith.constant 0 : index
    %c0_24 = arith.constant 0 : index
    %c0_25 = arith.constant 0 : index
    %45 = vector.load %arg8[%c0_23, %c0_24, %c0_25] : memref<1x32x32xbf16, #tpu.memory_space<vmem>>, vector<1x32x32xbf16>
    %46 = vector.shape_cast %45 : vector<1x32x32xbf16> to vector<32x32xbf16>
    %cst_26 = arith.constant dense<0.000000e+00> : vector<8x32xf32>
    %47 = tpu.matmul %44, %46, %cst_26 {dimension_numbers = #tpu.dot_dimension_numbers<[1], [0], [0], [1], [0, 0, 1, 1], [], []>} : vector<8x32xbf16>, vector<32x32xbf16>, vector<8x32xf32> -> vector<8x32xf32>
    %c0_27 = arith.constant 0 : index
    %c0_28 = arith.constant 0 : index
    %c0_29 = arith.constant 0 : index
    %48 = vector.load %arg9[%c0_27, %c0_28, %c0_29] : memref<1x1x32xf32, #tpu.memory_space<vmem>>, vector<1x1x32xf32>
    %49 = vector.shape_cast %48 : vector<1x1x32xf32> to vector<1x32xf32>
    %50 = vector.broadcast %49 : vector<1x32xf32> to vector<8x32xf32>
    %51 = arith.addf %47, %50 : vector<8x32xf32>
    %52 = arith.addf %3, %51 : vector<8x32xf32>
    %c0_30 = arith.constant 0 : index
    %c0_31 = arith.constant 0 : index
    %c0_32 = arith.constant 0 : index
    %c0_33 = arith.constant 0 : index
    %53 = vector.load %arg10[%c0_30, %c0_31, %c0_32, %c0_33] : memref<1x2x1x32xf32, #tpu.memory_space<vmem>>, vector<1x1x1x32xf32>
    %54 = vector.shape_cast %53 : vector<1x1x1x32xf32> to vector<1x32xf32>
    %c0_34 = arith.constant 0 : index
    %c1 = arith.constant 1 : index
    %c0_35 = arith.constant 0 : index
    %c0_36 = arith.constant 0 : index
    %55 = vector.load %arg10[%c0_34, %c1, %c0_35, %c0_36] : memref<1x2x1x32xf32, #tpu.memory_space<vmem>>, vector<1x1x1x32xf32>
    %56 = vector.shape_cast %55 : vector<1x1x1x32xf32> to vector<1x32xf32>
    %cst_37 = arith.constant dense<0.000000e+00> : vector<8xf32>
    %57 = vector.multi_reduction <add>, %52, %cst_37 [1] : vector<8x32xf32> to vector<8xf32>
    %58 = vector.shape_cast %57 : vector<8xf32> to vector<8x1xf32>
    %cst_38 = arith.constant 3.200000e+01 : f32
    %59 = vector.broadcast %cst_38 : f32 to vector<8x1xf32>
    %60 = arith.divf %58, %59 : vector<8x1xf32>
    %61 = vector.broadcast %60 : vector<8x1xf32> to vector<8x32xf32>
    %62 = arith.subf %52, %61 : vector<8x32xf32>
    %63 = arith.mulf %62, %62 : vector<8x32xf32>
    %cst_39 = arith.constant dense<0.000000e+00> : vector<8xf32>
    %64 = vector.multi_reduction <add>, %63, %cst_39 [1] : vector<8x32xf32> to vector<8xf32>
    %65 = vector.shape_cast %64 : vector<8xf32> to vector<8x1xf32>
    %cst_40 = arith.constant 3.200000e+01 : f32
    %66 = vector.broadcast %cst_40 : f32 to vector<8x1xf32>
    %67 = arith.divf %65, %66 : vector<8x1xf32>
    %68 = vector.broadcast %60 : vector<8x1xf32> to vector<8x32xf32>
    %69 = arith.subf %52, %68 : vector<8x32xf32>
    %cst_41 = arith.constant 9.99999974E-6 : f32
    %70 = vector.broadcast %cst_41 : f32 to vector<8x1xf32>
    %71 = arith.addf %67, %70 : vector<8x1xf32>
    %72 = math.rsqrt %71 : vector<8x1xf32>
    %73 = vector.broadcast %72 : vector<8x1xf32> to vector<8x32xf32>
    %74 = arith.mulf %69, %73 : vector<8x32xf32>
    %75 = vector.broadcast %54 : vector<1x32xf32> to vector<8x32xf32>
    %76 = arith.mulf %74, %75 : vector<8x32xf32>
    %77 = vector.broadcast %56 : vector<1x32xf32> to vector<8x32xf32>
    %78 = arith.addf %76, %77 : vector<8x32xf32>
    %c0_42 = arith.constant 0 : index
    %c0_43 = arith.constant 0 : index
    %79 = vector.load %arg5[%c0_42, %c0_43] : memref<8x32xf32, #tpu.memory_space<vmem>>, vector<8x32xf32>
    %80 = arith.truncf %79 : vector<8x32xf32> to vector<8x32xbf16>
    %81 = arith.truncf %78 : vector<8x32xf32> to vector<8x32xbf16>
    %c0_44 = arith.constant 0 : index
    %c0_45 = arith.constant 0 : index
    %c0_46 = arith.constant 0 : index
    %82 = vector.load %arg11[%c0_44, %c0_45, %c0_46] : memref<1x32x32xbf16, #tpu.memory_space<vmem>>, vector<1x32x32xbf16>
    %83 = vector.shape_cast %82 : vector<1x32x32xbf16> to vector<32x32xbf16>
    %cst_47 = arith.constant dense<0.000000e+00> : vector<8x32xf32>
    %84 = tpu.matmul %81, %83, %cst_47 {dimension_numbers = #tpu.dot_dimension_numbers<[1], [0], [0], [1], [0, 0, 1, 1], [], []>} : vector<8x32xbf16>, vector<32x32xbf16>, vector<8x32xf32> -> vector<8x32xf32>
    %c0_48 = arith.constant 0 : index
    %c0_49 = arith.constant 0 : index
    %c0_50 = arith.constant 0 : index
    %85 = vector.load %arg12[%c0_48, %c0_49, %c0_50] : memref<1x1x32xf32, #tpu.memory_space<vmem>>, vector<1x1x32xf32>
    %86 = vector.shape_cast %85 : vector<1x1x32xf32> to vector<1x32xf32>
    %87 = vector.broadcast %86 : vector<1x32xf32> to vector<8x32xf32>
    %88 = arith.addf %84, %87 : vector<8x32xf32>
    %c0_51 = arith.constant 0 : index
    %c0_52 = arith.constant 0 : index
    %c0_53 = arith.constant 0 : index
    %89 = vector.load %arg13[%c0_51, %c0_52, %c0_53] : memref<1x32x64xbf16, #tpu.memory_space<vmem>>, vector<1x32x64xbf16>
    %90 = vector.shape_cast %89 : vector<1x32x64xbf16> to vector<32x64xbf16>
    %cst_54 = arith.constant dense<0.000000e+00> : vector<8x64xf32>
    %91 = tpu.matmul %80, %90, %cst_54 {dimension_numbers = #tpu.dot_dimension_numbers<[1], [0], [0], [1], [0, 0, 1, 1], [], []>} : vector<8x32xbf16>, vector<32x64xbf16>, vector<8x64xf32> -> vector<8x64xf32>
    %c0_55 = arith.constant 0 : index
    %c0_56 = arith.constant 0 : index
    %c0_57 = arith.constant 0 : index
    %92 = vector.load %arg14[%c0_55, %c0_56, %c0_57] : memref<1x1x64xf32, #tpu.memory_space<vmem>>, vector<1x1x64xf32>
    %93 = vector.shape_cast %92 : vector<1x1x64xf32> to vector<1x64xf32>
    %94 = vector.broadcast %93 : vector<1x64xf32> to vector<8x64xf32>
    %95 = arith.addf %91, %94 : vector<8x64xf32>
    %96 = vector.extract_strided_slice %95 {offsets = [0, 0], sizes = [8, 32], strides = [1, 1]} : vector<8x64xf32> to vector<8x32xf32>
    %97 = vector.extract_strided_slice %95 {offsets = [0, 32], sizes = [8, 32], strides = [1, 1]} : vector<8x64xf32> to vector<8x32xf32>
    %c0_58 = arith.constant 0 : index
    %c0_59 = arith.constant 0 : index
    %98 = vector.load %arg23[%c0_58, %c0_59] : memref<64x8xbf16, #tpu.memory_space<vmem>>, vector<64x8xbf16>
    %c0_60 = arith.constant 0 : index
    %c0_61 = arith.constant 0 : index
    %99 = vector.load %arg24[%c0_60, %c0_61] : memref<8x64xbf16, #tpu.memory_space<vmem>>, vector<8x64xbf16>
    %c0_62 = arith.constant 0 : index
    %c0_63 = arith.constant 0 : index
    %100 = vector.load %arg25[%c0_62, %c0_63] : memref<64x32xf32, #tpu.memory_space<vmem>>, vector<64x32xf32>
    %c0_64 = arith.constant 0 : index
    %c0_65 = arith.constant 0 : index
    %101 = vector.load %arg27[%c0_64, %c0_65] : memref<64x8xf32, #tpu.memory_space<vmem>>, vector<64x8xf32>
    %102 = arith.truncf %96 : vector<8x32xf32> to vector<8x32xbf16>
    %103 = arith.truncf %97 : vector<8x32xf32> to vector<8x32xbf16>
    %104 = arith.truncf %88 : vector<8x32xf32> to vector<8x32xbf16>
    %cst_66 = arith.constant dense<0.000000e+00> : vector<64x32xf32>
    %105 = tpu.matmul %98, %104, %cst_66 {dimension_numbers = #tpu.dot_dimension_numbers<[1], [0], [0], [1], [0, 0, 1, 1], [], []>} : vector<64x8xbf16>, vector<8x32xbf16>, vector<64x32xf32> -> vector<64x32xf32>
    %106 = arith.mulf %105, %100 : vector<64x32xf32>
    %107 = arith.truncf %106 : vector<64x32xf32> to vector<64x32xbf16>
    %cst_67 = arith.constant dense<0.000000e+00> : vector<64x8xf32>
    %108 = tpu.matmul %107, %102, %cst_67 {dimension_numbers = #tpu.dot_dimension_numbers<[1], [1], [0], [0], [0, 0, 1, 0], [], []>} : vector<64x32xbf16>, vector<8x32xbf16>, vector<64x8xf32> -> vector<64x8xf32>
    %cst_68 = arith.constant 5.000000e-01 : f32
    %109 = vector.broadcast %cst_68 : f32 to vector<64x8xf32>
    %110 = arith.mulf %108, %109 : vector<64x8xf32>
    %111 = arith.addf %110, %101 : vector<64x8xf32>
    %cst_69 = arith.constant dense<0xFF800000> : vector<64xf32>
    %112 = vector.multi_reduction <maximumf>, %111, %cst_69 [1] : vector<64x8xf32> to vector<64xf32>
    %113 = vector.shape_cast %112 : vector<64xf32> to vector<64x1xf32>
    %114 = vector.broadcast %113 : vector<64x1xf32> to vector<64x8xf32>
    %115 = arith.subf %111, %114 : vector<64x8xf32>
    %116 = math.exp %115 : vector<64x8xf32>
    %cst_70 = arith.constant dense<0.000000e+00> : vector<64xf32>
    %117 = vector.multi_reduction <add>, %116, %cst_70 [1] : vector<64x8xf32> to vector<64xf32>
    %118 = vector.shape_cast %117 : vector<64xf32> to vector<64x1xf32>
    %119 = tpu.reciprocal %118 {approx = true} : vector<64x1xf32> -> vector<64x1xf32>
    %120 = vector.broadcast %119 : vector<64x1xf32> to vector<64x8xf32>
    %121 = arith.mulf %116, %120 : vector<64x8xf32>
    %122 = arith.truncf %121 : vector<64x8xf32> to vector<64x8xbf16>
    %cst_71 = arith.constant dense<0.000000e+00> : vector<64x32xf32>
    %123 = tpu.matmul %122, %103, %cst_71 {dimension_numbers = #tpu.dot_dimension_numbers<[1], [0], [0], [1], [0, 0, 1, 1], [], []>} : vector<64x8xbf16>, vector<8x32xbf16>, vector<64x32xf32> -> vector<64x32xf32>
    %124 = arith.mulf %123, %100 : vector<64x32xf32>
    %125 = arith.truncf %124 : vector<64x32xf32> to vector<64x32xbf16>
    %cst_72 = arith.constant dense<0.000000e+00> : vector<8x32xf32>
    %126 = tpu.matmul %99, %125, %cst_72 {dimension_numbers = #tpu.dot_dimension_numbers<[1], [0], [0], [1], [0, 0, 1, 1], [], []>} : vector<8x64xbf16>, vector<64x32xbf16>, vector<8x32xf32> -> vector<8x32xf32>
    %127 = arith.truncf %126 : vector<8x32xf32> to vector<8x32xbf16>
    %c0_73 = arith.constant 0 : index
    %c0_74 = arith.constant 0 : index
    %c0_75 = arith.constant 0 : index
    %128 = vector.load %arg15[%c0_73, %c0_74, %c0_75] : memref<1x32x32xbf16, #tpu.memory_space<vmem>>, vector<1x32x32xbf16>
    %129 = vector.shape_cast %128 : vector<1x32x32xbf16> to vector<32x32xbf16>
    %cst_76 = arith.constant dense<0.000000e+00> : vector<8x32xf32>
    %130 = tpu.matmul %127, %129, %cst_76 {dimension_numbers = #tpu.dot_dimension_numbers<[1], [0], [0], [1], [0, 0, 1, 1], [], []>} : vector<8x32xbf16>, vector<32x32xbf16>, vector<8x32xf32> -> vector<8x32xf32>
    %c0_77 = arith.constant 0 : index
    %c0_78 = arith.constant 0 : index
    %c0_79 = arith.constant 0 : index
    %131 = vector.load %arg16[%c0_77, %c0_78, %c0_79] : memref<1x1x32xf32, #tpu.memory_space<vmem>>, vector<1x1x32xf32>
    %132 = vector.shape_cast %131 : vector<1x1x32xf32> to vector<1x32xf32>
    %133 = vector.broadcast %132 : vector<1x32xf32> to vector<8x32xf32>
    %134 = arith.addf %130, %133 : vector<8x32xf32>
    %135 = arith.addf %78, %134 : vector<8x32xf32>
    %c0_80 = arith.constant 0 : index
    %c0_81 = arith.constant 0 : index
    %c0_82 = arith.constant 0 : index
    %c0_83 = arith.constant 0 : index
    %136 = vector.load %arg17[%c0_80, %c0_81, %c0_82, %c0_83] : memref<1x2x1x32xf32, #tpu.memory_space<vmem>>, vector<1x1x1x32xf32>
    %137 = vector.shape_cast %136 : vector<1x1x1x32xf32> to vector<1x32xf32>
    %c0_84 = arith.constant 0 : index
    %c1_85 = arith.constant 1 : index
    %c0_86 = arith.constant 0 : index
    %c0_87 = arith.constant 0 : index
    %138 = vector.load %arg17[%c0_84, %c1_85, %c0_86, %c0_87] : memref<1x2x1x32xf32, #tpu.memory_space<vmem>>, vector<1x1x1x32xf32>
    %139 = vector.shape_cast %138 : vector<1x1x1x32xf32> to vector<1x32xf32>
    %cst_88 = arith.constant dense<0.000000e+00> : vector<8xf32>
    %140 = vector.multi_reduction <add>, %135, %cst_88 [1] : vector<8x32xf32> to vector<8xf32>
    %141 = vector.shape_cast %140 : vector<8xf32> to vector<8x1xf32>
    %cst_89 = arith.constant 3.200000e+01 : f32
    %142 = vector.broadcast %cst_89 : f32 to vector<8x1xf32>
    %143 = arith.divf %141, %142 : vector<8x1xf32>
    %144 = vector.broadcast %143 : vector<8x1xf32> to vector<8x32xf32>
    %145 = arith.subf %135, %144 : vector<8x32xf32>
    %146 = arith.mulf %145, %145 : vector<8x32xf32>
    %cst_90 = arith.constant dense<0.000000e+00> : vector<8xf32>
    %147 = vector.multi_reduction <add>, %146, %cst_90 [1] : vector<8x32xf32> to vector<8xf32>
    %148 = vector.shape_cast %147 : vector<8xf32> to vector<8x1xf32>
    %cst_91 = arith.constant 3.200000e+01 : f32
    %149 = vector.broadcast %cst_91 : f32 to vector<8x1xf32>
    %150 = arith.divf %148, %149 : vector<8x1xf32>
    %151 = vector.broadcast %143 : vector<8x1xf32> to vector<8x32xf32>
    %152 = arith.subf %135, %151 : vector<8x32xf32>
    %cst_92 = arith.constant 9.99999974E-6 : f32
    %153 = vector.broadcast %cst_92 : f32 to vector<8x1xf32>
    %154 = arith.addf %150, %153 : vector<8x1xf32>
    %155 = math.rsqrt %154 : vector<8x1xf32>
    %156 = vector.broadcast %155 : vector<8x1xf32> to vector<8x32xf32>
    %157 = arith.mulf %152, %156 : vector<8x32xf32>
    %158 = vector.broadcast %137 : vector<1x32xf32> to vector<8x32xf32>
    %159 = arith.mulf %157, %158 : vector<8x32xf32>
    %160 = vector.broadcast %139 : vector<1x32xf32> to vector<8x32xf32>
    %161 = arith.addf %159, %160 : vector<8x32xf32>
    %162 = arith.truncf %161 : vector<8x32xf32> to vector<8x32xbf16>
    %c0_93 = arith.constant 0 : index
    %c0_94 = arith.constant 0 : index
    %c0_95 = arith.constant 0 : index
    %163 = vector.load %arg18[%c0_93, %c0_94, %c0_95] : memref<1x32x2048xbf16, #tpu.memory_space<vmem>>, vector<1x32x2048xbf16>
    %164 = vector.shape_cast %163 : vector<1x32x2048xbf16> to vector<32x2048xbf16>
    %cst_96 = arith.constant dense<0.000000e+00> : vector<8x2048xf32>
    %165 = tpu.matmul %162, %164, %cst_96 {dimension_numbers = #tpu.dot_dimension_numbers<[1], [0], [0], [1], [0, 0, 1, 1], [], []>} : vector<8x32xbf16>, vector<32x2048xbf16>, vector<8x2048xf32> -> vector<8x2048xf32>
    %c0_97 = arith.constant 0 : index
    %c0_98 = arith.constant 0 : index
    %c0_99 = arith.constant 0 : index
    %166 = vector.load %arg19[%c0_97, %c0_98, %c0_99] : memref<1x1x2048xf32, #tpu.memory_space<vmem>>, vector<1x1x2048xf32>
    %167 = vector.shape_cast %166 : vector<1x1x2048xf32> to vector<1x2048xf32>
    %168 = vector.broadcast %167 : vector<1x2048xf32> to vector<8x2048xf32>
    %169 = arith.addf %165, %168 : vector<8x2048xf32>
    %cst_100 = arith.constant 0.000000e+00 : f32
    %170 = vector.broadcast %cst_100 : f32 to vector<8x2048xf32>
    %171 = arith.maximumf %169, %170 : vector<8x2048xf32>
    %172 = arith.truncf %171 : vector<8x2048xf32> to vector<8x2048xbf16>
    %c0_101 = arith.constant 0 : index
    %c0_102 = arith.constant 0 : index
    %c0_103 = arith.constant 0 : index
    %173 = vector.load %arg20[%c0_101, %c0_102, %c0_103] : memref<1x2048x32xbf16, #tpu.memory_space<vmem>>, vector<1x2048x32xbf16>
    %174 = vector.shape_cast %173 : vector<1x2048x32xbf16> to vector<2048x32xbf16>
    %cst_104 = arith.constant dense<0.000000e+00> : vector<8x32xf32>
    %175 = tpu.matmul %172, %174, %cst_104 {dimension_numbers = #tpu.dot_dimension_numbers<[1], [0], [0], [1], [0, 0, 1, 1], [], []>} : vector<8x2048xbf16>, vector<2048x32xbf16>, vector<8x32xf32> -> vector<8x32xf32>
    %c0_105 = arith.constant 0 : index
    %c0_106 = arith.constant 0 : index
    %c0_107 = arith.constant 0 : index
    %176 = vector.load %arg21[%c0_105, %c0_106, %c0_107] : memref<1x1x32xf32, #tpu.memory_space<vmem>>, vector<1x1x32xf32>
    %177 = vector.shape_cast %176 : vector<1x1x32xf32> to vector<1x32xf32>
    %178 = vector.broadcast %177 : vector<1x32xf32> to vector<8x32xf32>
    %179 = arith.addf %175, %178 : vector<8x32xf32>
    %180 = arith.addf %161, %179 : vector<8x32xf32>
    %c0_108 = arith.constant 0 : index
    %c0_109 = arith.constant 0 : index
    %c0_110 = arith.constant 0 : index
    %c0_111 = arith.constant 0 : index
    %181 = vector.load %arg22[%c0_108, %c0_109, %c0_110, %c0_111] : memref<1x2x1x32xf32, #tpu.memory_space<vmem>>, vector<1x1x1x32xf32>
    %182 = vector.shape_cast %181 : vector<1x1x1x32xf32> to vector<1x32xf32>
    %c0_112 = arith.constant 0 : index
    %c1_113 = arith.constant 1 : index
    %c0_114 = arith.constant 0 : index
    %c0_115 = arith.constant 0 : index
    %183 = vector.load %arg22[%c0_112, %c1_113, %c0_114, %c0_115] : memref<1x2x1x32xf32, #tpu.memory_space<vmem>>, vector<1x1x1x32xf32>
    %184 = vector.shape_cast %183 : vector<1x1x1x32xf32> to vector<1x32xf32>
    %cst_116 = arith.constant dense<0.000000e+00> : vector<8xf32>
    %185 = vector.multi_reduction <add>, %180, %cst_116 [1] : vector<8x32xf32> to vector<8xf32>
    %186 = vector.shape_cast %185 : vector<8xf32> to vector<8x1xf32>
    %cst_117 = arith.constant 3.200000e+01 : f32
    %187 = vector.broadcast %cst_117 : f32 to vector<8x1xf32>
    %188 = arith.divf %186, %187 : vector<8x1xf32>
    %189 = vector.broadcast %188 : vector<8x1xf32> to vector<8x32xf32>
    %190 = arith.subf %180, %189 : vector<8x32xf32>
    %191 = arith.mulf %190, %190 : vector<8x32xf32>
    %cst_118 = arith.constant dense<0.000000e+00> : vector<8xf32>
    %192 = vector.multi_reduction <add>, %191, %cst_118 [1] : vector<8x32xf32> to vector<8xf32>
    %193 = vector.shape_cast %192 : vector<8xf32> to vector<8x1xf32>
    %cst_119 = arith.constant 3.200000e+01 : f32
    %194 = vector.broadcast %cst_119 : f32 to vector<8x1xf32>
    %195 = arith.divf %193, %194 : vector<8x1xf32>
    %196 = vector.broadcast %188 : vector<8x1xf32> to vector<8x32xf32>
    %197 = arith.subf %180, %196 : vector<8x32xf32>
    %cst_120 = arith.constant 9.99999974E-6 : f32
    %198 = vector.broadcast %cst_120 : f32 to vector<8x1xf32>
    %199 = arith.addf %195, %198 : vector<8x1xf32>
    %200 = math.rsqrt %199 : vector<8x1xf32>
    %201 = vector.broadcast %200 : vector<8x1xf32> to vector<8x32xf32>
    %202 = arith.mulf %197, %201 : vector<8x32xf32>
    %203 = vector.broadcast %182 : vector<1x32xf32> to vector<8x32xf32>
    %204 = arith.mulf %202, %203 : vector<8x32xf32>
    %205 = vector.broadcast %184 : vector<1x32xf32> to vector<8x32xf32>
    %206 = arith.addf %204, %205 : vector<8x32xf32>
    %c0_121 = arith.constant 0 : index
    %c0_122 = arith.constant 0 : index
    %207 = vector.load %arg28[%c0_121, %c0_122] : memref<8x32xf32, #tpu.memory_space<vmem>>, vector<8x32xf32>
    tpu.vector_store %arg28[%c0_121, %c0_122], %206 {strides = array<i32>} : memref<8x32xf32, #tpu.memory_space<vmem>>, vector<8x32xf32>,
    return
  }
  func.func @transform_0(%arg0: i32) -> (i32, i32) {
    %c0_i32 = arith.constant 0 : i32
    %c0_i32_0 = arith.constant 0 : i32
    %c0_i32_1 = arith.constant 0 : i32
    return %c0_i32, %c0_i32_0 : i32, i32
  }
  func.func @transform_1(%arg0: i32) -> (i32, i32) {
    %c0_i32 = arith.constant 0 : i32
    %c0_i32_0 = arith.constant 0 : i32
    %c0_i32_1 = arith.constant 0 : i32
    return %c0_i32, %c0_i32_0 : i32, i32
  }
  func.func @transform_2(%arg0: i32) -> (i32, i32) {
    %c0_i32 = arith.constant 0 : i32
    %c0_i32_0 = arith.constant 0 : i32
    %c0_i32_1 = arith.constant 0 : i32
    return %c0_i32, %c0_i32_0 : i32, i32
  }
  func.func @transform_3(%arg0: i32) -> (i32, i32) {
    %c0_i32 = arith.constant 0 : i32
    %c0_i32_0 = arith.constant 0 : i32
    %c0_i32_1 = arith.constant 0 : i32
    return %c0_i32, %c0_i32_0 : i32, i32
  }
  func.func @transform_4(%arg0: i32) -> (i32, i32) {
    %c0_i32 = arith.constant 0 : i32
    %c0_i32_0 = arith.constant 0 : i32
    %c0_i32_1 = arith.constant 0 : i32
    return %c0_i32, %c0_i32_0 : i32, i32
  }
  func.func @transform_5(%arg0: i32) -> (i32, i32, i32) {
    %c0_i32 = arith.constant 0 : i32
    %c0_i32_0 = arith.constant 0 : i32
    %c0_i32_1 = arith.constant 0 : i32
    return %arg0, %c0_i32, %c0_i32_0 : i32, i32, i32
  }
  func.func @transform_6(%arg0: i32) -> (i32, i32, i32) {
    %c0_i32 = arith.constant 0 : i32
    %c0_i32_0 = arith.constant 0 : i32
    %c0_i32_1 = arith.constant 0 : i32
    return %arg0, %c0_i32, %c0_i32_0 : i32, i32, i32
  }
  func.func @transform_7(%arg0: i32) -> (i32, i32, i32) {
    %c0_i32 = arith.constant 0 : i32
    %c0_i32_0 = arith.constant 0 : i32
    %c0_i32_1 = arith.constant 0 : i32
    return %arg0, %c0_i32, %c0_i32_0 : i32, i32, i32
  }
  func.func @transform_8(%arg0: i32) -> (i32, i32, i32) {
    %c0_i32 = arith.constant 0 : i32
    %c0_i32_0 = arith.constant 0 : i32
    %c0_i32_1 = arith.constant 0 : i32
    return %arg0, %c0_i32, %c0_i32_0 : i32, i32, i32
  }
  func.func @transform_9(%arg0: i32) -> (i32, i32, i32, i32) {
    %c0_i32 = arith.constant 0 : i32
    %c0_i32_0 = arith.constant 0 : i32
    %c0_i32_1 = arith.constant 0 : i32
    %c0_i32_2 = arith.constant 0 : i32
    return %arg0, %c0_i32, %c0_i32_0, %c0_i32_1 : i32, i32, i32, i32
  }
  func.func @transform_10(%arg0: i32) -> (i32, i32, i32) {
    %c0_i32 = arith.constant 0 : i32
    %c0_i32_0 = arith.constant 0 : i32
    %c0_i32_1 = arith.constant 0 : i32
    return %arg0, %c0_i32, %c0_i32_0 : i32, i32, i32
  }
  func.func @transform_11(%arg0: i32) -> (i32, i32, i32) {
    %c0_i32 = arith.constant 0 : i32
    %c0_i32_0 = arith.constant 0 : i32
    %c0_i32_1 = arith.constant 0 : i32
    return %arg0, %c0_i32, %c0_i32_0 : i32, i32, i32
  }
  func.func @transform_12(%arg0: i32) -> (i32, i32, i32) {
    %c0_i32 = arith.constant 0 : i32
    %c0_i32_0 = arith.constant 0 : i32
    %c0_i32_1 = arith.constant 0 : i32
    return %arg0, %c0_i32, %c0_i32_0 : i32, i32, i32
  }
  func.func @transform_13(%arg0: i32) -> (i32, i32, i32) {
    %c0_i32 = arith.constant 0 : i32
    %c0_i32_0 = arith.constant 0 : i32
    %c0_i32_1 = arith.constant 0 : i32
    return %arg0, %c0_i32, %c0_i32_0 : i32, i32, i32
  }
  func.func @transform_14(%arg0: i32) -> (i32, i32, i32) {
    %c0_i32 = arith.constant 0 : i32
    %c0_i32_0 = arith.constant 0 : i32
    %c0_i32_1 = arith.constant 0 : i32
    return %arg0, %c0_i32, %c0_i32_0 : i32, i32, i32
  }
  func.func @transform_15(%arg0: i32) -> (i32, i32, i32) {
    %c0_i32 = arith.constant 0 : i32
    %c0_i32_0 = arith.constant 0 : i32
    %c0_i32_1 = arith.constant 0 : i32
    return %arg0, %c0_i32, %c0_i32_0 : i32, i32, i32
  }
  func.func @transform_16(%arg0: i32) -> (i32, i32, i32, i32) {
    %c0_i32 = arith.constant 0 : i32
    %c0_i32_0 = arith.constant 0 : i32
    %c0_i32_1 = arith.constant 0 : i32
    %c0_i32_2 = arith.constant 0 : i32
    return %arg0, %c0_i32, %c0_i32_0, %c0_i32_1 : i32, i32, i32, i32
  }
  func.func @transform_17(%arg0: i32) -> (i32, i32, i32) {
    %c0_i32 = arith.constant 0 : i32
    %c0_i32_0 = arith.constant 0 : i32
    %c0_i32_1 = arith.constant 0 : i32
    return %arg0, %c0_i32, %c0_i32_0 : i32, i32, i32
  }
  func.func @transform_18(%arg0: i32) -> (i32, i32, i32) {
    %c0_i32 = arith.constant 0 : i32
    %c0_i32_0 = arith.constant 0 : i32
    %c0_i32_1 = arith.constant 0 : i32
    return %arg0, %c0_i32, %c0_i32_0 : i32, i32, i32
  }
  func.func @transform_19(%arg0: i32) -> (i32, i32, i32) {
    %c0_i32 = arith.constant 0 : i32
    %c0_i32_0 = arith.constant 0 : i32
    %c0_i32_1 = arith.constant 0 : i32
    return %arg0, %c0_i32, %c0_i32_0 : i32, i32, i32
  }
  func.func @transform_20(%arg0: i32) -> (i32, i32, i32) {
    %c0_i32 = arith.constant 0 : i32
    %c0_i32_0 = arith.constant 0 : i32
    %c0_i32_1 = arith.constant 0 : i32
    return %arg0, %c0_i32, %c0_i32_0 : i32, i32, i32
  }
  func.func @transform_21(%arg0: i32) -> (i32, i32, i32, i32) {
    %c0_i32 = arith.constant 0 : i32
    %c0_i32_0 = arith.constant 0 : i32
    %c0_i32_1 = arith.constant 0 : i32
    %c0_i32_2 = arith.constant 0 : i32
    return %arg0, %c0_i32, %c0_i32_0, %c0_i32_1 : i32, i32, i32, i32
  }
  func.func @transform_22(%arg0: i32) -> (i32, i32) {
    %c0_i32 = arith.constant 0 : i32
    %c0_i32_0 = arith.constant 0 : i32
    %c0_i32_1 = arith.constant 0 : i32
    return %c0_i32, %c0_i32_0 : i32, i32
  }
  func.func @transform_23(%arg0: i32) -> (i32, i32) {
    %c0_i32 = arith.constant 0 : i32
    %c0_i32_0 = arith.constant 0 : i32
    %c0_i32_1 = arith.constant 0 : i32
    return %c0_i32, %c0_i32_0 : i32, i32
  }
  func.func @transform_24(%arg0: i32) -> (i32, i32) {
    %c0_i32 = arith.constant 0 : i32
    %c0_i32_0 = arith.constant 0 : i32
    %c0_i32_1 = arith.constant 0 : i32
    return %c0_i32, %c0_i32_0 : i32, i32
  }
  func.func @transform_25(%arg0: i32) -> (i32, i32) {
    %c0_i32 = arith.constant 0 : i32
    %c0_i32_0 = arith.constant 0 : i32
    %c0_i32_1 = arith.constant 0 : i32
    return %c0_i32, %c0_i32_0 : i32, i32
  }
  func.func @transform_26(%arg0: i32) -> (i32, i32) {
    %c0_i32 = arith.constant 0 : i32
    %c0_i32_0 = arith.constant 0 : i32
    %c0_i32_1 = arith.constant 0 : i32
    return %c0_i32, %c0_i32_0 : i32, i32
  }
  func.func @transform_27(%arg0: i32) -> (i32, i32) {
    %c0_i32 = arith.constant 0 : i32
    %c0_i32_0 = arith.constant 0 : i32
    %c0_i32_1 = arith.constant 0 : i32
    return %c0_i32, %c0_i32_0 : i32, i32
  }
}

module attributes {stable_mosaic.version = 11 : i64} {
  func.func @_linear_kernel(%arg0: memref<8x32xbf16, #tpu.memory_space<vmem>>, %arg1: memref<32x512xbf16, #tpu.memory_space<vmem>>, %arg2: memref<1x512xf32, #tpu.memory_space<vmem>>, %arg3: memref<8x512xf32, #tpu.memory_space<vmem>>) attributes {dimension_semantics = [], scalar_prefetch = 0 : i64, scratch_operands = 0 : i64, tpu.core_type = #tpu.core_type<tc>} {
    %c0 = arith.constant 0 : index
    %c0_0 = arith.constant 0 : index
    %0 = vector.load %arg0[%c0, %c0_0] : memref<8x32xbf16, #tpu.memory_space<vmem>>, vector<8x32xbf16>
    %c0_1 = arith.constant 0 : index
    %c0_2 = arith.constant 0 : index
    %1 = vector.load %arg1[%c0_1, %c0_2] : memref<32x512xbf16, #tpu.memory_space<vmem>>, vector<32x512xbf16>
    %cst = arith.constant dense<0.000000e+00> : vector<8x512xf32>
    %2 = tpu.matmul %0, %1, %cst {dimension_numbers = #tpu.dot_dimension_numbers<[1], [0], [0], [1], [0, 0, 1, 1], [], []>} : vector<8x32xbf16>, vector<32x512xbf16>, vector<8x512xf32> -> vector<8x512xf32>
    %c0_3 = arith.constant 0 : index
    %c0_4 = arith.constant 0 : index
    %3 = vector.load %arg2[%c0_3, %c0_4] : memref<1x512xf32, #tpu.memory_space<vmem>>, vector<1x512xf32>
    %4 = vector.broadcast %3 : vector<1x512xf32> to vector<8x512xf32>
    %5 = arith.addf %2, %4 : vector<8x512xf32>
    %cst_5 = arith.constant 0.000000e+00 : f32
    %6 = vector.broadcast %cst_5 : f32 to vector<8x512xf32>
    %7 = arith.cmpf oge, %5, %6 : vector<8x512xf32>
    %cst_6 = arith.constant 0.00999999977 : f32
    %8 = vector.broadcast %cst_6 : f32 to vector<8x512xf32>
    %9 = arith.mulf %8, %5 : vector<8x512xf32>
    %10 = arith.select %7, %5, %9 : vector<8x512xi1>, vector<8x512xf32>
    %c0_7 = arith.constant 0 : index
    %c0_8 = arith.constant 0 : index
    %11 = vector.load %arg3[%c0_7, %c0_8] : memref<8x512xf32, #tpu.memory_space<vmem>>, vector<8x512xf32>
    tpu.vector_store %arg3[%c0_7, %c0_8], %10 {strides = array<i32>} : memref<8x512xf32, #tpu.memory_space<vmem>>, vector<8x512xf32>,
    return
  }
}

module attributes {stable_mosaic.version = 11 : i64} {
  func.func @_conv_gemm_kernel(%arg0: i32, %arg1: memref<8x1536xbf16, #tpu.memory_space<vmem>>, %arg2: memref<1536x256xbf16, #tpu.memory_space<vmem>>, %arg3: memref<8x1xf32, #tpu.memory_space<vmem>>, %arg4: memref<8x256xbf16, #tpu.memory_space<vmem>>) attributes {dimension_semantics = [#tpu.dimension_semantics<parallel>], iteration_bounds = array<i64: 2>, scalar_prefetch = 0 : i64, scratch_operands = 0 : i64, tpu.core_type = #tpu.core_type<tc>, window_params = [{pipeline_mode = #tpu.pipeline_mode<synchronous>, transform_indices = @transform_0, window_bounds = array<i64: 8, 1536>}, {transform_indices = @transform_1, window_bounds = array<i64: 1536, 256>}, {pipeline_mode = #tpu.pipeline_mode<synchronous>, transform_indices = @transform_2, window_bounds = array<i64: 8, 1>}, {transform_indices = @transform_3, window_bounds = array<i64: 8, 256>}]} {
    %c0 = arith.constant 0 : index
    %c0_0 = arith.constant 0 : index
    %0 = vector.load %arg1[%c0, %c0_0] : memref<8x1536xbf16, #tpu.memory_space<vmem>>, vector<8x1536xbf16>
    %c0_1 = arith.constant 0 : index
    %c0_2 = arith.constant 0 : index
    %1 = vector.load %arg2[%c0_1, %c0_2] : memref<1536x256xbf16, #tpu.memory_space<vmem>>, vector<1536x256xbf16>
    %cst = arith.constant dense<0.000000e+00> : vector<8x256xf32>
    %2 = tpu.matmul %0, %1, %cst {dimension_numbers = #tpu.dot_dimension_numbers<[1], [0], [0], [1], [0, 0, 1, 1], [], []>} : vector<8x1536xbf16>, vector<1536x256xbf16>, vector<8x256xf32> -> vector<8x256xf32>
    %c0_3 = arith.constant 0 : index
    %c0_4 = arith.constant 0 : index
    %3 = vector.load %arg3[%c0_3, %c0_4] : memref<8x1xf32, #tpu.memory_space<vmem>>, vector<8x1xf32>
    %4 = vector.broadcast %3 : vector<8x1xf32> to vector<8x256xf32>
    %5 = arith.addf %2, %4 : vector<8x256xf32>
    %cst_5 = arith.constant 0.000000e+00 : f32
    %6 = vector.broadcast %cst_5 : f32 to vector<8x256xf32>
    %7 = arith.cmpf oge, %5, %6 : vector<8x256xf32>
    %cst_6 = arith.constant 0.00999999977 : f32
    %8 = vector.broadcast %cst_6 : f32 to vector<8x256xf32>
    %9 = arith.mulf %8, %5 : vector<8x256xf32>
    %10 = arith.select %7, %5, %9 : vector<8x256xi1>, vector<8x256xf32>
    %11 = arith.truncf %10 : vector<8x256xf32> to vector<8x256xbf16>
    %c0_7 = arith.constant 0 : index
    %c0_8 = arith.constant 0 : index
    %12 = vector.load %arg4[%c0_7, %c0_8] : memref<8x256xbf16, #tpu.memory_space<vmem>>, vector<8x256xbf16>
    tpu.vector_store %arg4[%c0_7, %c0_8], %11 {strides = array<i32>} : memref<8x256xbf16, #tpu.memory_space<vmem>>, vector<8x256xbf16>,
    return
  }
  func.func @transform_0(%arg0: i32) -> (i32, i32) {
    %c0_i32 = arith.constant 0 : i32
    %c0_i32_0 = arith.constant 0 : i32
    %c0_i32_1 = arith.constant 0 : i32
    return %c0_i32, %c0_i32_0 : i32, i32
  }
  func.func @transform_1(%arg0: i32) -> (i32, i32) {
    %c0_i32 = arith.constant 0 : i32
    %c0_i32_0 = arith.constant 0 : i32
    return %c0_i32, %arg0 : i32, i32
  }
  func.func @transform_2(%arg0: i32) -> (i32, i32) {
    %c0_i32 = arith.constant 0 : i32
    %c0_i32_0 = arith.constant 0 : i32
    %c0_i32_1 = arith.constant 0 : i32
    return %c0_i32, %c0_i32_0 : i32, i32
  }
  func.func @transform_3(%arg0: i32) -> (i32, i32) {
    %c0_i32 = arith.constant 0 : i32
    %c0_i32_0 = arith.constant 0 : i32
    return %c0_i32, %arg0 : i32, i32
  }
}

module attributes {stable_mosaic.version = 11 : i64} {
  func.func @_conv_gemm_kernel(%arg0: i32, %arg1: memref<3x384xbf16, #tpu.memory_space<vmem>>, %arg2: memref<384x1024xbf16, #tpu.memory_space<vmem>>, %arg3: memref<3x1xf32, #tpu.memory_space<vmem>>, %arg4: memref<3x1024xf32, #tpu.memory_space<vmem>>) attributes {dimension_semantics = [#tpu.dimension_semantics<parallel>], iteration_bounds = array<i64: 2>, scalar_prefetch = 0 : i64, scratch_operands = 0 : i64, tpu.core_type = #tpu.core_type<tc>, window_params = [{pipeline_mode = #tpu.pipeline_mode<synchronous>, transform_indices = @transform_0, window_bounds = array<i64: 3, 384>}, {transform_indices = @transform_1, window_bounds = array<i64: 384, 1024>}, {pipeline_mode = #tpu.pipeline_mode<synchronous>, transform_indices = @transform_2, window_bounds = array<i64: 3, 1>}, {transform_indices = @transform_3, window_bounds = array<i64: 3, 1024>}]} {
    %c0 = arith.constant 0 : index
    %c0_0 = arith.constant 0 : index
    %0 = vector.load %arg1[%c0, %c0_0] : memref<3x384xbf16, #tpu.memory_space<vmem>>, vector<3x384xbf16>
    %c0_1 = arith.constant 0 : index
    %c0_2 = arith.constant 0 : index
    %1 = vector.load %arg2[%c0_1, %c0_2] : memref<384x1024xbf16, #tpu.memory_space<vmem>>, vector<384x1024xbf16>
    %cst = arith.constant dense<0.000000e+00> : vector<3x1024xf32>
    %2 = tpu.matmul %0, %1, %cst {dimension_numbers = #tpu.dot_dimension_numbers<[1], [0], [0], [1], [0, 0, 1, 1], [], []>} : vector<3x384xbf16>, vector<384x1024xbf16>, vector<3x1024xf32> -> vector<3x1024xf32>
    %c0_3 = arith.constant 0 : index
    %c0_4 = arith.constant 0 : index
    %3 = vector.load %arg3[%c0_3, %c0_4] : memref<3x1xf32, #tpu.memory_space<vmem>>, vector<3x1xf32>
    %4 = vector.broadcast %3 : vector<3x1xf32> to vector<3x1024xf32>
    %5 = arith.addf %2, %4 : vector<3x1024xf32>
    %cst_5 = arith.constant 0.000000e+00 : f32
    %6 = vector.broadcast %cst_5 : f32 to vector<3x1024xf32>
    %7 = arith.subf %6, %5 : vector<3x1024xf32>
    %8 = math.exp %7 : vector<3x1024xf32>
    %cst_6 = arith.constant 1.000000e+00 : f32
    %9 = vector.broadcast %cst_6 : f32 to vector<3x1024xf32>
    %10 = arith.addf %9, %8 : vector<3x1024xf32>
    %cst_7 = arith.constant 1.000000e+00 : f32
    %11 = vector.broadcast %cst_7 : f32 to vector<3x1024xf32>
    %12 = arith.divf %11, %10 : vector<3x1024xf32>
    %c0_8 = arith.constant 0 : index
    %c0_9 = arith.constant 0 : index
    %13 = vector.load %arg4[%c0_8, %c0_9] : memref<3x1024xf32, #tpu.memory_space<vmem>>, vector<3x1024xf32>
    tpu.vector_store %arg4[%c0_8, %c0_9], %12 {strides = array<i32>} : memref<3x1024xf32, #tpu.memory_space<vmem>>, vector<3x1024xf32>,
    return
  }
  func.func @transform_0(%arg0: i32) -> (i32, i32) {
    %c0_i32 = arith.constant 0 : i32
    %c0_i32_0 = arith.constant 0 : i32
    %c0_i32_1 = arith.constant 0 : i32
    return %c0_i32, %c0_i32_0 : i32, i32
  }
  func.func @transform_1(%arg0: i32) -> (i32, i32) {
    %c0_i32 = arith.constant 0 : i32
    %c0_i32_0 = arith.constant 0 : i32
    return %c0_i32, %arg0 : i32, i32
  }
  func.func @transform_2(%arg0: i32) -> (i32, i32) {
    %c0_i32 = arith.constant 0 : i32
    %c0_i32_0 = arith.constant 0 : i32
    %c0_i32_1 = arith.constant 0 : i32
    return %c0_i32, %c0_i32_0 : i32, i32
  }
  func.func @transform_3(%arg0: i32) -> (i32, i32) {
    %c0_i32 = arith.constant 0 : i32
    %c0_i32_0 = arith.constant 0 : i32
    return %c0_i32, %arg0 : i32, i32
  }
}

</mosaic_0001>

<bundles_post_ra>
// kernel: videobert_forward.8
= control target key start
LH: loop header
LB: loop body
LE: loop exit
PB: predicated region body
PF: predicated region fallthrough
CT: control target
= control target key end

     0   :  { %s657_s12 = smov 0   ;;  %s659_s13 = smov 0   ;;  %s755_s0 = inlined_call_operand.vmem [shape: bf16[8,144], index: 0, kind: input, shape index: {}]   ;;  %s756_s1 = inlined_call_operand.vmem [shape: bf16[144,512], index: 1, kind: input, shape index: {}]   ;;  %s757_s2 = inlined_call_operand.vmem [shape: f32[8,1], index: 2, kind: input, shape index: {}]   ;;  %s758_s3 = inlined_call_operand.vmem [shape: bf16[8,512], index: 3, kind: output, shape index: {}]  }
   0x1   :  { %s661_s14 = smov 0  }
   0x2 LB: > { %s520_s15 = sadd.s32 4294967295, %s634_s14   ;;  %s674_s16 = sadd.s32 1, %s634_s14   ;;  %s634_s14 = sphi %s661_s14, %s761_s14   ;;  %s630_s13 = sphi %s659_s13, %s760_s13   ;;  %s626_s12 = sphi %s657_s12, %s759_s12  }
   0x3   : > { %s38_s17 = ssub.s32 %s634_s14, %s674_s16  ;;  %s41_s18 = sadd.s32 1, %s630_s13 }
   0x4   : > { %p39_p0 = scmp.eq.s32.totalorder %s38_s17, 0  ;;  %p48_p1 = scmp.ne.s32.totalorder %s630_s13, %s626_s12 }
   0x5   : > { %p49_p2 = scmp.eq.s32.totalorder %s634_s14, 0  ;;  %p523_p4 = scmp.ge.s32.totalorder %s634_s14, 2 }
   0x6   : > { %s683_s19 = scalar_select %p39_p0, %s630_s13, %s41_s18  }
   0x7   : > { %p50_p3 = por %p49_p2, %p48_p1  ;;  %127 = sbr.rel (%p523_p4) target bundleno = 27 (0x1b), region = 24 }
   0xe   : > { %130 = sbr.rel (!%p50_p3) target bundleno = 27 (0x1b), region = 28  ;;  %s132_s20 = sand.u32 (%p50_p3), 1, %s630_s13  }
   0xf   : > { %s553_s21 = sshll.u32 (%p50_p3), %s634_s14, 3  ;;  %s555_s22 = smul.u32 (%p50_p3), 144, %s132_s20 }
  0x10   : > { %s691_s25 = scalar_lea.vmem (%p50_p3), %s756_s1, %s553_s21 }
  0x11   : > { %v199_v0 = vld [vmem:[%s691_s25] sm:$0xff] (%p50_p3)  ;;  %v201_v1 = vld [vmem:[%s691_s25 + $0x10] sm:$0xff] (%p50_p3)  ;;  %s134_s26 = scalar_lea.vmem (%p50_p3), [#allocation2], %s555_s22 }
  0x12   : > { %v203_v2 = vld [vmem:[%s691_s25 + $0x20] sm:$0xff] (%p50_p3)  ;;  %v205_v3 = vld [vmem:[%s691_s25 + $0x30] sm:$0xff] (%p50_p3)  ;;  %200 = vst [vmem:[%s134_s26] sm:$0xff] (%p50_p3), %v199_v0  ;;  %202 = vst [vmem:[%s134_s26 + $0x8] sm:$0xff] (%p50_p3), %v201_v1 }
  0x13   : > { %v207_v4 = vld [vmem:[%s691_s25 + $0x40] sm:$0xff] (%p50_p3)  ;;  %v209_v5 = vld [vmem:[%s691_s25 + $0x50] sm:$0xff] (%p50_p3)  ;;  %204 = vst [vmem:[%s134_s26 + $0x10] sm:$0xff] (%p50_p3), %v203_v2  ;;  %206 = vst [vmem:[%s134_s26 + $0x18] sm:$0xff] (%p50_p3), %v205_v3 }
  0x14   : > { %208 = vst [vmem:[%s134_s26 + $0x20] sm:$0xff] (%p50_p3), %v207_v4  ;;  %210 = vst [vmem:[%s134_s26 + $0x28] sm:$0xff] (%p50_p3), %v209_v5  ;;  %v211_v6 = vld [vmem:[%s691_s25 + $0x60] sm:$0xff] (%p50_p3)  ;;  %v213_v7 = vld [vmem:[%s691_s25 + $0x70] sm:$0xff] (%p50_p3) }
  0x15   : > { %v215_v8 = vld [vmem:[%s691_s25 + $0x80] sm:$0xff]  ;;  %212 = vst [vmem:[%s134_s26 + $0x30] sm:$0xff] %v211_v6  ;;  %214 = vst [vmem:[%s134_s26 + $0x38] sm:$0xff] %v213_v7  ;;  %v217_v9 = vld [vmem:[%s691_s25 + $0x90] sm:$0xff] }
  0x16   : > { %216 = vst [vmem:[%s134_s26 + $0x40] sm:$0xff] %v215_v8  ;;  %v219_v10 = vld [vmem:[%s691_s25 + $0xa0] sm:$0xff]  ;;  %v221_v11 = vld [vmem:[%s691_s25 + $0xb0] sm:$0xff]  ;;  %218 = vst [vmem:[%s134_s26 + $0x48] sm:$0xff] %v217_v9 }
  0x17   : > { %220 = vst [vmem:[%s134_s26 + $0x50] sm:$0xff] %v219_v10  ;;  %222 = vst [vmem:[%s134_s26 + $0x58] sm:$0xff] %v221_v11  ;;  %v223_v12 = vld [vmem:[%s691_s25 + $0xc0] sm:$0xff]  ;;  %v225_v13 = vld [vmem:[%s691_s25 + $0xd0] sm:$0xff] }
  0x18   : > { %v227_v14 = vld [vmem:[%s691_s25 + $0xe0] sm:$0xff]  ;;  %224 = vst [vmem:[%s134_s26 + $0x60] sm:$0xff] %v223_v12  ;;  %226 = vst [vmem:[%s134_s26 + $0x68] sm:$0xff] %v225_v13  ;;  %v229_v15 = vld [vmem:[%s691_s25 + $0xf0] sm:$0xff] }
  0x19   : > { %228 = vst [vmem:[%s134_s26 + $0x70] sm:$0xff] %v227_v14  ;;  %v231_v16 = vld [vmem:[%s691_s25 + $0x100] sm:$0xff]  ;;  %v233_v17 = vld [vmem:[%s691_s25 + $0x110] sm:$0xff]  ;;  %230 = vst [vmem:[%s134_s26 + $0x78] sm:$0xff] %v229_v15 }
  0x1a   : > { %232 = vst [vmem:[%s134_s26 + $0x80] sm:$0xff] %v231_v16  ;;  %234 = vst [vmem:[%s134_s26 + $0x88] sm:$0xff] %v233_v17 }
  0x1b PF: > { %p526_p5 = scmp.ge.s32.totalorder %s634_s14, 1  ;;  %p239_p6 = scmp.lt.s32.totalorder %s634_s14, 3 }
  0x1d   : > { %p240_p7 = pnand %p526_p5, %p239_p6 }
  0x1e   : > { %s246_s27 = sand.u32 (!%p240_p7), 1, %s626_s12   ;;  %v277_v18 = vld [vmem:[%s755_s0] sm:$0xff] (!%p240_p7)  ;;  %vm398_vm0 = vcmask (!%p240_p7), 130048   ;;  %v636_v21 = vmov (!%p240_p7), 0   ;;  %s527_s7 = sshll.u32 (!%p240_p7), %s520_s15, 1 }
  0x1f   : > { %243 = sbr.rel (%p240_p7) target bundleno = 293 (0x125), region = 66  ;;  %v296_v19 = vld [vmem:[%s757_s2] sm:$0xff] (!%p240_p7)  ;;  %v530_v20 = vcombine.high (!%p240_p7), %v277_v18, %v277_v18  ;;  %582 = vset.pattern.permute.xlu0 (!%p240_p7), %v636_v21  ;;  %v529_v40 = vcombine.low (!%p240_p7), %v277_v18, %v277_v18  ;;  %p271_p8 = scmp.lt.s32.totalorder (!%p240_p7), %s527_s7, 3 }
  0x20   : > { %s556_s5 = smul.u32 (!%p240_p7), 144, %s246_s27  ;;  %299 = vperm.xlu0 (!%p240_p7), %582, %v296_v19  }
  0x21   : > { %549 = vmatprep.mubr.msk.bf16.mxu0 (!%p240_p7), %vm398_vm0, %v530_v20 }
  0x22   : > { %s720_s6 = scalar_lea.vmem (!%p240_p7), [#allocation2], %s556_s5 }
  0x23   : > { %v583_v22 = vld [vmem:[%s720_s6 + $0x4] ss:$8 sps:$4 sm:$0xff] (!%p240_p7)   ;;  %v585_v23 = vld [vmem:[%s720_s6] ss:$8 sps:$4 sm:$0xff] (!%p240_p7)   ;;  %v586_v24 = vld [vmem:[%s720_s6 + $0x14] ss:$8 sps:$4 sm:$0xff] (!%p240_p7)  }
  0x24   : > { %402 = vmatprep.subr.bf16.mxu0 (!%p240_p7), %v583_v22  ;;  %v588_v25 = vld [vmem:[%s720_s6 + $0x10] ss:$8 sps:$4 sm:$0xff] (!%p240_p7)   ;;  %v589_v26 = vld [vmem:[%s720_s6 + $0x24] ss:$8 sps:$4 sm:$0xff] (!%p240_p7)   ;;  %v591_v27 = vld [vmem:[%s720_s6 + $0x20] ss:$8 sps:$4 sm:$0xff] (!%p240_p7)  }
  0x25   : > { %403 = vmatpush1.bf16.msra.mxu0 (!%p240_p7), %v585_v23  ;;  %v592_v28 = vld [vmem:[%s720_s6 + $0x34] ss:$8 sps:$4 sm:$0xff] (!%p240_p7)   ;;  %v594_v29 = vld [vmem:[%s720_s6 + $0x30] ss:$8 sps:$4 sm:$0xff] (!%p240_p7)   ;;  %v595_v30 = vld [vmem:[%s720_s6 + $0x44] ss:$8 sps:$4 sm:$0xff] (!%p240_p7)  }
  0x26   : > { %404 = vmatprep.subr.bf16.mxu0 %v586_v24  ;;  %v597_v31 = vld [vmem:[%s720_s6 + $0x40] ss:$8 sps:$4 sm:$0xff]   ;;  %v598_v32 = vld [vmem:[%s720_s6 + $0x54] ss:$8 sps:$4 sm:$0xff]   ;;  %v600_v33 = vld [vmem:[%s720_s6 + $0x50] ss:$8 sps:$4 sm:$0xff]  }
  0x27   : > { %v601_v34 = vld [vmem:[%s720_s6 + $0x64] ss:$8 sps:$4 sm:$0xff]   ;;  %v603_v35 = vld [vmem:[%s720_s6 + $0x60] ss:$8 sps:$4 sm:$0xff]   ;;  %v604_v36 = vld [vmem:[%s720_s6 + $0x74] ss:$8 sps:$4 sm:$0xff]  }
  0x28   : > { %v606_v37 = vld [vmem:[%s720_s6 + $0x70] ss:$8 sps:$4 sm:$0xff]   ;;  %v607_v38 = vld [vmem:[%s720_s6 + $0x84] ss:$8 sps:$4 sm:$0xff]   ;;  %v609_v39 = vld [vmem:[%s720_s6 + $0x80] ss:$8 sps:$4 sm:$0xff]  }
  0x29   : > { %405 = vmatpush1.bf16.msra.mxu0 %v588_v25  ;;  %s763_s7 = smov (!%p271_p8, %s527_s7), 3 }
  0x2a   : > { %406 = vmatprep.subr.bf16.mxu0 %v589_v26  ;;  %s528_s8 = sshll.u32 %s763_s7, 2 }
  0x2b   : > { %s274_s11 = scalar_lea.vmem %s758_s3, %s528_s8 }
  0x2d   : > { %407 = vmatpush1.bf16.msra.mxu0 %v591_v27 }
  0x2e   : > { %408 = vmatprep.subr.bf16.mxu0 %v592_v28 }
  0x31   : > { %409 = vmatpush1.bf16.msra.mxu0 %v594_v29 }
  0x32   : > { %410 = vmatprep.subr.bf16.mxu0 %v595_v30 }
  0x35   : > { %411 = vmatpush1.bf16.msra.mxu0 %v597_v31 }
  0x36   : > { %412 = vmatprep.subr.bf16.mxu0 %v598_v32 }
  0x39   : > { %413 = vmatpush1.bf16.msra.mxu0 %v600_v33 }
  0x3a   : > { %414 = vmatprep.subr.bf16.mxu0 %v601_v34 }
  0x3d   : > { %415 = vmatpush1.bf16.msra.mxu0 %v603_v35 }
  0x3e   : > { %416 = vmatprep.subr.bf16.mxu0 %v604_v36 }
  0x41   : > { %417 = vmatpush1.bf16.msra.mxu0 %v606_v37 }
  0x42   : > { %418 = vmatprep.subr.bf16.mxu0 %v607_v38 }
  0x45   : > { %419 = vmatpush1.bf16.msra.mxu0 %v609_v39 }
  0x48   : > { %435 = vmatmul.mubr.bf16.vlgmr.msra.gmra.mrb[0].mxu0 %v529_v40 }
  0x9f   : > { %v300_v41 = vpop.permute.xlu0 %299 }
 0x11b   : > { %v436_v42 = vpop.f32.mrb[0].mxu0 }
 0x11c   : > { %v437_v43 = vadd.f32 %v436_v42, %v300_v41  ;;  %v438_v44 = vpop.f32.mrb[1].mxu0 }
 0x11d   : > { %v439_v45 = vadd.f32 %v438_v44, %v300_v41  ;;  %v440_v46 = vpop.f32.mrb[2].mxu0 }
 0x11e   : > { %vm443_vm1 = vcmp.ge.f32.partialorder %v437_v43, 0.0  ;;  %v445_v47 = vmul.f32 0.01, %v437_v43  ;;  %v441_v48 = vpop.f32.mrb[3].mxu0 }
 0x11f   : > { %vm444_vm2 = vcmp.ge.f32.partialorder %v439_v45, 0.0  ;;  %v446_v49 = vmul.f32 0.01, %v439_v45 }
 0x120   : > { %v447_v50 = vsel %vm443_vm1, %v437_v43, %v445_v47 }
 0x121   : > { %v448_v51 = vsel %vm444_vm2, %v439_v45, %v446_v49 }
 0x122   : > { %v554_v52 = vpack.c.bf16 %v448_v51, %v447_v50 }
 0x124   : > { %457 = vst [vmem:[%s274_s11] sm:$0xff] %v554_v52 }
 0x125 PF: > { %p10_p9 = scmp.ge.s32.totalorder %s674_s16, 4   ;;  %s759_s12 = smov %s630_s13 }
 0x126   : > { %s760_s13 = smov %s683_s19  ;;  %s761_s14 = smov %s674_s16 }
 0x127   :  { %12 = sbr.rel (!%p10_p9) target bundleno = 2 (0x2), region = 105 }

// kernel: videobert_forward.9
= control target key start
LH: loop header
LB: loop body
LE: loop exit
PB: predicated region body
PF: predicated region fallthrough
CT: control target
= control target key end

     0   :  { %v547_v1 = vmov 0   ;;  %s676_s1 = inlined_call_operand.vmem [shape: bf16[384,128], index: 1, kind: input, shape index: {}]   ;;  %s677_s0 = inlined_call_operand.vmem [shape: bf16[32,384], index: 0, kind: input, shape index: {}]   ;;  %s678_s2 = inlined_call_operand.vmem [shape: f32[32,1], index: 2, kind: input, shape index: {}]   ;;  %s679_s3 = inlined_call_operand.vmem [shape: bf16[32,128], index: 3, kind: output, shape index: {}]  }
   0x1   :  { %v515_v0 = vld [vmem:[%s676_s1 + $0x40] sm:$0xff]   ;;  %513 = vset.pattern.permute.xlu0 %v547_v1  ;;  %514 = vset.pattern.permute.xlu1 %v547_v1  ;;  %v517_v3 = vld [vmem:[%s676_s1 + $0x48] sm:$0xff]   ;;  %v520_v6 = vld [vmem:[%s676_s1 + $0x50] sm:$0xff]  }
   0x2   :  { %v516_v2 = vld [vmem:[%s676_s1] sm:$0xff]   ;;  %454 = vmatprep.subr.bf16.mxu0 %v515_v0  ;;  %v519_v5 = vld [vmem:[%s676_s1 + $0x8] sm:$0xff]   ;;  %v522_v8 = vld [vmem:[%s676_s1 + $0x10] sm:$0xff]  }
   0x3   :  { %455 = vmatpush3.bf16.msra.mxu0 %v516_v2  ;;  %v518_v4 = vld [vmem:[%s676_s1 + $0x80] sm:$0xff]   ;;  %v521_v7 = vld [vmem:[%s676_s1 + $0x88] sm:$0xff]   ;;  %v523_v9 = vld [vmem:[%s676_s1 + $0x58] sm:$0xff]  }
   0x4   :  { %456 = vmatprep.subr.bf16.mxu0 %v517_v3  ;;  %492 = vmatprep.subr.bf16.mxu1 %v518_v4  ;;  %v524_v10 = vld [vmem:[%s676_s1 + $0x90] sm:$0xff]   ;;  %v525_v11 = vld [vmem:[%s676_s1 + $0x18] sm:$0xff]   ;;  %v526_v12 = vld [vmem:[%s676_s1 + $0x60] sm:$0xff]  }
   0x5   :  { %493 = vmatpush3.bf16.msra.mxu1 %v518_v4  ;;  %v527_v13 = vld [vmem:[%s676_s1 + $0x98] sm:$0xff]   ;;  %v528_v14 = vld [vmem:[%s676_s1 + $0x20] sm:$0xff]   ;;  %v529_v16 = vld [vmem:[%s676_s1 + $0x68] sm:$0xff]  }
   0x6   :  { %494 = vmatprep.subr.bf16.mxu1 %v521_v7  ;;  %v530_v15 = vld [vmem:[%s676_s1 + $0xa0] sm:$0xff]   ;;  %v531_v17 = vld [vmem:[%s676_s1 + $0x28] sm:$0xff]   ;;  %v532_v19 = vld [vmem:[%s676_s1 + $0x70] sm:$0xff]  }
   0x7   :  { %457 = vmatpush3.bf16.msra.mxu0 %v519_v5  ;;  %v533_v18 = vld [vmem:[%s676_s1 + $0xa8] sm:$0xff]   ;;  %v534_v20 = vld [vmem:[%s676_s1 + $0x30] sm:$0xff]   ;;  %v535_v21 = vld [vmem:[%s676_s1 + $0x78] sm:$0xff]  }
   0x8   :  { %458 = vmatprep.subr.bf16.mxu0 %v520_v6  ;;  %v536_v22 = vld [vmem:[%s676_s1 + $0xb0] sm:$0xff]   ;;  %v537_v24 = vld [vmem:[%s676_s1 + $0x38] sm:$0xff]   ;;  %v71_v27 = vld [vmem:[%s678_s2] sm:$0xff] }
   0x9   :  { %495 = vmatpush3.bf16.msra.mxu1 %v521_v7  ;;  %v540_v23 = vld [vmem:[%s677_s0 + $0x4] ss:$12 sps:$4 sm:$0xff]   ;;  %v542_v25 = vld [vmem:[%s677_s0 + $0x8] ss:$12 sps:$4 sm:$0xff]   ;;  %v541_v26 = vld [vmem:[%s676_s1 + $0xb8] sm:$0xff]   ;;  %77 = vperm.xlu0 %513, %v71_v27  }
   0xa   :  { %496 = vmatprep.subr.bf16.mxu1 %v524_v10  ;;  %303 = vmatprep.mubr.bf16.mxu0 %v540_v23  ;;  %v73_v28 = vld [vmem:[%s678_s2 + $0x10] sm:$0xff]  ;;  %v538_v29 = vld [vmem:[%s677_s0] ss:$12 sps:$4 sm:$0xff]   ;;  %v544_v31 = vld [vmem:[%s677_s0 + $0x1c] ss:$12 sps:$4 sm:$0xff]  }
   0xb   :  { %459 = vmatpush3.bf16.msra.mxu0 %v522_v8  ;;  %508 = vmatprep.mubr.bf16.mxu1 %v542_v25  ;;  %v72_v30 = vld [vmem:[%s678_s2 + $0x8] sm:$0xff]  ;;  %v74_v32 = vld [vmem:[%s678_s2 + $0x18] sm:$0xff] }
   0xc   :  { %460 = vmatprep.subr.bf16.mxu0 %v523_v9  ;;  %87 = vperm.xlu1 %514, %v73_v28   ;;  %v543_v33 = vld [vmem:[%s677_s0 + $0x20] ss:$12 sps:$4 sm:$0xff]   ;;  %v546_v34 = vld [vmem:[%s677_s0 + $0x18] ss:$12 sps:$4 sm:$0xff]  }
   0xd   :  { %497 = vmatpush3.bf16.msra.mxu1 %v524_v10  ;;  %82 = vperm.xlu0 %513, %v72_v30  }
   0xe   :  { %498 = vmatprep.subr.bf16.mxu1 %v527_v13 }
   0xf   :  { %461 = vmatpush3.bf16.msra.mxu0 %v525_v11 }
  0x10   :  { %462 = vmatprep.subr.bf16.mxu0 %v526_v12  ;;  %92 = vperm.xlu1 %514, %v74_v32  }
  0x11   :  { %499 = vmatpush3.bf16.msra.mxu1 %v527_v13 }
  0x12   :  { %500 = vmatprep.subr.bf16.mxu1 %v530_v15 }
  0x13   :  { %463 = vmatpush3.bf16.msra.mxu0 %v528_v14 }
  0x14   :  { %464 = vmatprep.subr.bf16.mxu0 %v529_v16 }
  0x15   :  { %501 = vmatpush3.bf16.msra.mxu1 %v530_v15 }
  0x16   :  { %502 = vmatprep.subr.bf16.mxu1 %v533_v18 }
  0x17   :  { %465 = vmatpush3.bf16.msra.mxu0 %v531_v17 }
  0x18   :  { %466 = vmatprep.subr.bf16.mxu0 %v532_v19 }
  0x19   :  { %503 = vmatpush3.bf16.msra.mxu1 %v533_v18 }
  0x1a   :  { %504 = vmatprep.subr.bf16.mxu1 %v536_v22 }
  0x1b   :  { %467 = vmatpush3.bf16.msra.mxu0 %v534_v20 }
  0x1c   :  { %468 = vmatprep.subr.bf16.mxu0 %v535_v21 }
  0x1d   :  { %505 = vmatpush3.bf16.msra.mxu1 %v536_v22 }
  0x1e   :  { %506 = vmatprep.subr.bf16.mxu1 %v541_v26 }
  0x1f   :  { %469 = vmatpush3.bf16.msra.mxu0 %v537_v24 }
  0x21   :  { %507 = vmatpush3.bf16.msra.mxu1 %v541_v26 }
  0x22   :  { %304 = vmatmul.mubr.bf16.vlgmr.msra.gmra.mrb[0].mxu0 %v538_v29 }
  0x23   :  { %311 = vmatprep.mubr.bf16.mxu0 %v544_v31 }
  0x24   :  { %509 = vmatmul.mubr.bf16.vlgmr.msra.gmra.mrb[0].mxu1 %v543_v33 }
  0x2a   :  { %312 = vmatmul.mubr.bf16.gmra.mrb[4].mxu0 %v546_v34 }
  0x88   :  { %v78_v35 = vpop.permute.xlu0 %77 }
  0x8b   :  { %v88_v50 = vpop.permute.xlu1 %87 }
  0x8c   :  { %v83_v40 = vpop.permute.xlu0 %82 }
  0x8f   :  { %v93_v0 = vpop.permute.xlu1 %92 }
  0xf5   :  { %v470_v36 = vpop.f32.mrb[0].mxu0 }
  0xf6   :  { %v471_v37 = vpop.f32.mrb[1].mxu0 }
  0xf7   :  { %v472_v38 = vadd.f32 %v471_v37, %v470_v36  ;;  %v473_v39 = vpop.f32.mrb[2].mxu0  ;;  %v510_v42 = vpop.f32.mrb[0].mxu1 }
  0xf8   :  { %v474_v41 = vpop.f32.mrb[3].mxu0  ;;  %v354_v45 = vpop.f32.mrb[1].mxu1 }
  0xf9   :  { %v475_v43 = vadd.f32 %v474_v41, %v473_v39  ;;  %v306_v44 = vadd.f32 %v472_v38, %v78_v35  ;;  %v511_v46 = vpop.f32.mrb[2].mxu1 }
  0xfa   :  { %v357_v49 = vpop.f32.mrb[3].mxu1 }
  0xfb   :  { %v309_v47 = vadd.f32 %v475_v43, %v83_v40  ;;  %v355_v48 = vadd.f32 %v354_v45, %v306_v44 }
  0xfd   :  { %v373_v51 = vmul.f32 0.01, %v355_v48  ;;  %v358_v52 = vadd.f32 %v357_v49, %v309_v47  ;;  %v476_v53 = vpop.f32.mrb[4].mxu0  ;;  %vm369_vm0 = vcmp.ge.f32.partialorder %v355_v48, 0.0 }
  0xfe   :  { %v477_v54 = vpop.f32.mrb[5].mxu0 }
  0xff   :  { %vm370_vm1 = vcmp.ge.f32.partialorder %v358_v52, 0.0  ;;  %v374_v55 = vmul.f32 0.01, %v358_v52  ;;  %v478_v56 = vadd.f32 %v477_v54, %v476_v53  ;;  %v479_v57 = vpop.f32.mrb[6].mxu0  ;;  %v377_v59 = vsel %vm369_vm0, %v355_v48, %v373_v51 }
 0x100   :  { %v480_v58 = vpop.f32.mrb[7].mxu0 }
 0x101   :  { %v378_v60 = vsel %vm370_vm1, %v358_v52, %v374_v55  ;;  %v314_v61 = vadd.f32 %v478_v56, %v88_v50  ;;  %v481_v62 = vadd.f32 %v480_v58, %v479_v57 }
 0x102   :  { %v446_v63 = vpack.c.bf16 %v378_v60, %v377_v59 }
 0x103   :  { %v363_v1 = vadd.f32 %v510_v42, %v314_v61  ;;  %v317_v2 = vadd.f32 %v481_v62, %v93_v0 }
 0x104   :  { %447 = vst [vmem:[%s679_s3] sm:$0xff] %v446_v63  }
 0x105   :  { %v375_v3 = vmul.f32 0.01, %v363_v1  ;;  %v366_v4 = vadd.f32 %v511_v46, %v317_v2  ;;  %vm371_vm2 = vcmp.ge.f32.partialorder %v363_v1, 0.0 }
 0x107   :  { %vm372_vm3 = vcmp.ge.f32.partialorder %v366_v4, 0.0  ;;  %v376_v5 = vmul.f32 0.01, %v366_v4  ;;  %v379_v6 = vsel %vm371_vm2, %v363_v1, %v375_v3 }
 0x109   :  { %v380_v7 = vsel %vm372_vm3, %v366_v4, %v376_v5 }
 0x10a   :  { %v451_v8 = vpack.c.bf16 %v380_v7, %v379_v6 }
 0x10c   :  { %453 = vst [vmem:[%s679_s3 + $0x8] sm:$0xff] %v451_v8  }

// kernel: videobert_forward.10
= control target key start
LH: loop header
LB: loop body
LE: loop exit
PB: predicated region body
PF: predicated region fallthrough
CT: control target
= control target key end

     0   :  { %vm377_vm1 = vcmask 261120   ;;  %s628_s1 = inlined_call_operand.vmem [shape: bf16[512,32], index: 1, kind: input, shape index: {}]   ;;  %s629_s0 = inlined_call_operand.vmem [shape: bf16[8,512], index: 0, kind: input, shape index: {}]   ;;  %s630_s2 = inlined_call_operand.vmem [shape: f32[1,32], index: 2, kind: input, shape index: {}]   ;;  %s631_s3 = inlined_call_operand.vmem [shape: f32[8,32], index: 3, kind: output, shape index: {}]  }
   0x1   :  { %v464_v0 = vld [vmem:[%s628_s1 + $0x40] sm:$0xff]   ;;  %v468_v4 = vld [vmem:[%s628_s1 + $0x48] sm:$0xff]   ;;  %v472_v8 = vld [vmem:[%s628_s1 + $0x50] sm:$0xff]  }
   0x2   :  { %v465_v1 = vld [vmem:[%s628_s1 + $0xc0] sm:$0xff]   ;;  %420 = vmatprep.subr.bf16.mxu0 %v464_v0  ;;  %v469_v5 = vld [vmem:[%s628_s1 + $0xc8] sm:$0xff]   ;;  %v473_v9 = vld [vmem:[%s628_s1 + $0xd0] sm:$0xff]  }
   0x3   :  { %v466_v2 = vld [vmem:[%s628_s1] sm:$0xff]   ;;  %442 = vmatprep.subr.bf16.mxu1 %v465_v1  ;;  %v470_v6 = vld [vmem:[%s628_s1 + $0x8] sm:$0xff]   ;;  %v474_v10 = vld [vmem:[%s628_s1 + $0x10] sm:$0xff]  }
   0x4   :  { %v467_v3 = vld [vmem:[%s628_s1 + $0x80] sm:$0xff]   ;;  %421 = vmatpush3.bf16.msra.mxu0 %v466_v2  ;;  %v471_v7 = vld [vmem:[%s628_s1 + $0x88] sm:$0xff]   ;;  %v475_v11 = vld [vmem:[%s628_s1 + $0x90] sm:$0xff]  }
   0x5   :  { %443 = vmatpush3.bf16.msra.mxu1 %v467_v3  ;;  %422 = vmatprep.subr.bf16.mxu0 %v468_v4  ;;  %v476_v12 = vld [vmem:[%s628_s1 + $0x58] sm:$0xff]   ;;  %v480_v16 = vld [vmem:[%s628_s1 + $0x60] sm:$0xff]   ;;  %v484_v20 = vld [vmem:[%s628_s1 + $0x68] sm:$0xff]  }
   0x6   :  { %444 = vmatprep.subr.bf16.mxu1 %v469_v5  ;;  %v477_v13 = vld [vmem:[%s628_s1 + $0xd8] sm:$0xff]   ;;  %v481_v17 = vld [vmem:[%s628_s1 + $0xe0] sm:$0xff]   ;;  %v485_v21 = vld [vmem:[%s628_s1 + $0xe8] sm:$0xff]  }
   0x7   :  { %v478_v14 = vld [vmem:[%s628_s1 + $0x18] sm:$0xff]   ;;  %v482_v18 = vld [vmem:[%s628_s1 + $0x20] sm:$0xff]   ;;  %v486_v22 = vld [vmem:[%s628_s1 + $0x28] sm:$0xff]  }
   0x8   :  { %423 = vmatpush3.bf16.msra.mxu0 %v470_v6  ;;  %v479_v15 = vld [vmem:[%s628_s1 + $0x98] sm:$0xff]   ;;  %v483_v19 = vld [vmem:[%s628_s1 + $0xa0] sm:$0xff]   ;;  %v487_v23 = vld [vmem:[%s628_s1 + $0xa8] sm:$0xff]  }
   0x9   :  { %445 = vmatpush3.bf16.msra.mxu1 %v471_v7  ;;  %424 = vmatprep.subr.bf16.mxu0 %v472_v8  ;;  %v488_v24 = vld [vmem:[%s628_s1 + $0x70] sm:$0xff]   ;;  %v492_v28 = vld [vmem:[%s628_s1 + $0x78] sm:$0xff]   ;;  %v15_v32 = vld [vmem:[%s629_s0] sm:$0xff] }
   0xa   :  { %446 = vmatprep.subr.bf16.mxu1 %v473_v9  ;;  %v489_v25 = vld [vmem:[%s628_s1 + $0xf0] sm:$0xff]   ;;  %v493_v29 = vld [vmem:[%s628_s1 + $0xf8] sm:$0xff]   ;;  %v16_v33 = vld [vmem:[%s629_s0 + $0x8] sm:$0xff]  ;;  %v384_v34 = vcombine.low %v15_v32, %v15_v32  ;;  %v385_v35 = vcombine.high %v15_v32, %v15_v32 }
   0xb   :  { %v490_v26 = vld [vmem:[%s628_s1 + $0x30] sm:$0xff]   ;;  %v494_v30 = vld [vmem:[%s628_s1 + $0x38] sm:$0xff]   ;;  %v386_v36 = vcombine.low %v16_v33, %v16_v33  ;;  %v387_v37 = vcombine.high %v16_v33, %v16_v33  ;;  %v383_v40 = vld [vmem:[%s630_s2] ss:$0 sm:$0xff] }
   0xc   :  { %425 = vmatpush3.bf16.msra.mxu0 %v474_v10  ;;  %v491_v27 = vld [vmem:[%s628_s1 + $0xb0] sm:$0xff]   ;;  %v495_v31 = vld [vmem:[%s628_s1 + $0xb8] sm:$0xff]   ;;  %326 = vmatprep.mubr.bf16.mxu0 %v385_v35 }
   0xd   :  { %447 = vmatpush3.bf16.msra.mxu1 %v475_v11  ;;  %426 = vmatprep.subr.bf16.mxu0 %v476_v12 }
   0xe   :  { %448 = vmatprep.subr.bf16.mxu1 %v477_v13  ;;  %366 = vmatprep.mubr.bf16.mxu1 %v387_v37 }
  0x10   :  { %427 = vmatpush3.bf16.msra.mxu0 %v478_v14 }
  0x11   :  { %449 = vmatpush3.bf16.msra.mxu1 %v479_v15  ;;  %428 = vmatprep.subr.bf16.mxu0 %v480_v16 }
  0x12   :  { %450 = vmatprep.subr.bf16.mxu1 %v481_v17 }
  0x14   :  { %429 = vmatpush3.bf16.msra.mxu0 %v482_v18 }
  0x15   :  { %451 = vmatpush3.bf16.msra.mxu1 %v483_v19  ;;  %430 = vmatprep.subr.bf16.mxu0 %v484_v20 }
  0x16   :  { %452 = vmatprep.subr.bf16.mxu1 %v485_v21 }
  0x18   :  { %431 = vmatpush3.bf16.msra.mxu0 %v486_v22 }
  0x19   :  { %453 = vmatpush3.bf16.msra.mxu1 %v487_v23  ;;  %432 = vmatprep.subr.bf16.mxu0 %v488_v24 }
  0x1a   :  { %454 = vmatprep.subr.bf16.mxu1 %v489_v25 }
  0x1c   :  { %433 = vmatpush3.bf16.msra.mxu0 %v490_v26 }
  0x1d   :  { %455 = vmatpush3.bf16.msra.mxu1 %v491_v27  ;;  %434 = vmatprep.subr.bf16.mxu0 %v492_v28 }
  0x1e   :  { %456 = vmatprep.subr.bf16.mxu1 %v493_v29 }
  0x20   :  { %435 = vmatpush3.bf16.msra.mxu0 %v494_v30 }
  0x21   :  { %457 = vmatpush3.bf16.msra.mxu1 %v495_v31 }
  0x23   :  { %327 = vmatmul.mubr.bf16.vlgmr.msra.gmra.mrb[0].mxu0 %v384_v34 }
  0x24   :  { %367 = vmatmul.mubr.bf16.vlgmr.msra.gmra.mrb[0].mxu1 %v386_v36 }
  0xf6   :  { %v436_v38 = vpop.f32.mrb[0].mxu0 }
  0xf7   :  { %v458_v39 = vpop.f32.mrb[0].mxu1  ;;  %v437_v41 = vpop.f32.mrb[1].mxu0 }
  0xf8   :  { %v459_v42 = vpop.f32.mrb[1].mxu1  ;;  %v438_v43 = vadd.f32 %v437_v41, %v436_v38  ;;  %v439_v45 = vpop.f32.mrb[2].mxu0 }
  0xf9   :  { %v460_v44 = vadd.f32 %v459_v42, %v458_v39  ;;  %v461_v46 = vpop.f32.mrb[2].mxu1  ;;  %v440_v47 = vpop.f32.mrb[3].mxu0 }
  0xfa   :  { %v462_v48 = vpop.f32.mrb[3].mxu1  ;;  %v329_v49 = vadd.f32 %v438_v43, %v383_v40 }
  0xfc   :  { %v369_v50 = vadd.f32 %v460_v44, %v329_v49 }
  0xfe   :  { %vm374_vm0 = vcmp.ge.f32.partialorder %v369_v50, 0.0  ;;  %v375_v51 = vmul.f32 0.01, %v369_v50 }
 0x100   :  { %v376_v52 = vsel %vm374_vm0, %v369_v50, %v375_v51 }
 0x101   :  { %378 = vst.msk [vmem:[%s631_s3] sm:$0xff] %vm377_vm1, %v376_v52 }

// kernel: tile.25
= control target key start
LH: loop header
LB: loop body
LE: loop exit
PB: predicated region body
PF: predicated region fallthrough
CT: control target
= control target key end

     0   :  { %vm4_vm0 = vcmask 1047556   ;;  %s177_s14 = smov 60   ;;  %s43_s15 = smov 3  ;;  %vm6_vm1 = vcmask 80896   ;;  %vm22_vm2 = vcmask 654896   ;;  %vm40_vm3 = vcmask 572896   ;;  %s324_s0 = inlined_call_operand.vmem [shape: f32[8,10,10], index: 0, kind: input, shape index: {}]   ;;  %s325_s1 = inlined_call_operand.vmem [shape: f32[80,10], index: 1, kind: output, shape index: {}]  }
   0x1   :  { %v146_v0 = vld [vmem:[%s324_s0 + $0x6] ss:$8 sm:$0xf]   ;;  %v142_v3 = vld [vmem:[%s324_s0 + $0x7] ss:$8 sm:$0xf]  }
   0x2   :  { %v147_v1 = vld [vmem:[%s324_s0 + $0x6] ss:$8 sm:$0xf0]   ;;  %v143_v4 = vld [vmem:[%s324_s0 + $0x7] ss:$8 sm:$0xf0]  }
   0x3   :  { %v37_v2 = vsel %vm4_vm0, %v147_v1, %v146_v0  ;;  %v19_v5 = vsel %vm4_vm0, %v143_v4, %v142_v3  ;;  %s25_s16 = smov 3  ;;  %s178_s17 = smov 70   ;;  %v148_v6 = vld [vmem:[%s324_s0 + $0x46] ss:$8 sm:%s43_s15]   ;;  %vm58_vm4 = vcmask 490896   ;;  %vm76_vm5 = vcmask 408896  }
   0x4   :  { %38 = vrot.lane.b32.xlu1 %v37_v2, %s177_s14  ;;  %20 = vrot.lane.b32.xlu0 %v19_v5, %s178_s17  ;;  %v144_v7 = vld [vmem:[%s324_s0 + $0x47] ss:$8 sm:%s25_s16]   ;;  %s61_s22 = smov 3  ;;  %s79_s29 = smov 3  ;;  %vm94_vm6 = vcmask 326896   ;;  %vm112_vm7 = vcmask 244896  }
   0x5   :  { %v150_v8 = vld [vmem:[%s324_s0 + $0x5] ss:$8 sm:$0xf]   ;;  %v154_v12 = vld [vmem:[%s324_s0 + $0x4] ss:$8 sm:$0xf]  }
   0x6   :  { %v151_v9 = vld [vmem:[%s324_s0 + $0x5] ss:$8 sm:$0xf0]   ;;  %v155_v13 = vld [vmem:[%s324_s0 + $0x4] ss:$8 sm:$0xf0]  }
   0x7   :  { %v152_v10 = vld [vmem:[%s324_s0 + $0x45] ss:$8 sm:%s61_s22]   ;;  %v55_v11 = vsel %vm4_vm0, %v151_v9, %v150_v8  ;;  %s179_s5 = smov 50   ;;  %s9_s6 = smov 3  ;;  %v156_v14 = vld [vmem:[%s324_s0 + $0x44] ss:$8 sm:%s79_s29]   ;;  %v73_v16 = vsel %vm4_vm0, %v155_v13, %v154_v12 }
   0x8   :  { %45 = vrot.lane.b32.xlu1 %v148_v6, %s177_s14  ;;  %27 = vrot.lane.b32.xlu0 %v144_v7, %s178_s17  ;;  %s97_s9 = smov 3  ;;  %v158_v15 = vld [vmem:[%s324_s0 + $0x3] ss:$8 sm:$0xf]   ;;  %s180_s20 = smov 40   ;;  %vm130_vm8 = vcmask 162896  }
   0x9   :  { %v159_v17 = vld [vmem:[%s324_s0 + $0x3] ss:$8 sm:$0xf0]   ;;  %v2_v18 = vld [vmem:[%s324_s0] ss:$8 sm:$0xf]  }
   0xa   :  { %v3_v19 = vld [vmem:[%s324_s0] ss:$8 sm:$0xf0]   ;;  %v160_v22 = vld [vmem:[%s324_s0 + $0x43] ss:$8 sm:%s97_s9]   ;;  %v91_v23 = vsel %vm4_vm0, %v159_v17, %v158_v15  ;;  %s115_s27 = smov 3 }
   0xb   :  { %v140_v20 = vld [vmem:[%s324_s0 + $0x40] ss:$8 sm:%s9_s6]   ;;  %v5_v21 = vsel %vm4_vm0, %v3_v19, %v2_v18  ;;  %v162_v24 = vld [vmem:[%s324_s0 + $0x2] ss:$8 sm:$0xf]   ;;  %s181_s3 = smov 30  }
   0xc   :  { %63 = vrot.lane.b32.xlu1 %v152_v10, %s179_s5  ;;  %56 = vrot.lane.b32.xlu0 %v55_v11, %s179_s5  ;;  %141 = vst.msk [vmem:[%s325_s1 + $0x8] sm:$0x3] %vm6_vm1, %v140_v20   ;;  %7 = vst.msk [vmem:[%s325_s1] sm:$0xff] %vm6_vm1, %v5_v21   ;;  %s133_s6 = smov 3  ;;  %s182_s11 = smov 20  }
   0xd   :  { %v163_v25 = vld [vmem:[%s324_s0 + $0x2] ss:$8 sm:$0xf0]   ;;  %v166_v28 = vld [vmem:[%s324_s0 + $0x1] ss:$8 sm:$0xf]  }
   0xe   :  { %v164_v26 = vld [vmem:[%s324_s0 + $0x42] ss:$8 sm:%s115_s27]   ;;  %v109_v27 = vsel %vm4_vm0, %v163_v25, %v162_v24  ;;  %v167_v29 = vld [vmem:[%s324_s0 + $0x1] ss:$8 sm:$0xf0]  }
   0xf   :  { %v168_v30 = vld [vmem:[%s324_s0 + $0x41] ss:$8 sm:%s133_s6]   ;;  %v127_v31 = vsel %vm4_vm0, %v167_v29, %v166_v28  ;;  %s183_s0 = smov 10  }
  0x10   :  { %81 = vrot.lane.b32.xlu1 %v156_v14, %s180_s20  ;;  %74 = vrot.lane.b32.xlu0 %v73_v16, %s180_s20 }
  0x14   :  { %99 = vrot.lane.b32.xlu1 %v160_v22, %s181_s3  ;;  %92 = vrot.lane.b32.xlu0 %v91_v23, %s181_s3 }
  0x18   :  { %117 = vrot.lane.b32.xlu1 %v164_v26, %s182_s11  ;;  %110 = vrot.lane.b32.xlu0 %v109_v27, %s182_s11 }
  0x1c   :  { %135 = vrot.lane.b32.xlu1 %v168_v30, %s183_s0  ;;  %128 = vrot.lane.b32.xlu0 %v127_v31, %s183_s0 }
  0x76   :  { %v39_v32 = vpop.permute.xlu1 %38   ;;  %v21_v33 = vpop.permute.xlu0 %20  }
  0x77   :  { %23 = vst.msk [vmem:[%s325_s1] sm:$0xff] %vm22_vm2, %v21_v33  }
  0x78   :  { %41 = vst.msk [vmem:[%s325_s1] sm:$0xff] %vm40_vm3, %v39_v32  }
  0x7a   :  { %v46_v34 = vpop.permute.xlu1 %45   ;;  %v28_v35 = vpop.permute.xlu0 %27  }
  0x7b   :  { %145 = vst.msk [vmem:[%s325_s1 + $0x8] sm:$0x3] %vm22_vm2, %v28_v35  }
  0x7c   :  { %149 = vst.msk [vmem:[%s325_s1 + $0x8] sm:$0x3] %vm40_vm3, %v46_v34  }
  0x7e   :  { %v64_v36 = vpop.permute.xlu1 %63   ;;  %v57_v37 = vpop.permute.xlu0 %56  }
  0x7f   :  { %153 = vst.msk [vmem:[%s325_s1 + $0x8] sm:$0x3] %vm58_vm4, %v64_v36   ;;  %59 = vst.msk [vmem:[%s325_s1] sm:$0xff] %vm58_vm4, %v57_v37  }
  0x82   :  { %v82_v38 = vpop.permute.xlu1 %81   ;;  %v75_v39 = vpop.permute.xlu0 %74  }
  0x83   :  { %157 = vst.msk [vmem:[%s325_s1 + $0x8] sm:$0x3] %vm76_vm5, %v82_v38   ;;  %77 = vst.msk [vmem:[%s325_s1] sm:$0xff] %vm76_vm5, %v75_v39  }
  0x86   :  { %v100_v40 = vpop.permute.xlu1 %99   ;;  %v93_v41 = vpop.permute.xlu0 %92  }
  0x87   :  { %161 = vst.msk [vmem:[%s325_s1 + $0x8] sm:$0x3] %vm94_vm6, %v100_v40   ;;  %95 = vst.msk [vmem:[%s325_s1] sm:$0xff] %vm94_vm6, %v93_v41  }
  0x8a   :  { %v118_v42 = vpop.permute.xlu1 %117   ;;  %v111_v43 = vpop.permute.xlu0 %110  }
  0x8b   :  { %165 = vst.msk [vmem:[%s325_s1 + $0x8] sm:$0x3] %vm112_vm7, %v118_v42   ;;  %113 = vst.msk [vmem:[%s325_s1] sm:$0xff] %vm112_vm7, %v111_v43  }
  0x8e   :  { %v136_v44 = vpop.permute.xlu1 %135   ;;  %v129_v45 = vpop.permute.xlu0 %128  }
  0x8f   :  { %169 = vst.msk [vmem:[%s325_s1 + $0x8] sm:$0x3] %vm130_vm8, %v136_v44   ;;  %131 = vst.msk [vmem:[%s325_s1] sm:$0xff] %vm130_vm8, %v129_v45  }

// kernel: videobert_forward.13
= control target key start
LH: loop header
LB: loop body
LE: loop exit
PB: predicated region body
PF: predicated region fallthrough
CT: control target
= control target key end

     0   :  { %v215_v1 = vmov 0   ;;  %vm86_vm0 = vcmask 261120   ;;  %v26_v10 = vlaneseq  ;;  %s278_s1 = inlined_call_operand.vmem [shape: bf16[32,512], index: 1, kind: input, shape index: {}]   ;;  %s279_s0 = inlined_call_operand.vmem [shape: bf16[8,32], index: 0, kind: input, shape index: {}]   ;;  %s280_s2 = inlined_call_operand.vmem [shape: f32[1,512], index: 2, kind: input, shape index: {}]   ;;  %s281_s3 = inlined_call_operand.vmem [shape: f32[8,512], index: 3, kind: output, shape index: {}]  }
   0x1   :  { %v203_v0 = vld [vmem:[%s278_s1 + $0x4] ss:$16 sps:$4 sm:$0xff]   ;;  %122 = vmatprep.mubr.bf16.mxu0 %v215_v1  ;;  %163 = vmatprep.mubr.bf16.mxu1 %v215_v1  ;;  %v205_v2 = vld [vmem:[%s278_s1 + $0xc] ss:$16 sps:$4 sm:$0xff]   ;;  %v207_v3 = vld [vmem:[%s278_s1] ss:$16 sps:$4 sm:$0xff]  }
   0x2   :  { %90 = vmatprep.subr.bf16.mxu0 %v203_v0  ;;  %v208_v4 = vld [vmem:[%s278_s1 + $0x8] ss:$16 sps:$4 sm:$0xff]   ;;  %131 = vmatprep.subr.bf16.mxu1 %v205_v2  ;;  %v209_v5 = vld [vmem:[%s278_s1 + $0x24] ss:$16 sps:$4 sm:$0xff]   ;;  %v211_v6 = vld [vmem:[%s278_s1 + $0x2c] ss:$16 sps:$4 sm:$0xff]  }
   0x3   :  { %91 = vmatpush1.bf16.msra.mxu0 %v207_v3  ;;  %132 = vmatpush1.bf16.msra.mxu1 %v208_v4  ;;  %v213_v7 = vld [vmem:[%s278_s1 + $0x20] ss:$16 sps:$4 sm:$0xff]   ;;  %v214_v8 = vld [vmem:[%s278_s1 + $0x28] ss:$16 sps:$4 sm:$0xff]   ;;  %v27_v11 = vshrl.u32 %v26_v10, 7 }
   0x4   :  { %92 = vmatprep.subr.bf16.mxu0 %v209_v5  ;;  %133 = vmatprep.subr.bf16.mxu1 %v211_v6  ;;  %v15_v9 = vld [vmem:[%s279_s0] sm:$0xf] }
   0x5   :  { %v28_v12 = vsub.s32 0, %v27_v11  ;;  %v36_v13 = vsub.s32 2, %v27_v11  ;;  %v24_v14 = vld [vmem:[%s280_s2] sm:$0xf]  ;;  %v32_v15 = vsub.s32 1, %v27_v11  ;;  %v40_v16 = vsub.s32 3, %v27_v11 }
   0x7   :  { %93 = vmatpush1.bf16.msra.mxu0 %v213_v7  ;;  %134 = vmatpush1.bf16.msra.mxu1 %v214_v8  ;;  %v29_v17 = vrot.slane %v24_v14, %v28_v12  ;;  %v37_v18 = vrot.slane %v24_v14, %v36_v13  ;;  %v33_v19 = vrot.slane %v24_v14, %v32_v15 }
   0x8   :  { %v41_v20 = vrot.slane %v24_v14, %v40_v16 }
   0xa   :  { %200 = vmatmul.mubr.msk.bf16.vlgmr.msra.gmra.mrb[0].mxu0 %vm86_vm0, %v15_v9  ;;  %201 = vmatmul.mubr.msk.bf16.vlgmr.msra.gmra.mrb[0].mxu1 %vm86_vm0, %v15_v9 }
  0xdd   :  { %v124_v21 = vpop.f32.mrb[0].mxu0  ;;  %v165_v22 = vpop.f32.mrb[0].mxu1 }
  0xde   :  { %v125_v23 = vadd.f32 %v124_v21, %v29_v17  ;;  %v166_v24 = vadd.f32 %v165_v22, %v37_v18  ;;  %v126_v25 = vpop.f32.mrb[1].mxu0  ;;  %v167_v26 = vpop.f32.mrb[1].mxu1 }
  0xdf   :  { %v127_v27 = vadd.f32 %v126_v25, %v33_v19  ;;  %v168_v28 = vadd.f32 %v167_v26, %v41_v20  ;;  %v128_v29 = vpop.f32.mrb[2].mxu0  ;;  %v169_v30 = vpop.f32.mrb[2].mxu1 }
  0xe0   :  { %vm172_vm1 = vcmp.ge.f32.partialorder %v125_v23, 0.0  ;;  %v176_v31 = vmul.f32 0.01, %v125_v23  ;;  %vm174_vm2 = vcmp.ge.f32.partialorder %v166_v24, 0.0  ;;  %v178_v32 = vmul.f32 0.01, %v166_v24 }
  0xe1   :  { %vm173_vm3 = vcmp.ge.f32.partialorder %v127_v27, 0.0  ;;  %v177_v33 = vmul.f32 0.01, %v127_v27  ;;  %vm175_vm4 = vcmp.ge.f32.partialorder %v168_v28, 0.0  ;;  %v179_v34 = vmul.f32 0.01, %v168_v28 }
  0xe2   :  { %v180_v35 = vsel %vm172_vm1, %v125_v23, %v176_v31  ;;  %v182_v36 = vsel %vm174_vm2, %v166_v24, %v178_v32  ;;  %v129_v37 = vpop.f32.mrb[3].mxu0  ;;  %v170_v38 = vpop.f32.mrb[3].mxu1 }
  0xe3   :  { %184 = vst [vmem:[%s281_s3] sm:$0xff] %v180_v35  ;;  %186 = vst [vmem:[%s281_s3 + $0x10] sm:$0xff] %v182_v36  ;;  %v181_v39 = vsel %vm173_vm3, %v127_v27, %v177_v33  ;;  %v183_v40 = vsel %vm175_vm4, %v168_v28, %v179_v34 }
  0xe4   :  { %185 = vst [vmem:[%s281_s3 + $0x8] sm:$0xff] %v181_v39  ;;  %187 = vst [vmem:[%s281_s3 + $0x18] sm:$0xff] %v183_v40 }

// kernel: videobert_forward.11
= control target key start
LH: loop header
LB: loop body
LE: loop exit
PB: predicated region body
PF: predicated region fallthrough
CT: control target
= control target key end

     0   :  { %s4415_s18 = smov 0   ;;  %s5044_s0 = inlined_call_operand.vmem [shape: f32[10,32], index: 0, kind: input, shape index: {}]   ;;  %s5045_s1 = inlined_call_operand.vmem [shape: bf16[2,32,96], index: 1, kind: input, shape index: {}]   ;;  %s5046_s2 = inlined_call_operand.vmem [shape: f32[2,1,96], index: 2, kind: input, shape index: {}]   ;;  %s5047_s3 = inlined_call_operand.vmem [shape: bf16[2,32,32], index: 3, kind: input, shape index: {}]   ;;  %s5048_s4 = inlined_call_operand.vmem [shape: f32[2,1,32], index: 4, kind: input, shape index: {}]   ;;  %s5049_s5 = inlined_call_operand.vmem [shape: f32[2,2,1,32], index: 5, kind: input, shape index: {}]   ;;  %s5050_s6 = inlined_call_operand.vmem [shape: bf16[2,32,2048], index: 6, kind: input, shape index: {}]   ;;  %s5051_s7 = inlined_call_operand.vmem [shape: f32[2,1,2048], index: 7, kind: input, shape index: {}]   ;;  %s5052_s8 = inlined_call_operand.vmem [shape: bf16[2,2048,32], index: 8, kind: input, shape index: {}]   ;;  %s5053_s9 = inlined_call_operand.vmem [shape: f32[2,1,32], index: 9, kind: input, shape index: {}]   ;;  %s5054_s10 = inlined_call_operand.vmem [shape: f32[2,2,1,32], index: 10, kind: input, shape index: {}]   ;;  %s5055_s11 = inlined_call_operand.vmem [shape: bf16[80,10], index: 11, kind: input, shape index: {}]   ;;  %s5056_s12 = inlined_call_operand.vmem [shape: bf16[10,80], index: 12, kind: input, shape index: {}]   ;;  %s5057_s13 = inlined_call_operand.vmem [shape: f32[80,32], index: 13, kind: input, shape index: {}]   ;;  %s5058_s14 = inlined_call_operand.vmem [shape: f32[80,10], index: 14, kind: input, shape index: {}]   ;;  %s5059_s15 = inlined_call_operand.vmem [shape: f32[10,32], index: 15, kind: output, shape index: {}]  }
   0x1   :  { %5065 = sst [smem:[#allocation4_spill]] %s5045_s1 }
   0x2   :  { %5066 = sst [smem:[#allocation5_spill]] %s5047_s3 }
   0x3   :  { %5067 = sst [smem:[#allocation6_spill]] %s5049_s5 }
   0x4   :  { %5068 = sst [smem:[#allocation7_spill]] %s5055_s11 }
   0x5   :  { %5069 = sst [smem:[#allocation8_spill]] %s5056_s12 }
   0x6   :  { %5070 = sst [smem:[#allocation9_spill]] %s5057_s13 }
   0x7   :  { %5071 = sst [smem:[#allocation10_spill]] %s5058_s14 }
   0x8 LB: > { %5072 = sst [smem:[#allocation2_spill]] %s4328_s18  ;;  %s3592_s19 = sadd.s32 4294967295, %s4328_s18   ;;  %s4328_s18 = sphi %s4415_s18, %s25_s18  }
   0x9   : > { %p3595_p0 = scmp.ge.s32.totalorder %s4328_s18, 1  ;;  %p513_p1 = scmp.lt.s32.totalorder %s4328_s18, 3 }
   0xb   : > { %p514_p2 = pnand %p3595_p0, %p513_p1 }
   0xd   : > { %517 = sbr.rel (%p514_p2) target bundleno = 2902 (0xb56), region = 80 }
  0x14   : > { %p592_p3 = scmp.lt.s32.totalorder %s3592_s19, 1  ;;  %s5073_s1 = sld [smem:[#allocation4_spill]] }
  0x15   : > { %s5074_s3 = sld [smem:[#allocation5_spill]]  ;;  %s5075_s5 = sld [smem:[#allocation6_spill]] }
  0x16   : > { %s4423_s20 = scalar_select %p592_p3, %s3592_s19, 1 }
  0x17   : > { %p3607_p4 = scmp.ne.s32.totalorder %s3592_s19, 0 }
  0x18   : > { %s3815_s21 = sshll.u32 %s4423_s20, 4  ;;  %s3600_s12 = sshll.u32 %s4423_s20, 1  ;;  %v638_v0 = vld [vmem:[%s5044_s0] sm:$0xff] (!%p3607_p4)  ;;  %vm640_vm0 = vcmask (!%p3607_p4), 261120   ;;  %v639_v1 = vld [vmem:[%s5044_s0 + $0x8] sm:$0x3] (!%p3607_p4) }
  0x19   : > { %s3817_s22 = sshll.u32 %s4423_s20, 8  ;;  %s4457_s29 = scalar_lea.vmem %s5051_s7, %s3815_s21  ;;  %vm642_vm1 = vcmask (!%p3607_p4), 254976   ;;  %641 = vst.msk [vmem:[%s5059_s15] sm:$0xff] (!%p3607_p4), %vm640_vm0, %v638_v0 }
  0x1a   : > { %s596_s27 = scalar_lea.vmem %s5073_s1, %s3815_s21  ;;  %s4452_s25 = scalar_lea.vmem %s5050_s6, %s3817_s22  ;;  %643 = vst.msk [vmem:[%s5059_s15 + $0x8] sm:$0x3] (!%p3607_p4), %vm642_vm1, %v639_v1 }
  0x1b   : > { %s4436_s30 = scalar_lea.vmem %s5074_s3, %s3815_s21  ;;  %s4446_s11 = scalar_lea.vmem %s5075_s5, %s3600_s12 }
  0x1c   : > { %5076 = sst [smem:[#allocation3_spill]] %s4446_s11  ;;  %s3818_s1 = sshll.u32 %s4423_s20, 10 }
  0x1d   : > { %s628_s18 = scalar_lea.vmem %s5053_s9, %s4423_s20  ;;  %s4467_s14 = scalar_lea.vmem %s5052_s8, %s3818_s1 }
  0x1e   : > { %s4472_s24 = scalar_lea.vmem %s5054_s10, %s3600_s12  ;;  %637 = sbr.rel (%p3607_p4) target bundleno = 37 (0x25), region = 84 }
  0x25 PF: > { %v4134_v2 = vld [vmem:[%s596_s27] sm:$0xff]   ;;  %v4330_v3 = vmov 0.0   ;;  %v4135_v4 = vld [vmem:[%s596_s27 + $0x8] sm:$0xff]   ;;  %vm4331_vm2 = vmmov 0   ;;  %vm670_vm3 = vcmask 261120   ;;  %s5077_s13 = scalar_lea.vmem %s5046_s2, %s4423_s20  ;;  %vm789_vm4 = vcmask 1044480   ;;  %s5082_s12 = scalar_lea.vmem %s5048_s4, %s4423_s20 }
  0x26   : > { %4025 = vmatprep.subr.bf16.mxu0 %v4330_v3  ;;  %4033 = vmatprep.subr.bf16.mxu1 %v4330_v3  ;;  %v644_v5 = vld [vmem:[%s5059_s15] sm:$0xff]  ;;  %v645_v6 = vld [vmem:[%s5059_s15 + $0x8] sm:$0x3]  ;;  %s4332_s22 = smov 96   ;;  %s5078_s26 = sld [smem:[#allocation7_spill]]  ;;  %vm773_vm5 = vcmask 80896  }
  0x27   : > { %4026 = vmatpush3.bf16.msra.mxu0 %v4134_v2  ;;  %4029 = vmatprep.mubr.msk.bf16.mxu0 %vm4331_vm2, %v4330_v3  ;;  %v646_v7 = vpack.c.bf16 %v645_v6, %v644_v5  ;;  %v3608_v8 = vld [vmem:[%s5077_s13] ss:$0 sm:$0xff]  ;;  %s5079_s13 = sld [smem:[#allocation9_spill]]  ;;  %s5080_s11 = sld [smem:[#allocation10_spill]]  ;;  %vm1223_vm6 = vcmask 654336   ;;  %vm1344_vm7 = vcmask 254976  }
  0x28   : > { %4027 = vmatprep.subr.bf16.mxu0 %v4330_v3  ;;  %4035 = vmatprep.mubr.msk.bf16.mxu1 %vm4331_vm2, %v4330_v3  ;;  %s4333_s21 = smov 64   ;;  %s5081_s1 = sld [smem:[#allocation8_spill]] }
  0x29   : > { %s5083_s17 = sld [smem:[#allocation3_spill]] }
  0x2b   : > { %4028 = vmatpush3.bf16.msra.mxu0 %v4135_v4 }
  0x2c   : > { %4055 = vmatprep.subr.bf16.mxu0 %v4330_v3  ;;  %v4136_v17 = vld [vmem:[%s5078_s26] sm:$0xff]   ;;  %v4137_v18 = vld [vmem:[%s5078_s26 + $0x8] sm:$0xff]   ;;  %v4138_v19 = vld [vmem:[%s5078_s26 + $0x10] sm:$0xff]  }
  0x2d   : > { %v4139_v20 = vld [vmem:[%s5078_s26 + $0x18] sm:$0xff]   ;;  %v4140_v21 = vld [vmem:[%s5078_s26 + $0x20] sm:$0xff]   ;;  %v4554_v26 = vld [vmem:[%s5079_s13 + $0x8] sm:$0xff] }
  0x2e   : > { %4030 = vmatmul.mubr.msk.bf16.vlgmr.msra.gmra.mrb[0].mxu0 %vm670_vm3, %v646_v7  ;;  %v4549_v24 = vld [vmem:[%s5079_s13] sm:$0xff]  ;;  %v4562_v33 = vld [vmem:[%s5079_s13 + $0x10] sm:$0xff]  ;;  %v4567_v35 = vld [vmem:[%s5079_s13 + $0x18] sm:$0xff] }
  0x2f   : > { %4057 = vmatprep.mubr.msk.bf16.mxu0 %vm4331_vm2, %v4330_v3  ;;  %v4577_v42 = vld [vmem:[%s5079_s13 + $0x20] sm:$0xff]  ;;  %v4582_v44 = vld [vmem:[%s5079_s13 + $0x28] sm:$0xff]  ;;  %v4592_v51 = vld [vmem:[%s5079_s13 + $0x30] sm:$0xff] }
  0x30   : > { %v4597_v53 = vld [vmem:[%s5079_s13 + $0x38] sm:$0xff]  ;;  %v4606_v60 = vld [vmem:[%s5079_s13 + $0x40] sm:$0xff]  ;;  %v4612_v62 = vld [vmem:[%s5079_s13 + $0x48] sm:$0xff] }
  0x31   : > { %v737_v7 = vld [vmem:[%s5080_s11] sm:$0xff] }
 0x101   : > { %v708_v9 = vpop.f32.mrb[0].mxu0 }
 0x102   : > { %v4031_v10 = vpop.f32.mrb[1].mxu0  ;;  %v709_v12 = vadd.f32 %v3608_v8, %v708_v9 }
 0x103   : > { %v711_v11 = vpop.f32.mrb[2].mxu0 }
 0x104   : > { %v712_v13 = vadd.f32 %v3608_v8, %v711_v11  ;;  %v4032_v14 = vpop.f32.mrb[3].mxu0  ;;  %v738_v11 = vld [vmem:[%s5080_s11 + $0x8] sm:$0xff] }
 0x106   : > { %v4508_v15 = vpack.c.bf16 %v712_v13, %v709_v12 }
 0x108   : > { %882 = vrot.lane.b32.xlu0 %v4508_v15, %s4332_s22  ;;  %v791_v16 = vsel %vm789_vm4, %v4508_v15, 0 }
 0x109   : > { %4034 = vmatpush3.bf16.msra.mxu1 %v791_v16 }
 0x10a   : > { %4077 = vmatprep.subr.bf16.mxu1 %v4330_v3 }
 0x10c   : > { %4036 = vmatmul.mubr.msk.bf16.vlgmr.msra.gmra.mrb[0].mxu1 %vm773_vm5, %v4136_v17 }
 0x10d   : > { %4039 = vmatprep.mubr.msk.bf16.mxu1 %vm4331_vm2, %v4330_v3 }
 0x114   : > { %4040 = vmatmul.mubr.msk.bf16.gmra.mrb[4].mxu1 %vm773_vm5, %v4137_v18 }
 0x115   : > { %4043 = vmatprep.mubr.msk.bf16.mxu1 %vm4331_vm2, %v4330_v3 }
 0x11c   : > { %4044 = vmatmul.mubr.msk.bf16.gmra.mrb[8].mxu1 %vm773_vm5, %v4138_v19 }
 0x11d   : > { %4047 = vmatprep.mubr.msk.bf16.mxu1 %vm4331_vm2, %v4330_v3 }
 0x124   : > { %4048 = vmatmul.mubr.msk.bf16.gmra.mrb[12].mxu1 %vm773_vm5, %v4139_v20  ;;  %v739_v20 = vld [vmem:[%s5080_s11 + $0x10] sm:$0xff] }
 0x125   : > { %4051 = vmatprep.mubr.msk.bf16.mxu1 %vm4331_vm2, %v4330_v3 }
 0x12c   : > { %4052 = vmatmul.mubr.msk.bf16.gmra.mrb[16].mxu1 %vm773_vm5, %v4140_v21 }
 0x12d   : > { %4079 = vmatprep.mubr.msk.bf16.mxu1 %vm4331_vm2, %v4330_v3 }
 0x17a   : > { %v883_v22 = vpop.permute.xlu0 %882 }
 0x17b   : > { %v900_v23 = vsel %vm670_vm3, %v883_v22, 0 }
 0x17c   : > { %4056 = vmatpush3.bf16.xpose.msra.mxu0 %v900_v23 }
 0x17d   : > { %4099 = vmatprep.subr.bf16.mxu0 %v4330_v3 }
 0x1df   : > { %v827_v25 = vpop.f32.mrb[0].mxu1 }
 0x1e0   : > { %v4037_v27 = vpop.f32.mrb[1].mxu1  ;;  %v866_v29 = vmul.f32 %v827_v25, %v4549_v24  ;;  %v740_v25 = vld [vmem:[%s5080_s11 + $0x18] sm:$0xff] }
 0x1e1   : > { %v830_v28 = vpop.f32.mrb[2].mxu1 }
 0x1e2   : > { %v867_v30 = vmul.f32 %v830_v28, %v4554_v26  ;;  %v4038_v31 = vpop.f32.mrb[3].mxu1 }
 0x1e4   : > { %v876_v32 = vpack.c.bf16 %v867_v30, %v866_v29 }
 0x1e6   : > { %4058 = vmatmul.mubr.msk.bf16.vlgmr.msra.gmra.mrb[4].mxu0 %vm670_vm3, %v876_v32 }
 0x1e7   : > { %v835_v34 = vpop.f32.mrb[4].mxu1  ;;  %4061 = vmatprep.mubr.msk.bf16.mxu0 %vm4331_vm2, %v4330_v3 }
 0x1e8   : > { %v4041_v36 = vpop.f32.mrb[5].mxu1  ;;  %v868_v38 = vmul.f32 %v835_v34, %v4562_v33  ;;  %v741_v34 = vld [vmem:[%s5080_s11 + $0x20] sm:$0xff] }
 0x1e9   : > { %v838_v37 = vpop.f32.mrb[6].mxu1 }
 0x1ea   : > { %v869_v39 = vmul.f32 %v838_v37, %v4567_v35  ;;  %v4042_v40 = vpop.f32.mrb[7].mxu1 }
 0x1eb   : > { %v742_v40 = vld [vmem:[%s5080_s11 + $0x28] sm:$0xff] }
 0x1ec   : > { %v877_v41 = vpack.c.bf16 %v869_v39, %v868_v38 }
 0x1ee   : > { %4062 = vmatmul.mubr.msk.bf16.gmra.mrb[8].mxu0 %vm670_vm3, %v877_v41 }
 0x1ef   : > { %v843_v43 = vpop.f32.mrb[8].mxu1  ;;  %4065 = vmatprep.mubr.msk.bf16.mxu0 %vm4331_vm2, %v4330_v3 }
 0x1f0   : > { %v4045_v45 = vpop.f32.mrb[9].mxu1  ;;  %v870_v47 = vmul.f32 %v843_v43, %v4577_v42 }
 0x1f1   : > { %v846_v46 = vpop.f32.mrb[10].mxu1 }
 0x1f2   : > { %v871_v48 = vmul.f32 %v846_v46, %v4582_v44  ;;  %v4046_v49 = vpop.f32.mrb[11].mxu1 }
 0x1f3   : > { %v743_v49 = vld [vmem:[%s5080_s11 + $0x30] sm:$0xff] }
 0x1f4   : > { %v878_v50 = vpack.c.bf16 %v871_v48, %v870_v47 }
 0x1f6   : > { %4066 = vmatmul.mubr.msk.bf16.gmra.mrb[12].mxu0 %vm670_vm3, %v878_v50 }
 0x1f7   : > { %v851_v52 = vpop.f32.mrb[12].mxu1  ;;  %4069 = vmatprep.mubr.msk.bf16.mxu0 %vm4331_vm2, %v4330_v3 }
 0x1f8   : > { %v4049_v54 = vpop.f32.mrb[13].mxu1  ;;  %v872_v56 = vmul.f32 %v851_v52, %v4592_v51 }
 0x1f9   : > { %v854_v55 = vpop.f32.mrb[14].mxu1 }
 0x1fa   : > { %v873_v57 = vmul.f32 %v854_v55, %v4597_v53  ;;  %v4050_v58 = vpop.f32.mrb[15].mxu1 }
 0x1fc   : > { %v879_v59 = vpack.c.bf16 %v873_v57, %v872_v56  ;;  %v744_v56 = vld [vmem:[%s5080_s11 + $0x38] sm:$0xff] }
 0x1fe   : > { %4070 = vmatmul.mubr.msk.bf16.gmra.mrb[16].mxu0 %vm670_vm3, %v879_v59 }
 0x1ff   : > { %v859_v61 = vpop.f32.mrb[16].mxu1  ;;  %4073 = vmatprep.mubr.msk.bf16.mxu0 %vm4331_vm2, %v4330_v3 }
 0x200   : > { %v874_v63 = vmul.f32 %v859_v61, %v4606_v60  ;;  %v4053_v0 = vpop.f32.mrb[17].mxu1 }
 0x201   : > { %v862_v1 = vpop.f32.mrb[18].mxu1 }
 0x202   : > { %v875_v2 = vmul.f32 %v862_v1, %v4612_v62  ;;  %v4054_v4 = vpop.f32.mrb[19].mxu1  ;;  %v745_v1 = vld [vmem:[%s5080_s11 + $0x40] sm:$0xff] }
 0x204   : > { %v880_v5 = vpack.c.bf16 %v875_v2, %v874_v63 }
 0x206   : > { %4074 = vmatmul.mubr.msk.bf16.gmra.mrb[20].mxu0 %vm670_vm3, %v880_v5 }
 0x207   : > { %4109 = vmatprep.mubr.msk.bf16.mxu0 %vm4331_vm2, %v4330_v3 }
 0x2b9   : > { %v936_v6 = vpop.f32.mrb[4].mxu0 }
 0x2ba   : > { %v975_v8 = vmul.f32 0.5, %v936_v6  ;;  %v4059_v9 = vpop.f32.mrb[5].mxu0 }
 0x2bb   : > { %v939_v10 = vpop.f32.mrb[6].mxu0 }
 0x2bc   : > { %v976_v12 = vmul.f32 0.5, %v939_v10  ;;  %v4060_v13 = vpop.f32.mrb[7].mxu0  ;;  %v4627_v14 = vadd.f32 %v975_v8, %v737_v7  ;;  %v746_v7 = vld [vmem:[%s5080_s11 + $0x48] sm:$0xff] }
 0x2be   : > { %v995_v16 = vsel %vm773_vm5, %v4627_v14, -inf  ;;  %v4631_v17 = vadd.f32 %v976_v12, %v738_v11 }
 0x2bf   : > { %996 = vmax.xlane.f32.xlu0 %v995_v16 }
 0x2c0   : > { %v998_v18 = vsel %vm773_vm5, %v4631_v17, -inf }
 0x2c1   : > { %999 = vmax.xlane.f32.xlu1 %v998_v18  ;;  %v944_v19 = vpop.f32.mrb[8].mxu0 }
 0x2c2   : > { %v977_v21 = vmul.f32 0.5, %v944_v19  ;;  %v4063_v22 = vpop.f32.mrb[9].mxu0 }
 0x2c3   : > { %v947_v23 = vpop.f32.mrb[10].mxu0 }
 0x2c4   : > { %v978_v27 = vmul.f32 0.5, %v947_v23  ;;  %v4064_v28 = vpop.f32.mrb[11].mxu0  ;;  %v987_v29 = vadd.f32 %v977_v21, %v739_v20 }
 0x2c6   : > { %v1001_v30 = vsel %vm773_vm5, %v987_v29, -inf  ;;  %v988_v31 = vadd.f32 %v978_v27, %v740_v25 }
 0x2c7   : > { %1002 = vmax.xlane.f32.xlu1 %v1001_v30 }
 0x2c8   : > { %v1004_v38 = vsel %vm773_vm5, %v988_v31, -inf }
 0x2c9   : > { %v952_v32 = vpop.f32.mrb[12].mxu0 }
 0x2ca   : > { %v979_v36 = vmul.f32 0.5, %v952_v32  ;;  %v4067_v37 = vpop.f32.mrb[13].mxu0 }
 0x2cb   : > { %1005 = vmax.xlane.f32.xlu1 %v1004_v38  ;;  %v955_v39 = vpop.f32.mrb[14].mxu0 }
 0x2cc   : > { %v980_v41 = vmul.f32 0.5, %v955_v39  ;;  %v4068_v43 = vpop.f32.mrb[15].mxu0  ;;  %v989_v45 = vadd.f32 %v979_v36, %v741_v34 }
 0x2ce   : > { %v1007_v46 = vsel %vm773_vm5, %v989_v45, -inf  ;;  %v990_v47 = vadd.f32 %v980_v41, %v742_v40 }
 0x2cf   : > { %1008 = vmax.xlane.f32.xlu1 %v1007_v46 }
 0x2d0   : > { %v1010_v54 = vsel %vm773_vm5, %v990_v47, -inf }
 0x2d1   : > { %v960_v48 = vpop.f32.mrb[16].mxu0 }
 0x2d2   : > { %v981_v50 = vmul.f32 0.5, %v960_v48  ;;  %v4071_v52 = vpop.f32.mrb[17].mxu0 }
 0x2d3   : > { %1011 = vmax.xlane.f32.xlu1 %v1010_v54  ;;  %v963_v55 = vpop.f32.mrb[18].mxu0 }
 0x2d4   : > { %v982_v57 = vmul.f32 0.5, %v963_v55  ;;  %v4072_v58 = vpop.f32.mrb[19].mxu0  ;;  %v991_v59 = vadd.f32 %v981_v50, %v743_v49 }
 0x2d6   : > { %v1013_v61 = vsel %vm773_vm5, %v991_v59, -inf  ;;  %v992_v63 = vadd.f32 %v982_v57, %v744_v56 }
 0x2d7   : > { %1014 = vmax.xlane.f32.xlu1 %v1013_v61 }
 0x2d8   : > { %v1016_v4 = vsel %vm773_vm5, %v992_v63, -inf }
 0x2d9   : > { %v968_v0 = vpop.f32.mrb[20].mxu0 }
 0x2da   : > { %v983_v2 = vmul.f32 0.5, %v968_v0  ;;  %v4075_v5 = vpop.f32.mrb[21].mxu0 }
 0x2db   : > { %1017 = vmax.xlane.f32.xlu1 %v1016_v4  ;;  %v971_v6 = vpop.f32.mrb[22].mxu0 }
 0x2dc   : > { %v984_v8 = vmul.f32 0.5, %v971_v6  ;;  %v993_v9 = vadd.f32 %v983_v2, %v745_v1  ;;  %v4076_v10 = vpop.f32.mrb[23].mxu0 }
 0x2de   : > { %v1019_v11 = vsel %vm773_vm5, %v993_v9, -inf  ;;  %v994_v12 = vadd.f32 %v984_v8, %v746_v7 }
 0x2df   : > { %1020 = vmax.xlane.f32.xlu1 %v1019_v11 }
 0x2e0   : > { %v1022_v13 = vsel %vm773_vm5, %v994_v12, -inf }
 0x2e3   : > { %1023 = vmax.xlane.f32.xlu1 %v1022_v13 }
 0x34c   : > { %v997_v16 = vpop.xlane.xlu0 %996 }
 0x34d   : > { %v1025_v18 = vsub.f32 %v4627_v14, %v997_v16 }
 0x34e   : > { %v1000_v19 = vpop.xlane.xlu1 %999 }
 0x34f   : > { %v1035_v20 = vmul.f32 1.442695, %v1025_v18  ;;  %v1026_v21 = vsub.f32 %v4631_v17, %v1000_v19 }
 0x351   : > { %4272 = vpow2.f32 %v1035_v20  ;;  %v1037_v22 = vmul.f32 1.442695, %v1026_v21 }
 0x353   : > { %4274 = vpow2.f32 %v1037_v22 }
 0x354   : > { %v1003_v23 = vpop.xlane.xlu1 %1002 }
 0x355   : > { %v1027_v25 = vsub.f32 %v987_v29, %v1003_v23 }
 0x357   : > { %v1039_v27 = vmul.f32 1.442695, %v1027_v25 }
 0x358   : > { %v1006_v28 = vpop.xlane.xlu1 %1005 }
 0x359   : > { %4276 = vpow2.f32 %v1039_v27  ;;  %v1028_v30 = vsub.f32 %v988_v31, %v1006_v28 }
 0x35b   : > { %v4669_v32 = vpop.eup %4272  ;;  %v1041_v34 = vmul.f32 1.442695, %v1028_v30 }
 0x35c   : > { %v1009_v36 = vpop.xlane.xlu1 %1008  ;;  %v1055_v14 = vsel %vm773_vm5, %v4669_v32, 0.0 }
 0x35d   : > { %v4673_v37 = vpop.eup %4274  ;;  %4278 = vpow2.f32 %v1041_v34  ;;  %v1029_v17 = vsub.f32 %v989_v45, %v1009_v36  ;;  %1056 = vadd.xlane.f32.xlu0 %v1055_v14 }
 0x35e   : > { %v1058_v38 = vsel %vm773_vm5, %v4673_v37, 0.0 }
 0x35f   : > { %v1043_v29 = vmul.f32 1.442695, %v1029_v17  ;;  %1059 = vadd.xlane.f32.xlu1 %v1058_v38 }
 0x360   : > { %v1012_v39 = vpop.xlane.xlu1 %1011 }
 0x361   : > { %4280 = vpow2.f32 %v1043_v29  ;;  %v1030_v31 = vsub.f32 %v990_v47, %v1012_v39 }
 0x363   : > { %v4677_v40 = vpop.eup %4276  ;;  %v1045_v41 = vmul.f32 1.442695, %v1030_v31 }
 0x364   : > { %v1015_v43 = vpop.xlane.xlu1 %1014  ;;  %v1061_v46 = vsel %vm773_vm5, %v4677_v40, 0.0 }
 0x365   : > { %4282 = vpow2.f32 %v1045_v41  ;;  %v1031_v48 = vsub.f32 %v991_v59, %v1015_v43  ;;  %1062 = vadd.xlane.f32.xlu0 %v1061_v46 }
 0x367   : > { %v4681_v45 = vpop.eup %4278  ;;  %v1047_v49 = vmul.f32 1.442695, %v1031_v48 }
 0x368   : > { %v1018_v50 = vpop.xlane.xlu1 %1017  ;;  %v1064_v52 = vsel %vm773_vm5, %v4681_v45, 0.0 }
 0x369   : > { %4284 = vpow2.f32 %v1047_v49  ;;  %v1032_v54 = vsub.f32 %v992_v63, %v1018_v50  ;;  %1065 = vadd.xlane.f32.xlu1 %v1064_v52 }
 0x36b   : > { %v4685_v47 = vpop.eup %4280  ;;  %v1049_v55 = vmul.f32 1.442695, %v1032_v54 }
 0x36c   : > { %v1021_v56 = vpop.xlane.xlu1 %1020  ;;  %v1067_v57 = vsel %vm773_vm5, %v4685_v47, 0.0 }
 0x36d   : > { %4286 = vpow2.f32 %v1049_v55  ;;  %v1033_v58 = vsub.f32 %v993_v9, %v1021_v56  ;;  %1068 = vadd.xlane.f32.xlu0 %v1067_v57 }
 0x36f   : > { %v4283_v59 = vpop.eup %4282  ;;  %v1051_v61 = vmul.f32 1.442695, %v1033_v58 }
 0x370   : > { %v1024_v0 = vpop.xlane.xlu1 %1023  ;;  %v1070_v1 = vsel %vm773_vm5, %v4283_v59, 0.0 }
 0x371   : > { %4288 = vpow2.f32 %v1051_v61  ;;  %v1034_v2 = vsub.f32 %v994_v12, %v1024_v0  ;;  %1071 = vadd.xlane.f32.xlu1 %v1070_v1 }
 0x373   : > { %v4690_v63 = vpop.eup %4284  ;;  %v1053_v4 = vmul.f32 1.442695, %v1034_v2 }
 0x374   : > { %v1073_v5 = vsel %vm773_vm5, %v4690_v63, 0.0 }
 0x375   : > { %4290 = vpow2.f32 %v1053_v4  ;;  %1074 = vadd.xlane.f32.xlu0 %v1073_v5 }
 0x377   : > { %v4287_v6 = vpop.eup %4286 }
 0x378   : > { %v1076_v7 = vsel %vm773_vm5, %v4287_v6, 0.0 }
 0x379   : > { %1077 = vadd.xlane.f32.xlu1 %v1076_v7 }
 0x37b   : > { %v4289_v8 = vpop.eup %4288 }
 0x37c   : > { %v1079_v9 = vsel %vm773_vm5, %v4289_v8, 0.0 }
 0x37d   : > { %1080 = vadd.xlane.f32.xlu1 %v1079_v9 }
 0x37f   : > { %v4291_v10 = vpop.eup %4290 }
 0x380   : > { %v1082_v11 = vsel %vm773_vm5, %v4291_v10, 0.0 }
 0x381   : > { %1083 = vadd.xlane.f32.xlu1 %v1082_v11 }
 0x38b   : > { %1110 = vrot.lane.b32.xlu0 %v4508_v15, %s4333_s21 }
 0x3ea   : > { %v1057_v13 = vpop.xlane.xlu0 %1056 }
 0x3ec   : > { %v1060_v12 = vpop.xlane.xlu1 %1059 }
 0x3ed   : > { %4292 = vrcp.f32 %v1060_v12 }
 0x3ee   : > { %4294 = vrcp.f32 %v1057_v13 }
 0x3f2   : > { %v1063_v16 = vpop.xlane.xlu0 %1062 }
 0x3f6   : > { %v1066_v18 = vpop.xlane.xlu1 %1065 }
 0x3f7   : > { %4296 = vrcp.f32 %v1066_v18  ;;  %v4293_v20 = vpop.eup %4292 }
 0x3f8   : > { %4298 = vrcp.f32 %v1063_v16  ;;  %v4295_v22 = vpop.eup %4294  ;;  %v1096_v23 = vmul.f32 %v4293_v20, %v4673_v37 }
 0x3f9   : > { %v1095_v28 = vmul.f32 %v4295_v22, %v4669_v32 }
 0x3fa   : > { %v1069_v19 = vpop.xlane.xlu0 %1068 }
 0x3fb   : > { %v1105_v30 = vpack.c.bf16 %v1096_v23, %v1095_v28 }
 0x3fe   : > { %v1072_v25 = vpop.xlane.xlu1 %1071 }
 0x3ff   : > { %4300 = vrcp.f32 %v1072_v25 }
 0x400   : > { %4302 = vrcp.f32 %v1069_v19 }
 0x401   : > { %v4297_v36 = vpop.eup %4296 }
 0x402   : > { %v1075_v21 = vpop.xlane.xlu0 %1074  ;;  %v4299_v14 = vpop.eup %4298  ;;  %v1098_v37 = vmul.f32 %v4297_v36, %v4681_v45 }
 0x403   : > { %v1097_v38 = vmul.f32 %v4299_v14, %v4677_v40 }
 0x405   : > { %v1106_v32 = vpack.c.bf16 %v1098_v37, %v1097_v38  ;;  %v3634_v37 = vld [vmem:[%s5082_s12] ss:$0 sm:$0xff] }
 0x406   : > { %v1111_v27 = vpop.permute.xlu0 %1110  ;;  %v1078_v34 = vpop.xlane.xlu1 %1077 }
 0x407   : > { %v1128_v15 = vsel %vm789_vm4, %v1111_v27, 0  ;;  %4304 = vrcp.f32 %v1078_v34 }
 0x408   : > { %4078 = vmatpush3.bf16.msra.mxu1 %v1128_v15  ;;  %4306 = vrcp.f32 %v1075_v21 }
 0x409   : > { %v4301_v29 = vpop.eup %4300 }
 0x40a   : > { %v1081_v17 = vpop.xlane.xlu1 %1080  ;;  %v4303_v39 = vpop.eup %4302  ;;  %v1100_v41 = vmul.f32 %v4301_v29, %v4283_v59 }
 0x40b   : > { %4080 = vmatmul.mubr.msk.bf16.vlgmr.msra.gmra.mrb[20].mxu1 %vm773_vm5, %v1105_v30  ;;  %v1099_v43 = vmul.f32 %v4303_v39, %v4685_v47 }
 0x40c   : > { %4083 = vmatprep.mubr.msk.bf16.mxu1 %vm4331_vm2, %v4330_v3 }
 0x40d   : > { %v1107_v46 = vpack.c.bf16 %v1100_v41, %v1099_v43 }
 0x40e   : > { %v1084_v31 = vpop.xlane.xlu1 %1083 }
 0x40f   : > { %4308 = vrcp.f32 %v1084_v31 }
 0x410   : > { %4310 = vrcp.f32 %v1081_v17 }
 0x411   : > { %v4305_v48 = vpop.eup %4304 }
 0x412   : > { %v4307_v40 = vpop.eup %4306  ;;  %v1102_v45 = vmul.f32 %v4305_v48, %v4287_v6 }
 0x413   : > { %4084 = vmatmul.mubr.msk.bf16.gmra.mrb[24].mxu1 %vm773_vm5, %v1106_v32  ;;  %v1101_v49 = vmul.f32 %v4307_v40, %v4690_v63 }
 0x414   : > { %4087 = vmatprep.mubr.msk.bf16.mxu1 %vm4331_vm2, %v4330_v3 }
 0x415   : > { %v1108_v50 = vpack.c.bf16 %v1102_v45, %v1101_v49 }
 0x419   : > { %v4309_v52 = vpop.eup %4308 }
 0x41a   : > { %v4311_v54 = vpop.eup %4310  ;;  %v1104_v47 = vmul.f32 %v4309_v52, %v4291_v10 }
 0x41b   : > { %4088 = vmatmul.mubr.msk.bf16.gmra.mrb[28].mxu1 %vm773_vm5, %v1107_v46  ;;  %v1103_v55 = vmul.f32 %v4311_v54, %v4289_v8  ;;  %v4321_v46 = vld [vmem:[%s5059_s15 + $0x8] sm:$0x3] }
 0x41c   : > { %4091 = vmatprep.mubr.msk.bf16.mxu1 %vm4331_vm2, %v4330_v3 }
 0x41d   : > { %v1109_v56 = vpack.c.bf16 %v1104_v47, %v1103_v55 }
 0x423   : > { %4092 = vmatmul.mubr.msk.bf16.gmra.mrb[32].mxu1 %vm773_vm5, %v1108_v50 }
 0x424   : > { %4095 = vmatprep.mubr.msk.bf16.mxu1 %vm4331_vm2, %v4330_v3 }
 0x42b   : > { %4096 = vmatmul.mubr.msk.bf16.gmra.mrb[36].mxu1 %vm773_vm5, %v1109_v56 }
 0x4de   : > { %v1164_v57 = vpop.f32.mrb[20].mxu1 }
 0x4df   : > { %v4081_v58 = vpop.f32.mrb[21].mxu1  ;;  %v1203_v61 = vmul.f32 %v1164_v57, %v4549_v24 }
 0x4e0   : > { %v1167_v59 = vpop.f32.mrb[22].mxu1 }
 0x4e1   : > { %v1204_v0 = vmul.f32 %v1167_v59, %v4554_v26  ;;  %v4082_v1 = vpop.f32.mrb[23].mxu1  ;;  %v1386_v59 = vld [vmem:[%s4452_s25] sm:$0xff] }
 0x4e3   : > { %v1213_v2 = vpack.c.bf16 %v1204_v0, %v1203_v61  ;;  %v1394_v61 = vld [vmem:[%s4452_s25 + $0x40] sm:$0xff]  ;;  %v1388_v0 = vld [vmem:[%s4452_s25 + $0x10] sm:$0xff] }
 0x4e4   : > { %v3642_v1 = vcombine.high %v1386_v59, %v1394_v61 }
 0x4e5   : > { %4100 = vmatpush3.bf16.msra.mxu0 %v1213_v2  ;;  %v1396_v2 = vld [vmem:[%s4452_s25 + $0x50] sm:$0xff] }
 0x4e6   : > { %v1172_v63 = vpop.f32.mrb[24].mxu1  ;;  %4101 = vmatprep.subr.bf16.mxu0 %v4330_v3 }
 0x4e7   : > { %v4085_v4 = vpop.f32.mrb[25].mxu1  ;;  %v1205_v6 = vmul.f32 %v1172_v63, %v4562_v33  ;;  %v3641_v63 = vcombine.low %v1386_v59, %v1394_v61  ;;  %v1391_v59 = vld [vmem:[%s4452_s25 + $0x28] sm:$0xff] }
 0x4e8   : > { %v1175_v5 = vpop.f32.mrb[26].mxu1  ;;  %v3645_v4 = vcombine.low %v1388_v0, %v1396_v2  ;;  %v1399_v61 = vld [vmem:[%s4452_s25 + $0x68] sm:$0xff] }
 0x4e9   : > { %v1206_v7 = vmul.f32 %v1175_v5, %v4567_v35  ;;  %v4086_v8 = vpop.f32.mrb[27].mxu1  ;;  %v3646_v5 = vcombine.high %v1388_v0, %v1396_v2  ;;  %v3652_v2 = vcombine.high %v1391_v59, %v1399_v61 }
 0x4ea   : > { %v1404_v8 = vld [vmem:[%s4452_s25 + $0x90] sm:$0xff] }
 0x4eb   : > { %v1214_v9 = vpack.c.bf16 %v1206_v7, %v1205_v6  ;;  %1751 = vmatprep.subr.bf16.mxu1 %v3646_v5  ;;  %v1402_v6 = vld [vmem:[%s4452_s25 + $0x80] sm:$0xff]  ;;  %v1415_v5 = vld [vmem:[%s4452_s25 + $0xe8] sm:$0xff] }
 0x4ec   : > { %v1410_v7 = vld [vmem:[%s4452_s25 + $0xc0] sm:$0xff]  ;;  %1752 = vmatpush1.bf16.msra.mxu1 %v3645_v4  ;;  %v1407_v4 = vld [vmem:[%s4452_s25 + $0xa8] sm:$0xff] }
 0x4ed   : > { %4102 = vmatpush3.bf16.msra.mxu0 %v1214_v9  ;;  %v3658_v9 = vcombine.high %v1402_v6, %v1410_v7 }
 0x4ee   : > { %v1180_v10 = vpop.f32.mrb[28].mxu1  ;;  %4103 = vmatprep.subr.bf16.mxu0 %v4330_v3 }
 0x4ef   : > { %v4089_v24 = vpop.f32.mrb[29].mxu1  ;;  %v1207_v11 = vmul.f32 %v1180_v10, %v4577_v42  ;;  %v1412_v10 = vld [vmem:[%s4452_s25 + $0xd0] sm:$0xff] }
 0x4f0   : > { %v1183_v26 = vpop.f32.mrb[30].mxu1  ;;  %v3657_v24 = vcombine.low %v1402_v6, %v1410_v7  ;;  %v3651_v6 = vcombine.low %v1391_v59, %v1399_v61  ;;  %v3668_v7 = vcombine.high %v1407_v4, %v1415_v5 }
 0x4f1   : > { %v1208_v12 = vmul.f32 %v1183_v26, %v4582_v44  ;;  %v4090_v13 = vpop.f32.mrb[31].mxu1  ;;  %v3661_v26 = vcombine.low %v1404_v8, %v1412_v10 }
 0x4f2   : > { %v1395_v13 = vld [vmem:[%s4452_s25 + $0x48] sm:$0xff] }
 0x4f3   : > { %v1215_v16 = vpack.c.bf16 %v1208_v12, %v1207_v11  ;;  %v3662_v11 = vcombine.high %v1404_v8, %v1412_v10  ;;  %v1387_v12 = vld [vmem:[%s4452_s25 + $0x8] sm:$0xff]  ;;  %v4145_v8 = vld [vmem:[%s4467_s14] sm:$0xff]   ;;  %v1401_v10 = vld [vmem:[%s4452_s25 + $0x78] sm:$0xff] }
 0x4f5   : > { %4104 = vmatpush3.bf16.msra.mxu0 %v1215_v16  ;;  %1753 = vmatprep.subr.bf16.mxu1 %v3662_v11  ;;  %v1390_v16 = vld [vmem:[%s4452_s25 + $0x20] sm:$0xff] }
 0x4f6   : > { %v1188_v18 = vpop.f32.mrb[32].mxu1  ;;  %4105 = vmatprep.subr.bf16.mxu0 %v4330_v3  ;;  %1754 = vmatpush1.bf16.msra.mxu1 %v3661_v26  ;;  %v3667_v26 = vcombine.low %v1407_v4, %v1415_v5 }
 0x4f7   : > { %v4093_v33 = vpop.f32.mrb[33].mxu1  ;;  %v1209_v19 = vmul.f32 %v1188_v18, %v4592_v51  ;;  %v4141_v51 = vld [vmem:[%s5081_s1] sm:$0x1f]   ;;  %v3644_v18 = vcombine.high %v1387_v12, %v1395_v13 }
 0x4f8   : > { %v1191_v35 = vpop.f32.mrb[34].mxu1  ;;  %v1398_v33 = vld [vmem:[%s4452_s25 + $0x60] sm:$0xff] }
 0x4f9   : > { %v1210_v20 = vmul.f32 %v1191_v35, %v4597_v53  ;;  %v4094_v21 = vpop.f32.mrb[35].mxu1  ;;  %v4142_v53 = vld [vmem:[%s4436_s30] sm:$0xff]   ;;  %v4334_v35 = vmov 0  }
 0x4fa   : > { %1783 = vmatprep.mubr.bf16.mxu1 %v4334_v35  ;;  %v3650_v21 = vcombine.high %v1390_v16, %v1398_v33 }
 0x4fb   : > { %v1216_v22 = vpack.c.bf16 %v1210_v20, %v1209_v19  ;;  %v3643_v19 = vcombine.low %v1387_v12, %v1395_v13  ;;  %v3649_v20 = vcombine.low %v1390_v16, %v1398_v33  ;;  %v4147_v12 = vld [vmem:[%s4467_s14 + $0x8] sm:$0xff]   ;;  %v1409_v13 = vld [vmem:[%s4452_s25 + $0xb8] sm:$0xff] }
 0x4fc   : > { %1837 = vmatprep.subr.bf16.mxu1 %v3650_v21  ;;  %v1417_v16 = vld [vmem:[%s4452_s25 + $0xf8] sm:$0xff] }
 0x4fd   : > { %4106 = vmatpush3.bf16.msra.mxu0 %v1216_v22  ;;  %v4152_v21 = vld [vmem:[%s4467_s14 + $0x58] sm:$0xff]  }
 0x4fe   : > { %v1196_v23 = vpop.f32.mrb[36].mxu1  ;;  %4107 = vmatprep.subr.bf16.mxu0 %v4330_v3 }
 0x4ff   : > { %v4097_v42 = vpop.f32.mrb[37].mxu1  ;;  %v1211_v25 = vmul.f32 %v1196_v23, %v4606_v60  ;;  %v4143_v60 = vld [vmem:[%s4436_s30 + $0x8] sm:$0xff]  }
 0x500   : > { %v1199_v44 = vpop.f32.mrb[38].mxu1 }
 0x501   : > { %v1212_v27 = vmul.f32 %v1199_v44, %v4612_v62  ;;  %v4098_v28 = vpop.f32.mrb[39].mxu1 }
 0x503   : > { %v1217_v15 = vpack.c.bf16 %v1212_v27, %v1211_v25 }
 0x505   : > { %4108 = vmatpush3.bf16.msra.mxu0 %v1217_v15 }
 0x506   : > { %4113 = vmatprep.subr.bf16.mxu0 %v4330_v3 }
 0x508   : > { %4110 = vmatmul.mubr.msk.bf16.vlgmr.msra.gmra.mrb[24].mxu0 %vm1223_vm6, %v4141_v51  ;;  %v3639_v51 = vld [vmem:[%s5083_s17] ss:$0 sm:$0xff] }
 0x509   : > { %4114 = vmatpush3.bf16.msra.mxu0 %v4142_v53  ;;  %4117 = vmatprep.mubr.msk.bf16.mxu0 %vm4331_vm2, %v4330_v3 }
 0x50a   : > { %4115 = vmatprep.subr.bf16.mxu0 %v4330_v3  ;;  %v4320_v3 = vld [vmem:[%s5059_s15] sm:$0xff] }
 0x50d   : > { %4116 = vmatpush3.bf16.msra.mxu0 %v4143_v60 }
 0x50e   : > { %1665 = vmatprep.subr.bf16.mxu0 %v3642_v1 }
 0x5db   : > { %v1261_v62 = vpop.f32.mrb[24].mxu0 }
 0x5dc   : > { %v4111_v30 = vpop.f32.mrb[25].mxu0 }
 0x5dd   : > { %v1264_v34 = vpop.f32.mrb[26].mxu0  ;;  %v3640_v30 = vld [vmem:[%s5083_s17 + $0x1] ss:$0 sm:$0xff] }
 0x5de   : > { %v1268_v36 = vpack.c.bf16 %v1264_v34, %v1261_v62  ;;  %v4112_v14 = vpop.f32.mrb[27].mxu0 }
 0x5df   : > { %v1411_v14 = vld [vmem:[%s4452_s25 + $0xc8] sm:$0xff] }
 0x5e0   : > { %4118 = vmatmul.mubr.msk.bf16.vlgmr.msra.gmra.mrb[28].mxu0 %vm670_vm3, %v1268_v36  ;;  %v1403_v36 = vld [vmem:[%s4452_s25 + $0x88] sm:$0xff] }
 0x5e1   : > { %1666 = vmatpush1.bf16.msra.mxu0 %v3641_v63  ;;  %1697 = vmatprep.mubr.bf16.mxu0 %v4334_v35  ;;  %v4144_v63 = vld [vmem:[%s4467_s14 + $0x40] sm:$0xff]  }
 0x5e2   : > { %1667 = vmatprep.subr.bf16.mxu0 %v3658_v9  ;;  %v1393_v9 = vld [vmem:[%s4452_s25 + $0x38] sm:$0xff] }
 0x5e3   : > { %v3656_v11 = vcombine.high %v1393_v9, %v1401_v10  ;;  %v3655_v33 = vcombine.low %v1393_v9, %v1401_v10 }
 0x5e5   : > { %1668 = vmatpush1.bf16.msra.mxu0 %v3657_v24  ;;  %v4146_v24 = vld [vmem:[%s4467_s14 + $0x48] sm:$0xff]  }
 0x5e6   : > { %1708 = vmatprep.subr.bf16.mxu0 %v3644_v18  ;;  %v4148_v18 = vld [vmem:[%s4467_s14 + $0x50] sm:$0xff]  }
 0x6b3   : > { %v1329_v17 = vpop.f32.mrb[28].mxu0 }
 0x6b4   : > { %v1330_v38 = vadd.f32 %v3634_v37, %v1329_v17  ;;  %v4119_v32 = vpop.f32.mrb[29].mxu0  ;;  %v1414_v17 = vld [vmem:[%s4452_s25 + $0xe0] sm:$0xff] }
 0x6b5   : > { %v1332_v29 = vpop.f32.mrb[30].mxu0 }
 0x6b6   : > { %v1333_v39 = vadd.f32 %v3634_v37, %v1332_v29  ;;  %v1336_v31 = vadd.f32 %v4320_v3, %v1330_v38  ;;  %v4120_v41 = vpop.f32.mrb[31].mxu0  ;;  %v1406_v37 = vld [vmem:[%s4452_s25 + $0xa0] sm:$0xff] }
 0x6b7   : > { %v3666_v3 = vcombine.high %v1406_v37, %v1414_v17  ;;  %v1397_v41 = vld [vmem:[%s4452_s25 + $0x58] sm:$0xff] }
 0x6b8   : > { %v1341_v43 = vsel %vm670_vm3, %v1336_v31, 0.0  ;;  %v1337_v48 = vadd.f32 %v4321_v46, %v1333_v39  ;;  %v3660_v39 = vcombine.high %v1403_v36, %v1411_v14  ;;  %v1400_v46 = vld [vmem:[%s4452_s25 + $0x70] sm:$0xff] }
 0x6b9   : > { %1342 = vadd.xlane.f32.xlu1 %v1341_v43  ;;  %v1392_v43 = vld [vmem:[%s4452_s25 + $0x30] sm:$0xff] }
 0x6ba   : > { %v1345_v40 = vsel %vm1344_vm7, %v1337_v48, 0.0 }
 0x6bd   : > { %1346 = vadd.xlane.f32.xlu1 %v1345_v40  ;;  %v3665_v40 = vcombine.low %v1406_v37, %v1414_v17  ;;  %v4167_v37 = vld [vmem:[%s4467_s14 + $0xa0] sm:$0xff]   ;;  %v4168_v17 = vld [vmem:[%s4467_s14 + $0x78] sm:$0xff]  }
 0x746   : > { %v1343_v45 = vpop.xlane.xlu1 %1342 }
 0x747   : > { %v1349_v49 = vmul.f32 0.03125, %v1343_v45 }
 0x749   : > { %v1351_v50 = vsub.f32 %v1336_v31, %v1349_v49  ;;  %v1389_v31 = vld [vmem:[%s4452_s25 + $0x18] sm:$0xff]  ;;  %v3654_v49 = vcombine.high %v1392_v43, %v1400_v46 }
 0x74a   : > { %v1347_v52 = vpop.xlane.xlu1 %1346  ;;  %v3648_v45 = vcombine.high %v1389_v31, %v1397_v41 }
 0x74b   : > { %v1350_v54 = vmul.f32 0.03125, %v1347_v52  ;;  %v1353_v47 = vmul.f32 %v1351_v50, %v1351_v50  ;;  %v1413_v52 = vld [vmem:[%s4452_s25 + $0xd8] sm:$0xff] }
 0x74d   : > { %v1352_v55 = vsub.f32 %v1337_v48, %v1350_v54  ;;  %v1355_v56 = vsel %vm670_vm3, %v1353_v47, 0.0  ;;  %v3659_v48 = vcombine.low %v1403_v36, %v1411_v14  ;;  %v1408_v54 = vld [vmem:[%s4452_s25 + $0xb0] sm:$0xff]  ;;  %v4165_v36 = vld [vmem:[%s4467_s14 + $0xe0] sm:$0xff]  }
 0x74e   : > { %1356 = vadd.xlane.f32.xlu1 %v1355_v56  ;;  %v1416_v47 = vld [vmem:[%s4452_s25 + $0xf0] sm:$0xff]  ;;  %v3653_v56 = vcombine.low %v1392_v43, %v1400_v46  ;;  %v4176_v46 = vld [vmem:[%s4467_s14 + $0xf8] sm:$0xff]  }
 0x74f   : > { %v1354_v57 = vmul.f32 %v1352_v55, %v1352_v55  ;;  %v3669_v1 = vcombine.low %v1408_v54, %v1416_v47  ;;  %v4166_v14 = vld [vmem:[%s4467_s14 + $0x30] sm:$0xff]  }
 0x750   : > { %v4174_v43 = vld [vmem:[%s4467_s14 + $0xb0] sm:$0xff]  }
 0x751   : > { %v1358_v58 = vsel %vm1344_vm7, %v1354_v57, 0.0 }
 0x752   : > { %1359 = vadd.xlane.f32.xlu1 %v1358_v58  ;;  %v3670_v58 = vcombine.high %v1408_v54, %v1416_v47 }
 0x7db   : > { %v1357_v22 = vpop.xlane.xlu1 %1356 }
 0x7dc   : > { %v1361_v23 = vmul.f32 0.03125, %v1357_v22  ;;  %v3671_v22 = vcombine.low %v1409_v13, %v1417_v16 }
 0x7de   : > { %v1363_v42 = vadd.f32 1e-05, %v1361_v23  ;;  %v4149_v23 = vld [vmem:[%s4467_s14 + $0xc0] sm:$0xff]  }
 0x7df   : > { %v1360_v44 = vpop.xlane.xlu1 %1359 }
 0x7e0   : > { %4312 = vrsqrt.f32 %v1363_v42  ;;  %v1362_v25 = vmul.f32 0.03125, %v1360_v44  ;;  %v4154_v42 = vld [vmem:[%s4467_s14 + $0x18] sm:$0xff]   ;;  %v4156_v44 = vld [vmem:[%s4467_s14 + $0x60] sm:$0xff]  }
 0x7e2   : > { %v1364_v27 = vadd.f32 1e-05, %v1362_v25  ;;  %v4151_v25 = vld [vmem:[%s4467_s14 + $0x80] sm:$0xff]  }
 0x7e4   : > { %4314 = vrsqrt.f32 %v1364_v27  ;;  %v4153_v27 = vld [vmem:[%s4467_s14 + $0xc8] sm:$0xff]  }
 0x7ea   : > { %v4313_v28 = vpop.eup %4312 }
 0x7eb   : > { %v1367_v15 = vmul.f32 %v4313_v28, %v1351_v50  ;;  %v1405_v50 = vld [vmem:[%s4452_s25 + $0x98] sm:$0xff]  ;;  %v4158_v28 = vld [vmem:[%s4467_s14 + $0x20] sm:$0xff]  }
 0x7ec   : > { %v3664_v57 = vcombine.high %v1405_v50, %v1413_v52  ;;  %v3663_v0 = vcombine.low %v1405_v50, %v1413_v52  ;;  %v4861_v52 = vld [vmem:[%s4457_s29 + $0x8] sm:$0xff] }
 0x7ed   : > { %v1375_v60 = vmul.f32 %v3639_v51, %v1367_v15  ;;  %v4155_v15 = vld [vmem:[%s4467_s14 + $0x88] sm:$0xff]  }
 0x7ee   : > { %v4315_v53 = vpop.eup %4314 }
 0x7ef   : > { %v1368_v62 = vmul.f32 %v4315_v53, %v1352_v55  ;;  %v4777_v38 = vadd.f32 %v3640_v30, %v1375_v60  ;;  %v3647_v55 = vcombine.low %v1389_v31, %v1397_v41  ;;  %v4162_v53 = vld [vmem:[%s4467_s14 + $0x28] sm:$0xff]   ;;  %v4159_v60 = vld [vmem:[%s4467_s14 + $0x90] sm:$0xff]   ;;  %v4173_v41 = vld [vmem:[%s4467_s14 + $0x140] sm:$0xff]  }
 0x7f0   : > { %v4172_v31 = vld [vmem:[%s4467_s14 + $0xf0] sm:$0xff]  }
 0x7f1   : > { %v1376_v34 = vmul.f32 %v3639_v51, %v1368_v62  ;;  %v4157_v51 = vld [vmem:[%s4467_s14 + $0xd0] sm:$0xff]   ;;  %v4161_v62 = vld [vmem:[%s4467_s14 + $0xd8] sm:$0xff]  }
 0x7f3   : > { %v4779_v32 = vadd.f32 %v3640_v30, %v1376_v34  ;;  %v4163_v30 = vld [vmem:[%s4467_s14 + $0x98] sm:$0xff]   ;;  %v4164_v34 = vld [vmem:[%s4467_s14 + $0x70] sm:$0xff]  }
 0x7f5   : > { %v4783_v29 = vpack.c.bf16 %v4779_v32, %v4777_v38 }
 0x7f7   : > { %3673 = vmatmul.mubr.msk.bf16.vlgmr.msra.gmra.mrb[32].mxu0 %vm670_vm3, %v4783_v29  ;;  %3675 = vmatmul.mubr.msk.bf16.vlgmr.msra.gmra.mrb[40].mxu1 %vm670_vm3, %v4783_v29 }
 0x7f8   : > { %1709 = vmatpush1.bf16.msra.mxu0 %v3643_v19  ;;  %1838 = vmatpush1.bf16.msra.mxu1 %v3649_v20  ;;  %v3672_v19 = vcombine.high %v1409_v13, %v1417_v16  ;;  %v4150_v20 = vld [vmem:[%s4467_s14 + $0x10] sm:$0xff]  }
 0x7f9   : > { %1710 = vmatprep.subr.bf16.mxu0 %v3660_v39  ;;  %1839 = vmatprep.subr.bf16.mxu1 %v3666_v3  ;;  %v4170_v39 = vld [vmem:[%s4467_s14 + $0x38] sm:$0xff]   ;;  %v4171_v3 = vld [vmem:[%s4467_s14 + $0xa8] sm:$0xff]  }
 0x7fa   : > { %1740 = vmatprep.mubr.bf16.mxu0 %v4334_v35  ;;  %1869 = vmatprep.mubr.bf16.mxu1 %v4334_v35 }
 0x7fc   : > { %1711 = vmatpush1.bf16.msra.mxu0 %v3659_v48  ;;  %1840 = vmatpush1.bf16.msra.mxu1 %v3665_v40  ;;  %v4178_v48 = vld [vmem:[%s4467_s14 + $0xb8] sm:$0xff]   ;;  %v4181_v40 = vld [vmem:[%s4467_s14 + $0x1c0] sm:$0xff]  }
 0x7fd   : > { %1794 = vmatprep.subr.bf16.mxu0 %v3648_v45  ;;  %1923 = vmatprep.subr.bf16.mxu1 %v3654_v49  ;;  %v1422_v45 = vlaneseq }
 0x7ff   : > { %3674 = vmatmul.mubr.msk.bf16.vlgmr.msra.gmra.mrb[36].mxu0 %vm670_vm3, %v4783_v29  ;;  %3677 = vmatmul.mubr.msk.bf16.vlgmr.msra.gmra.mrb[44].mxu1 %vm670_vm3, %v4783_v29  ;;  %v4857_v49 = vshrl.u32 %v1422_v45, 7 }
 0x800   : > { %1795 = vmatpush1.bf16.msra.mxu0 %v3647_v55  ;;  %1924 = vmatpush1.bf16.msra.mxu1 %v3653_v56  ;;  %v1418_v56 = vld [vmem:[%s4457_s29] sm:$0xff] }
 0x801   : > { %1796 = vmatprep.subr.bf16.mxu0 %v3664_v57  ;;  %1925 = vmatprep.subr.bf16.mxu1 %v3670_v58  ;;  %v1448_v50 = vsub.s32 6, %v4857_v49  ;;  %v1424_v47 = vsub.s32 0, %v4857_v49  ;;  %v1440_v55 = vsub.s32 4, %v4857_v49  ;;  %v1428_v57 = vsub.s32 1, %v4857_v49 }
 0x802   : > { %1826 = vmatprep.mubr.bf16.mxu0 %v4334_v35  ;;  %1955 = vmatprep.mubr.bf16.mxu1 %v4334_v35  ;;  %v1444_v58 = vsub.s32 5, %v4857_v49  ;;  %v1436_v5 = vsub.s32 3, %v4857_v49 }
 0x803   : > { %v4864_v54 = vrot.slane %v4861_v52, %v1448_v50  ;;  %v1425_v59 = vrot.slane %v1418_v56, %v1424_v47  ;;  %v1441_v61 = vrot.slane %v1418_v56, %v1440_v55 }
 0x804   : > { %1797 = vmatpush1.bf16.msra.mxu0 %v3663_v0  ;;  %1926 = vmatpush1.bf16.msra.mxu1 %v3669_v1  ;;  %v1429_v0 = vrot.slane %v1418_v56, %v1428_v57  ;;  %v1445_v1 = vrot.slane %v1418_v56, %v1444_v58 }
 0x805   : > { %1880 = vmatprep.subr.bf16.mxu0 %v3652_v2  ;;  %3849 = vmatprep.subr.bf16.mxu1 %v4144_v63  ;;  %v1432_v2 = vsub.s32 2, %v4857_v49 }
 0x807   : > { %3676 = vmatmul.mubr.msk.bf16.vlgmr.msra.gmra.mrb[40].mxu0 %vm670_vm3, %v4783_v29  ;;  %3679 = vmatmul.mubr.msk.bf16.vlgmr.msra.gmra.mrb[48].mxu1 %vm670_vm3, %v4783_v29 }
 0x808   : > { %1881 = vmatpush1.bf16.msra.mxu0 %v3651_v6  ;;  %1912 = vmatprep.mubr.bf16.mxu0 %v4334_v35 }
 0x809   : > { %1882 = vmatprep.subr.bf16.mxu0 %v3668_v7  ;;  %3850 = vmatpush3.bf16.msra.mxu1 %v4145_v8 }
 0x80a   : > { %3851 = vmatprep.subr.bf16.mxu1 %v4146_v24 }
 0x80c   : > { %1883 = vmatpush1.bf16.msra.mxu0 %v3667_v26 }
 0x80d   : > { %1966 = vmatprep.subr.bf16.mxu0 %v3656_v11  ;;  %3852 = vmatpush3.bf16.msra.mxu1 %v4147_v12 }
 0x80e   : > { %3853 = vmatprep.subr.bf16.mxu1 %v4148_v18 }
 0x80f   : > { %3678 = vmatmul.mubr.msk.bf16.vlgmr.msra.gmra.mrb[44].mxu0 %vm670_vm3, %v4783_v29 }
 0x810   : > { %1967 = vmatpush1.bf16.msra.mxu0 %v3655_v33  ;;  %1998 = vmatprep.mubr.bf16.mxu0 %v4334_v35  ;;  %v4160_v35 = vld [vmem:[%s4467_s14 + $0x68] sm:$0xff]   ;;  %v1433_v33 = vrot.slane %v1418_v56, %v1432_v2 }
 0x811   : > { %1968 = vmatprep.subr.bf16.mxu0 %v3672_v19  ;;  %3854 = vmatpush3.bf16.msra.mxu1 %v4150_v20  ;;  %v1457_v19 = vrot.slane %v4861_v52, %v1424_v47 }
 0x812   : > { %3855 = vmatprep.subr.bf16.mxu1 %v4152_v21 }
 0x814   : > { %1969 = vmatpush1.bf16.msra.mxu0 %v3671_v22  ;;  %v1437_v22 = vrot.slane %v1418_v56, %v1436_v5 }
 0x815   : > { %3871 = vmatprep.subr.bf16.mxu0 %v4149_v23  ;;  %3856 = vmatpush3.bf16.msra.mxu1 %v4154_v42  ;;  %v1461_v23 = vrot.slane %v4861_v52, %v1428_v57 }
 0x816   : > { %3857 = vmatprep.subr.bf16.mxu1 %v4156_v44 }
 0x817   : > { %3680 = vmatmul.mubr.msk.bf16.vlgmr.msra.gmra.mrb[48].mxu0 %vm670_vm3, %v4783_v29  ;;  %v4169_v29 = vld [vmem:[%s4467_s14 + $0xe8] sm:$0xff]  }
 0x818   : > { %3872 = vmatpush3.bf16.msra.mxu0 %v4151_v25 }
 0x819   : > { %3873 = vmatprep.subr.bf16.mxu0 %v4153_v27  ;;  %3858 = vmatpush3.bf16.msra.mxu1 %v4158_v28 }
 0x81a   : > { %3859 = vmatprep.subr.bf16.mxu1 %v4160_v35 }
 0x81c   : > { %3874 = vmatpush3.bf16.msra.mxu0 %v4155_v15 }
 0x81d   : > { %3875 = vmatprep.subr.bf16.mxu0 %v4157_v51  ;;  %3860 = vmatpush3.bf16.msra.mxu1 %v4162_v53 }
 0x81e   : > { %3861 = vmatprep.subr.bf16.mxu1 %v4164_v34 }
 0x820   : > { %3876 = vmatpush3.bf16.msra.mxu0 %v4159_v60 }
 0x821   : > { %3877 = vmatprep.subr.bf16.mxu0 %v4161_v62  ;;  %3862 = vmatpush3.bf16.msra.mxu1 %v4166_v14  ;;  %v1452_v62 = vsub.s32 7, %v4857_v49  ;;  %v4201_v49 = vld [vmem:[%s4467_s14 + $0x1e8] sm:$0xff]  }
 0x822   : > { %3863 = vmatprep.subr.bf16.mxu1 %v4168_v17 }
 0x824   : > { %3878 = vmatpush3.bf16.msra.mxu0 %v4163_v30 }
 0x825   : > { %3879 = vmatprep.subr.bf16.mxu0 %v4165_v36  ;;  %3864 = vmatpush3.bf16.msra.mxu1 %v4170_v39 }
 0x826   : > { %3893 = vmatprep.subr.bf16.mxu1 %v4173_v41 }
 0x828   : > { %3880 = vmatpush3.bf16.msra.mxu0 %v4167_v37  ;;  %v4175_v37 = vld [vmem:[%s4467_s14 + $0x100] sm:$0xff]  }
 0x829   : > { %3881 = vmatprep.subr.bf16.mxu0 %v4169_v29 }
 0x82c   : > { %3882 = vmatpush3.bf16.msra.mxu0 %v4171_v3 }
 0x82d   : > { %3883 = vmatprep.subr.bf16.mxu0 %v4172_v31  ;;  %v4177_v31 = vld [vmem:[%s4467_s14 + $0x148] sm:$0xff]  }
 0x830   : > { %3884 = vmatpush3.bf16.msra.mxu0 %v4174_v43 }
 0x831   : > { %3885 = vmatprep.subr.bf16.mxu0 %v4176_v46 }
 0x834   : > { %3886 = vmatpush3.bf16.msra.mxu0 %v4178_v48 }
 0x835   : > { %3915 = vmatprep.subr.bf16.mxu0 %v4181_v40  ;;  %v1449_v40 = vrot.slane %v1418_v56, %v1448_v50  ;;  %v1477_v50 = vrot.slane %v4861_v52, %v1444_v58 }
 0x8ca   : > { %v1699_v63 = vpop.f32.mrb[32].mxu0  ;;  %v1785_v4 = vpop.f32.mrb[40].mxu1 }
 0x8cb   : > { %v1700_v6 = vadd.f32 %v1699_v63, %v1425_v59  ;;  %v1786_v7 = vadd.f32 %v1785_v4, %v1441_v61  ;;  %v1701_v8 = vpop.f32.mrb[33].mxu0  ;;  %v1787_v9 = vpop.f32.mrb[41].mxu1  ;;  %v4179_v4 = vld [vmem:[%s4467_s14 + $0x108] sm:$0xff]  }
 0x8cc   : > { %v1702_v10 = vadd.f32 %v1701_v8, %v1429_v0  ;;  %v1788_v24 = vadd.f32 %v1787_v9, %v1445_v1  ;;  %v1703_v26 = vpop.f32.mrb[34].mxu0  ;;  %v1789_v11 = vpop.f32.mrb[42].mxu1 }
 0x8cd   : > { %v1704_v12 = vadd.f32 %v1703_v26, %v1425_v59  ;;  %v1790_v13 = vadd.f32 %v1789_v11, %v1441_v61  ;;  %v1705_v16 = vpop.f32.mrb[35].mxu0  ;;  %v1791_v18 = vpop.f32.mrb[43].mxu1  ;;  %v2009_v42 = vmax.f32 %v1700_v6, 0.0  ;;  %v2013_v44 = vmax.f32 %v1786_v7, 0.0 }
 0x8ce   : > { %v1706_v20 = vadd.f32 %v1705_v16, %v1429_v0  ;;  %v1792_v21 = vadd.f32 %v1791_v18, %v1445_v1  ;;  %v2010_v28 = vmax.f32 %v1702_v10, 0.0  ;;  %v2014_v35 = vmax.f32 %v1788_v24, 0.0 }
 0x8cf   : > { %v2025_v25 = vmax.f32 %v1704_v12, 0.0  ;;  %v2029_v27 = vmax.f32 %v1790_v13, 0.0  ;;  %v1473_v61 = vrot.slane %v4861_v52, %v1440_v55  ;;  %v1453_v0 = vrot.slane %v1418_v56, %v1452_v62  ;;  %v4180_v55 = vld [vmem:[%s4467_s14 + $0x150] sm:$0xff]  }
 0x8d0   : > { %v2026_v15 = vmax.f32 %v1706_v20, 0.0  ;;  %v2030_v51 = vmax.f32 %v1792_v21, 0.0 }
 0x8d1   : > { %v2041_v53 = vpack.c.bf16 %v2025_v25, %v2009_v42  ;;  %v4881_v60 = vpack.c.bf16 %v2029_v27, %v2013_v44  ;;  %v4184_v42 = vld [vmem:[%s4467_s14 + $0x158] sm:$0xff]   ;;  %v4185_v44 = vld [vmem:[%s4467_s14 + $0x1c8] sm:$0xff]  }
 0x8d2   : > { %v2042_v30 = vpack.c.bf16 %v2026_v15, %v2010_v28  ;;  %v2046_v34 = vpack.c.bf16 %v2030_v51, %v2014_v35  ;;  %v1742_v36 = vpop.f32.mrb[36].mxu0  ;;  %v1871_v14 = vpop.f32.mrb[44].mxu1 }
 0x8d3   : > { %v1743_v17 = vadd.f32 %v1742_v36, %v1433_v33  ;;  %v1872_v29 = vadd.f32 %v1871_v14, %v1457_v19  ;;  %v1744_v39 = vpop.f32.mrb[37].mxu0  ;;  %v1873_v3 = vpop.f32.mrb[45].mxu1 }
 0x8d4   : > { %v1745_v41 = vadd.f32 %v1744_v39, %v1437_v22  ;;  %v1874_v43 = vadd.f32 %v1873_v3, %v1461_v23  ;;  %v1746_v46 = vpop.f32.mrb[38].mxu0  ;;  %v1875_v48 = vpop.f32.mrb[46].mxu1  ;;  %3120 = vmatprep.mubr.bf16.mxu1 %v2042_v30 }
 0x8d5   : > { %v1747_v45 = vadd.f32 %v1746_v46, %v1433_v33  ;;  %v1876_v47 = vadd.f32 %v1875_v48, %v1457_v19  ;;  %v1748_v57 = vpop.f32.mrb[39].mxu0  ;;  %v1877_v59 = vpop.f32.mrb[47].mxu1  ;;  %3121 = vmatmul.mubr.bf16.vlgmr.msra.gmra.mrb[52].mxu1 %v2041_v53  ;;  %v2011_v6 = vmax.f32 %v1743_v17, 0.0  ;;  %v2017_v7 = vmax.f32 %v1872_v29, 0.0  ;;  %v4182_v33 = vld [vmem:[%s4467_s14 + $0x110] sm:$0xff]   ;;  %v4183_v19 = vld [vmem:[%s4467_s14 + $0x180] sm:$0xff]  }
 0x8d6   : > { %v1749_v1 = vadd.f32 %v1748_v57, %v1437_v22  ;;  %v1878_v63 = vadd.f32 %v1877_v59, %v1461_v23  ;;  %3894 = vmatpush3.bf16.msra.mxu1 %v4175_v37  ;;  %3202 = vmatprep.mubr.bf16.mxu1 %v2046_v34  ;;  %v2012_v10 = vmax.f32 %v1745_v41, 0.0  ;;  %v2018_v24 = vmax.f32 %v1874_v43, 0.0  ;;  %v4186_v37 = vld [vmem:[%s4467_s14 + $0x118] sm:$0xff]   ;;  %v4187_v17 = vld [vmem:[%s4467_s14 + $0x188] sm:$0xff]   ;;  %v4188_v43 = vld [vmem:[%s4467_s14 + $0x160] sm:$0xff]  }
 0x8d7   : > { %v2027_v8 = vmax.f32 %v1747_v45, 0.0  ;;  %v2033_v9 = vmax.f32 %v1876_v47, 0.0  ;;  %3895 = vmatprep.subr.bf16.mxu1 %v4177_v31  ;;  %v1465_v34 = vrot.slane %v4861_v52, %v1432_v2  ;;  %v1469_v29 = vrot.slane %v4861_v52, %v1436_v5  ;;  %v4189_v2 = vld [vmem:[%s4467_s14 + $0x1d0] sm:$0xff]  }
 0x8d8   : > { %v2028_v56 = vmax.f32 %v1749_v1, 0.0  ;;  %v2034_v26 = vmax.f32 %v1878_v63, 0.0  ;;  %v4191_v1 = vld [vmem:[%s4467_s14 + $0x190] sm:$0xff]  }
 0x8d9   : > { %v2043_v11 = vpack.c.bf16 %v2027_v8, %v2011_v6  ;;  %v4894_v12 = vpack.c.bf16 %v2033_v9, %v2017_v7  ;;  %v4193_v6 = vld [vmem:[%s4467_s14 + $0x1d8] sm:$0xff]  }
 0x8da   : > { %v2044_v13 = vpack.c.bf16 %v2028_v56, %v2012_v10  ;;  %v4896_v16 = vpack.c.bf16 %v2034_v26, %v2018_v24  ;;  %3896 = vmatpush3.bf16.msra.mxu1 %v4179_v4  ;;  %v1828_v58 = vpop.f32.mrb[40].mxu0  ;;  %v1957_v18 = vpop.f32.mrb[48].mxu1  ;;  %v4194_v24 = vld [vmem:[%s4467_s14 + $0x128] sm:$0xff]   ;;  %v4195_v56 = vld [vmem:[%s4467_s14 + $0x198] sm:$0xff]  }
 0x8db   : > { %v1829_v20 = vadd.f32 %v1828_v58, %v1449_v40  ;;  %v1958_v21 = vadd.f32 %v1957_v18, %v1473_v61  ;;  %v1830_v22 = vpop.f32.mrb[41].mxu0  ;;  %v1959_v23 = vpop.f32.mrb[49].mxu1  ;;  %3897 = vmatprep.subr.bf16.mxu1 %v4180_v55  ;;  %v4197_v58 = vld [vmem:[%s4467_s14 + $0x1e0] sm:$0xff]  }
 0x8dc   : > { %v1831_v25 = vadd.f32 %v1830_v22, %v1453_v0  ;;  %v1960_v27 = vadd.f32 %v1959_v23, %v1477_v50  ;;  %v1832_v28 = vpop.f32.mrb[42].mxu0  ;;  %v1961_v35 = vpop.f32.mrb[50].mxu1  ;;  %3161 = vmatprep.mubr.bf16.mxu0 %v2044_v13  ;;  %v4196_v13 = vld [vmem:[%s4467_s14 + $0x170] sm:$0xff]  }
 0x8dd   : > { %v1833_v15 = vadd.f32 %v1832_v28, %v1449_v40  ;;  %v1962_v51 = vadd.f32 %v1961_v35, %v1473_v61  ;;  %v1834_v53 = vpop.f32.mrb[43].mxu0  ;;  %v1963_v30 = vpop.f32.mrb[51].mxu1  ;;  %3162 = vmatmul.mubr.bf16.vlgmr.msra.gmra.mrb[52].mxu0 %v2043_v11  ;;  %v2015_v39 = vmax.f32 %v1829_v20, 0.0  ;;  %v2021_v3 = vmax.f32 %v1958_v21, 0.0  ;;  %v4198_v23 = vld [vmem:[%s4467_s14 + $0x130] sm:$0xff]  }
 0x8de   : > { %v1835_v36 = vadd.f32 %v1834_v53, %v1453_v0  ;;  %v1964_v14 = vadd.f32 %v1963_v30, %v1477_v50  ;;  %3898 = vmatpush3.bf16.msra.mxu1 %v4182_v33  ;;  %3916 = vmatpush3.bf16.msra.mxu0 %v4183_v19  ;;  %v2016_v46 = vmax.f32 %v1831_v25, 0.0  ;;  %v2022_v48 = vmax.f32 %v1960_v27, 0.0  ;;  %v4190_v0 = vld [vmem:[%s4467_s14 + $0x120] sm:$0xff]   ;;  %v4192_v50 = vld [vmem:[%s4467_s14 + $0x168] sm:$0xff]   ;;  %v4200_v27 = vld [vmem:[%s4467_s14 + $0x178] sm:$0xff]  }
 0x8df   : > { %v2031_v31 = vmax.f32 %v1833_v15, 0.0  ;;  %v2037_v41 = vmax.f32 %v1962_v51, 0.0  ;;  %3899 = vmatprep.subr.bf16.mxu1 %v4184_v42  ;;  %3917 = vmatprep.subr.bf16.mxu0 %v4185_v44  ;;  %v1485_v19 = vrot.slane %v4861_v52, %v1452_v62  ;;  %v4199_v42 = vld [vmem:[%s4467_s14 + $0x1a0] sm:$0xff]   ;;  %v4202_v51 = vld [vmem:[%s4467_s14 + $0x138] sm:$0xff]   ;;  %v4203_v53 = vld [vmem:[%s4467_s14 + $0x1a8] sm:$0xff]  }
 0x8e0   : > { %v2032_v40 = vmax.f32 %v1835_v36, 0.0  ;;  %v2038_v45 = vmax.f32 %v1964_v14, 0.0  ;;  %v4204_v36 = vld [vmem:[%s4467_s14 + $0x1f0] sm:$0xff]   ;;  %v4205_v14 = vld [vmem:[%s4467_s14 + $0x240] sm:$0xff]  }
 0x8e1   : > { %v4912_v47 = vpack.c.bf16 %v2031_v31, %v2015_v39  ;;  %v4914_v57 = vpack.c.bf16 %v2037_v41, %v2021_v3  ;;  %v4206_v39 = vld [vmem:[%s4467_s14 + $0x1b0] sm:$0xff]   ;;  %v4207_v3 = vld [vmem:[%s4467_s14 + $0x200] sm:$0xff]   ;;  %v4208_v31 = vld [vmem:[%s4467_s14 + $0x1f8] sm:$0xff]  }
 0x8e2   : > { %v2048_v5 = vpack.c.bf16 %v2032_v40, %v2016_v46  ;;  %v4916_v59 = vpack.c.bf16 %v2038_v45, %v2022_v48  ;;  %3900 = vmatpush3.bf16.msra.mxu1 %v4186_v37  ;;  %3918 = vmatpush3.bf16.msra.mxu0 %v4187_v17  ;;  %v1914_v61 = vpop.f32.mrb[44].mxu0  ;;  %v4209_v41 = vld [vmem:[%s4467_s14 + $0x248] sm:$0xff]   ;;  %v4212_v46 = vld [vmem:[%s4467_s14 + $0x250] sm:$0xff]   ;;  %v4213_v48 = vld [vmem:[%s4467_s14 + $0x2c0] sm:$0xff]  }
 0x8e3   : > { %v1915_v63 = vadd.f32 %v1914_v61, %v1465_v34  ;;  %v1916_v4 = vpop.f32.mrb[45].mxu0  ;;  %3901 = vmatprep.subr.bf16.mxu1 %v4188_v43  ;;  %3919 = vmatprep.subr.bf16.mxu0 %v4189_v2  ;;  %v4210_v43 = vld [vmem:[%s4467_s14 + $0x1b8] sm:$0xff]   ;;  %v4211_v2 = vld [vmem:[%s4467_s14 + $0x208] sm:$0xff]   ;;  %v4214_v40 = vld [vmem:[%s4467_s14 + $0x210] sm:$0xff]  }
 0x8e4   : > { %v1917_v7 = vadd.f32 %v1916_v4, %v1469_v29  ;;  %v1918_v8 = vpop.f32.mrb[46].mxu0  ;;  %3243 = vmatprep.mubr.bf16.mxu0 %v2048_v5  ;;  %v4216_v45 = vld [vmem:[%s4467_s14 + $0x258] sm:$0xff]   ;;  %v4217_v5 = vld [vmem:[%s4467_s14 + $0x2c8] sm:$0xff]  }
 0x8e5   : > { %v1919_v9 = vadd.f32 %v1918_v8, %v1465_v34  ;;  %v1920_v55 = vpop.f32.mrb[47].mxu0  ;;  %v2019_v26 = vmax.f32 %v1915_v63, 0.0  ;;  %v4219_v61 = vld [vmem:[%s4467_s14 + $0x288] sm:$0xff]   ;;  %v4222_v63 = vld [vmem:[%s4467_s14 + $0x220] sm:$0xff]   ;;  %v4228_v8 = vld [vmem:[%s4467_s14 + $0x270] sm:$0xff]  }
 0x8e6   : > { %v1921_v10 = vadd.f32 %v1920_v55, %v1469_v29  ;;  %3902 = vmatpush3.bf16.msra.mxu1 %v4190_v0  ;;  %3920 = vmatpush3.bf16.msra.mxu0 %v4191_v1  ;;  %v2020_v18 = vmax.f32 %v1917_v7, 0.0  ;;  %v4220_v0 = vld [vmem:[%s4467_s14 + $0x260] sm:$0xff]   ;;  %v4221_v1 = vld [vmem:[%s4467_s14 + $0x2d0] sm:$0xff]   ;;  %v4224_v4 = vld [vmem:[%s4467_s14 + $0x268] sm:$0xff]  }
 0x8e7   : > { %v2035_v11 = vmax.f32 %v1919_v9, 0.0  ;;  %3903 = vmatprep.subr.bf16.mxu1 %v4192_v50  ;;  %3921 = vmatprep.subr.bf16.mxu0 %v4193_v6  ;;  %v4225_v50 = vld [vmem:[%s4467_s14 + $0x2d8] sm:$0xff]   ;;  %v4226_v6 = vld [vmem:[%s4467_s14 + $0x228] sm:$0xff]   ;;  %v4229_v9 = vld [vmem:[%s4467_s14 + $0x2e0] sm:$0xff]  }
 0x8e8   : > { %v2036_v33 = vmax.f32 %v1921_v10, 0.0  ;;  %v4227_v7 = vld [vmem:[%s4467_s14 + $0x298] sm:$0xff]   ;;  %v4230_v55 = vld [vmem:[%s4467_s14 + $0x230] sm:$0xff]   ;;  %v4231_v10 = vld [vmem:[%s4467_s14 + $0x2a0] sm:$0xff]  }
 0x8e9   : > { %v4929_v20 = vpack.c.bf16 %v2035_v11, %v2019_v26  ;;  %v4234_v26 = vld [vmem:[%s4467_s14 + $0x238] sm:$0xff]   ;;  %v4235_v11 = vld [vmem:[%s4467_s14 + $0x2a8] sm:$0xff]  }
 0x8ea   : > { %v2052_v21 = vpack.c.bf16 %v2036_v33, %v2020_v18  ;;  %3904 = vmatpush3.bf16.msra.mxu1 %v4194_v24  ;;  %3922 = vmatpush3.bf16.msra.mxu0 %v4195_v56  ;;  %v2000_v22 = vpop.f32.mrb[48].mxu0  ;;  %v4232_v24 = vld [vmem:[%s4467_s14 + $0x278] sm:$0xff]   ;;  %v4233_v56 = vld [vmem:[%s4467_s14 + $0x2e8] sm:$0xff]   ;;  %v4238_v18 = vld [vmem:[%s4467_s14 + $0x2b0] sm:$0xff]  }
 0x8eb   : > { %v2001_v44 = vadd.f32 %v2000_v22, %v4864_v54  ;;  %v2002_v25 = vpop.f32.mrb[49].mxu0  ;;  %3905 = vmatprep.subr.bf16.mxu1 %v4196_v13  ;;  %3923 = vmatprep.subr.bf16.mxu0 %v4197_v58  ;;  %v4236_v13 = vld [vmem:[%s4467_s14 + $0x2f0] sm:$0xff]   ;;  %v4237_v58 = vld [vmem:[%s4467_s14 + $0x340] sm:$0xff]   ;;  %v4242_v22 = vld [vmem:[%s4467_s14 + $0x2b8] sm:$0xff]  }
 0x8ec   : > { %v2003_v52 = vadd.f32 %v2002_v25, %v1485_v19  ;;  %v2004_v62 = vpop.f32.mrb[50].mxu0  ;;  %v4239_v33 = vld [vmem:[%s4467_s14 + $0x300] sm:$0xff]   ;;  %v4246_v25 = vld [vmem:[%s4467_s14 + $0x310] sm:$0xff]  }
 0x8ed   : > { %v2005_v28 = vadd.f32 %v2004_v62, %v4864_v54  ;;  %v2006_v35 = vpop.f32.mrb[51].mxu0  ;;  %v2023_v30 = vmax.f32 %v2001_v44, 0.0  ;;  %v4245_v44 = vld [vmem:[%s4467_s14 + $0x3c0] sm:$0xff]  }
 0x8ee   : > { %v2007_v15 = vadd.f32 %v2006_v35, %v1485_v19  ;;  %3906 = vmatpush3.bf16.msra.mxu1 %v4198_v23  ;;  %3924 = vmatpush3.bf16.msra.mxu0 %v4199_v42  ;;  %v2024_v37 = vmax.f32 %v2003_v52, 0.0  ;;  %v4240_v19 = vld [vmem:[%s4467_s14 + $0x2f8] sm:$0xff]   ;;  %v4243_v23 = vld [vmem:[%s4467_s14 + $0x308] sm:$0xff]   ;;  %v4244_v42 = vld [vmem:[%s4467_s14 + $0x350] sm:$0xff]  }
 0x8ef   : > { %v2039_v34 = vmax.f32 %v2005_v28, 0.0  ;;  %3907 = vmatprep.subr.bf16.mxu1 %v4200_v27  ;;  %3925 = vmatprep.subr.bf16.mxu0 %v4201_v49  ;;  %v4248_v27 = vld [vmem:[%s4467_s14 + $0x358] sm:$0xff]   ;;  %v4249_v49 = vld [vmem:[%s4467_s14 + $0x3c8] sm:$0xff]   ;;  %v4252_v62 = vld [vmem:[%s4467_s14 + $0x360] sm:$0xff]  }
 0x8f0   : > { %v2040_v54 = vmax.f32 %v2007_v15, 0.0  ;;  %v4251_v52 = vld [vmem:[%s4467_s14 + $0x388] sm:$0xff]   ;;  %v4253_v28 = vld [vmem:[%s4467_s14 + $0x3d0] sm:$0xff]   ;;  %v4254_v35 = vld [vmem:[%s4467_s14 + $0x320] sm:$0xff]  }
 0x8f1   : > { %v4941_v17 = vpack.c.bf16 %v2039_v34, %v2023_v30  ;;  %v4256_v15 = vld [vmem:[%s4467_s14 + $0x368] sm:$0xff]   ;;  %v4259_v30 = vld [vmem:[%s4467_s14 + $0x398] sm:$0xff]   ;;  %v4260_v34 = vld [vmem:[%s4467_s14 + $0x370] sm:$0xff]  }
 0x8f2   : > { %v4943_v29 = vpack.c.bf16 %v2040_v54, %v2024_v37  ;;  %3908 = vmatpush3.bf16.msra.mxu1 %v4202_v51  ;;  %3926 = vmatpush3.bf16.msra.mxu0 %v4203_v53  ;;  %v4257_v51 = vld [vmem:[%s4467_s14 + $0x3d8] sm:$0xff]   ;;  %v4258_v53 = vld [vmem:[%s4467_s14 + $0x328] sm:$0xff]   ;;  %v4263_v37 = vld [vmem:[%s4467_s14 + $0x3a0] sm:$0xff]  }
 0x8f3   : > { %3927 = vmatprep.subr.bf16.mxu0 %v4204_v36  ;;  %3937 = vmatprep.subr.bf16.mxu1 %v4205_v14  ;;  %v4261_v36 = vld [vmem:[%s4467_s14 + $0x3e0] sm:$0xff]   ;;  %v4262_v14 = vld [vmem:[%s4467_s14 + $0x330] sm:$0xff]   ;;  %v4264_v54 = vld [vmem:[%s4467_s14 + $0x378] sm:$0xff]  }
 0x8f5   : > { %3203 = vmatmul.mubr.bf16.vlgmr.msra.gmra.mrb[56].mxu1 %v4881_v60  ;;  %v4215_v60 = vld [vmem:[%s4467_s14 + $0x280] sm:$0xff]  }
 0x8f6   : > { %3928 = vmatpush3.bf16.msra.mxu0 %v4206_v39  ;;  %3938 = vmatpush3.bf16.msra.mxu1 %v4207_v3  ;;  %v4266_v39 = vld [vmem:[%s4467_s14 + $0x338] sm:$0xff]   ;;  %v4267_v3 = vld [vmem:[%s4467_s14 + $0x3a8] sm:$0xff]  }
 0x8f7   : > { %3284 = vmatprep.mubr.bf16.mxu1 %v4896_v16  ;;  %3929 = vmatprep.subr.bf16.mxu0 %v4208_v31  ;;  %v4218_v16 = vld [vmem:[%s4467_s14 + $0x218] sm:$0xff]   ;;  %v4268_v31 = vld [vmem:[%s4467_s14 + $0x3f0] sm:$0xff]  }
 0x8f8   : > { %3939 = vmatprep.subr.bf16.mxu1 %v4209_v41  ;;  %v4269_v41 = vld [vmem:[%s4467_s14 + $0x3b0] sm:$0xff]  }
 0x8fa   : > { %3930 = vmatpush3.bf16.msra.mxu0 %v4210_v43  ;;  %3940 = vmatpush3.bf16.msra.mxu1 %v4211_v2  ;;  %v4270_v43 = vld [vmem:[%s4467_s14 + $0x3f8] sm:$0xff]  }
 0x8fb   : > { %3941 = vmatprep.subr.bf16.mxu1 %v4212_v46  ;;  %3959 = vmatprep.subr.bf16.mxu0 %v4213_v48  ;;  %v4271_v2 = vld [vmem:[%s4467_s14 + $0x3b8] sm:$0xff]  }
 0x8fd   : > { %3244 = vmatmul.mubr.bf16.vlgmr.msra.gmra.mrb[56].mxu0 %v4912_v47  ;;  %v4223_v47 = vld [vmem:[%s4467_s14 + $0x290] sm:$0xff]  }
 0x8fe   : > { %3942 = vmatpush3.bf16.msra.mxu1 %v4214_v40  ;;  %3960 = vmatpush3.bf16.msra.mxu0 %v4215_v60 }
 0x8ff   : > { %3325 = vmatprep.mubr.bf16.mxu0 %v2052_v21  ;;  %3943 = vmatprep.subr.bf16.mxu1 %v4216_v45  ;;  %v4241_v21 = vld [vmem:[%s4467_s14 + $0x348] sm:$0xff]  }
 0x900   : > { %3961 = vmatprep.subr.bf16.mxu0 %v4217_v5 }
 0x902   : > { %3944 = vmatpush3.bf16.msra.mxu1 %v4218_v16  ;;  %3962 = vmatpush3.bf16.msra.mxu0 %v4219_v61  ;;  %v3681_v16 = vld [vmem:[%s628_s18] ss:$0 sm:$0xff] }
 0x903   : > { %3945 = vmatprep.subr.bf16.mxu1 %v4220_v0  ;;  %3963 = vmatprep.subr.bf16.mxu0 %v4221_v1 }
 0x906   : > { %3946 = vmatpush3.bf16.msra.mxu1 %v4222_v63  ;;  %3964 = vmatpush3.bf16.msra.mxu0 %v4223_v47 }
 0x907   : > { %3947 = vmatprep.subr.bf16.mxu1 %v4224_v4  ;;  %3965 = vmatprep.subr.bf16.mxu0 %v4225_v50 }
 0x90a   : > { %3948 = vmatpush3.bf16.msra.mxu1 %v4226_v6  ;;  %3966 = vmatpush3.bf16.msra.mxu0 %v4227_v7 }
 0x90b   : > { %3949 = vmatprep.subr.bf16.mxu1 %v4228_v8  ;;  %3967 = vmatprep.subr.bf16.mxu0 %v4229_v9 }
 0x90e   : > { %3950 = vmatpush3.bf16.msra.mxu1 %v4230_v55  ;;  %3968 = vmatpush3.bf16.msra.mxu0 %v4231_v10 }
 0x90f   : > { %3951 = vmatprep.subr.bf16.mxu1 %v4232_v24  ;;  %3969 = vmatprep.subr.bf16.mxu0 %v4233_v56 }
 0x912   : > { %3952 = vmatpush3.bf16.msra.mxu1 %v4234_v26  ;;  %3970 = vmatpush3.bf16.msra.mxu0 %v4235_v11 }
 0x913   : > { %3971 = vmatprep.subr.bf16.mxu0 %v4236_v13  ;;  %3981 = vmatprep.subr.bf16.mxu1 %v4237_v58 }
 0x915   : > { %3285 = vmatmul.mubr.bf16.vlgmr.msra.gmra.mrb[60].mxu1 %v4894_v12  ;;  %v4247_v12 = vld [vmem:[%s4467_s14 + $0x380] sm:$0xff]  }
 0x916   : > { %3972 = vmatpush3.bf16.msra.mxu0 %v4238_v18  ;;  %3982 = vmatpush3.bf16.msra.mxu1 %v4239_v33 }
 0x917   : > { %3366 = vmatprep.mubr.bf16.mxu1 %v4916_v59  ;;  %3973 = vmatprep.subr.bf16.mxu0 %v4240_v19  ;;  %v4250_v59 = vld [vmem:[%s4467_s14 + $0x318] sm:$0xff]  }
 0x918   : > { %3983 = vmatprep.subr.bf16.mxu1 %v4241_v21 }
 0x91a   : > { %3974 = vmatpush3.bf16.msra.mxu0 %v4242_v22  ;;  %3984 = vmatpush3.bf16.msra.mxu1 %v4243_v23 }
 0x91b   : > { %3985 = vmatprep.subr.bf16.mxu1 %v4244_v42  ;;  %4003 = vmatprep.subr.bf16.mxu0 %v4245_v44 }
 0x91d   : > { %3326 = vmatmul.mubr.bf16.vlgmr.msra.gmra.mrb[60].mxu0 %v4929_v20  ;;  %v4255_v20 = vld [vmem:[%s4467_s14 + $0x390] sm:$0xff]  }
 0x91e   : > { %3986 = vmatpush3.bf16.msra.mxu1 %v4246_v25  ;;  %4004 = vmatpush3.bf16.msra.mxu0 %v4247_v12 }
 0x91f   : > { %3407 = vmatprep.mubr.bf16.mxu0 %v4943_v29  ;;  %3987 = vmatprep.subr.bf16.mxu1 %v4248_v27  ;;  %v4265_v29 = vld [vmem:[%s4467_s14 + $0x3e8] sm:$0xff]  }
 0x920   : > { %4005 = vmatprep.subr.bf16.mxu0 %v4249_v49 }
 0x922   : > { %3988 = vmatpush3.bf16.msra.mxu1 %v4250_v59  ;;  %4006 = vmatpush3.bf16.msra.mxu0 %v4251_v52 }
 0x923   : > { %3989 = vmatprep.subr.bf16.mxu1 %v4252_v62  ;;  %4007 = vmatprep.subr.bf16.mxu0 %v4253_v28 }
 0x926   : > { %3990 = vmatpush3.bf16.msra.mxu1 %v4254_v35  ;;  %4008 = vmatpush3.bf16.msra.mxu0 %v4255_v20 }
 0x927   : > { %3991 = vmatprep.subr.bf16.mxu1 %v4256_v15  ;;  %4009 = vmatprep.subr.bf16.mxu0 %v4257_v51 }
 0x92a   : > { %3992 = vmatpush3.bf16.msra.mxu1 %v4258_v53  ;;  %4010 = vmatpush3.bf16.msra.mxu0 %v4259_v30 }
 0x92b   : > { %3993 = vmatprep.subr.bf16.mxu1 %v4260_v34  ;;  %4011 = vmatprep.subr.bf16.mxu0 %v4261_v36 }
 0x92e   : > { %3994 = vmatpush3.bf16.msra.mxu1 %v4262_v14  ;;  %4012 = vmatpush3.bf16.msra.mxu0 %v4263_v37 }
 0x92f   : > { %3995 = vmatprep.subr.bf16.mxu1 %v4264_v54  ;;  %4013 = vmatprep.subr.bf16.mxu0 %v4265_v29 }
 0x932   : > { %3996 = vmatpush3.bf16.msra.mxu1 %v4266_v39  ;;  %4014 = vmatpush3.bf16.msra.mxu0 %v4267_v3 }
 0x933   : > { %4015 = vmatprep.subr.bf16.mxu0 %v4268_v31 }
 0x935   : > { %3367 = vmatmul.mubr.bf16.vlgmr.msra.gmra.mrb[64].mxu1 %v4914_v57 }
 0x936   : > { %4016 = vmatpush3.bf16.msra.mxu0 %v4269_v41 }
 0x937   : > { %4017 = vmatprep.subr.bf16.mxu0 %v4270_v43 }
 0x93a   : > { %4018 = vmatpush3.bf16.msra.mxu0 %v4271_v2 }
 0x93d   : > { %3408 = vmatmul.mubr.bf16.vlgmr.msra.gmra.mrb[64].mxu0 %v4941_v17 }
 0x9a8   : > { %v3865_v46 = vpop.f32.mrb[52].mxu1 }
 0x9a9   : > { %v3866_v48 = vpop.f32.mrb[53].mxu1 }
 0x9aa   : > { %v3867_v40 = vadd.f32 %v3866_v48, %v3865_v46  ;;  %v3868_v60 = vpop.f32.mrb[54].mxu1 }
 0x9ab   : > { %v3869_v45 = vpop.f32.mrb[55].mxu1 }
 0x9ac   : > { %v3870_v5 = vadd.f32 %v3869_v45, %v3868_v60  ;;  %v3123_v57 = vadd.f32 %v3867_v40, %v3681_v16 }
 0x9ae   : > { %v3126_v4 = vadd.f32 %v3870_v5, %v3681_v16 }
 0x9b0   : > { %v3887_v61 = vpop.f32.mrb[52].mxu0 }
 0x9b1   : > { %v3888_v0 = vpop.f32.mrb[53].mxu0 }
 0x9b2   : > { %v3889_v1 = vadd.f32 %v3888_v0, %v3887_v61  ;;  %v3890_v63 = vpop.f32.mrb[54].mxu0 }
 0x9b3   : > { %v3891_v47 = vpop.f32.mrb[55].mxu0 }
 0x9b4   : > { %v3164_v50 = vadd.f32 %v3889_v1, %v3123_v57  ;;  %v3892_v17 = vadd.f32 %v3891_v47, %v3890_v63 }
 0x9b6   : > { %v3167_v6 = vadd.f32 %v3892_v17, %v3126_v4 }
 0x9c8   : > { %v3909_v7 = vpop.f32.mrb[56].mxu1 }
 0x9c9   : > { %v3910_v8 = vpop.f32.mrb[57].mxu1 }
 0x9ca   : > { %v3911_v9 = vadd.f32 %v3910_v8, %v3909_v7  ;;  %v3912_v55 = vpop.f32.mrb[58].mxu1 }
 0x9cb   : > { %v3913_v10 = vpop.f32.mrb[59].mxu1 }
 0x9cc   : > { %v3205_v24 = vadd.f32 %v3911_v9, %v3164_v50  ;;  %v3914_v56 = vadd.f32 %v3913_v10, %v3912_v55 }
 0x9ce   : > { %v3208_v26 = vadd.f32 %v3914_v56, %v3167_v6 }
 0x9d0   : > { %v3931_v11 = vpop.f32.mrb[56].mxu0 }
 0x9d1   : > { %v3932_v13 = vpop.f32.mrb[57].mxu0 }
 0x9d2   : > { %v3933_v58 = vadd.f32 %v3932_v13, %v3931_v11  ;;  %v3934_v18 = vpop.f32.mrb[58].mxu0 }
 0x9d3   : > { %v3935_v33 = vpop.f32.mrb[59].mxu0 }
 0x9d4   : > { %v3246_v19 = vadd.f32 %v3933_v58, %v3205_v24  ;;  %v3936_v21 = vadd.f32 %v3935_v33, %v3934_v18  ;;  %v3811_v24 = vld [vmem:[%s4472_s24] ss:$0 sm:$0xff] }
 0x9d6   : > { %v3249_v22 = vadd.f32 %v3936_v21, %v3208_v26  ;;  %v3812_v26 = vld [vmem:[%s4472_s24 + $0x1] ss:$0 sm:$0xff] }
 0x9e8   : > { %v3953_v23 = vpop.f32.mrb[60].mxu1 }
 0x9e9   : > { %v3954_v42 = vpop.f32.mrb[61].mxu1 }
 0x9ea   : > { %v3955_v44 = vadd.f32 %v3954_v42, %v3953_v23  ;;  %v3956_v25 = vpop.f32.mrb[62].mxu1 }
 0x9eb   : > { %v3957_v12 = vpop.f32.mrb[63].mxu1 }
 0x9ec   : > { %v3287_v27 = vadd.f32 %v3955_v44, %v3246_v19  ;;  %v3958_v49 = vadd.f32 %v3957_v12, %v3956_v25 }
 0x9ee   : > { %v3290_v59 = vadd.f32 %v3958_v49, %v3249_v22 }
 0x9f0   : > { %v3975_v52 = vpop.f32.mrb[60].mxu0 }
 0x9f1   : > { %v3976_v62 = vpop.f32.mrb[61].mxu0 }
 0x9f2   : > { %v3977_v28 = vadd.f32 %v3976_v62, %v3975_v52  ;;  %v3978_v35 = vpop.f32.mrb[62].mxu0 }
 0x9f3   : > { %v3979_v20 = vpop.f32.mrb[63].mxu0 }
 0x9f4   : > { %v3328_v15 = vadd.f32 %v3977_v28, %v3287_v27  ;;  %v3980_v51 = vadd.f32 %v3979_v20, %v3978_v35 }
 0x9f6   : > { %v3331_v53 = vadd.f32 %v3980_v51, %v3290_v59 }
 0xa08   : > { %v3997_v30 = vpop.f32.mrb[64].mxu1 }
 0xa09   : > { %v3998_v34 = vpop.f32.mrb[65].mxu1 }
 0xa0a   : > { %v3999_v36 = vadd.f32 %v3998_v34, %v3997_v30  ;;  %v4000_v14 = vpop.f32.mrb[66].mxu1 }
 0xa0b   : > { %v4001_v37 = vpop.f32.mrb[67].mxu1 }
 0xa0c   : > { %v3369_v54 = vadd.f32 %v3999_v36, %v3328_v15  ;;  %v4002_v29 = vadd.f32 %v4001_v37, %v4000_v14 }
 0xa0e   : > { %v3372_v39 = vadd.f32 %v4002_v29, %v3331_v53 }
 0xa10   : > { %v4019_v3 = vpop.f32.mrb[64].mxu0 }
 0xa11   : > { %v4020_v31 = vpop.f32.mrb[65].mxu0 }
 0xa12   : > { %v4021_v41 = vadd.f32 %v4020_v31, %v4019_v3  ;;  %v4022_v43 = vpop.f32.mrb[66].mxu0 }
 0xa13   : > { %v4023_v2 = vpop.f32.mrb[67].mxu0 }
 0xa14   : > { %v3410_v46 = vadd.f32 %v4021_v41, %v3369_v54  ;;  %v4024_v48 = vadd.f32 %v4023_v2, %v4022_v43 }
 0xa16   : > { %v3413_v40 = vadd.f32 %v4024_v48, %v3372_v39  ;;  %v3416_v60 = vadd.f32 %v3410_v46, %v4777_v38 }
 0xa18   : > { %v3421_v45 = vsel %vm670_vm3, %v3416_v60, 0.0  ;;  %v3417_v5 = vadd.f32 %v3413_v40, %v4779_v32 }
 0xa19   : > { %3422 = vadd.xlane.f32.xlu0 %v3421_v45 }
 0xa1a   : > { %v3424_v16 = vsel %vm1344_vm7, %v3417_v5, 0.0 }
 0xa1b   : > { %3425 = vadd.xlane.f32.xlu1 %v3424_v16 }
 0xaa6   : > { %v3423_v61 = vpop.xlane.xlu0 %3422 }
 0xaa7   : > { %v3427_v0 = vmul.f32 0.03125, %v3423_v61 }
 0xaa8   : > { %v3426_v57 = vpop.xlane.xlu1 %3425 }
 0xaa9   : > { %v3429_v1 = vsub.f32 %v3416_v60, %v3427_v0  ;;  %v3428_v63 = vmul.f32 0.03125, %v3426_v57 }
 0xaab   : > { %v3430_v47 = vsub.f32 %v3417_v5, %v3428_v63  ;;  %v3431_v4 = vmul.f32 %v3429_v1, %v3429_v1 }
 0xaad   : > { %v3433_v50 = vsel %vm670_vm3, %v3431_v4, 0.0  ;;  %v3432_v38 = vmul.f32 %v3430_v47, %v3430_v47 }
 0xaae   : > { %3434 = vadd.xlane.f32.xlu1 %v3433_v50 }
 0xaaf   : > { %v3436_v17 = vsel %vm1344_vm7, %v3432_v38, 0.0 }
 0xab2   : > { %3437 = vadd.xlane.f32.xlu1 %v3436_v17 }
 0xb3b   : > { %v3435_v32 = vpop.xlane.xlu1 %3434 }
 0xb3c   : > { %v3439_v6 = vmul.f32 0.03125, %v3435_v32 }
 0xb3e   : > { %v3441_v7 = vadd.f32 1e-05, %v3439_v6 }
 0xb3f   : > { %v3438_v8 = vpop.xlane.xlu1 %3437 }
 0xb40   : > { %4316 = vrsqrt.f32 %v3441_v7  ;;  %v3440_v9 = vmul.f32 0.03125, %v3438_v8 }
 0xb42   : > { %v3442_v55 = vadd.f32 1e-05, %v3440_v9 }
 0xb44   : > { %4318 = vrsqrt.f32 %v3442_v55 }
 0xb4a   : > { %v4317_v10 = vpop.eup %4316 }
 0xb4b   : > { %v3445_v56 = vmul.f32 %v4317_v10, %v3429_v1 }
 0xb4d   : > { %v3453_v11 = vmul.f32 %v3811_v24, %v3445_v56 }
 0xb4e   : > { %v4319_v13 = vpop.eup %4318 }
 0xb4f   : > { %v3461_v58 = vadd.f32 %v3812_v26, %v3453_v11  ;;  %v3446_v18 = vmul.f32 %v4319_v13, %v3430_v47 }
 0xb51   : > { %3463 = vst.msk [vmem:[%s5059_s15] sm:$0xff] %vm670_vm3, %v3461_v58  ;;  %v3454_v33 = vmul.f32 %v3811_v24, %v3446_v18 }
 0xb53   : > { %v3462_v19 = vadd.f32 %v3812_v26, %v3454_v33 }
 0xb55   : > { %3464 = vst.msk [vmem:[%s5059_s15 + $0x8] sm:$0x3] %vm1344_vm7, %v3462_v19 }
 0xb56 PF: > { %s5084_s21 = sld [smem:[#allocation2_spill]] }
 0xb5c   : > { %s25_s18 = sadd.s32 1, %s5084_s21  }
 0xb5d   : > { %p22_p5 = scmp.ge.s32.totalorder %s25_s18, 4  }
 0xb5f   :  { %24 = sbr.rel (!%p22_p5) target bundleno = 8 (0x8), region = 139 }

// kernel: videobert_forward.12
= control target key start
LH: loop header
LB: loop body
LE: loop exit
PB: predicated region body
PF: predicated region fallthrough
CT: control target
= control target key end

     0   :  { %s6464_s0 = inlined_call_operand.vmem [shape: f32[2,16], index: 0, kind: input, shape index: {}]   ;;  %s6465_s1 = inlined_call_operand.vmem [shape: bf16[16,32], index: 1, kind: input, shape index: {}]   ;;  %s6466_s2 = inlined_call_operand.vmem [shape: f32[1,32], index: 2, kind: input, shape index: {}]   ;;  %s6467_s3 = inlined_call_operand.vmem [shape: bf16[8,2], index: 3, kind: input, shape index: {}]   ;;  %s6468_s4 = inlined_call_operand.vmem [shape: f32[8,32], index: 4, kind: input, shape index: {}]   ;;  %s6469_s5 = inlined_call_operand.vmem [shape: bf16[2,32,96], index: 5, kind: input, shape index: {}]   ;;  %s6470_s6 = inlined_call_operand.vmem [shape: f32[2,1,96], index: 6, kind: input, shape index: {}]   ;;  %s6471_s7 = inlined_call_operand.vmem [shape: bf16[2,32,32], index: 7, kind: input, shape index: {}]   ;;  %s6472_s8 = inlined_call_operand.vmem [shape: f32[2,1,32], index: 8, kind: input, shape index: {}]   ;;  %s6473_s9 = inlined_call_operand.vmem [shape: f32[2,2,1,32], index: 9, kind: input, shape index: {}]   ;;  %s6474_s10 = inlined_call_operand.vmem [shape: bf16[2,32,32], index: 10, kind: input, shape index: {}]   ;;  %s6475_s11 = inlined_call_operand.vmem [shape: f32[2,1,32], index: 11, kind: input, shape index: {}]   ;;  %s6476_s12 = inlined_call_operand.vmem [shape: bf16[2,32,64], index: 12, kind: input, shape index: {}]   ;;  %s6477_s13 = inlined_call_operand.vmem [shape: f32[2,1,64], index: 13, kind: input, shape index: {}]   ;;  %s6478_s14 = inlined_call_operand.vmem [shape: bf16[2,32,32], index: 14, kind: input, shape index: {}]   ;;  %s6479_s15 = inlined_call_operand.vmem [shape: f32[2,1,32], index: 15, kind: input, shape index: {}]   ;;  %s6480_s16 = inlined_call_operand.vmem [shape: f32[2,2,1,32], index: 16, kind: input, shape index: {}]   ;;  %s6481_s17 = inlined_call_operand.vmem [shape: bf16[2,32,2048], index: 17, kind: input, shape index: {}]   ;;  %s6482_s18 = inlined_call_operand.vmem [shape: f32[2,1,2048], index: 18, kind: input, shape index: {}]   ;;  %s6483_s19 = inlined_call_operand.vmem [shape: bf16[2,2048,32], index: 19, kind: input, shape index: {}]   ;;  %s6484_s20 = inlined_call_operand.vmem [shape: f32[2,1,32], index: 20, kind: input, shape index: {}]   ;;  %s6485_s21 = inlined_call_operand.vmem [shape: f32[2,2,1,32], index: 21, kind: input, shape index: {}]   ;;  %s6486_s22 = inlined_call_operand.vmem [shape: bf16[64,8], index: 22, kind: input, shape index: {}]   ;;  %s6487_s23 = inlined_call_operand.vmem [shape: bf16[8,64], index: 23, kind: input, shape index: {}]   ;;  %s6488_s24 = inlined_call_operand.vmem [shape: f32[64,32], index: 24, kind: input, shape index: {}]   ;;  %s6489_s25 = inlined_call_operand.vmem [shape: f32[64,8], index: 25, kind: input, shape index: {}]   ;;  %s6490_s26 = inlined_call_operand.vmem [shape: f32[64,8], index: 26, kind: input, shape index: {}]   ;;  %s6491_s27 = inlined_call_operand.vmem [shape: f32[8,32], index: 27, kind: output, shape index: {}]  }
   0x1   :  { %6500 = sst [smem:[#allocation5_spill]] %s6464_s0 }
   0x2   :  { %6501 = sst [smem:[#allocation6_spill]] %s6465_s1 }
   0x3   :  { %6502 = sst [smem:[#allocation7_spill]] %s6466_s2 }
   0x4   :  { %6503 = sst [smem:[#allocation8_spill]] %s6467_s3 }
   0x5   :  { %6504 = sst [smem:[#allocation9_spill]] %s6468_s4 }
   0x6   :  { %6505 = sst [smem:[#allocation10_spill]] %s6469_s5 }
   0x7   :  { %6506 = sst [smem:[#allocation11_spill]] %s6470_s6 }
   0x8   :  { %6507 = sst [smem:[#allocation12_spill]] %s6471_s7  ;;  %s5730_s7 = smov 0  }
   0x9   :  { %6508 = sst [smem:[#allocation13_spill]] %s6472_s8 }
   0xa   :  { %6509 = sst [smem:[#allocation14_spill]] %s6473_s9 }
   0xb   :  { %6510 = sst [smem:[#allocation15_spill]] %s6474_s10 }
   0xc   :  { %6511 = sst [smem:[#allocation16_spill]] %s6475_s11 }
   0xd   :  { %6512 = sst [smem:[#allocation17_spill]] %s6476_s12 }
   0xe   :  { %6513 = sst [smem:[#allocation18_spill]] %s6478_s14 }
   0xf   :  { %6514 = sst [smem:[#allocation19_spill]] %s6480_s16 }
  0x10   :  { %6515 = sst [smem:[#allocation20_spill]] %s6485_s21 }
  0x11   :  { %6516 = sst [smem:[#allocation21_spill]] %s6486_s22 }
  0x12   :  { %6517 = sst [smem:[#allocation22_spill]] %s6487_s23 }
  0x13   :  { %6518 = sst [smem:[#allocation23_spill]] %s6488_s24 }
  0x14   :  { %6519 = sst [smem:[#allocation24_spill]] %s6489_s25 }
  0x15   :  { %6520 = sst [smem:[#allocation25_spill]] %s6490_s26 }
  0x16   :  { %6521 = sst [smem:[#allocation26_spill]] %s6491_s27 }
  0x17 LB: > { %6522 = sst [smem:[#allocation2_spill]] %s5581_s7  ;;  %s4705_s4 = sadd.s32 4294967295, %s5581_s7   ;;  %s5581_s7 = sphi %s5730_s7, %s37_s7  }
  0x18   : > { %p4708_p0 = scmp.ge.s32.totalorder %s5581_s7, 1  ;;  %p876_p1 = scmp.lt.s32.totalorder %s5581_s7, 3 }
  0x1a   : > { %p877_p2 = pnand %p4708_p0, %p876_p1 }
  0x1c   : > { %880 = sbr.rel (%p877_p2) target bundleno = 5297 (0x14b1), region = 128 }
  0x23   : > { %p1007_p3 = scmp.lt.s32.totalorder %s4705_s4, 1  ;;  %s6524_s1 = sld [smem:[#allocation10_spill]] }
  0x24   : > { %s6526_s3 = sld [smem:[#allocation12_spill]]  ;;  %s6529_s5 = sld [smem:[#allocation14_spill]] }
  0x25   : > { %s5738_s8 = scalar_select %p1007_p3, %s4705_s4, 1 }
  0x26   : > { %s6532_s12 = sld [smem:[#allocation17_spill]]  ;;  %s6533_s14 = sld [smem:[#allocation18_spill]] }
  0x27   : > { %s4962_s30 = sshll.u32 %s5738_s8, 4  ;;  %s4713_s22 = sshll.u32 %s5738_s8, 1 }
  0x28   : > { %s6534_s16 = sld [smem:[#allocation19_spill]]  ;;  %s4967_s21 = sshll.u32 %s5738_s8, 8 }
  0x29   : > { %s5748_s6 = scalar_lea.vmem %s6524_s1, %s4962_s30  ;;  %s6530_s1 = sld [smem:[#allocation15_spill]] }
  0x2a   : > { %6525 = sst [smem:[#allocation3_spill]] %s5748_s6  ;;  %s5753_s7 = scalar_lea.vmem %s6526_s3, %s4962_s30 }
  0x2b   : > { %6527 = sst [smem:[#allocation4_spill]] %s5753_s7  ;;  %s5763_s28 = scalar_lea.vmem %s6529_s5, %s4713_s22 }
  0x2c   : > { %s5777_s23 = scalar_lea.vmem %s6532_s12, %s4962_s30  ;;  %s5786_s24 = scalar_lea.vmem %s6533_s14, %s4962_s30 }
  0x2d   : > { %s5801_s25 = scalar_lea.vmem %s6482_s18, %s4962_s30  ;;  %s5806_s9 = scalar_lea.vmem %s6481_s17, %s4967_s21 }
  0x2e   : > { %s5795_s2 = scalar_lea.vmem %s6534_s16, %s4713_s22  ;;  %s4968_s5 = sshll.u32 %s5738_s8, 10 }
  0x2f   : > { %s5768_s0 = scalar_lea.vmem %s6530_s1, %s4962_s30  ;;  %s5812_s29 = scalar_lea.vmem %s6483_s19, %s4968_s5 }
  0x30   : > { %s1071_s1 = scalar_lea.vmem %s6484_s20, %s5738_s8  ;;  %s6535_s3 = sld [smem:[#allocation20_spill]] }
  0x31   : > { %p4727_p4 = scmp.ne.s32.totalorder %s4705_s4, 0 }
  0x32   : > { %s6536_s7 = sld [smem:[#allocation6_spill]] (!%p4727_p4)  ;;  %v5583_v1 = vmov (!%p4727_p4), 0.0   ;;  %s6537_s5 = sld [smem:[#allocation5_spill]] (!%p4727_p4)  ;;  %vm5584_vm0 = vmmov (!%p4727_p4), 0   ;;  %vm1098_vm1 = vcmask (!%p4727_p4), 130048   ;;  %vm1151_vm3 = vcmask (!%p4727_p4), 1040384  }
  0x33   : > { %1080 = sbr.rel (%p4727_p4) target bundleno = 498 (0x1f2), region = 132  ;;  %5204 = vmatprep.subr.bf16.mxu0 (!%p4727_p4), %v5583_v1  ;;  %5210 = vmatprep.subr.bf16.mxu1 (!%p4727_p4), %v5583_v1  ;;  %s6539_s6 = sld [smem:[#allocation8_spill]] (!%p4727_p4)  ;;  %vm1147_vm4 = vcmask (!%p4727_p4), 15360   ;;  %vm1195_vm5 = vcmask (!%p4727_p4), 261120  }
  0x34   : > { %5206 = vmatprep.mubr.msk.bf16.mxu0 (!%p4727_p4), %vm5584_vm0, %v5583_v1  ;;  %5212 = vmatprep.mubr.msk.bf16.mxu1 (!%p4727_p4), %vm5584_vm0, %v5583_v1  ;;  %s6540_s27 = sld [smem:[#allocation26_spill]] (!%p4727_p4) }
  0x36   : > { %s5821_s30 = scalar_lea.vmem %s6535_s3, %s4713_s22  ;;  %s6538_s22 = sld [smem:[#allocation7_spill]] (!%p4727_p4) }
  0x38   : > { %v5361_v0 = vld [vmem:[%s6536_s7] sm:$0xff] (!%p4727_p4)  }
  0x39   : > { %v1081_v2 = vld [vmem:[%s6537_s5] sm:$0x3] (!%p4727_p4)  ;;  %5205 = vmatpush3.bf16.msra.mxu0 (!%p4727_p4), %v5361_v0 }
  0x3a   : > { %v1082_v3 = vpack.c.bf16 %v1081_v2, %v1081_v2  ;;  %v1145_v14 = vld [vmem:[%s6539_s6] sm:$0xf] }
  0x3c   : > { %5207 = vmatmul.mubr.msk.bf16.vlgmr.msra.gmra.mrb[0].mxu0 %vm1098_vm1, %v1082_v3  ;;  %v4728_v4 = vld [vmem:[%s6538_s22] ss:$0 sm:$0xff] }
 0x10f   : > { %v1136_v5 = vpop.f32.mrb[0].mxu0 }
 0x110   : > { %v1137_v6 = vadd.f32 %v4728_v4, %v1136_v5  ;;  %v5208_v7 = vpop.f32.mrb[1].mxu0 }
 0x111   : > { %v1139_v8 = vpop.f32.mrb[2].mxu0 }
 0x112   : > { %v1143_v9 = vmul.f32 0.01, %v1137_v6  ;;  %v5209_v10 = vpop.f32.mrb[3].mxu0  ;;  %vm1142_vm2 = vcmp.ge.f32.partialorder %v1137_v6, 0.0 }
 0x114   : > { %v1144_v11 = vsel %vm1142_vm2, %v1137_v6, %v1143_v9 }
 0x115   : > { %v1146_v12 = vpack.c.bf16 %v1144_v11, %v1144_v11 }
 0x117   : > { %v1153_v13 = vsel %vm1151_vm3, %v1146_v12, 0 }
 0x118   : > { %5211 = vmatpush3.bf16.msra.mxu1 %v1153_v13 }
 0x11b   : > { %5213 = vmatmul.mubr.msk.bf16.vlgmr.msra.gmra.mrb[0].mxu1 %vm1147_vm4, %v1145_v14 }
 0x1ee   : > { %v1189_v15 = vpop.f32.mrb[0].mxu1 }
 0x1ef   : > { %1196 = vst.msk [vmem:[%s6540_s27] sm:$0xff] %vm1195_vm5, %v1189_v15  ;;  %v5214_v16 = vpop.f32.mrb[1].mxu1 }
 0x1f0   : > { %v1192_v17 = vpop.f32.mrb[2].mxu1 }
 0x1f1   : > { %v5215_v18 = vpop.f32.mrb[3].mxu1 }
 0x1f2 PF: > { %s6541_s21 = sld [smem:[#allocation3_spill]]  ;;  %v5585_v20 = vmov 0.0   ;;  %vm5586_vm6 = vmmov 0   ;;  %s6542_s26 = sld [smem:[#allocation26_spill]]  ;;  %vm1222_vm7 = vcmask 261120   ;;  %vm1312_vm8 = vcmask 64512  }
 0x1f3   : > { %5216 = vmatprep.subr.bf16.mxu0 %v5585_v20  ;;  %5220 = vmatprep.mubr.msk.bf16.mxu0 %vm5586_vm6, %v5585_v20  ;;  %s6543_s16 = sld [smem:[#allocation21_spill]]  ;;  %s6544_s10 = sld [smem:[#allocation11_spill]]  ;;  %vm1325_vm9 = vcmask 1043456   ;;  %vm1691_vm10 = vcmask 523264  }
 0x1f4   : > { %s5587_s11 = smov 96   ;;  %s6546_s4 = sld [smem:[#allocation23_spill]] }
 0x1f5   : > { %s6547_s12 = sld [smem:[#allocation24_spill]]  ;;  %s5588_s3 = smov 64  }
 0x1f6   : > { %s6548_s27 = sld [smem:[#allocation4_spill]]  ;;  %s6549_s5 = sld [smem:[#allocation22_spill]] }
 0x1f8   : > { %v5362_v19 = vld [vmem:[%s6541_s21] sm:$0xff]   ;;  %v5363_v21 = vld [vmem:[%s6541_s21 + $0x8] sm:$0xff]   ;;  %s6552_s21 = sld [smem:[#allocation9_spill]] }
 0x1f9   : > { %5217 = vmatpush3.bf16.msra.mxu0 %v5362_v19  ;;  %v1197_v22 = vld [vmem:[%s6542_s26] sm:$0xff]  ;;  %s6545_s6 = scalar_lea.vmem %s6544_s10, %s5738_s8  ;;  %v5871_v33 = vld [vmem:[%s6543_s16 + $0x8] sm:$0xff]   ;;  %v5876_v34 = vld [vmem:[%s6543_s16 + $0x10] sm:$0xff]   ;;  %s6550_s10 = sld [smem:[#allocation13_spill]] }
 0x1fa   : > { %5218 = vmatprep.subr.bf16.mxu0 %v5585_v20  ;;  %v1198_v23 = vpack.c.bf16 %v1197_v22, %v1197_v22  ;;  %v5851_v24 = vld [vmem:[%s6543_s16] sm:$0xff]   ;;  %v5885_v35 = vld [vmem:[%s6543_s16 + $0x18] sm:$0xff]   ;;  %v5895_v38 = vld [vmem:[%s6546_s4 + $0x10] sm:$0xff] }
 0x1fb   : > { %5226 = vmatprep.mubr.msk.bf16.mxu1 %vm1312_vm8, %v5851_v24  ;;  %v4732_v25 = vld [vmem:[%s6545_s6] ss:$0 sm:$0xff]  ;;  %v5900_v40 = vld [vmem:[%s6546_s4 + $0x18] sm:$0xff]  ;;  %v5910_v43 = vld [vmem:[%s6546_s4 + $0x8] sm:$0xff] }
 0x1fc   : > { %v5905_v41 = vld [vmem:[%s6546_s4] sm:$0xff]  ;;  %v5919_v52 = vld [vmem:[%s6546_s4 + $0x30] sm:$0xff]  ;;  %v5930_v55 = vld [vmem:[%s6546_s4 + $0x38] sm:$0xff] }
 0x1fd   : > { %5219 = vmatpush3.bf16.msra.mxu0 %v5363_v21  ;;  %v5924_v53 = vld [vmem:[%s6546_s4 + $0x20] sm:$0xff]  ;;  %v5937_v58 = vld [vmem:[%s6546_s4 + $0x28] sm:$0xff]  ;;  %v1285_v3 = vld [vmem:[%s6547_s12 + $0x10] sm:$0xff] }
 0x1fe   : > { %v1283_v6 = vld [vmem:[%s6547_s12] sm:$0xff]  ;;  %v1286_v9 = vld [vmem:[%s6547_s12 + $0x18] sm:$0xff]  ;;  %v1284_v18 = vld [vmem:[%s6547_s12 + $0x8] sm:$0xff] }
 0x1ff   : > { %s6551_s6 = scalar_lea.vmem %s6550_s10, %s5738_s8 }
 0x200   : > { %5221 = vmatmul.mubr.msk.bf16.vlgmr.msra.gmra.mrb[0].mxu0 %vm1222_vm7, %v1198_v23 }
 0x2d3   : > { %v1260_v26 = vpop.f32.mrb[0].mxu0 }
 0x2d4   : > { %v1261_v27 = vadd.f32 %v4732_v25, %v1260_v26  ;;  %v5222_v28 = vpop.f32.mrb[1].mxu0 }
 0x2d5   : > { %v1263_v29 = vpop.f32.mrb[2].mxu0 }
 0x2d6   : > { %v5860_v30 = vpack.c.bf16 %v1261_v27, %v1261_v27  ;;  %v5223_v31 = vpop.f32.mrb[3].mxu0  ;;  %v1289_v27 = vld [vmem:[%s6547_s12 + $0x30] sm:$0xff] }
 0x2d8   : > { %1407 = vrot.lane.b32.xlu0 %v5860_v30, %s5587_s11  ;;  %5340 = vmatprep.subr.msk.bf16.mxu1 %vm1325_vm9, %v5860_v30  ;;  %v1327_v32 = vsel %vm1325_vm9, %v5860_v30, 0 }
 0x2d9   : > { %5225 = vmatpush3.bf16.msra.mxu1 %v1327_v32 }
 0x2dc   : > { %5227 = vmatmul.mubr.msk.bf16.vlgmr.msra.gmra.mrb[0].mxu1 %vm1312_vm8, %v5871_v33 }
 0x2dd   : > { %5230 = vmatprep.mubr.msk.bf16.mxu1 %vm1312_vm8, %v5876_v34 }
 0x2e4   : > { %5231 = vmatmul.mubr.msk.bf16.gmra.mrb[4].mxu1 %vm1312_vm8, %v5885_v35 }
 0x34a   : > { %v1408_v36 = vpop.permute.xlu0 %1407 }
 0x34b   : > { %v1422_v37 = vsel %vm1222_vm7, %v1408_v36, 0  ;;  %5341 = vmatprep.subr.msk.bf16.mxu0 %vm1222_vm7, %v1408_v36  ;;  %v1287_v36 = vld [vmem:[%s6547_s12 + $0x20] sm:$0xff] }
 0x34c   : > { %5235 = vmatpush3.bf16.xpose.msra.mxu0 %v1422_v37 }
 0x34d   : > { %5254 = vmatprep.subr.bf16.mxu0 %v5585_v20 }
 0x3af   : > { %v5228_v39 = vpop.f32.mrb[0].mxu1 }
 0x3b0   : > { %v1363_v42 = vpop.f32.mrb[1].mxu1  ;;  %v1396_v45 = vmul.f32 %v5228_v39, %v5895_v38 }
 0x3b1   : > { %v5229_v44 = vpop.f32.mrb[2].mxu1  ;;  %v1394_v48 = vmul.f32 %v1363_v42, %v5905_v41 }
 0x3b2   : > { %v1397_v46 = vmul.f32 %v5229_v44, %v5900_v40  ;;  %v1366_v47 = vpop.f32.mrb[3].mxu1  ;;  %v1288_v44 = vld [vmem:[%s6547_s12 + $0x28] sm:$0xff] }
 0x3b3   : > { %v1395_v49 = vmul.f32 %v1366_v47, %v5910_v43 }
 0x3b4   : > { %v1403_v50 = vpack.c.bf16 %v1397_v46, %v1396_v45 }
 0x3b5   : > { %v1402_v51 = vpack.c.bf16 %v1395_v49, %v1394_v48  ;;  %v1290_v48 = vld [vmem:[%s6547_s12 + $0x38] sm:$0xff] }
 0x3b7   : > { %v5232_v54 = vpop.f32.mrb[4].mxu1  ;;  %5236 = vmatprep.mubr.msk.bf16.mxu0 %vm1222_vm7, %v1402_v51 }
 0x3b8   : > { %v1400_v56 = vmul.f32 %v5232_v54, %v5919_v52  ;;  %v1379_v57 = vpop.f32.mrb[5].mxu1  ;;  %5237 = vmatmul.mubr.msk.bf16.vlgmr.msra.gmra.mrb[4].mxu0 %vm1222_vm7, %v1403_v50 }
 0x3b9   : > { %v1398_v59 = vmul.f32 %v1379_v57, %v5924_v53  ;;  %v5233_v60 = vpop.f32.mrb[6].mxu1 }
 0x3ba   : > { %v1401_v61 = vmul.f32 %v5233_v60, %v5930_v55  ;;  %v1382_v62 = vpop.f32.mrb[7].mxu1 }
 0x3bb   : > { %v1399_v63 = vmul.f32 %v1382_v62, %v5937_v58 }
 0x3bc   : > { %v1405_v0 = vpack.c.bf16 %v1401_v61, %v1400_v56 }
 0x3bd   : > { %v1404_v1 = vpack.c.bf16 %v1399_v63, %v1398_v59 }
 0x3bf   : > { %5240 = vmatprep.mubr.msk.bf16.mxu0 %vm1222_vm7, %v1404_v1 }
 0x3c0   : > { %5241 = vmatmul.mubr.msk.bf16.gmra.mrb[8].mxu0 %vm1222_vm7, %v1405_v0 }
 0x3c1   : > { %5262 = vmatprep.mubr.msk.bf16.mxu0 %vm5586_vm6, %v5585_v20 }
 0x48b   : > { %v5238_v2 = vpop.f32.mrb[4].mxu0 }
 0x48c   : > { %v1491_v4 = vmul.f32 0.5, %v5238_v2  ;;  %v1458_v5 = vpop.f32.mrb[5].mxu0 }
 0x48d   : > { %v1489_v7 = vmul.f32 0.5, %v1458_v5  ;;  %v5239_v8 = vpop.f32.mrb[6].mxu0 }
 0x48e   : > { %v1492_v10 = vmul.f32 0.5, %v5239_v8  ;;  %v1461_v11 = vpop.f32.mrb[7].mxu0  ;;  %v1499_v12 = vadd.f32 %v1491_v4, %v1285_v3 }
 0x48f   : > { %v1497_v13 = vadd.f32 %v1489_v7, %v1283_v6  ;;  %v1490_v14 = vmul.f32 0.5, %v1461_v11 }
 0x490   : > { %v1511_v15 = vsel %vm1312_vm8, %v1499_v12, -inf  ;;  %v1500_v16 = vadd.f32 %v1492_v10, %v1286_v9 }
 0x491   : > { %1512 = vmax.xlane.f32.xlu1 %v1511_v15  ;;  %v1505_v17 = vsel %vm1312_vm8, %v1497_v13, -inf  ;;  %v1498_v25 = vadd.f32 %v1490_v14, %v1284_v18 }
 0x492   : > { %1506 = vmax.xlane.f32.xlu0 %v1505_v17  ;;  %v1514_v23 = vsel %vm1312_vm8, %v1500_v16, -inf }
 0x493   : > { %v5242_v19 = vpop.f32.mrb[8].mxu0  ;;  %v1508_v31 = vsel %vm1312_vm8, %v1498_v25, -inf }
 0x494   : > { %v1495_v21 = vmul.f32 0.5, %v5242_v19  ;;  %v1474_v22 = vpop.f32.mrb[9].mxu0 }
 0x495   : > { %1515 = vmax.xlane.f32.xlu1 %v1514_v23  ;;  %v5243_v26 = vpop.f32.mrb[10].mxu0  ;;  %v1493_v29 = vmul.f32 0.5, %v1474_v22 }
 0x496   : > { %v1477_v28 = vpop.f32.mrb[11].mxu0  ;;  %v1503_v32 = vadd.f32 %v1495_v21, %v1289_v27  ;;  %v1496_v45 = vmul.f32 0.5, %v5243_v26 }
 0x497   : > { %v1494_v37 = vmul.f32 0.5, %v1477_v28  ;;  %v1501_v42 = vadd.f32 %v1493_v29, %v1287_v36 }
 0x498   : > { %v1523_v39 = vsel %vm1312_vm8, %v1503_v32, -inf  ;;  %v1504_v50 = vadd.f32 %v1496_v45, %v1290_v48 }
 0x499   : > { %1509 = vmax.xlane.f32.xlu1 %v1508_v31  ;;  %v1517_v46 = vsel %vm1312_vm8, %v1501_v42, -inf  ;;  %v1502_v47 = vadd.f32 %v1494_v37, %v1288_v44 }
 0x49a   : > { %v1526_v51 = vsel %vm1312_vm8, %v1504_v50, -inf }
 0x49b   : > { %v1520_v49 = vsel %vm1312_vm8, %v1502_v47, -inf }
 0x49d   : > { %1524 = vmax.xlane.f32.xlu1 %v1523_v39 }
 0x4a1   : > { %1518 = vmax.xlane.f32.xlu1 %v1517_v46 }
 0x4a5   : > { %1521 = vmax.xlane.f32.xlu1 %v1520_v49 }
 0x4a9   : > { %1527 = vmax.xlane.f32.xlu1 %v1526_v51 }
 0x51e   : > { %v1513_v54 = vpop.xlane.xlu1 %1512 }
 0x51f   : > { %v1531_v56 = vsub.f32 %v1499_v12, %v1513_v54  ;;  %v1507_v57 = vpop.xlane.xlu0 %1506 }
 0x520   : > { %v1529_v59 = vsub.f32 %v1497_v13, %v1507_v57 }
 0x521   : > { %v1541_v60 = vmul.f32 1.442695, %v1531_v56 }
 0x522   : > { %v1537_v61 = vmul.f32 1.442695, %v1529_v59  ;;  %v1516_v62 = vpop.xlane.xlu1 %1515 }
 0x523   : > { %5504 = vpow2.f32 %v1541_v60  ;;  %v1532_v63 = vsub.f32 %v1500_v16, %v1516_v62 }
 0x524   : > { %5506 = vpow2.f32 %v1537_v61 }
 0x525   : > { %v1543_v2 = vmul.f32 1.442695, %v1532_v63 }
 0x526   : > { %v1510_v0 = vpop.xlane.xlu1 %1509 }
 0x527   : > { %v1530_v1 = vsub.f32 %v1498_v25, %v1510_v0 }
 0x529   : > { %v1539_v3 = vmul.f32 1.442695, %v1530_v1 }
 0x52a   : > { %v1525_v4 = vpop.xlane.xlu1 %1524 }
 0x52b   : > { %5508 = vpow2.f32 %v1539_v3  ;;  %v1535_v5 = vsub.f32 %v1503_v32, %v1525_v4 }
 0x52c   : > { %5510 = vpow2.f32 %v1543_v2 }
 0x52d   : > { %v5978_v6 = vpop.eup %5504  ;;  %v1549_v7 = vmul.f32 1.442695, %v1535_v5 }
 0x52e   : > { %v5507_v8 = vpop.eup %5506  ;;  %v1519_v9 = vpop.xlane.xlu1 %1518  ;;  %v1559_v10 = vsel %vm1312_vm8, %v5978_v6, 0.0 }
 0x52f   : > { %5512 = vpow2.f32 %v1549_v7  ;;  %v1533_v11 = vsub.f32 %v1501_v42, %v1519_v9  ;;  %1560 = vadd.xlane.f32.xlu0 %v1559_v10  ;;  %v1553_v12 = vsel %vm1312_vm8, %v5507_v8, 0.0 }
 0x530   : > { %1554 = vadd.xlane.f32.xlu1 %v1553_v12 }
 0x531   : > { %v1545_v13 = vmul.f32 1.442695, %v1533_v11 }
 0x532   : > { %v1522_v14 = vpop.xlane.xlu1 %1521 }
 0x533   : > { %5514 = vpow2.f32 %v1545_v13  ;;  %v1534_v15 = vsub.f32 %v1502_v47, %v1522_v14 }
 0x535   : > { %v5509_v16 = vpop.eup %5508  ;;  %v1547_v17 = vmul.f32 1.442695, %v1534_v15 }
 0x536   : > { %v1528_v18 = vpop.xlane.xlu1 %1527  ;;  %v1556_v19 = vsel %vm1312_vm8, %v5509_v16, 0.0  ;;  %v5511_v21 = vpop.eup %5510 }
 0x537   : > { %5516 = vpow2.f32 %v1547_v17  ;;  %v1536_v22 = vsub.f32 %v1504_v50, %v1528_v18  ;;  %1557 = vadd.xlane.f32.xlu1 %v1556_v19  ;;  %v1562_v27 = vsel %vm1312_vm8, %v5511_v21, 0.0 }
 0x539   : > { %v5513_v23 = vpop.eup %5512  ;;  %v1551_v25 = vmul.f32 1.442695, %v1536_v22 }
 0x53a   : > { %v1571_v26 = vsel %vm1312_vm8, %v5513_v23, 0.0 }
 0x53b   : > { %5518 = vpow2.f32 %v1551_v25  ;;  %1572 = vadd.xlane.f32.xlu0 %v1571_v26  ;;  %1563 = vadd.xlane.f32.xlu1 %v1562_v27 }
 0x53d   : > { %v5515_v28 = vpop.eup %5514 }
 0x53e   : > { %v1565_v29 = vsel %vm1312_vm8, %v5515_v28, 0.0 }
 0x53f   : > { %1566 = vadd.xlane.f32.xlu0 %v1565_v29 }
 0x541   : > { %v5517_v31 = vpop.eup %5516 }
 0x542   : > { %v1568_v32 = vsel %vm1312_vm8, %v5517_v31, 0.0 }
 0x543   : > { %1569 = vadd.xlane.f32.xlu1 %v1568_v32 }
 0x545   : > { %v5519_v36 = vpop.eup %5518 }
 0x546   : > { %v1574_v37 = vsel %vm1312_vm8, %v5519_v36, 0.0 }
 0x547   : > { %1575 = vadd.xlane.f32.xlu1 %v1574_v37 }
 0x555   : > { %1597 = vrot.lane.b32.xlu0 %v5860_v30, %s5588_s3 }
 0x5bc   : > { %v1561_v42 = vpop.xlane.xlu0 %1560 }
 0x5bd   : > { %v1555_v39 = vpop.xlane.xlu1 %1554 }
 0x5be   : > { %5520 = vrcp.f32 %v1555_v39  ;;  %v6016_v39 = vld [vmem:[%s6549_s5] sm:$0xf]  ;;  %s6553_s5 = sld [smem:[#allocation16_spill]] }
 0x5c4   : > { %v1558_v44 = vpop.xlane.xlu1 %1557  ;;  %s6554_s14 = scalar_lea.vmem %s6553_s5, %s5738_s8  ;;  %s6557_s5 = scalar_lea.vmem %s6479_s15, %s5738_s8 }
 0x5c5   : > { %5522 = vrcp.f32 %v1558_v44 }
 0x5c6   : > { %5524 = vrcp.f32 %v1561_v42  ;;  %v5369_v42 = vld [vmem:[%s6548_s27 + $0x8] sm:$0xff]  }
 0x5c8   : > { %v1573_v45 = vpop.xlane.xlu0 %1572  ;;  %v1564_v46 = vpop.xlane.xlu1 %1563 }
 0x5c9   : > { %5526 = vrcp.f32 %v1564_v46  ;;  %v5521_v48 = vpop.eup %5520 }
 0x5ca   : > { %v1585_v54 = vmul.f32 %v5521_v48, %v5507_v8 }
 0x5cc   : > { %v1567_v47 = vpop.xlane.xlu0 %1566 }
 0x5cd   : > { %5528 = vrcp.f32 %v1567_v47 }
 0x5cf   : > { %v5523_v49 = vpop.eup %5522 }
 0x5d0   : > { %v1598_v50 = vpop.permute.xlu0 %1597  ;;  %v1570_v51 = vpop.xlane.xlu1 %1569  ;;  %v1586_v56 = vmul.f32 %v5523_v49, %v5509_v16  ;;  %v4753_v49 = vld [vmem:[%s6551_s6] ss:$0 sm:$0xff]  ;;  %s6555_s6 = scalar_lea.vmem %s6477_s13, %s5738_s8 }
 0x5d1   : > { %v1612_v57 = vsel %vm1325_vm9, %v1598_v50, 0  ;;  %5530 = vrcp.f32 %v1570_v51  ;;  %5342 = vmatprep.subr.msk.bf16.mxu1 %vm1325_vm9, %v1598_v50  ;;  %v5525_v30 = vpop.eup %5524 }
 0x5d2   : > { %5245 = vmatpush3.bf16.msra.mxu1 %v1612_v57  ;;  %v1593_v59 = vpack.c.bf16 %v1586_v56, %v1585_v54  ;;  %5532 = vrcp.f32 %v1573_v45  ;;  %v1587_v62 = vmul.f32 %v5525_v30, %v5978_v6  ;;  %v5368_v6 = vld [vmem:[%s6548_s27] sm:$0xff]  }
 0x5d3   : > { %5266 = vmatprep.subr.bf16.mxu1 %v5585_v20  ;;  %v5527_v60 = vpop.eup %5526  ;;  %v5574_v30 = vld [vmem:[%s6542_s26] sm:$0xff] }
 0x5d4   : > { %5246 = vmatprep.mubr.msk.bf16.mxu1 %vm1312_vm8, %v1593_v59  ;;  %v1576_v61 = vpop.xlane.xlu1 %1575  ;;  %v1588_v63 = vmul.f32 %v5527_v60, %v5511_v21 }
 0x5d5   : > { %5534 = vrcp.f32 %v1576_v61 }
 0x5d6   : > { %v1594_v0 = vpack.c.bf16 %v1588_v63, %v1587_v62 }
 0x5d7   : > { %v5529_v1 = vpop.eup %5528 }
 0x5d8   : > { %5247 = vmatmul.mubr.msk.bf16.vlgmr.msra.gmra.mrb[8].mxu1 %vm1312_vm8, %v1594_v0  ;;  %v1589_v3 = vmul.f32 %v5529_v1, %v5515_v28 }
 0x5d9   : > { %5267 = vmatpush3.bf16.msra.mxu1 %v5368_v6 }
 0x5da   : > { %5268 = vmatprep.subr.bf16.mxu1 %v5585_v20 }
 0x5db   : > { %v5531_v2 = vpop.eup %5530 }
 0x5dc   : > { %v1590_v4 = vmul.f32 %v5531_v2, %v5517_v31  ;;  %v5533_v5 = vpop.eup %5532  ;;  %v5370_v2 = vld [vmem:[%s5768_s0] sm:$0xff]  }
 0x5dd   : > { %v1591_v9 = vmul.f32 %v5533_v5, %v5513_v23  ;;  %5269 = vmatpush3.bf16.msra.mxu1 %v5369_v42  ;;  %v5373_v5 = vld [vmem:[%s5777_s23 + $0x8] sm:$0xff]  }
 0x5de   : > { %v1595_v7 = vpack.c.bf16 %v1590_v4, %v1589_v3  ;;  %5282 = vmatprep.subr.bf16.mxu1 %v5585_v20  ;;  %v5371_v3 = vld [vmem:[%s5768_s0 + $0x8] sm:$0xff]   ;;  %v5372_v4 = vld [vmem:[%s5777_s23] sm:$0xff]   ;;  %s6556_s0 = sld [smem:[#allocation25_spill]] }
 0x5df   : > { %v5535_v8 = vpop.eup %5534 }
 0x5e0   : > { %5250 = vmatprep.mubr.msk.bf16.mxu1 %vm1312_vm8, %v1595_v7  ;;  %v1592_v10 = vmul.f32 %v5535_v8, %v5519_v36 }
 0x5e2   : > { %v1596_v11 = vpack.c.bf16 %v1592_v10, %v1591_v9 }
 0x5e4   : > { %5251 = vmatmul.mubr.msk.bf16.gmra.mrb[12].mxu1 %vm1312_vm8, %v1596_v11  ;;  %v4758_v11 = vld [vmem:[%s5763_s28] ss:$0 sm:$0xff] }
 0x5e5   : > { %5270 = vmatprep.mubr.msk.bf16.mxu1 %vm5586_vm6, %v5585_v20 }
 0x6ab   : > { %v5248_v12 = vpop.f32.mrb[8].mxu1 }
 0x6ac   : > { %v1648_v13 = vpop.f32.mrb[9].mxu1  ;;  %v1681_v15 = vmul.f32 %v5248_v12, %v5895_v38  ;;  %v4759_v12 = vld [vmem:[%s5763_s28 + $0x1] ss:$0 sm:$0xff] }
 0x6ad   : > { %v5249_v14 = vpop.f32.mrb[10].mxu1  ;;  %v1679_v18 = vmul.f32 %v1648_v13, %v5905_v41 }
 0x6ae   : > { %v1682_v16 = vmul.f32 %v5249_v14, %v5900_v40  ;;  %v1651_v17 = vpop.f32.mrb[11].mxu1 }
 0x6af   : > { %v1680_v19 = vmul.f32 %v1651_v17, %v5910_v43 }
 0x6b0   : > { %v1688_v21 = vpack.c.bf16 %v1682_v16, %v1681_v15  ;;  %v1834_v16 = vld [vmem:[%s6552_s21] sm:$0xff] }
 0x6b1   : > { %v1687_v22 = vpack.c.bf16 %v1680_v19, %v1679_v18  ;;  %v1835_v17 = vpack.c.bf16 %v1834_v16, %v1834_v16  ;;  %v4760_v18 = vld [vmem:[%s6554_s14] ss:$0 sm:$0xff] }
 0x6b3   : > { %5255 = vmatpush3.bf16.msra.mxu0 %v1687_v22 }
 0x6b4   : > { %5256 = vmatprep.subr.bf16.mxu0 %v5585_v20 }
 0x6b7   : > { %v5252_v23 = vpop.f32.mrb[12].mxu1  ;;  %5257 = vmatpush3.bf16.msra.mxu0 %v1688_v21 }
 0x6b8   : > { %v1664_v25 = vpop.f32.mrb[13].mxu1  ;;  %5258 = vmatprep.subr.bf16.mxu0 %v5585_v20  ;;  %v1685_v27 = vmul.f32 %v5252_v23, %v5919_v52 }
 0x6b9   : > { %v5253_v26 = vpop.f32.mrb[14].mxu1  ;;  %v1683_v31 = vmul.f32 %v1664_v25, %v5924_v53 }
 0x6ba   : > { %v1686_v28 = vmul.f32 %v5253_v26, %v5930_v55  ;;  %v1667_v29 = vpop.f32.mrb[15].mxu1 }
 0x6bb   : > { %v1684_v32 = vmul.f32 %v1667_v29, %v5937_v58 }
 0x6bc   : > { %v1690_v36 = vpack.c.bf16 %v1686_v28, %v1685_v27  ;;  %v4764_v27 = vld [vmem:[%s6555_s6] ss:$0 sm:$0xff] }
 0x6bd   : > { %v1689_v37 = vpack.c.bf16 %v1684_v32, %v1683_v31 }
 0x6bf   : > { %5259 = vmatpush3.bf16.msra.mxu0 %v1689_v37 }
 0x6c0   : > { %5260 = vmatprep.subr.bf16.mxu0 %v5585_v20 }
 0x6c3   : > { %5261 = vmatpush3.bf16.msra.mxu0 %v1690_v36 }
 0x6c4   : > { %5274 = vmatprep.subr.bf16.mxu0 %v5585_v20 }
 0x6c6   : > { %5263 = vmatmul.mubr.msk.bf16.vlgmr.msra.gmra.mrb[12].mxu0 %vm1691_vm10, %v6016_v39 }
 0x6c7   : > { %5278 = vmatprep.mubr.msk.bf16.mxu0 %vm5586_vm6, %v5585_v20  ;;  %5275 = vmatpush3.bf16.msra.mxu0 %v5370_v2 }
 0x6c8   : > { %5276 = vmatprep.subr.bf16.mxu0 %v5585_v20 }
 0x6cb   : > { %5277 = vmatpush3.bf16.msra.mxu0 %v5371_v3 }
 0x799   : > { %v1729_v44 = vpop.f32.mrb[12].mxu0 }
 0x79a   : > { %v1735_v45 = vpack.c.bf16 %v1729_v44, %v1729_v44  ;;  %v5264_v46 = vpop.f32.mrb[13].mxu0 }
 0x79b   : > { %v1732_v47 = vpop.f32.mrb[14].mxu0 }
 0x79c   : > { %v5265_v48 = vpop.f32.mrb[15].mxu0  ;;  %5271 = vmatmul.mubr.msk.bf16.vlgmr.msra.gmra.mrb[16].mxu1 %vm1222_vm7, %v1735_v45 }
 0x79d   : > { %5286 = vmatprep.mubr.msk.bf16.mxu1 %vm5586_vm6, %v5585_v20  ;;  %5283 = vmatpush3.bf16.msra.mxu1 %v5372_v4 }
 0x79e   : > { %5284 = vmatprep.subr.bf16.mxu1 %v5585_v20 }
 0x7a1   : > { %5285 = vmatpush3.bf16.msra.mxu1 %v5373_v5 }
 0x7a4   : > { %5287 = vmatmul.mubr.msk.bf16.vlgmr.msra.gmra.mrb[20].mxu1 %vm1222_vm7, %v1835_v17 }
 0x86f   : > { %v1796_v50 = vpop.f32.mrb[16].mxu1 }
 0x870   : > { %v1797_v51 = vadd.f32 %v4753_v49, %v1796_v50  ;;  %v5272_v54 = vpop.f32.mrb[17].mxu1 }
 0x871   : > { %v1799_v56 = vpop.f32.mrb[18].mxu1 }
 0x872   : > { %v5273_v57 = vpop.f32.mrb[19].mxu1  ;;  %v1802_v59 = vadd.f32 %v5574_v30, %v1797_v51 }
 0x874   : > { %v1806_v60 = vsel %vm1222_vm7, %v1802_v59, 0.0 }
 0x875   : > { %1807 = vadd.xlane.f32.xlu1 %v1806_v60 }
 0x877   : > { %v1963_v28 = vpop.f32.mrb[20].mxu1 }
 0x878   : > { %v1964_v29 = vadd.f32 %v4764_v27, %v1963_v28  ;;  %v5288_v31 = vpop.f32.mrb[21].mxu1 }
 0x879   : > { %v1966_v32 = vpop.f32.mrb[22].mxu1  ;;  %v1975_v31 = vld [vmem:[%s6556_s0 + $0x30] sm:$0xff] }
 0x87a   : > { %v6075_v36 = vpack.c.bf16 %v1964_v29, %v1964_v29  ;;  %v5289_v37 = vpop.f32.mrb[23].mxu1 }
 0x87c   : > { %5344 = vmatprep.subr.msk.bf16.mxu1 %vm1222_vm7, %v6075_v36 }
 0x902   : > { %v1808_v61 = vpop.xlane.xlu1 %1807 }
 0x903   : > { %v1810_v62 = vmul.f32 0.03125, %v1808_v61 }
 0x905   : > { %v1811_v63 = vsub.f32 %v1802_v59, %v1810_v62 }
 0x907   : > { %v1812_v0 = vmul.f32 %v1811_v63, %v1811_v63 }
 0x909   : > { %v1813_v1 = vsel %vm1222_vm7, %v1812_v0, 0.0 }
 0x90a   : > { %1814 = vadd.xlane.f32.xlu1 %v1813_v1  ;;  %v1971_v1 = vld [vmem:[%s6556_s0 + $0x10] sm:$0xff] }
 0x997   : > { %v1815_v7 = vpop.xlane.xlu1 %1814 }
 0x998   : > { %v1816_v8 = vmul.f32 0.03125, %v1815_v7  ;;  %v1969_v7 = vld [vmem:[%s6556_s0] sm:$0xff] }
 0x99a   : > { %v1817_v9 = vadd.f32 1e-05, %v1816_v8 }
 0x99c   : > { %5536 = vrsqrt.f32 %v1817_v9 }
 0x9a6   : > { %v5537_v10 = vpop.eup %5536 }
 0x9a7   : > { %v1819_v6 = vmul.f32 %v5537_v10, %v1811_v63 }
 0x9a9   : > { %v1826_v13 = vmul.f32 %v4758_v11, %v1819_v6 }
 0x9ab   : > { %v6046_v14 = vadd.f32 %v4759_v12, %v1826_v13  ;;  %v1972_v12 = vld [vmem:[%s6556_s0 + $0x18] sm:$0xff] }
 0x9ad   : > { %v1836_v15 = vpack.c.bf16 %v6046_v14, %v6046_v14 }
 0x9af   : > { %5279 = vmatmul.mubr.msk.bf16.vlgmr.msra.gmra.mrb[16].mxu0 %vm1222_vm7, %v1836_v15 }
 0x9b0   : > { %5292 = vmatprep.mubr.msk.bf16.mxu0 %vm1312_vm8, %v5851_v24 }
 0xa82   : > { %v1897_v19 = vpop.f32.mrb[16].mxu0 }
 0xa83   : > { %v1898_v21 = vadd.f32 %v4760_v18, %v1897_v19  ;;  %v5280_v22 = vpop.f32.mrb[17].mxu0  ;;  %v1973_v19 = vld [vmem:[%s6556_s0 + $0x20] sm:$0xff] }
 0xa84   : > { %v1900_v23 = vpop.f32.mrb[18].mxu0 }
 0xa85   : > { %v1978_v25 = vpack.c.bf16 %v1898_v21, %v1898_v21  ;;  %v5281_v26 = vpop.f32.mrb[19].mxu0  ;;  %v1970_v23 = vld [vmem:[%s6556_s0 + $0x8] sm:$0xff] }
 0xa87   : > { %v1980_v24 = vsel %vm1325_vm9, %v1978_v25, 0  ;;  %5343 = vmatprep.subr.msk.bf16.mxu0 %vm1325_vm9, %v1978_v25 }
 0xa88   : > { %5291 = vmatpush3.bf16.msra.mxu0 %v1980_v24 }
 0xa8b   : > { %5293 = vmatmul.mubr.msk.bf16.vlgmr.msra.gmra.mrb[20].mxu0 %vm1312_vm8, %v5871_v33  ;;  %v2072_v33 = vsel %vm1222_vm7, %v6075_v36, 0 }
 0xa8c   : > { %5296 = vmatprep.mubr.msk.bf16.mxu0 %vm1312_vm8, %v5876_v34  ;;  %5301 = vmatpush3.bf16.xpose.msra.mxu1 %v2072_v33 }
 0xa8d   : > { %5320 = vmatprep.subr.bf16.mxu1 %v5585_v20 }
 0xa93   : > { %5297 = vmatmul.mubr.msk.bf16.gmra.mrb[24].mxu0 %vm1312_vm8, %v5885_v35 }
 0xb5e   : > { %v5294_v34 = vpop.f32.mrb[20].mxu0 }
 0xb5f   : > { %v2016_v35 = vpop.f32.mrb[21].mxu0  ;;  %v2049_v44 = vmul.f32 %v5294_v34, %v5895_v38  ;;  %v1974_v34 = vld [vmem:[%s6556_s0 + $0x28] sm:$0xff] }
 0xb60   : > { %v5295_v42 = vpop.f32.mrb[22].mxu0  ;;  %v2047_v47 = vmul.f32 %v2016_v35, %v5905_v41 }
 0xb61   : > { %v2050_v45 = vmul.f32 %v5295_v42, %v5900_v40  ;;  %v2019_v46 = vpop.f32.mrb[23].mxu0 }
 0xb62   : > { %v2048_v48 = vmul.f32 %v2019_v46, %v5910_v43 }
 0xb63   : > { %v2056_v49 = vpack.c.bf16 %v2050_v45, %v2049_v44  ;;  %v1976_v45 = vld [vmem:[%s6556_s0 + $0x38] sm:$0xff] }
 0xb64   : > { %v2055_v50 = vpack.c.bf16 %v2048_v48, %v2047_v47 }
 0xb66   : > { %v5298_v51 = vpop.f32.mrb[24].mxu0  ;;  %5302 = vmatprep.mubr.msk.bf16.mxu1 %vm1222_vm7, %v2055_v50 }
 0xb67   : > { %v2053_v54 = vmul.f32 %v5298_v51, %v5919_v52  ;;  %v2032_v56 = vpop.f32.mrb[25].mxu0  ;;  %5303 = vmatmul.mubr.msk.bf16.vlgmr.msra.gmra.mrb[24].mxu1 %vm1222_vm7, %v2056_v49 }
 0xb68   : > { %v2051_v57 = vmul.f32 %v2032_v56, %v5924_v53  ;;  %v5299_v30 = vpop.f32.mrb[26].mxu0 }
 0xb69   : > { %v2054_v59 = vmul.f32 %v5299_v30, %v5930_v55  ;;  %v2035_v60 = vpop.f32.mrb[27].mxu0 }
 0xb6a   : > { %v2052_v61 = vmul.f32 %v2035_v60, %v5937_v58 }
 0xb6b   : > { %v2058_v62 = vpack.c.bf16 %v2054_v59, %v2053_v54 }
 0xb6c   : > { %v2057_v63 = vpack.c.bf16 %v2052_v61, %v2051_v57 }
 0xb6e   : > { %5306 = vmatprep.mubr.msk.bf16.mxu1 %vm1222_vm7, %v2057_v63 }
 0xb6f   : > { %5307 = vmatmul.mubr.msk.bf16.gmra.mrb[28].mxu1 %vm1222_vm7, %v2058_v62 }
 0xb70   : > { %5328 = vmatprep.mubr.msk.bf16.mxu1 %vm5586_vm6, %v5585_v20 }
 0xc3a   : > { %v5304_v0 = vpop.f32.mrb[24].mxu1 }
 0xc3b   : > { %v2141_v2 = vmul.f32 0.5, %v5304_v0  ;;  %v2108_v3 = vpop.f32.mrb[25].mxu1 }
 0xc3c   : > { %v2139_v4 = vmul.f32 0.5, %v2108_v3  ;;  %v5305_v5 = vpop.f32.mrb[26].mxu1 }
 0xc3d   : > { %v2111_v8 = vpop.f32.mrb[27].mxu1  ;;  %v2149_v9 = vadd.f32 %v2141_v2, %v1971_v1  ;;  %v2142_v10 = vmul.f32 0.5, %v5305_v5 }
 0xc3e   : > { %v2147_v6 = vadd.f32 %v2139_v4, %v1969_v7  ;;  %v2140_v15 = vmul.f32 0.5, %v2111_v8 }
 0xc3f   : > { %v2161_v11 = vsel %vm1312_vm8, %v2149_v9, -inf  ;;  %v2150_v18 = vadd.f32 %v2142_v10, %v1972_v12 }
 0xc40   : > { %2162 = vmax.xlane.f32.xlu1 %v2161_v11  ;;  %v2155_v17 = vsel %vm1312_vm8, %v2147_v6, -inf  ;;  %v2148_v28 = vadd.f32 %v2140_v15, %v1970_v23 }
 0xc41   : > { %v2164_v27 = vsel %vm1312_vm8, %v2150_v18, -inf }
 0xc42   : > { %v5308_v13 = vpop.f32.mrb[28].mxu1  ;;  %v2158_v37 = vsel %vm1312_vm8, %v2148_v28, -inf }
 0xc43   : > { %v2124_v16 = vpop.f32.mrb[29].mxu1  ;;  %v2145_v24 = vmul.f32 0.5, %v5308_v13 }
 0xc44   : > { %v2143_v21 = vmul.f32 0.5, %v2124_v16  ;;  %2156 = vmax.xlane.f32.xlu1 %v2155_v17  ;;  %v5309_v22 = vpop.f32.mrb[30].mxu1 }
 0xc45   : > { %v2127_v25 = vpop.f32.mrb[31].mxu1  ;;  %v2153_v33 = vadd.f32 %v2145_v24, %v1975_v31  ;;  %v2146_v35 = vmul.f32 0.5, %v5309_v22 }
 0xc46   : > { %v2151_v26 = vadd.f32 %v2143_v21, %v1973_v19  ;;  %v2144_v32 = vmul.f32 0.5, %v2127_v25 }
 0xc47   : > { %v2173_v42 = vsel %vm1312_vm8, %v2153_v33, -inf  ;;  %v2154_v47 = vadd.f32 %v2146_v35, %v1976_v45 }
 0xc48   : > { %2165 = vmax.xlane.f32.xlu1 %v2164_v27  ;;  %v2167_v29 = vsel %vm1312_vm8, %v2151_v26, -inf  ;;  %v2152_v44 = vadd.f32 %v2144_v32, %v1974_v34 }
 0xc49   : > { %2168 = vmax.xlane.f32.xlu0 %v2167_v29  ;;  %v2176_v48 = vsel %vm1312_vm8, %v2154_v47, -inf }
 0xc4a   : > { %v2170_v46 = vsel %vm1312_vm8, %v2152_v44, -inf }
 0xc4c   : > { %2159 = vmax.xlane.f32.xlu1 %v2158_v37 }
 0xc50   : > { %2174 = vmax.xlane.f32.xlu1 %v2173_v42 }
 0xc54   : > { %2171 = vmax.xlane.f32.xlu1 %v2170_v46 }
 0xc58   : > { %2177 = vmax.xlane.f32.xlu1 %v2176_v48 }
 0xccd   : > { %v2163_v49 = vpop.xlane.xlu1 %2162 }
 0xcce   : > { %v2181_v50 = vsub.f32 %v2149_v9, %v2163_v49 }
 0xcd0   : > { %v2191_v51 = vmul.f32 1.442695, %v2181_v50 }
 0xcd1   : > { %v2157_v54 = vpop.xlane.xlu1 %2156 }
 0xcd2   : > { %5538 = vpow2.f32 %v2191_v51  ;;  %v2179_v56 = vsub.f32 %v2147_v6, %v2157_v54 }
 0xcd4   : > { %v2187_v57 = vmul.f32 1.442695, %v2179_v56 }
 0xcd5   : > { %v2166_v30 = vpop.xlane.xlu1 %2165 }
 0xcd6   : > { %5540 = vpow2.f32 %v2187_v57  ;;  %v2182_v59 = vsub.f32 %v2150_v18, %v2166_v30  ;;  %v2169_v60 = vpop.xlane.xlu0 %2168 }
 0xcd7   : > { %v2183_v1 = vsub.f32 %v2151_v26, %v2169_v60 }
 0xcd8   : > { %v2193_v0 = vmul.f32 1.442695, %v2182_v59 }
 0xcd9   : > { %v2160_v61 = vpop.xlane.xlu1 %2159  ;;  %v2195_v8 = vmul.f32 1.442695, %v2183_v1 }
 0xcda   : > { %v2180_v62 = vsub.f32 %v2148_v28, %v2160_v61 }
 0xcdc   : > { %v6128_v63 = vpop.eup %5538  ;;  %v2189_v2 = vmul.f32 1.442695, %v2180_v62 }
 0xcdd   : > { %v2175_v3 = vpop.xlane.xlu1 %2174  ;;  %v2209_v4 = vsel %vm1312_vm8, %v6128_v63, 0.0 }
 0xcde   : > { %5542 = vpow2.f32 %v2189_v2  ;;  %v2185_v5 = vsub.f32 %v2153_v33, %v2175_v3  ;;  %2210 = vadd.xlane.f32.xlu1 %v2209_v4 }
 0xcdf   : > { %5544 = vpow2.f32 %v2193_v0 }
 0xce0   : > { %v5541_v7 = vpop.eup %5540  ;;  %v2199_v9 = vmul.f32 1.442695, %v2185_v5 }
 0xce1   : > { %v2172_v10 = vpop.xlane.xlu1 %2171  ;;  %v2203_v11 = vsel %vm1312_vm8, %v5541_v7, 0.0 }
 0xce2   : > { %5546 = vpow2.f32 %v2199_v9  ;;  %v2184_v6 = vsub.f32 %v2152_v44, %v2172_v10  ;;  %2204 = vadd.xlane.f32.xlu1 %v2203_v11 }
 0xce3   : > { %5548 = vpow2.f32 %v2195_v8 }
 0xce4   : > { %v2197_v12 = vmul.f32 1.442695, %v2184_v6 }
 0xce5   : > { %v2178_v13 = vpop.xlane.xlu1 %2177 }
 0xce6   : > { %5550 = vpow2.f32 %v2197_v12  ;;  %v2186_v15 = vsub.f32 %v2154_v47, %v2178_v13 }
 0xce8   : > { %v5543_v16 = vpop.eup %5542  ;;  %v2201_v17 = vmul.f32 1.442695, %v2186_v15 }
 0xce9   : > { %v2206_v18 = vsel %vm1312_vm8, %v5543_v16, 0.0  ;;  %v5545_v19 = vpop.eup %5544 }
 0xcea   : > { %5552 = vpow2.f32 %v2201_v17  ;;  %2207 = vadd.xlane.f32.xlu1 %v2206_v18  ;;  %v2212_v23 = vsel %vm1312_vm8, %v5545_v19, 0.0 }
 0xcec   : > { %v5547_v21 = vpop.eup %5546 }
 0xced   : > { %v2221_v22 = vsel %vm1312_vm8, %v5547_v21, 0.0  ;;  %v5549_v25 = vpop.eup %5548 }
 0xcee   : > { %2222 = vadd.xlane.f32.xlu0 %v2221_v22  ;;  %2213 = vadd.xlane.f32.xlu1 %v2212_v23  ;;  %v2215_v24 = vsel %vm1312_vm8, %v5549_v25, 0.0  ;;  %v5374_v23 = vld [vmem:[%s5786_s24] sm:$0xff]  }
 0xcf0   : > { %v5551_v26 = vpop.eup %5550 }
 0xcf1   : > { %v2218_v27 = vsel %vm1312_vm8, %v5551_v26, 0.0 }
 0xcf2   : > { %2216 = vadd.xlane.f32.xlu0 %v2215_v24  ;;  %2219 = vadd.xlane.f32.xlu1 %v2218_v27 }
 0xcf4   : > { %v5553_v28 = vpop.eup %5552 }
 0xcf5   : > { %v2224_v29 = vsel %vm1312_vm8, %v5553_v28, 0.0 }
 0xcf6   : > { %2225 = vadd.xlane.f32.xlu1 %v2224_v29 }
 0xd08   : > { %2248 = vrot.lane.b32.xlu0 %v6075_v36, %s5587_s11 }
 0xd6b   : > { %v2211_v31 = vpop.xlane.xlu1 %2210 }
 0xd6f   : > { %v2205_v32 = vpop.xlane.xlu1 %2204 }
 0xd70   : > { %5554 = vrcp.f32 %v2205_v32 }
 0xd77   : > { %v2208_v37 = vpop.xlane.xlu1 %2207 }
 0xd78   : > { %5556 = vrcp.f32 %v2208_v37 }
 0xd79   : > { %5558 = vrcp.f32 %v2211_v31 }
 0xd7a   : > { %v5555_v44 = vpop.eup %5554 }
 0xd7b   : > { %v2223_v33 = vpop.xlane.xlu0 %2222  ;;  %v2214_v34 = vpop.xlane.xlu1 %2213  ;;  %v2235_v48 = vmul.f32 %v5555_v44, %v5541_v7  ;;  %v2481_v44 = vld [vmem:[%s5806_s9] sm:$0xff] }
 0xd7c   : > { %5560 = vrcp.f32 %v2214_v34 }
 0xd7f   : > { %v2217_v35 = vpop.xlane.xlu0 %2216  ;;  %v2220_v42 = vpop.xlane.xlu1 %2219 }
 0xd80   : > { %5562 = vrcp.f32 %v2217_v35 }
 0xd81   : > { %5564 = vrcp.f32 %v2220_v42 }
 0xd82   : > { %v5557_v45 = vpop.eup %5556  ;;  %5566 = vrcp.f32 %v2223_v33 }
 0xd83   : > { %v2249_v46 = vpop.permute.xlu0 %2248  ;;  %v2226_v47 = vpop.xlane.xlu1 %2225  ;;  %v2236_v36 = vmul.f32 %v5557_v45, %v5543_v16  ;;  %v2489_v45 = vld [vmem:[%s5806_s9 + $0x40] sm:$0xff] }
 0xd84   : > { %v2263_v49 = vsel %vm1325_vm9, %v2249_v46, 0  ;;  %5568 = vrcp.f32 %v2226_v47  ;;  %5345 = vmatprep.subr.msk.bf16.mxu0 %vm1325_vm9, %v2249_v46  ;;  %v5559_v50 = vpop.eup %5558  ;;  %v2482_v46 = vld [vmem:[%s5806_s9 + $0x8] sm:$0xff]  ;;  %v4789_v47 = vcombine.high %v2481_v44, %v2489_v45 }
 0xd85   : > { %5311 = vmatpush3.bf16.msra.mxu0 %v2263_v49  ;;  %v2243_v51 = vpack.c.bf16 %v2236_v36, %v2235_v48  ;;  %v2237_v56 = vmul.f32 %v5559_v50, %v6128_v63  ;;  %v4788_v48 = vcombine.low %v2481_v44, %v2489_v45  ;;  %v2497_v50 = vld [vmem:[%s5806_s9 + $0x80] sm:$0xff]  ;;  %v2503_v45 = vld [vmem:[%s5806_s9 + $0xb0] sm:$0xff] }
 0xd86   : > { %v5561_v54 = vpop.eup %5560  ;;  %2760 = vmatprep.subr.bf16.mxu0 %v4789_v47  ;;  %v2504_v47 = vld [vmem:[%s5806_s9 + $0xb8] sm:$0xff] }
 0xd87   : > { %5312 = vmatprep.mubr.msk.bf16.mxu0 %vm1312_vm8, %v2243_v51  ;;  %v2238_v57 = vmul.f32 %v5561_v54, %v5545_v19  ;;  %v2505_v51 = vld [vmem:[%s5806_s9 + $0xc0] sm:$0xff]  ;;  %v2498_v54 = vld [vmem:[%s5806_s9 + $0x88] sm:$0xff] }
 0xd89   : > { %v2244_v59 = vpack.c.bf16 %v2238_v57, %v2237_v56  ;;  %v4805_v56 = vcombine.high %v2497_v50, %v2505_v51  ;;  %v2506_v57 = vld [vmem:[%s5806_s9 + $0xc8] sm:$0xff] }
 0xd8a   : > { %v5563_v30 = vpop.eup %5562 }
 0xd8b   : > { %v5565_v60 = vpop.eup %5564  ;;  %v2239_v61 = vmul.f32 %v5563_v30, %v5549_v25  ;;  %5313 = vmatmul.mubr.msk.bf16.vlgmr.msra.gmra.mrb[28].mxu0 %vm1312_vm8, %v2244_v59  ;;  %v4804_v30 = vcombine.low %v2497_v50, %v2505_v51  ;;  %v4806_v59 = vcombine.low %v2498_v54, %v2506_v57 }
 0xd8c   : > { %v5567_v62 = vpop.eup %5566  ;;  %v2240_v0 = vmul.f32 %v5565_v60, %v5551_v26  ;;  %2761 = vmatpush1.bf16.msra.mxu0 %v4788_v48  ;;  %v4807_v60 = vcombine.high %v2498_v54, %v2506_v57  ;;  %v5377_v57 = vld [vmem:[%s5812_s29 + $0xc0] sm:$0xff]  }
 0xd8d   : > { %v2241_v3 = vmul.f32 %v5567_v62, %v5547_v21  ;;  %2762 = vmatprep.subr.bf16.mxu0 %v4805_v56  ;;  %v2491_v62 = vld [vmem:[%s5806_s9 + $0x50] sm:$0xff]  ;;  %v5376_v56 = vld [vmem:[%s5812_s29 + $0x40] sm:$0xff]  }
 0xd8e   : > { %v5569_v1 = vpop.eup %5568  ;;  %v2245_v2 = vpack.c.bf16 %v2240_v0, %v2239_v61  ;;  %v2483_v61 = vld [vmem:[%s5806_s9 + $0x10] sm:$0xff]  ;;  %v2484_v0 = vld [vmem:[%s5806_s9 + $0x18] sm:$0xff] }
 0xd8f   : > { %v2242_v4 = vmul.f32 %v5569_v1, %v5553_v28  ;;  %v4793_v1 = vcombine.high %v2483_v61, %v2491_v62 }
 0xd90   : > { %5316 = vmatprep.mubr.msk.bf16.mxu0 %vm1312_vm8, %v2245_v2  ;;  %2763 = vmatpush1.bf16.msra.mxu0 %v4804_v30  ;;  %v2492_v2 = vld [vmem:[%s5806_s9 + $0x58] sm:$0xff]  ;;  %v5378_v30 = vld [vmem:[%s5812_s29] sm:$0xff]  }
 0xd91   : > { %v2246_v5 = vpack.c.bf16 %v2242_v4, %v2241_v3  ;;  %v5589_v3 = vmov 0   ;;  %v4792_v4 = vcombine.low %v2483_v61, %v2491_v62  ;;  %2842 = vmatprep.subr.bf16.mxu0 %v4793_v1  ;;  %v5381_v61 = vld [vmem:[%s5812_s29 + $0xc8] sm:$0xff]   ;;  %v5384_v1 = vld [vmem:[%s5812_s29 + $0x50] sm:$0xff]  }
 0xd92   : > { %v5382_v62 = vld [vmem:[%s5812_s29 + $0x8] sm:$0xff]  }
 0xd93   : > { %5317 = vmatmul.mubr.msk.bf16.gmra.mrb[32].mxu0 %vm1312_vm8, %v2246_v5  ;;  %v4794_v5 = vcombine.low %v2484_v0, %v2492_v2 }
 0xd94   : > { %2792 = vmatprep.mubr.bf16.mxu0 %v5589_v3 }
 0xe5e   : > { %v5314_v7 = vpop.f32.mrb[28].mxu0 }
 0xe5f   : > { %v2299_v63 = vpop.f32.mrb[29].mxu0  ;;  %v2332_v9 = vmul.f32 %v5314_v7, %v5895_v38  ;;  %v4795_v7 = vcombine.high %v2484_v0, %v2492_v2  ;;  %v5383_v0 = vld [vmem:[%s5812_s29 + $0x88] sm:$0xff]   ;;  %v5385_v2 = vld [vmem:[%s5812_s29 + $0xd0] sm:$0xff]  }
 0xe60   : > { %v5315_v8 = vpop.f32.mrb[30].mxu0  ;;  %v2330_v6 = vmul.f32 %v2299_v63, %v5905_v41 }
 0xe61   : > { %v2333_v10 = vmul.f32 %v5315_v8, %v5900_v40  ;;  %v2302_v11 = vpop.f32.mrb[31].mxu0 }
 0xe62   : > { %v2331_v12 = vmul.f32 %v2302_v11, %v5910_v43  ;;  %v4786_v11 = vld [vmem:[%s5795_s2] ss:$0 sm:$0xff] }
 0xe63   : > { %v2339_v13 = vpack.c.bf16 %v2333_v10, %v2332_v9 }
 0xe64   : > { %v2338_v15 = vpack.c.bf16 %v2331_v12, %v2330_v6  ;;  %v4787_v12 = vld [vmem:[%s5795_s2 + $0x1] ss:$0 sm:$0xff] }
 0xe66   : > { %v5318_v16 = vpop.f32.mrb[32].mxu0  ;;  %5321 = vmatpush3.bf16.msra.mxu1 %v2338_v15  ;;  %v2499_v15 = vld [vmem:[%s5806_s9 + $0x90] sm:$0xff] }
 0xe67   : > { %v2315_v17 = vpop.f32.mrb[33].mxu0  ;;  %5322 = vmatprep.subr.bf16.mxu1 %v5585_v20  ;;  %v2336_v19 = vmul.f32 %v5318_v16, %v5919_v52  ;;  %v5375_v52 = vld [vmem:[%s5786_s24 + $0x8] sm:$0xff]   ;;  %v2507_v16 = vld [vmem:[%s5806_s9 + $0xd0] sm:$0xff] }
 0xe68   : > { %v5319_v18 = vpop.f32.mrb[34].mxu0  ;;  %v2334_v40 = vmul.f32 %v2315_v17, %v5924_v53  ;;  %v2500_v17 = vld [vmem:[%s5806_s9 + $0x98] sm:$0xff] }
 0xe69   : > { %v2337_v38 = vmul.f32 %v5319_v18, %v5930_v55  ;;  %v2318_v21 = vpop.f32.mrb[35].mxu0  ;;  %v2508_v18 = vld [vmem:[%s5806_s9 + $0xd8] sm:$0xff] }
 0xe6a   : > { %v2335_v41 = vmul.f32 %v2318_v21, %v5937_v58  ;;  %5323 = vmatpush3.bf16.msra.mxu1 %v2339_v13  ;;  %v4809_v21 = vcombine.high %v2499_v15, %v2507_v16 }
 0xe6b   : > { %v2341_v43 = vpack.c.bf16 %v2337_v38, %v2336_v19  ;;  %5324 = vmatprep.subr.bf16.mxu1 %v5585_v20 }
 0xe6c   : > { %v2340_v22 = vpack.c.bf16 %v2335_v41, %v2334_v40  ;;  %v4811_v40 = vcombine.high %v2500_v17, %v2508_v18  ;;  %v2485_v41 = vld [vmem:[%s5806_s9 + $0x20] sm:$0xff] }
 0xe6e   : > { %5325 = vmatpush3.bf16.msra.mxu1 %v2340_v22  ;;  %v2486_v22 = vld [vmem:[%s5806_s9 + $0x28] sm:$0xff] }
 0xe6f   : > { %5326 = vmatprep.subr.bf16.mxu1 %v5585_v20 }
 0xe72   : > { %5327 = vmatpush3.bf16.msra.mxu1 %v2341_v43  ;;  %v2493_v43 = vld [vmem:[%s5806_s9 + $0x60] sm:$0xff] }
 0xe73   : > { %5332 = vmatprep.subr.bf16.mxu1 %v5585_v20 }
 0xe75   : > { %5329 = vmatmul.mubr.msk.bf16.vlgmr.msra.gmra.mrb[32].mxu1 %vm1691_vm10, %v6016_v39  ;;  %v4781_v39 = vld [vmem:[%s6557_s5] ss:$0 sm:$0xff] }
 0xe76   : > { %5333 = vmatpush3.bf16.msra.mxu1 %v5374_v23  ;;  %5336 = vmatprep.mubr.msk.bf16.mxu1 %vm5586_vm6, %v5585_v20  ;;  %v2494_v23 = vld [vmem:[%s5806_s9 + $0x68] sm:$0xff] }
 0xe77   : > { %5334 = vmatprep.subr.bf16.mxu1 %v5585_v20 }
 0xe7a   : > { %5335 = vmatpush3.bf16.msra.mxu1 %v5375_v52  ;;  %v4808_v52 = vcombine.low %v2499_v15, %v2507_v16  ;;  %v5398_v15 = vld [vmem:[%s5812_s29 + $0x28] sm:$0xff]  }
 0xe7b   : > { %v5399_v16 = vld [vmem:[%s5812_s29 + $0xa8] sm:$0xff]  }
 0xf48   : > { %v2376_v53 = vpop.f32.mrb[32].mxu1 }
 0xf49   : > { %v2382_v55 = vpack.c.bf16 %v2376_v53, %v2376_v53  ;;  %v5330_v58 = vpop.f32.mrb[33].mxu1  ;;  %v4810_v53 = vcombine.low %v2500_v17, %v2508_v18  ;;  %v5400_v17 = vld [vmem:[%s5812_s29 + $0x70] sm:$0xff]  }
 0xf4a   : > { %v2379_v25 = vpop.f32.mrb[34].mxu1  ;;  %v4799_v58 = vcombine.high %v2486_v22, %v2494_v23  ;;  %v5401_v18 = vld [vmem:[%s5812_s29 + $0xf0] sm:$0xff]  }
 0xf4b   : > { %5337 = vmatmul.mubr.msk.bf16.vlgmr.msra.gmra.mrb[36].mxu1 %vm1222_vm7, %v2382_v55  ;;  %v5331_v26 = vpop.f32.mrb[35].mxu1  ;;  %v4797_v55 = vcombine.high %v2485_v41, %v2493_v43  ;;  %v2501_v25 = vld [vmem:[%s5806_s9 + $0xa0] sm:$0xff] }
 0xf4c   : > { %2833 = vmatprep.mubr.bf16.mxu1 %v5589_v3  ;;  %v2509_v26 = vld [vmem:[%s5806_s9 + $0xe0] sm:$0xff] }
0x101e   : > { %v2443_v24 = vpop.f32.mrb[36].mxu1 }
0x101f   : > { %v2444_v27 = vadd.f32 %v4781_v39, %v2443_v24  ;;  %v5338_v20 = vpop.f32.mrb[37].mxu1  ;;  %v2502_v39 = vld [vmem:[%s5806_s9 + $0xa8] sm:$0xff] }
0x1020   : > { %v2446_v28 = vpop.f32.mrb[38].mxu1  ;;  %v2510_v24 = vld [vmem:[%s5806_s9 + $0xe8] sm:$0xff]  ;;  %v4798_v20 = vcombine.low %v2486_v22, %v2494_v23  ;;  %v5407_v22 = vld [vmem:[%s5812_s29 + $0xb8] sm:$0xff]   ;;  %v5408_v23 = vld [vmem:[%s5812_s29 + $0x140] sm:$0xff]  }
0x1021   : > { %v2449_v29 = vadd.f32 %v2444_v27, %v6046_v14  ;;  %v5339_v31 = vpop.f32.mrb[39].mxu1  ;;  %v2490_v14 = vld [vmem:[%s5806_s9 + $0x48] sm:$0xff]  ;;  %v4796_v27 = vcombine.low %v2485_v41, %v2493_v43  ;;  %v4813_v28 = vcombine.high %v2501_v25, %v2509_v26  ;;  %v5405_v41 = vld [vmem:[%s5812_s29 + $0xf8] sm:$0xff]  }
0x1022   : > { %v4790_v36 = vcombine.low %v2482_v46, %v2490_v14  ;;  %v4791_v49 = vcombine.high %v2482_v46, %v2490_v14  ;;  %v2487_v31 = vld [vmem:[%s5806_s9 + $0x30] sm:$0xff]  ;;  %v2512_v14 = vld [vmem:[%s5806_s9 + $0xf8] sm:$0xff] }
0x1023   : > { %v2453_v32 = vsel %vm1222_vm7, %v2449_v29, 0.0  ;;  %v2511_v46 = vld [vmem:[%s5806_s9 + $0xf0] sm:$0xff]  ;;  %v4819_v50 = vcombine.high %v2504_v47, %v2512_v14  ;;  %v4818_v54 = vcombine.low %v2504_v47, %v2512_v14  ;;  %v5406_v43 = vld [vmem:[%s5812_s29 + $0x38] sm:$0xff]  }
0x1024   : > { %2454 = vadd.xlane.f32.xlu1 %v2453_v32  ;;  %2801 = vmatprep.subr.bf16.mxu1 %v4791_v49  ;;  %v2495_v32 = vld [vmem:[%s5806_s9 + $0x70] sm:$0xff]  ;;  %v4817_v49 = vcombine.high %v2503_v45, %v2511_v46  ;;  %v4816_v51 = vcombine.low %v2503_v45, %v2511_v46 }
0x1025   : > { %2802 = vmatpush1.bf16.msra.mxu1 %v4790_v36  ;;  %v4800_v48 = vcombine.low %v2487_v31, %v2495_v32 }
0x1026   : > { %2803 = vmatprep.subr.bf16.mxu1 %v4807_v60  ;;  %v5380_v60 = vld [vmem:[%s5812_s29 + $0x48] sm:$0xff]  }
0x1029   : > { %2804 = vmatpush1.bf16.msra.mxu1 %v4806_v59  ;;  %v5379_v59 = vld [vmem:[%s5812_s29 + $0x80] sm:$0xff]  }
0x102a   : > { %2883 = vmatprep.subr.bf16.mxu1 %v4795_v7  ;;  %v5389_v7 = vld [vmem:[%s5812_s29 + $0xd8] sm:$0xff]  }
0x10b1   : > { %v2455_v37 = vpop.xlane.xlu1 %2454 }
0x10b2   : > { %v2456_v33 = vmul.f32 0.03125, %v2455_v37  ;;  %v2488_v37 = vld [vmem:[%s5806_s9 + $0x38] sm:$0xff] }
0x10b4   : > { %v2457_v34 = vsub.f32 %v2449_v29, %v2456_v33  ;;  %v4815_v29 = vcombine.high %v2502_v39, %v2510_v24  ;;  %v2496_v33 = vld [vmem:[%s5806_s9 + $0x78] sm:$0xff] }
0x10b5   : > { %v4803_v44 = vcombine.high %v2488_v37, %v2496_v33  ;;  %v4802_v36 = vcombine.low %v2488_v37, %v2496_v33 }
0x10b6   : > { %v2458_v35 = vmul.f32 %v2457_v34, %v2457_v34 }
0x10b8   : > { %v2459_v42 = vsel %vm1222_vm7, %v2458_v35, 0.0  ;;  %v4814_v35 = vcombine.low %v2502_v39, %v2510_v24 }
0x10b9   : > { %2460 = vadd.xlane.f32.xlu1 %v2459_v42  ;;  %v4801_v42 = vcombine.high %v2487_v31, %v2495_v32 }
0x1146   : > { %v2461_v63 = vpop.xlane.xlu1 %2460 }
0x1147   : > { %v2462_v8 = vmul.f32 0.03125, %v2461_v63  ;;  %v5390_v63 = vld [vmem:[%s5812_s29 + $0x18] sm:$0xff]  }
0x1149   : > { %v2463_v9 = vadd.f32 1e-05, %v2462_v8  ;;  %v5391_v8 = vld [vmem:[%s5812_s29 + $0x98] sm:$0xff]  }
0x114b   : > { %5570 = vrsqrt.f32 %v2463_v9  ;;  %v5392_v9 = vld [vmem:[%s5812_s29 + $0x60] sm:$0xff]  }
0x1155   : > { %v5571_v10 = vpop.eup %5570 }
0x1156   : > { %v2465_v6 = vmul.f32 %v5571_v10, %v2457_v34  ;;  %v4812_v34 = vcombine.low %v2501_v25, %v2509_v26  ;;  %v5393_v10 = vld [vmem:[%s5812_s29 + $0xe0] sm:$0xff]   ;;  %v6278_v25 = vld [vmem:[%s5801_s25 + $0x8] sm:$0xff] }
0x1158   : > { %v2472_v13 = vmul.f32 %v4786_v11, %v2465_v6  ;;  %v5394_v11 = vld [vmem:[%s5812_s29 + $0x20] sm:$0xff]  }
0x1159   : > { %v5395_v6 = vld [vmem:[%s5812_s29 + $0xa0] sm:$0xff]  }
0x115a   : > { %v6196_v19 = vadd.f32 %v4787_v12, %v2472_v13  ;;  %v5396_v12 = vld [vmem:[%s5812_s29 + $0x68] sm:$0xff]  }
0x115b   : > { %v5397_v13 = vld [vmem:[%s5812_s29 + $0xe8] sm:$0xff]  }
0x115c   : > { %v6200_v38 = vpack.c.bf16 %v6196_v19, %v6196_v19 }
0x115e   : > { %4820 = vmatmul.mubr.msk.bf16.vlgmr.msra.gmra.mrb[36].mxu0 %vm1222_vm7, %v6200_v38  ;;  %4821 = vmatmul.mubr.msk.bf16.vlgmr.msra.gmra.mrb[40].mxu1 %vm1222_vm7, %v6200_v38 }
0x115f   : > { %2843 = vmatpush1.bf16.msra.mxu0 %v4792_v4  ;;  %2884 = vmatpush1.bf16.msra.mxu1 %v4794_v5  ;;  %v5387_v4 = vld [vmem:[%s5812_s29 + $0x90] sm:$0xff]   ;;  %v5388_v5 = vld [vmem:[%s5812_s29 + $0x58] sm:$0xff]  }
0x1160   : > { %2844 = vmatprep.subr.bf16.mxu0 %v4809_v21  ;;  %2885 = vmatprep.subr.bf16.mxu1 %v4811_v40  ;;  %v5403_v21 = vld [vmem:[%s5812_s29 + $0xb0] sm:$0xff]   ;;  %v5404_v40 = vld [vmem:[%s5812_s29 + $0x78] sm:$0xff]  }
0x1161   : > { %2874 = vmatprep.mubr.bf16.mxu0 %v5589_v3  ;;  %2915 = vmatprep.mubr.bf16.mxu1 %v5589_v3 }
0x1163   : > { %2845 = vmatpush1.bf16.msra.mxu0 %v4808_v52  ;;  %2886 = vmatpush1.bf16.msra.mxu1 %v4810_v53  ;;  %v5409_v52 = vld [vmem:[%s5812_s29 + $0x1c0] sm:$0xff]   ;;  %v2517_v53 = vlaneseq }
0x1164   : > { %2924 = vmatprep.subr.bf16.mxu0 %v4797_v55  ;;  %2965 = vmatprep.subr.bf16.mxu1 %v4799_v58 }
0x1165   : > { %v6274_v55 = vshrl.u32 %v2517_v53, 7  ;;  %v5419_v53 = vld [vmem:[%s5812_s29 + $0x190] sm:$0xff]  }
0x1166   : > { %4822 = vmatmul.mubr.msk.bf16.vlgmr.msra.gmra.mrb[40].mxu0 %vm1222_vm7, %v6200_v38  ;;  %4823 = vmatmul.mubr.msk.bf16.vlgmr.msra.gmra.mrb[44].mxu1 %vm1222_vm7, %v6200_v38 }
0x1167   : > { %2925 = vmatpush1.bf16.msra.mxu0 %v4796_v27  ;;  %2966 = vmatpush1.bf16.msra.mxu1 %v4798_v20  ;;  %v2543_v58 = vsub.s32 6, %v6274_v55  ;;  %v2519_v39 = vsub.s32 0, %v6274_v55  ;;  %v2527_v24 = vsub.s32 2, %v6274_v55  ;;  %v6288_v27 = vld [vmem:[%s5801_s25] sm:$0xff]  ;;  %v2523_v20 = vsub.s32 1, %v6274_v55 }
0x1168   : > { %2926 = vmatprep.subr.bf16.mxu0 %v4813_v28  ;;  %2967 = vmatprep.subr.bf16.mxu1 %v4815_v29  ;;  %v2531_v28 = vsub.s32 3, %v6274_v55 }
0x1169   : > { %2956 = vmatprep.mubr.bf16.mxu0 %v5589_v3  ;;  %2997 = vmatprep.mubr.bf16.mxu1 %v5589_v3  ;;  %v6283_v26 = vrot.slane %v6278_v25, %v2543_v58  ;;  %v2520_v29 = vrot.slane %v6288_v27, %v2519_v39  ;;  %v2528_v31 = vrot.slane %v6288_v27, %v2527_v24 }
0x116a   : > { %v2524_v32 = vrot.slane %v6288_v27, %v2523_v20  ;;  %v2532_v37 = vrot.slane %v6288_v27, %v2531_v28 }
0x116b   : > { %2927 = vmatpush1.bf16.msra.mxu0 %v4812_v34  ;;  %2968 = vmatpush1.bf16.msra.mxu1 %v4814_v35 }
0x116c   : > { %3006 = vmatprep.subr.bf16.mxu0 %v4801_v42  ;;  %3047 = vmatprep.subr.bf16.mxu1 %v4803_v44 }
0x116e   : > { %4824 = vmatmul.mubr.msk.bf16.vlgmr.msra.gmra.mrb[44].mxu0 %vm1222_vm7, %v6200_v38  ;;  %4825 = vmatmul.mubr.msk.bf16.vlgmr.msra.gmra.mrb[48].mxu1 %vm1222_vm7, %v6200_v38 }
0x116f   : > { %3007 = vmatpush1.bf16.msra.mxu0 %v4800_v48  ;;  %3048 = vmatpush1.bf16.msra.mxu1 %v4802_v36  ;;  %v2539_v36 = vsub.s32 5, %v6274_v55 }
0x1170   : > { %3008 = vmatprep.subr.bf16.mxu0 %v4817_v49  ;;  %3049 = vmatprep.subr.bf16.mxu1 %v4819_v50  ;;  %v2547_v49 = vsub.s32 7, %v6274_v55 }
0x1171   : > { %3038 = vmatprep.mubr.bf16.mxu0 %v5589_v3  ;;  %3079 = vmatprep.mubr.bf16.mxu1 %v5589_v3  ;;  %v5386_v3 = vld [vmem:[%s5812_s29 + $0x10] sm:$0xff]  }
0x1173   : > { %3009 = vmatpush1.bf16.msra.mxu0 %v4816_v51  ;;  %3050 = vmatpush1.bf16.msra.mxu1 %v4818_v54 }
0x1174   : > { %5028 = vmatprep.subr.bf16.mxu0 %v5376_v56  ;;  %5050 = vmatprep.subr.bf16.mxu1 %v5377_v57 }
0x1176   : > { %4826 = vmatmul.mubr.msk.bf16.vlgmr.msra.gmra.mrb[48].mxu0 %vm1222_vm7, %v6200_v38  ;;  %4827 = vmatmul.mubr.msk.bf16.vlgmr.msra.gmra.mrb[52].mxu1 %vm1222_vm7, %v6200_v38  ;;  %v5402_v38 = vld [vmem:[%s5812_s29 + $0x30] sm:$0xff]  }
0x1177   : > { %5029 = vmatpush3.bf16.msra.mxu0 %v5378_v30  ;;  %5051 = vmatpush3.bf16.msra.mxu1 %v5379_v59 }
0x1178   : > { %5030 = vmatprep.subr.bf16.mxu0 %v5380_v60  ;;  %5052 = vmatprep.subr.bf16.mxu1 %v5381_v61  ;;  %v2540_v61 = vrot.slane %v6288_v27, %v2539_v36 }
0x117b   : > { %5031 = vmatpush3.bf16.msra.mxu0 %v5382_v62  ;;  %5053 = vmatpush3.bf16.msra.mxu1 %v5383_v0  ;;  %v2548_v62 = vrot.slane %v6288_v27, %v2547_v49  ;;  %v5410_v0 = vld [vmem:[%s5812_s29 + $0x100] sm:$0xff]  }
0x117c   : > { %5032 = vmatprep.subr.bf16.mxu0 %v5384_v1  ;;  %5054 = vmatprep.subr.bf16.mxu1 %v5385_v2  ;;  %v5411_v1 = vld [vmem:[%s5812_s29 + $0x180] sm:$0xff]  }
0x117f   : > { %5033 = vmatpush3.bf16.msra.mxu0 %v5386_v3  ;;  %5055 = vmatpush3.bf16.msra.mxu1 %v5387_v4  ;;  %v5412_v4 = vld [vmem:[%s5812_s29 + $0x148] sm:$0xff]  }
0x1180   : > { %5034 = vmatprep.subr.bf16.mxu0 %v5388_v5  ;;  %5056 = vmatprep.subr.bf16.mxu1 %v5389_v7  ;;  %v5413_v5 = vld [vmem:[%s5812_s29 + $0x1c8] sm:$0xff]  }
0x1183   : > { %5035 = vmatpush3.bf16.msra.mxu0 %v5390_v63  ;;  %5057 = vmatpush3.bf16.msra.mxu1 %v5391_v8 }
0x1184   : > { %5036 = vmatprep.subr.bf16.mxu0 %v5392_v9  ;;  %5058 = vmatprep.subr.bf16.mxu1 %v5393_v10 }
0x1187   : > { %5037 = vmatpush3.bf16.msra.mxu0 %v5394_v11  ;;  %5059 = vmatpush3.bf16.msra.mxu1 %v5395_v6 }
0x1188   : > { %5038 = vmatprep.subr.bf16.mxu0 %v5396_v12  ;;  %5060 = vmatprep.subr.bf16.mxu1 %v5397_v13  ;;  %v5414_v13 = vld [vmem:[%s5812_s29 + $0x108] sm:$0xff]  }
0x118b   : > { %5039 = vmatpush3.bf16.msra.mxu0 %v5398_v15  ;;  %5061 = vmatpush3.bf16.msra.mxu1 %v5399_v16  ;;  %v5415_v15 = vld [vmem:[%s5812_s29 + $0x188] sm:$0xff]  }
0x118c   : > { %5040 = vmatprep.subr.bf16.mxu0 %v5400_v17  ;;  %5062 = vmatprep.subr.bf16.mxu1 %v5401_v18  ;;  %v5416_v18 = vld [vmem:[%s5812_s29 + $0x150] sm:$0xff]  }
0x118f   : > { %5041 = vmatpush3.bf16.msra.mxu0 %v5402_v38  ;;  %5063 = vmatpush3.bf16.msra.mxu1 %v5403_v21  ;;  %v5417_v38 = vld [vmem:[%s5812_s29 + $0x1d0] sm:$0xff]  }
0x1190   : > { %5042 = vmatprep.subr.bf16.mxu0 %v5404_v40  ;;  %5064 = vmatprep.subr.bf16.mxu1 %v5405_v41  ;;  %v2552_v41 = vrot.slane %v6278_v25, %v2519_v39 }
0x1193   : > { %5043 = vmatpush3.bf16.msra.mxu0 %v5406_v43  ;;  %5065 = vmatpush3.bf16.msra.mxu1 %v5407_v22  ;;  %v2560_v43 = vrot.slane %v6278_v25, %v2527_v24 }
0x1194   : > { %5072 = vmatprep.subr.bf16.mxu0 %v5408_v23  ;;  %5094 = vmatprep.subr.bf16.mxu1 %v5409_v52  ;;  %v5418_v52 = vld [vmem:[%s5812_s29 + $0x110] sm:$0xff]  }
0x1231   : > { %v2794_v33 = vpop.f32.mrb[36].mxu0  ;;  %v2835_v34 = vpop.f32.mrb[40].mxu1 }
0x1232   : > { %v2795_v35 = vadd.f32 %v2794_v33, %v2520_v29  ;;  %v2836_v42 = vadd.f32 %v2835_v34, %v2528_v31  ;;  %v2796_v44 = vpop.f32.mrb[37].mxu0  ;;  %v2837_v45 = vpop.f32.mrb[41].mxu1  ;;  %v5420_v29 = vld [vmem:[%s5812_s29 + $0x158] sm:$0xff]  }
0x1233   : > { %v2797_v46 = vadd.f32 %v2796_v44, %v2524_v32  ;;  %v2838_v47 = vadd.f32 %v2837_v45, %v2532_v37  ;;  %v2798_v14 = vpop.f32.mrb[38].mxu0  ;;  %v2839_v48 = vpop.f32.mrb[42].mxu1  ;;  %v5421_v31 = vld [vmem:[%s5812_s29 + $0x1d8] sm:$0xff]  }
0x1234   : > { %v3088_v50 = vmax.f32 %v2795_v35, 0.0  ;;  %v3090_v51 = vmax.f32 %v2836_v42, 0.0  ;;  %v2799_v54 = vpop.f32.mrb[39].mxu0  ;;  %v2840_v56 = vpop.f32.mrb[43].mxu1  ;;  %v5422_v44 = vld [vmem:[%s5812_s29 + $0x118] sm:$0xff]   ;;  %v5424_v48 = vld [vmem:[%s5812_s29 + $0x160] sm:$0xff]  }
0x1235   : > { %v3089_v57 = vmax.f32 %v2797_v46, 0.0  ;;  %v3091_v30 = vmax.f32 %v2838_v47, 0.0  ;;  %v5423_v45 = vld [vmem:[%s5812_s29 + $0x198] sm:$0xff]   ;;  %v2535_v46 = vsub.s32 4, %v6274_v55  ;;  %v5426_v54 = vld [vmem:[%s5812_s29 + $0x120] sm:$0xff]  }
0x1236   : > { %v3104_v2 = vpack.c.bf16 %v3088_v50, %v3088_v50  ;;  %v3106_v3 = vpack.c.bf16 %v3090_v51, %v3090_v51  ;;  %v5425_v50 = vld [vmem:[%s5812_s29 + $0x1e0] sm:$0xff]   ;;  %v5470_v55 = vld [vmem:[%s5812_s29 + $0x238] sm:$0xff]  }
0x1237   : > { %v3105_v59 = vpack.c.bf16 %v3089_v57, %v3089_v57  ;;  %v3107_v60 = vpack.c.bf16 %v3091_v30, %v3091_v30  ;;  %v2568_v51 = vrot.slane %v6278_v25, %v2535_v46  ;;  %v5427_v56 = vld [vmem:[%s5812_s29 + $0x1a0] sm:$0xff]   ;;  %v5428_v57 = vld [vmem:[%s5812_s29 + $0x168] sm:$0xff]  }
0x1238   : > { %v5429_v30 = vld [vmem:[%s5812_s29 + $0x1e8] sm:$0xff]  }
0x1239   : > { %v6312_v7 = vpop.f32.mrb[40].mxu0  ;;  %v6314_v63 = vpop.f32.mrb[44].mxu1  ;;  %4183 = vmatprep.mubr.bf16.mxu0 %v3105_v59  ;;  %4223 = vmatprep.mubr.bf16.mxu1 %v3107_v60 }
0x123a   : > { %v2878_v8 = vpop.f32.mrb[41].mxu0  ;;  %v2919_v9 = vpop.f32.mrb[45].mxu1  ;;  %4184 = vmatmul.mubr.bf16.vlgmr.msra.gmra.mrb[52].mxu0 %v3104_v2  ;;  %4224 = vmatmul.mubr.bf16.vlgmr.msra.gmra.mrb[56].mxu1 %v3106_v3 }
0x123b   : > { %v2879_v10 = vadd.f32 %v2878_v8, %v2540_v61  ;;  %v2920_v11 = vadd.f32 %v2919_v9, %v2548_v62  ;;  %5073 = vmatpush3.bf16.msra.mxu0 %v5410_v0  ;;  %5095 = vmatpush3.bf16.msra.mxu1 %v5411_v1  ;;  %v2880_v6 = vpop.f32.mrb[42].mxu0  ;;  %v2921_v12 = vpop.f32.mrb[46].mxu1  ;;  %v2536_v8 = vrot.slane %v6288_v27, %v2535_v46  ;;  %v5451_v46 = vld [vmem:[%s5812_s29 + $0x290] sm:$0xff]  }
0x123c   : > { %v2881_v16 = vpop.f32.mrb[43].mxu0  ;;  %v2922_v17 = vpop.f32.mrb[47].mxu1  ;;  %5074 = vmatprep.subr.bf16.mxu0 %v5412_v4  ;;  %5096 = vmatprep.subr.bf16.mxu1 %v5413_v5  ;;  %v5430_v4 = vld [vmem:[%s5812_s29 + $0x128] sm:$0xff]   ;;  %v5433_v6 = vld [vmem:[%s5812_s29 + $0x1f0] sm:$0xff]   ;;  %v2556_v12 = vrot.slane %v6278_v25, %v2523_v20  ;;  %v5437_v20 = vld [vmem:[%s5812_s29 + $0x1f8] sm:$0xff]  }
0x123d   : > { %v3093_v21 = vmax.f32 %v2879_v10, 0.0  ;;  %v3095_v40 = vmax.f32 %v2920_v11, 0.0  ;;  %v5431_v5 = vld [vmem:[%s5812_s29 + $0x1a8] sm:$0xff]   ;;  %v5432_v11 = vld [vmem:[%s5812_s29 + $0x170] sm:$0xff]   ;;  %v5436_v17 = vld [vmem:[%s5812_s29 + $0x178] sm:$0xff]  }
0x123f   : > { %v3109_v22 = vpack.c.bf16 %v3093_v21, %v3093_v21  ;;  %v3111_v23 = vpack.c.bf16 %v3095_v40, %v3095_v40  ;;  %5075 = vmatpush3.bf16.msra.mxu0 %v5414_v13  ;;  %5097 = vmatpush3.bf16.msra.mxu1 %v5415_v15  ;;  %v2564_v13 = vrot.slane %v6278_v25, %v2531_v28  ;;  %v5438_v28 = vld [vmem:[%s5812_s29 + $0x138] sm:$0xff]  }
0x1240   : > { %5076 = vmatprep.subr.bf16.mxu0 %v5416_v18  ;;  %5098 = vmatprep.subr.bf16.mxu1 %v5417_v38  ;;  %v2877_v15 = vadd.f32 %v6312_v7, %v2536_v8  ;;  %v5439_v21 = vld [vmem:[%s5812_s29 + $0x1b8] sm:$0xff]   ;;  %v5440_v7 = vld [vmem:[%s5812_s29 + $0x240] sm:$0xff]   ;;  %v2580_v8 = vrot.slane %v6278_v25, %v2547_v49 }
0x1241   : > { %v2958_v32 = vpop.f32.mrb[44].mxu0  ;;  %v2999_v37 = vpop.f32.mrb[48].mxu1  ;;  %4263 = vmatprep.mubr.bf16.mxu0 %v3109_v22  ;;  %4303 = vmatprep.mubr.bf16.mxu1 %v3111_v23  ;;  %v5442_v23 = vld [vmem:[%s5812_s29 + $0x200] sm:$0xff]   ;;  %v5471_v49 = vld [vmem:[%s5812_s29 + $0x2b8] sm:$0xff]  }
0x1242   : > { %v6326_v39 = vadd.f32 %v2958_v32, %v2552_v41  ;;  %v6328_v24 = vadd.f32 %v2999_v37, %v2560_v43  ;;  %v2960_v33 = vpop.f32.mrb[45].mxu0  ;;  %v3001_v34 = vpop.f32.mrb[49].mxu1  ;;  %v3092_v40 = vmax.f32 %v2877_v15, 0.0  ;;  %v5444_v32 = vld [vmem:[%s5812_s29 + $0x248] sm:$0xff]  }
0x1243   : > { %5077 = vmatpush3.bf16.msra.mxu0 %v5418_v52  ;;  %5099 = vmatpush3.bf16.msra.mxu1 %v5419_v53  ;;  %v2962_v35 = vpop.f32.mrb[46].mxu0  ;;  %v3003_v42 = vpop.f32.mrb[50].mxu1  ;;  %v2961_v18 = vadd.f32 %v2960_v33, %v2556_v12  ;;  %v3002_v38 = vadd.f32 %v3001_v34, %v2564_v13  ;;  %v5445_v37 = vld [vmem:[%s5812_s29 + $0x2c8] sm:$0xff]   ;;  %v5472_v12 = vld [vmem:[%s5812_s29 + $0x340] sm:$0xff]  }
0x1244   : > { %v2963_v47 = vpop.f32.mrb[47].mxu0  ;;  %v3004_v14 = vpop.f32.mrb[51].mxu1  ;;  %5078 = vmatprep.subr.bf16.mxu0 %v5420_v29  ;;  %5100 = vmatprep.subr.bf16.mxu1 %v5421_v31  ;;  %v3108_v52 = vpack.c.bf16 %v3092_v40, %v3092_v40  ;;  %v5443_v29 = vld [vmem:[%s5812_s29 + $0x280] sm:$0xff]   ;;  %v5446_v34 = vld [vmem:[%s5812_s29 + $0x208] sm:$0xff]   ;;  %v5448_v42 = vld [vmem:[%s5812_s29 + $0x250] sm:$0xff]   ;;  %v3098_v13 = vmax.f32 %v6328_v24, 0.0 }
0x1245   : > { %v3097_v43 = vmax.f32 %v2961_v18, 0.0  ;;  %v3099_v22 = vmax.f32 %v3002_v38, 0.0  ;;  %v5447_v35 = vld [vmem:[%s5812_s29 + $0x288] sm:$0xff]   ;;  %v5452_v47 = vld [vmem:[%s5812_s29 + $0x258] sm:$0xff]   ;;  %v5481_v40 = vld [vmem:[%s5812_s29 + $0x3d0] sm:$0xff]  }
0x1246   : > { %v5453_v14 = vld [vmem:[%s5812_s29 + $0x2d8] sm:$0xff]   ;;  %v5477_v24 = vld [vmem:[%s5812_s29 + $0x3c8] sm:$0xff]  }
0x1247   : > { %5079 = vmatpush3.bf16.msra.mxu0 %v5422_v44  ;;  %5101 = vmatpush3.bf16.msra.mxu1 %v5423_v45  ;;  %v3113_v31 = vpack.c.bf16 %v3097_v43, %v3097_v43  ;;  %v3115_v33 = vpack.c.bf16 %v3099_v22, %v3099_v22  ;;  %v5449_v44 = vld [vmem:[%s5812_s29 + $0x2d0] sm:$0xff]   ;;  %v5478_v38 = vld [vmem:[%s5812_s29 + $0x308] sm:$0xff]   ;;  %v5485_v43 = vld [vmem:[%s5812_s29 + $0x3d8] sm:$0xff]  }
0x1248   : > { %5080 = vmatprep.subr.bf16.mxu0 %v5424_v48  ;;  %5102 = vmatprep.subr.bf16.mxu1 %v5425_v50  ;;  %v5450_v45 = vld [vmem:[%s5812_s29 + $0x210] sm:$0xff]   ;;  %v5454_v48 = vld [vmem:[%s5812_s29 + $0x218] sm:$0xff]  }
0x1249   : > { %v3040_v59 = vpop.f32.mrb[48].mxu0  ;;  %v3081_v60 = vpop.f32.mrb[52].mxu1  ;;  %v5455_v50 = vld [vmem:[%s5812_s29 + $0x298] sm:$0xff]  }
0x124a   : > { %v6340_v61 = vadd.f32 %v3040_v59, %v2568_v51  ;;  %v6343_v62 = vadd.f32 %v3081_v60, %v6283_v26  ;;  %v6345_v0 = vpop.f32.mrb[49].mxu0  ;;  %v6347_v1 = vpop.f32.mrb[53].mxu1  ;;  %v2544_v26 = vrot.slane %v6288_v27, %v2543_v58  ;;  %v5434_v58 = vld [vmem:[%s5812_s29 + $0x130] sm:$0xff]   ;;  %v5456_v51 = vld [vmem:[%s5812_s29 + $0x260] sm:$0xff]   ;;  %v5461_v59 = vld [vmem:[%s5812_s29 + $0x2e8] sm:$0xff]  }
0x124b   : > { %5081 = vmatpush3.bf16.msra.mxu0 %v5426_v54  ;;  %5103 = vmatpush3.bf16.msra.mxu1 %v5427_v56  ;;  %v3044_v2 = vpop.f32.mrb[50].mxu0  ;;  %v3085_v3 = vpop.f32.mrb[54].mxu1  ;;  %v5435_v27 = vld [vmem:[%s5812_s29 + $0x1b0] sm:$0xff]   ;;  %v5457_v54 = vld [vmem:[%s5812_s29 + $0x2e0] sm:$0xff]   ;;  %v5462_v60 = vld [vmem:[%s5812_s29 + $0x228] sm:$0xff]  }
0x124c   : > { %v3045_v9 = vpop.f32.mrb[51].mxu0  ;;  %v3086_v10 = vpop.f32.mrb[55].mxu1  ;;  %5082 = vmatprep.subr.bf16.mxu0 %v5428_v57  ;;  %5104 = vmatprep.subr.bf16.mxu1 %v5429_v30  ;;  %v2918_v16 = vadd.f32 %v6314_v63, %v2544_v26  ;;  %v5441_v63 = vld [vmem:[%s5812_s29 + $0x2c0] sm:$0xff]   ;;  %v5460_v30 = vld [vmem:[%s5812_s29 + $0x268] sm:$0xff]   ;;  %v5464_v3 = vld [vmem:[%s5812_s29 + $0x270] sm:$0xff]  }
0x124d   : > { %v5458_v56 = vld [vmem:[%s5812_s29 + $0x220] sm:$0xff]   ;;  %v5463_v2 = vld [vmem:[%s5812_s29 + $0x2a8] sm:$0xff]   ;;  %v5466_v26 = vld [vmem:[%s5812_s29 + $0x230] sm:$0xff]  }
0x124e   : > { %v3094_v41 = vmax.f32 %v2918_v16, 0.0  ;;  %v5459_v57 = vld [vmem:[%s5812_s29 + $0x2a0] sm:$0xff]   ;;  %v5467_v9 = vld [vmem:[%s5812_s29 + $0x2b0] sm:$0xff]   ;;  %v5468_v10 = vld [vmem:[%s5812_s29 + $0x278] sm:$0xff]   ;;  %v3114_v16 = vpack.c.bf16 %v3098_v13, %v3098_v13 }
0x124f   : > { %5083 = vmatpush3.bf16.msra.mxu0 %v5430_v4  ;;  %5105 = vmatpush3.bf16.msra.mxu1 %v5431_v5  ;;  %v5465_v4 = vld [vmem:[%s5812_s29 + $0x2f0] sm:$0xff]   ;;  %v2572_v5 = vrot.slane %v6278_v25, %v2539_v36  ;;  %v3084_v36 = vadd.f32 %v6347_v1, %v2580_v8  ;;  %v3096_v25 = vmax.f32 %v6326_v39, 0.0  ;;  %v5475_v39 = vld [vmem:[%s5812_s29 + $0x380] sm:$0xff]   ;;  %v5486_v22 = vld [vmem:[%s5812_s29 + $0x318] sm:$0xff]  }
0x1250   : > { %5084 = vmatprep.subr.bf16.mxu0 %v5432_v11  ;;  %5106 = vmatprep.subr.bf16.mxu1 %v5433_v6  ;;  %v3110_v53 = vpack.c.bf16 %v3094_v41, %v3094_v41  ;;  %v5469_v11 = vld [vmem:[%s5812_s29 + $0x2f8] sm:$0xff]   ;;  %v5482_v41 = vld [vmem:[%s5812_s29 + $0x310] sm:$0xff]  }
0x1251   : > { %v3043_v6 = vadd.f32 %v6345_v0, %v2572_v5  ;;  %v3103_v15 = vmax.f32 %v3084_v36, 0.0  ;;  %v5474_v0 = vld [vmem:[%s5812_s29 + $0x300] sm:$0xff]   ;;  %v3112_v1 = vpack.c.bf16 %v3096_v25, %v3096_v25 }
0x1253   : > { %5085 = vmatpush3.bf16.msra.mxu0 %v5434_v58  ;;  %5107 = vmatpush3.bf16.msra.mxu1 %v5435_v27  ;;  %v5473_v58 = vld [vmem:[%s5812_s29 + $0x3c0] sm:$0xff]   ;;  %v3101_v27 = vmax.f32 %v3043_v6, 0.0  ;;  %v3119_v18 = vpack.c.bf16 %v3103_v15, %v3103_v15 }
0x1254   : > { %5086 = vmatprep.subr.bf16.mxu0 %v5436_v17  ;;  %5108 = vmatprep.subr.bf16.mxu1 %v5437_v20  ;;  %v5476_v17 = vld [vmem:[%s5812_s29 + $0x348] sm:$0xff]  }
0x1255   : > { %v3117_v20 = vpack.c.bf16 %v3101_v27, %v3101_v27 }
0x1257   : > { %5087 = vmatpush3.bf16.msra.mxu0 %v5438_v28  ;;  %5109 = vmatpush3.bf16.msra.mxu1 %v5439_v21  ;;  %v5479_v28 = vld [vmem:[%s5812_s29 + $0x388] sm:$0xff]   ;;  %v5480_v21 = vld [vmem:[%s5812_s29 + $0x350] sm:$0xff]  }
0x1258   : > { %5116 = vmatprep.subr.bf16.mxu0 %v5440_v7  ;;  %5138 = vmatprep.subr.bf16.mxu1 %v5441_v63  ;;  %v5483_v7 = vld [vmem:[%s5812_s29 + $0x390] sm:$0xff]   ;;  %v5484_v63 = vld [vmem:[%s5812_s29 + $0x358] sm:$0xff]  }
0x125a   : > { %4264 = vmatmul.mubr.bf16.vlgmr.msra.gmra.mrb[56].mxu0 %v3108_v52  ;;  %4304 = vmatmul.mubr.bf16.vlgmr.msra.gmra.mrb[60].mxu1 %v3110_v53  ;;  %v5488_v52 = vld [vmem:[%s5812_s29 + $0x360] sm:$0xff]  }
0x125b   : > { %5117 = vmatpush3.bf16.msra.mxu0 %v5442_v23  ;;  %4343 = vmatprep.mubr.bf16.mxu0 %v3113_v31  ;;  %v5487_v23 = vld [vmem:[%s5812_s29 + $0x398] sm:$0xff]   ;;  %v5489_v53 = vld [vmem:[%s5812_s29 + $0x3e0] sm:$0xff]  }
0x125c   : > { %5139 = vmatpush3.bf16.msra.mxu1 %v5443_v29  ;;  %4383 = vmatprep.mubr.bf16.mxu1 %v3115_v33  ;;  %v5490_v29 = vld [vmem:[%s5812_s29 + $0x320] sm:$0xff]   ;;  %v5494_v33 = vld [vmem:[%s5812_s29 + $0x328] sm:$0xff]  }
0x125d   : > { %5118 = vmatprep.subr.bf16.mxu0 %v5444_v32  ;;  %5140 = vmatprep.subr.bf16.mxu1 %v5445_v37  ;;  %v5491_v31 = vld [vmem:[%s5812_s29 + $0x3a0] sm:$0xff]   ;;  %v5492_v32 = vld [vmem:[%s5812_s29 + $0x368] sm:$0xff]  }
0x125e   : > { %v5493_v37 = vld [vmem:[%s5812_s29 + $0x3e8] sm:$0xff]  }
0x125f   : > { %5119 = vmatpush3.bf16.msra.mxu0 %v5446_v34  ;;  %v5495_v34 = vld [vmem:[%s5812_s29 + $0x3a8] sm:$0xff]  }
0x1260   : > { %5141 = vmatpush3.bf16.msra.mxu1 %v5447_v35  ;;  %5120 = vmatprep.subr.bf16.mxu0 %v5448_v42  ;;  %v5496_v35 = vld [vmem:[%s5812_s29 + $0x370] sm:$0xff]  }
0x1261   : > { %5142 = vmatprep.subr.bf16.mxu1 %v5449_v44  ;;  %v5497_v42 = vld [vmem:[%s5812_s29 + $0x3f0] sm:$0xff]  }
0x1262   : > { %v5498_v44 = vld [vmem:[%s5812_s29 + $0x330] sm:$0xff]  }
0x1263   : > { %5121 = vmatpush3.bf16.msra.mxu0 %v5450_v45  ;;  %v5499_v45 = vld [vmem:[%s5812_s29 + $0x3b0] sm:$0xff]  }
0x1264   : > { %5143 = vmatpush3.bf16.msra.mxu1 %v5451_v46  ;;  %5122 = vmatprep.subr.bf16.mxu0 %v5452_v47  ;;  %v5500_v46 = vld [vmem:[%s5812_s29 + $0x378] sm:$0xff]  }
0x1265   : > { %5144 = vmatprep.subr.bf16.mxu1 %v5453_v14  ;;  %v5501_v47 = vld [vmem:[%s5812_s29 + $0x3f8] sm:$0xff]  }
0x1266   : > { %v5502_v14 = vld [vmem:[%s5812_s29 + $0x338] sm:$0xff]  }
0x1267   : > { %5123 = vmatpush3.bf16.msra.mxu0 %v5454_v48  ;;  %v3100_v48 = vmax.f32 %v6340_v61, 0.0 }
0x1268   : > { %5145 = vmatpush3.bf16.msra.mxu1 %v5455_v50  ;;  %5124 = vmatprep.subr.bf16.mxu0 %v5456_v51  ;;  %v5503_v50 = vld [vmem:[%s5812_s29 + $0x3b8] sm:$0xff]   ;;  %v3102_v51 = vmax.f32 %v6343_v62, 0.0 }
0x1269   : > { %5146 = vmatprep.subr.bf16.mxu1 %v5457_v54  ;;  %v3116_v54 = vpack.c.bf16 %v3100_v48, %v3100_v48 }
0x126b   : > { %5125 = vmatpush3.bf16.msra.mxu0 %v5458_v56  ;;  %v3118_v56 = vpack.c.bf16 %v3102_v51, %v3102_v51  ;;  %v4958_v51 = vld [vmem:[%s5821_s30] ss:$0 sm:$0xff] }
0x126c   : > { %5147 = vmatpush3.bf16.msra.mxu1 %v5459_v57  ;;  %5126 = vmatprep.subr.bf16.mxu0 %v5460_v30 }
0x126d   : > { %5148 = vmatprep.subr.bf16.mxu1 %v5461_v59  ;;  %v4828_v59 = vld [vmem:[%s1071_s1] ss:$0 sm:$0xff] }
0x126f   : > { %5127 = vmatpush3.bf16.msra.mxu0 %v5462_v60 }
0x1270   : > { %5149 = vmatpush3.bf16.msra.mxu1 %v5463_v2  ;;  %5128 = vmatprep.subr.bf16.mxu0 %v5464_v3 }
0x1271   : > { %5150 = vmatprep.subr.bf16.mxu1 %v5465_v4 }
0x1273   : > { %5129 = vmatpush3.bf16.msra.mxu0 %v5466_v26 }
0x1274   : > { %5151 = vmatpush3.bf16.msra.mxu1 %v5467_v9  ;;  %5130 = vmatprep.subr.bf16.mxu0 %v5468_v10 }
0x1275   : > { %5152 = vmatprep.subr.bf16.mxu1 %v5469_v11 }
0x1277   : > { %5131 = vmatpush3.bf16.msra.mxu0 %v5470_v55 }
0x1278   : > { %5153 = vmatpush3.bf16.msra.mxu1 %v5471_v49  ;;  %5160 = vmatprep.subr.bf16.mxu0 %v5472_v12 }
0x1279   : > { %5182 = vmatprep.subr.bf16.mxu1 %v5473_v58 }
0x127a   : > { %4344 = vmatmul.mubr.bf16.vlgmr.msra.gmra.mrb[60].mxu0 %v3112_v1 }
0x127b   : > { %4384 = vmatmul.mubr.bf16.vlgmr.msra.gmra.mrb[64].mxu1 %v3114_v16  ;;  %5161 = vmatpush3.bf16.msra.mxu0 %v5474_v0 }
0x127c   : > { %4423 = vmatprep.mubr.bf16.mxu0 %v3117_v20  ;;  %5183 = vmatpush3.bf16.msra.mxu1 %v5475_v39 }
0x127d   : > { %4463 = vmatprep.mubr.bf16.mxu1 %v3119_v18  ;;  %5162 = vmatprep.subr.bf16.mxu0 %v5476_v17 }
0x127e   : > { %5184 = vmatprep.subr.bf16.mxu1 %v5477_v24 }
0x127f   : > { %5163 = vmatpush3.bf16.msra.mxu0 %v5478_v38 }
0x1280   : > { %5185 = vmatpush3.bf16.msra.mxu1 %v5479_v28  ;;  %5164 = vmatprep.subr.bf16.mxu0 %v5480_v21 }
0x1281   : > { %5186 = vmatprep.subr.bf16.mxu1 %v5481_v40 }
0x1283   : > { %5165 = vmatpush3.bf16.msra.mxu0 %v5482_v41 }
0x1284   : > { %5187 = vmatpush3.bf16.msra.mxu1 %v5483_v7  ;;  %5166 = vmatprep.subr.bf16.mxu0 %v5484_v63 }
0x1285   : > { %5188 = vmatprep.subr.bf16.mxu1 %v5485_v43 }
0x1287   : > { %5167 = vmatpush3.bf16.msra.mxu0 %v5486_v22 }
0x1288   : > { %5189 = vmatpush3.bf16.msra.mxu1 %v5487_v23  ;;  %5168 = vmatprep.subr.bf16.mxu0 %v5488_v52 }
0x1289   : > { %5190 = vmatprep.subr.bf16.mxu1 %v5489_v53 }
0x128b   : > { %5169 = vmatpush3.bf16.msra.mxu0 %v5490_v29 }
0x128c   : > { %5191 = vmatpush3.bf16.msra.mxu1 %v5491_v31  ;;  %5170 = vmatprep.subr.bf16.mxu0 %v5492_v32 }
0x128d   : > { %5192 = vmatprep.subr.bf16.mxu1 %v5493_v37 }
0x128f   : > { %5171 = vmatpush3.bf16.msra.mxu0 %v5494_v33 }
0x1290   : > { %5193 = vmatpush3.bf16.msra.mxu1 %v5495_v34  ;;  %5172 = vmatprep.subr.bf16.mxu0 %v5496_v35 }
0x1291   : > { %5194 = vmatprep.subr.bf16.mxu1 %v5497_v42 }
0x1293   : > { %5173 = vmatpush3.bf16.msra.mxu0 %v5498_v44 }
0x1294   : > { %5195 = vmatpush3.bf16.msra.mxu1 %v5499_v45  ;;  %5174 = vmatprep.subr.bf16.mxu0 %v5500_v46 }
0x1295   : > { %5196 = vmatprep.subr.bf16.mxu1 %v5501_v47 }
0x1297   : > { %5175 = vmatpush3.bf16.msra.mxu0 %v5502_v14 }
0x1298   : > { %5197 = vmatpush3.bf16.msra.mxu1 %v5503_v50 }
0x129a   : > { %4424 = vmatmul.mubr.bf16.vlgmr.msra.gmra.mrb[64].mxu0 %v3116_v54 }
0x129b   : > { %4464 = vmatmul.mubr.bf16.vlgmr.msra.gmra.mrb[68].mxu1 %v3118_v56  ;;  %v4959_v56 = vld [vmem:[%s5821_s30 + $0x1] ss:$0 sm:$0xff] }
0x130d   : > { %v5044_v57 = vpop.f32.mrb[52].mxu0  ;;  %v5066_v30 = vpop.f32.mrb[56].mxu1 }
0x130e   : > { %v5045_v61 = vpop.f32.mrb[53].mxu0  ;;  %v5067_v60 = vpop.f32.mrb[57].mxu1 }
0x130f   : > { %v5046_v2 = vadd.f32 %v5045_v61, %v5044_v57  ;;  %v5068_v3 = vadd.f32 %v5067_v60, %v5066_v30  ;;  %v5047_v4 = vpop.f32.mrb[54].mxu0  ;;  %v5069_v62 = vpop.f32.mrb[58].mxu1 }
0x1310   : > { %v5048_v5 = vpop.f32.mrb[55].mxu0  ;;  %v5070_v8 = vpop.f32.mrb[59].mxu1 }
0x1311   : > { %v4186_v26 = vadd.f32 %v5046_v2, %v4828_v59 }
0x1313   : > { %v4226_v9 = vadd.f32 %v5068_v3, %v4186_v26 }
0x132d   : > { %v5088_v10 = vpop.f32.mrb[56].mxu0  ;;  %v5110_v11 = vpop.f32.mrb[60].mxu1 }
0x132e   : > { %v5089_v6 = vpop.f32.mrb[57].mxu0  ;;  %v5111_v36 = vpop.f32.mrb[61].mxu1 }
0x132f   : > { %v5090_v55 = vadd.f32 %v5089_v6, %v5088_v10  ;;  %v5112_v25 = vadd.f32 %v5111_v36, %v5110_v11  ;;  %v5091_v49 = vpop.f32.mrb[58].mxu0  ;;  %v5113_v12 = vpop.f32.mrb[62].mxu1 }
0x1330   : > { %v5092_v13 = vpop.f32.mrb[59].mxu0  ;;  %v5114_v58 = vpop.f32.mrb[63].mxu1 }
0x1331   : > { %v4266_v27 = vadd.f32 %v5090_v55, %v4226_v9 }
0x1333   : > { %v4306_v15 = vadd.f32 %v5112_v25, %v4266_v27 }
0x134d   : > { %v5132_v0 = vpop.f32.mrb[60].mxu0 }
0x134e   : > { %v5154_v1 = vpop.f32.mrb[64].mxu1  ;;  %v5133_v39 = vpop.f32.mrb[61].mxu0 }
0x134f   : > { %v5134_v16 = vadd.f32 %v5133_v39, %v5132_v0  ;;  %v5155_v17 = vpop.f32.mrb[65].mxu1  ;;  %v5135_v20 = vpop.f32.mrb[62].mxu0 }
0x1350   : > { %v5156_v24 = vadd.f32 %v5155_v17, %v5154_v1  ;;  %v5157_v18 = vpop.f32.mrb[66].mxu1  ;;  %v5136_v38 = vpop.f32.mrb[63].mxu0 }
0x1351   : > { %v4346_v28 = vadd.f32 %v5134_v16, %v4306_v15  ;;  %v5158_v21 = vpop.f32.mrb[67].mxu1 }
0x1353   : > { %v4386_v40 = vadd.f32 %v5156_v24, %v4346_v28 }
0x136d   : > { %v5176_v41 = vpop.f32.mrb[64].mxu0 }
0x136e   : > { %v5198_v7 = vpop.f32.mrb[68].mxu1  ;;  %v5177_v63 = vpop.f32.mrb[65].mxu0 }
0x136f   : > { %v5178_v43 = vadd.f32 %v5177_v63, %v5176_v41  ;;  %v5199_v22 = vpop.f32.mrb[69].mxu1  ;;  %v5179_v23 = vpop.f32.mrb[66].mxu0 }
0x1370   : > { %v5200_v52 = vadd.f32 %v5199_v22, %v5198_v7  ;;  %v5201_v53 = vpop.f32.mrb[70].mxu1  ;;  %v5180_v29 = vpop.f32.mrb[67].mxu0 }
0x1371   : > { %v4426_v31 = vadd.f32 %v5178_v43, %v4386_v40  ;;  %v5202_v32 = vpop.f32.mrb[71].mxu1 }
0x1373   : > { %v4466_v37 = vadd.f32 %v5200_v52, %v4426_v31 }
0x1375   : > { %v4471_v33 = vadd.f32 %v4466_v37, %v6196_v19 }
0x1377   : > { %v4475_v34 = vsel %vm1222_vm7, %v4471_v33, 0.0 }
0x1378   : > { %4476 = vadd.xlane.f32.xlu1 %v4475_v34 }
0x1405   : > { %v4477_v35 = vpop.xlane.xlu1 %4476 }
0x1406   : > { %v4478_v42 = vmul.f32 0.03125, %v4477_v35 }
0x1408   : > { %v4479_v44 = vsub.f32 %v4471_v33, %v4478_v42 }
0x140a   : > { %v4480_v45 = vmul.f32 %v4479_v44, %v4479_v44 }
0x140c   : > { %v4481_v46 = vsel %vm1222_vm7, %v4480_v45, 0.0 }
0x140d   : > { %4482 = vadd.xlane.f32.xlu1 %v4481_v46 }
0x149a   : > { %v4483_v47 = vpop.xlane.xlu1 %4482 }
0x149b   : > { %v4484_v14 = vmul.f32 0.03125, %v4483_v47 }
0x149d   : > { %v4485_v48 = vadd.f32 1e-05, %v4484_v14 }
0x149f   : > { %5572 = vrsqrt.f32 %v4485_v48 }
0x14a9   : > { %v5573_v50 = vpop.eup %5572 }
0x14aa   : > { %v4487_v54 = vmul.f32 %v5573_v50, %v4479_v44 }
0x14ac   : > { %v4494_v19 = vmul.f32 %v4958_v51, %v4487_v54 }
0x14ae   : > { %v4501_v57 = vadd.f32 %v4959_v56, %v4494_v19 }
0x14b0   : > { %4502 = vst.msk [vmem:[%s6542_s26] sm:$0xff] %vm1222_vm7, %v4501_v57 }
0x14b1 PF: > { %s6558_s25 = sld [smem:[#allocation2_spill]] }
0x14b7   : > { %s37_s7 = sadd.s32 1, %s6558_s25  }
0x14b8   : > { %p34_p5 = scmp.ge.s32.totalorder %s37_s7, 4  }
0x14ba   :  { %36 = sbr.rel (!%p34_p5) target bundleno = 23 (0x17), region = 209 }

// kernel: videobert_forward.14
= control target key start
LH: loop header
LB: loop body
LE: loop exit
PB: predicated region body
PF: predicated region fallthrough
CT: control target
= control target key end

     0   :  { %s3112_s12 = smov 0   ;;  %s3114_s13 = smov 0   ;;  %s3803_s0 = inlined_call_operand.vmem [shape: bf16[8,1536], index: 0, kind: input, shape index: {}]   ;;  %s3804_s1 = inlined_call_operand.vmem [shape: bf16[1536,512], index: 1, kind: input, shape index: {}]   ;;  %s3805_s2 = inlined_call_operand.vmem [shape: f32[8,1], index: 2, kind: input, shape index: {}]   ;;  %s3806_s3 = inlined_call_operand.vmem [shape: bf16[8,512], index: 3, kind: output, shape index: {}]  }
   0x1   :  { %s3116_s14 = smov 0  }
   0x2 LB: > { %s2501_s15 = sadd.s32 4294967295, %s3089_s14   ;;  %s3129_s16 = sadd.s32 1, %s3089_s14   ;;  %s3089_s14 = sphi %s3116_s14, %s3809_s14   ;;  %s3085_s13 = sphi %s3114_s13, %s3808_s13   ;;  %s3081_s12 = sphi %s3112_s12, %s3807_s12  }
   0x3   : > { %s38_s17 = ssub.s32 %s3089_s14, %s3129_s16  ;;  %s41_s18 = sadd.s32 1, %s3085_s13 }
   0x4   : > { %p39_p0 = scmp.eq.s32.totalorder %s38_s17, 0  ;;  %p48_p1 = scmp.ne.s32.totalorder %s3085_s13, %s3081_s12 }
   0x5   : > { %p49_p2 = scmp.eq.s32.totalorder %s3089_s14, 0  ;;  %p2504_p4 = scmp.ge.s32.totalorder %s3089_s14, 2 }
   0x6   : > { %s3138_s19 = scalar_select %p39_p0, %s3085_s13, %s41_s18  }
   0x7   : > { %p50_p3 = por %p49_p2, %p48_p1  ;;  %127 = sbr.rel (%p2504_p4) target bundleno = 114 (0x72), region = 24 }
   0xe   : > { %130 = sbr.rel (!%p50_p3) target bundleno = 114 (0x72), region = 28  ;;  %s132_s20 = sand.u32 (%p50_p3), 1, %s3085_s13  }
   0xf   : > { %s2717_s21 = sshll.u32 (%p50_p3), %s3089_s14, 3  ;;  %s2739_s22 = smul.u32 (%p50_p3), 1536, %s132_s20 }
  0x10   : > { %s3146_s25 = scalar_lea.vmem (%p50_p3), %s3804_s1, %s2717_s21 }
  0x11   : > { %v547_v0 = vld [vmem:[%s3146_s25] sm:$0xff] (%p50_p3)  ;;  %v549_v1 = vld [vmem:[%s3146_s25 + $0x10] sm:$0xff] (%p50_p3)  ;;  %s3154_s26 = scalar_lea.vmem (%p50_p3), [#allocation2], %s2739_s22 }
  0x12   : > { %v551_v2 = vld [vmem:[%s3146_s25 + $0x20] sm:$0xff] (%p50_p3)  ;;  %v553_v3 = vld [vmem:[%s3146_s25 + $0x30] sm:$0xff] (%p50_p3)  ;;  %548 = vst [vmem:[%s3154_s26] sm:$0xff] (%p50_p3), %v547_v0  ;;  %550 = vst [vmem:[%s3154_s26 + $0x8] sm:$0xff] (%p50_p3), %v549_v1 }
  0x13   : > { %v555_v4 = vld [vmem:[%s3146_s25 + $0x40] sm:$0xff] (%p50_p3)  ;;  %v557_v5 = vld [vmem:[%s3146_s25 + $0x50] sm:$0xff] (%p50_p3)  ;;  %552 = vst [vmem:[%s3154_s26 + $0x10] sm:$0xff] (%p50_p3), %v551_v2  ;;  %554 = vst [vmem:[%s3154_s26 + $0x18] sm:$0xff] (%p50_p3), %v553_v3 }
  0x14   : > { %556 = vst [vmem:[%s3154_s26 + $0x20] sm:$0xff] (%p50_p3), %v555_v4  ;;  %558 = vst [vmem:[%s3154_s26 + $0x28] sm:$0xff] (%p50_p3), %v557_v5  ;;  %v559_v6 = vld [vmem:[%s3146_s25 + $0x60] sm:$0xff] (%p50_p3)  ;;  %v561_v7 = vld [vmem:[%s3146_s25 + $0x70] sm:$0xff] (%p50_p3) }
  0x15   : > { %v563_v8 = vld [vmem:[%s3146_s25 + $0x80] sm:$0xff]  ;;  %560 = vst [vmem:[%s3154_s26 + $0x30] sm:$0xff] %v559_v6  ;;  %562 = vst [vmem:[%s3154_s26 + $0x38] sm:$0xff] %v561_v7  ;;  %v565_v9 = vld [vmem:[%s3146_s25 + $0x90] sm:$0xff] }
  0x16   : > { %564 = vst [vmem:[%s3154_s26 + $0x40] sm:$0xff] %v563_v8  ;;  %v567_v10 = vld [vmem:[%s3146_s25 + $0xa0] sm:$0xff]  ;;  %v569_v11 = vld [vmem:[%s3146_s25 + $0xb0] sm:$0xff]  ;;  %566 = vst [vmem:[%s3154_s26 + $0x48] sm:$0xff] %v565_v9 }
  0x17   : > { %568 = vst [vmem:[%s3154_s26 + $0x50] sm:$0xff] %v567_v10  ;;  %570 = vst [vmem:[%s3154_s26 + $0x58] sm:$0xff] %v569_v11  ;;  %v571_v12 = vld [vmem:[%s3146_s25 + $0xc0] sm:$0xff]  ;;  %v573_v13 = vld [vmem:[%s3146_s25 + $0xd0] sm:$0xff] }
  0x18   : > { %v575_v14 = vld [vmem:[%s3146_s25 + $0xe0] sm:$0xff]  ;;  %572 = vst [vmem:[%s3154_s26 + $0x60] sm:$0xff] %v571_v12  ;;  %574 = vst [vmem:[%s3154_s26 + $0x68] sm:$0xff] %v573_v13  ;;  %v577_v15 = vld [vmem:[%s3146_s25 + $0xf0] sm:$0xff] }
  0x19   : > { %576 = vst [vmem:[%s3154_s26 + $0x70] sm:$0xff] %v575_v14  ;;  %v579_v16 = vld [vmem:[%s3146_s25 + $0x100] sm:$0xff]  ;;  %v581_v17 = vld [vmem:[%s3146_s25 + $0x110] sm:$0xff]  ;;  %578 = vst [vmem:[%s3154_s26 + $0x78] sm:$0xff] %v577_v15 }
  0x1a   : > { %580 = vst [vmem:[%s3154_s26 + $0x80] sm:$0xff] %v579_v16  ;;  %582 = vst [vmem:[%s3154_s26 + $0x88] sm:$0xff] %v581_v17  ;;  %v583_v18 = vld [vmem:[%s3146_s25 + $0x120] sm:$0xff]  ;;  %v585_v19 = vld [vmem:[%s3146_s25 + $0x130] sm:$0xff] }
  0x1b   : > { %v587_v20 = vld [vmem:[%s3146_s25 + $0x140] sm:$0xff]  ;;  %584 = vst [vmem:[%s3154_s26 + $0x90] sm:$0xff] %v583_v18  ;;  %586 = vst [vmem:[%s3154_s26 + $0x98] sm:$0xff] %v585_v19  ;;  %v589_v21 = vld [vmem:[%s3146_s25 + $0x150] sm:$0xff] }
  0x1c   : > { %588 = vst [vmem:[%s3154_s26 + $0xa0] sm:$0xff] %v587_v20  ;;  %v591_v22 = vld [vmem:[%s3146_s25 + $0x160] sm:$0xff]  ;;  %v593_v23 = vld [vmem:[%s3146_s25 + $0x170] sm:$0xff]  ;;  %590 = vst [vmem:[%s3154_s26 + $0xa8] sm:$0xff] %v589_v21 }
  0x1d   : > { %592 = vst [vmem:[%s3154_s26 + $0xb0] sm:$0xff] %v591_v22  ;;  %594 = vst [vmem:[%s3154_s26 + $0xb8] sm:$0xff] %v593_v23  ;;  %v595_v24 = vld [vmem:[%s3146_s25 + $0x180] sm:$0xff]  ;;  %v597_v25 = vld [vmem:[%s3146_s25 + $0x190] sm:$0xff] }
  0x1e   : > { %v599_v26 = vld [vmem:[%s3146_s25 + $0x1a0] sm:$0xff]  ;;  %596 = vst [vmem:[%s3154_s26 + $0xc0] sm:$0xff] %v595_v24  ;;  %598 = vst [vmem:[%s3154_s26 + $0xc8] sm:$0xff] %v597_v25  ;;  %v601_v27 = vld [vmem:[%s3146_s25 + $0x1b0] sm:$0xff] }
  0x1f   : > { %600 = vst [vmem:[%s3154_s26 + $0xd0] sm:$0xff] %v599_v26  ;;  %v603_v28 = vld [vmem:[%s3146_s25 + $0x1c0] sm:$0xff]  ;;  %v605_v29 = vld [vmem:[%s3146_s25 + $0x1d0] sm:$0xff]  ;;  %602 = vst [vmem:[%s3154_s26 + $0xd8] sm:$0xff] %v601_v27 }
  0x20   : > { %604 = vst [vmem:[%s3154_s26 + $0xe0] sm:$0xff] %v603_v28  ;;  %606 = vst [vmem:[%s3154_s26 + $0xe8] sm:$0xff] %v605_v29  ;;  %v607_v30 = vld [vmem:[%s3146_s25 + $0x1e0] sm:$0xff]  ;;  %v609_v31 = vld [vmem:[%s3146_s25 + $0x1f0] sm:$0xff] }
  0x21   : > { %v611_v32 = vld [vmem:[%s3146_s25 + $0x200] sm:$0xff]  ;;  %608 = vst [vmem:[%s3154_s26 + $0xf0] sm:$0xff] %v607_v30  ;;  %610 = vst [vmem:[%s3154_s26 + $0xf8] sm:$0xff] %v609_v31  ;;  %v613_v33 = vld [vmem:[%s3146_s25 + $0x210] sm:$0xff] }
  0x22   : > { %612 = vst [vmem:[%s3154_s26 + $0x100] sm:$0xff] %v611_v32  ;;  %v615_v34 = vld [vmem:[%s3146_s25 + $0x220] sm:$0xff]  ;;  %v617_v35 = vld [vmem:[%s3146_s25 + $0x230] sm:$0xff]  ;;  %614 = vst [vmem:[%s3154_s26 + $0x108] sm:$0xff] %v613_v33 }
  0x23   : > { %616 = vst [vmem:[%s3154_s26 + $0x110] sm:$0xff] %v615_v34  ;;  %618 = vst [vmem:[%s3154_s26 + $0x118] sm:$0xff] %v617_v35  ;;  %v619_v36 = vld [vmem:[%s3146_s25 + $0x240] sm:$0xff]  ;;  %v621_v37 = vld [vmem:[%s3146_s25 + $0x250] sm:$0xff] }
  0x24   : > { %v623_v38 = vld [vmem:[%s3146_s25 + $0x260] sm:$0xff]  ;;  %620 = vst [vmem:[%s3154_s26 + $0x120] sm:$0xff] %v619_v36  ;;  %622 = vst [vmem:[%s3154_s26 + $0x128] sm:$0xff] %v621_v37  ;;  %v625_v39 = vld [vmem:[%s3146_s25 + $0x270] sm:$0xff] }
  0x25   : > { %624 = vst [vmem:[%s3154_s26 + $0x130] sm:$0xff] %v623_v38  ;;  %v627_v40 = vld [vmem:[%s3146_s25 + $0x280] sm:$0xff]  ;;  %v629_v41 = vld [vmem:[%s3146_s25 + $0x290] sm:$0xff]  ;;  %626 = vst [vmem:[%s3154_s26 + $0x138] sm:$0xff] %v625_v39 }
  0x26   : > { %628 = vst [vmem:[%s3154_s26 + $0x140] sm:$0xff] %v627_v40  ;;  %630 = vst [vmem:[%s3154_s26 + $0x148] sm:$0xff] %v629_v41  ;;  %v631_v42 = vld [vmem:[%s3146_s25 + $0x2a0] sm:$0xff]  ;;  %v633_v43 = vld [vmem:[%s3146_s25 + $0x2b0] sm:$0xff] }
  0x27   : > { %v635_v44 = vld [vmem:[%s3146_s25 + $0x2c0] sm:$0xff]  ;;  %632 = vst [vmem:[%s3154_s26 + $0x150] sm:$0xff] %v631_v42  ;;  %634 = vst [vmem:[%s3154_s26 + $0x158] sm:$0xff] %v633_v43  ;;  %v637_v45 = vld [vmem:[%s3146_s25 + $0x2d0] sm:$0xff] }
  0x28   : > { %636 = vst [vmem:[%s3154_s26 + $0x160] sm:$0xff] %v635_v44  ;;  %v639_v46 = vld [vmem:[%s3146_s25 + $0x2e0] sm:$0xff]  ;;  %v641_v47 = vld [vmem:[%s3146_s25 + $0x2f0] sm:$0xff]  ;;  %638 = vst [vmem:[%s3154_s26 + $0x168] sm:$0xff] %v637_v45 }
  0x29   : > { %640 = vst [vmem:[%s3154_s26 + $0x170] sm:$0xff] %v639_v46  ;;  %642 = vst [vmem:[%s3154_s26 + $0x178] sm:$0xff] %v641_v47  ;;  %v643_v48 = vld [vmem:[%s3146_s25 + $0x300] sm:$0xff]  ;;  %v645_v49 = vld [vmem:[%s3146_s25 + $0x310] sm:$0xff] }
  0x2a   : > { %v647_v50 = vld [vmem:[%s3146_s25 + $0x320] sm:$0xff]  ;;  %644 = vst [vmem:[%s3154_s26 + $0x180] sm:$0xff] %v643_v48  ;;  %646 = vst [vmem:[%s3154_s26 + $0x188] sm:$0xff] %v645_v49  ;;  %v649_v51 = vld [vmem:[%s3146_s25 + $0x330] sm:$0xff] }
  0x2b   : > { %648 = vst [vmem:[%s3154_s26 + $0x190] sm:$0xff] %v647_v50  ;;  %v651_v52 = vld [vmem:[%s3146_s25 + $0x340] sm:$0xff]  ;;  %v653_v53 = vld [vmem:[%s3146_s25 + $0x350] sm:$0xff]  ;;  %650 = vst [vmem:[%s3154_s26 + $0x198] sm:$0xff] %v649_v51 }
  0x2c   : > { %652 = vst [vmem:[%s3154_s26 + $0x1a0] sm:$0xff] %v651_v52  ;;  %654 = vst [vmem:[%s3154_s26 + $0x1a8] sm:$0xff] %v653_v53  ;;  %v655_v54 = vld [vmem:[%s3146_s25 + $0x360] sm:$0xff]  ;;  %v657_v55 = vld [vmem:[%s3146_s25 + $0x370] sm:$0xff] }
  0x2d   : > { %v659_v56 = vld [vmem:[%s3146_s25 + $0x380] sm:$0xff]  ;;  %656 = vst [vmem:[%s3154_s26 + $0x1b0] sm:$0xff] %v655_v54  ;;  %658 = vst [vmem:[%s3154_s26 + $0x1b8] sm:$0xff] %v657_v55  ;;  %v661_v57 = vld [vmem:[%s3146_s25 + $0x390] sm:$0xff] }
  0x2e   : > { %660 = vst [vmem:[%s3154_s26 + $0x1c0] sm:$0xff] %v659_v56  ;;  %v663_v58 = vld [vmem:[%s3146_s25 + $0x3a0] sm:$0xff]  ;;  %v665_v59 = vld [vmem:[%s3146_s25 + $0x3b0] sm:$0xff]  ;;  %662 = vst [vmem:[%s3154_s26 + $0x1c8] sm:$0xff] %v661_v57 }
  0x2f   : > { %664 = vst [vmem:[%s3154_s26 + $0x1d0] sm:$0xff] %v663_v58  ;;  %666 = vst [vmem:[%s3154_s26 + $0x1d8] sm:$0xff] %v665_v59  ;;  %v667_v60 = vld [vmem:[%s3146_s25 + $0x3c0] sm:$0xff]  ;;  %v669_v61 = vld [vmem:[%s3146_s25 + $0x3d0] sm:$0xff] }
  0x30   : > { %v671_v62 = vld [vmem:[%s3146_s25 + $0x3e0] sm:$0xff]  ;;  %668 = vst [vmem:[%s3154_s26 + $0x1e0] sm:$0xff] %v667_v60  ;;  %670 = vst [vmem:[%s3154_s26 + $0x1e8] sm:$0xff] %v669_v61  ;;  %v673_v63 = vld [vmem:[%s3146_s25 + $0x3f0] sm:$0xff] }
  0x31   : > { %672 = vst [vmem:[%s3154_s26 + $0x1f0] sm:$0xff] %v671_v62  ;;  %v675_v0 = vld [vmem:[%s3146_s25 + $0x400] sm:$0xff]  ;;  %v677_v1 = vld [vmem:[%s3146_s25 + $0x410] sm:$0xff]  ;;  %674 = vst [vmem:[%s3154_s26 + $0x1f8] sm:$0xff] %v673_v63 }
  0x32   : > { %676 = vst [vmem:[%s3154_s26 + $0x200] sm:$0xff] %v675_v0  ;;  %678 = vst [vmem:[%s3154_s26 + $0x208] sm:$0xff] %v677_v1  ;;  %v679_v2 = vld [vmem:[%s3146_s25 + $0x420] sm:$0xff]  ;;  %v681_v3 = vld [vmem:[%s3146_s25 + $0x430] sm:$0xff] }
  0x33   : > { %v683_v4 = vld [vmem:[%s3146_s25 + $0x440] sm:$0xff]  ;;  %680 = vst [vmem:[%s3154_s26 + $0x210] sm:$0xff] %v679_v2  ;;  %682 = vst [vmem:[%s3154_s26 + $0x218] sm:$0xff] %v681_v3  ;;  %v685_v5 = vld [vmem:[%s3146_s25 + $0x450] sm:$0xff] }
  0x34   : > { %684 = vst [vmem:[%s3154_s26 + $0x220] sm:$0xff] %v683_v4  ;;  %v687_v6 = vld [vmem:[%s3146_s25 + $0x460] sm:$0xff]  ;;  %v689_v7 = vld [vmem:[%s3146_s25 + $0x470] sm:$0xff]  ;;  %686 = vst [vmem:[%s3154_s26 + $0x228] sm:$0xff] %v685_v5 }
  0x35   : > { %688 = vst [vmem:[%s3154_s26 + $0x230] sm:$0xff] %v687_v6  ;;  %690 = vst [vmem:[%s3154_s26 + $0x238] sm:$0xff] %v689_v7  ;;  %v691_v8 = vld [vmem:[%s3146_s25 + $0x480] sm:$0xff]  ;;  %v693_v9 = vld [vmem:[%s3146_s25 + $0x490] sm:$0xff] }
  0x36   : > { %v695_v10 = vld [vmem:[%s3146_s25 + $0x4a0] sm:$0xff]  ;;  %692 = vst [vmem:[%s3154_s26 + $0x240] sm:$0xff] %v691_v8  ;;  %694 = vst [vmem:[%s3154_s26 + $0x248] sm:$0xff] %v693_v9  ;;  %v697_v11 = vld [vmem:[%s3146_s25 + $0x4b0] sm:$0xff] }
  0x37   : > { %696 = vst [vmem:[%s3154_s26 + $0x250] sm:$0xff] %v695_v10  ;;  %v699_v12 = vld [vmem:[%s3146_s25 + $0x4c0] sm:$0xff]  ;;  %v701_v13 = vld [vmem:[%s3146_s25 + $0x4d0] sm:$0xff]  ;;  %698 = vst [vmem:[%s3154_s26 + $0x258] sm:$0xff] %v697_v11 }
  0x38   : > { %700 = vst [vmem:[%s3154_s26 + $0x260] sm:$0xff] %v699_v12  ;;  %702 = vst [vmem:[%s3154_s26 + $0x268] sm:$0xff] %v701_v13  ;;  %v703_v14 = vld [vmem:[%s3146_s25 + $0x4e0] sm:$0xff]  ;;  %v705_v15 = vld [vmem:[%s3146_s25 + $0x4f0] sm:$0xff] }
  0x39   : > { %v707_v16 = vld [vmem:[%s3146_s25 + $0x500] sm:$0xff]  ;;  %704 = vst [vmem:[%s3154_s26 + $0x270] sm:$0xff] %v703_v14  ;;  %706 = vst [vmem:[%s3154_s26 + $0x278] sm:$0xff] %v705_v15  ;;  %v709_v17 = vld [vmem:[%s3146_s25 + $0x510] sm:$0xff] }
  0x3a   : > { %708 = vst [vmem:[%s3154_s26 + $0x280] sm:$0xff] %v707_v16  ;;  %v711_v18 = vld [vmem:[%s3146_s25 + $0x520] sm:$0xff]  ;;  %v713_v19 = vld [vmem:[%s3146_s25 + $0x530] sm:$0xff]  ;;  %710 = vst [vmem:[%s3154_s26 + $0x288] sm:$0xff] %v709_v17 }
  0x3b   : > { %712 = vst [vmem:[%s3154_s26 + $0x290] sm:$0xff] %v711_v18  ;;  %714 = vst [vmem:[%s3154_s26 + $0x298] sm:$0xff] %v713_v19  ;;  %v715_v20 = vld [vmem:[%s3146_s25 + $0x540] sm:$0xff]  ;;  %v717_v21 = vld [vmem:[%s3146_s25 + $0x550] sm:$0xff] }
  0x3c   : > { %v719_v22 = vld [vmem:[%s3146_s25 + $0x560] sm:$0xff]  ;;  %716 = vst [vmem:[%s3154_s26 + $0x2a0] sm:$0xff] %v715_v20  ;;  %718 = vst [vmem:[%s3154_s26 + $0x2a8] sm:$0xff] %v717_v21  ;;  %v721_v23 = vld [vmem:[%s3146_s25 + $0x570] sm:$0xff] }
  0x3d   : > { %720 = vst [vmem:[%s3154_s26 + $0x2b0] sm:$0xff] %v719_v22  ;;  %v723_v24 = vld [vmem:[%s3146_s25 + $0x580] sm:$0xff]  ;;  %v725_v25 = vld [vmem:[%s3146_s25 + $0x590] sm:$0xff]  ;;  %722 = vst [vmem:[%s3154_s26 + $0x2b8] sm:$0xff] %v721_v23 }
  0x3e   : > { %724 = vst [vmem:[%s3154_s26 + $0x2c0] sm:$0xff] %v723_v24  ;;  %726 = vst [vmem:[%s3154_s26 + $0x2c8] sm:$0xff] %v725_v25  ;;  %v727_v26 = vld [vmem:[%s3146_s25 + $0x5a0] sm:$0xff]  ;;  %v729_v27 = vld [vmem:[%s3146_s25 + $0x5b0] sm:$0xff] }
  0x3f   : > { %v731_v28 = vld [vmem:[%s3146_s25 + $0x5c0] sm:$0xff]  ;;  %728 = vst [vmem:[%s3154_s26 + $0x2d0] sm:$0xff] %v727_v26  ;;  %730 = vst [vmem:[%s3154_s26 + $0x2d8] sm:$0xff] %v729_v27  ;;  %v733_v29 = vld [vmem:[%s3146_s25 + $0x5d0] sm:$0xff] }
  0x40   : > { %732 = vst [vmem:[%s3154_s26 + $0x2e0] sm:$0xff] %v731_v28  ;;  %v735_v30 = vld [vmem:[%s3146_s25 + $0x5e0] sm:$0xff]  ;;  %v737_v31 = vld [vmem:[%s3146_s25 + $0x5f0] sm:$0xff]  ;;  %734 = vst [vmem:[%s3154_s26 + $0x2e8] sm:$0xff] %v733_v29 }
  0x41   : > { %736 = vst [vmem:[%s3154_s26 + $0x2f0] sm:$0xff] %v735_v30  ;;  %738 = vst [vmem:[%s3154_s26 + $0x2f8] sm:$0xff] %v737_v31  ;;  %v739_v32 = vld [vmem:[%s3146_s25 + $0x600] sm:$0xff]  ;;  %v741_v33 = vld [vmem:[%s3146_s25 + $0x610] sm:$0xff] }
  0x42   : > { %v743_v34 = vld [vmem:[%s3146_s25 + $0x620] sm:$0xff]  ;;  %740 = vst [vmem:[%s3154_s26 + $0x300] sm:$0xff] %v739_v32  ;;  %742 = vst [vmem:[%s3154_s26 + $0x308] sm:$0xff] %v741_v33  ;;  %v745_v35 = vld [vmem:[%s3146_s25 + $0x630] sm:$0xff] }
  0x43   : > { %744 = vst [vmem:[%s3154_s26 + $0x310] sm:$0xff] %v743_v34  ;;  %v747_v36 = vld [vmem:[%s3146_s25 + $0x640] sm:$0xff]  ;;  %v749_v37 = vld [vmem:[%s3146_s25 + $0x650] sm:$0xff]  ;;  %746 = vst [vmem:[%s3154_s26 + $0x318] sm:$0xff] %v745_v35 }
  0x44   : > { %748 = vst [vmem:[%s3154_s26 + $0x320] sm:$0xff] %v747_v36  ;;  %750 = vst [vmem:[%s3154_s26 + $0x328] sm:$0xff] %v749_v37  ;;  %v751_v38 = vld [vmem:[%s3146_s25 + $0x660] sm:$0xff]  ;;  %v753_v39 = vld [vmem:[%s3146_s25 + $0x670] sm:$0xff] }
  0x45   : > { %v755_v40 = vld [vmem:[%s3146_s25 + $0x680] sm:$0xff]  ;;  %752 = vst [vmem:[%s3154_s26 + $0x330] sm:$0xff] %v751_v38  ;;  %754 = vst [vmem:[%s3154_s26 + $0x338] sm:$0xff] %v753_v39  ;;  %v757_v41 = vld [vmem:[%s3146_s25 + $0x690] sm:$0xff] }
  0x46   : > { %756 = vst [vmem:[%s3154_s26 + $0x340] sm:$0xff] %v755_v40  ;;  %v759_v42 = vld [vmem:[%s3146_s25 + $0x6a0] sm:$0xff]  ;;  %v761_v43 = vld [vmem:[%s3146_s25 + $0x6b0] sm:$0xff]  ;;  %758 = vst [vmem:[%s3154_s26 + $0x348] sm:$0xff] %v757_v41 }
  0x47   : > { %760 = vst [vmem:[%s3154_s26 + $0x350] sm:$0xff] %v759_v42  ;;  %762 = vst [vmem:[%s3154_s26 + $0x358] sm:$0xff] %v761_v43  ;;  %v763_v44 = vld [vmem:[%s3146_s25 + $0x6c0] sm:$0xff]  ;;  %v765_v45 = vld [vmem:[%s3146_s25 + $0x6d0] sm:$0xff] }
  0x48   : > { %v767_v46 = vld [vmem:[%s3146_s25 + $0x6e0] sm:$0xff]  ;;  %764 = vst [vmem:[%s3154_s26 + $0x360] sm:$0xff] %v763_v44  ;;  %766 = vst [vmem:[%s3154_s26 + $0x368] sm:$0xff] %v765_v45  ;;  %v769_v47 = vld [vmem:[%s3146_s25 + $0x6f0] sm:$0xff] }
  0x49   : > { %768 = vst [vmem:[%s3154_s26 + $0x370] sm:$0xff] %v767_v46  ;;  %v771_v48 = vld [vmem:[%s3146_s25 + $0x700] sm:$0xff]  ;;  %v773_v49 = vld [vmem:[%s3146_s25 + $0x710] sm:$0xff]  ;;  %770 = vst [vmem:[%s3154_s26 + $0x378] sm:$0xff] %v769_v47 }
  0x4a   : > { %772 = vst [vmem:[%s3154_s26 + $0x380] sm:$0xff] %v771_v48  ;;  %774 = vst [vmem:[%s3154_s26 + $0x388] sm:$0xff] %v773_v49  ;;  %v775_v50 = vld [vmem:[%s3146_s25 + $0x720] sm:$0xff]  ;;  %v777_v51 = vld [vmem:[%s3146_s25 + $0x730] sm:$0xff] }
  0x4b   : > { %v779_v52 = vld [vmem:[%s3146_s25 + $0x740] sm:$0xff]  ;;  %776 = vst [vmem:[%s3154_s26 + $0x390] sm:$0xff] %v775_v50  ;;  %778 = vst [vmem:[%s3154_s26 + $0x398] sm:$0xff] %v777_v51  ;;  %v781_v53 = vld [vmem:[%s3146_s25 + $0x750] sm:$0xff] }
  0x4c   : > { %780 = vst [vmem:[%s3154_s26 + $0x3a0] sm:$0xff] %v779_v52  ;;  %v783_v54 = vld [vmem:[%s3146_s25 + $0x760] sm:$0xff]  ;;  %v785_v55 = vld [vmem:[%s3146_s25 + $0x770] sm:$0xff]  ;;  %782 = vst [vmem:[%s3154_s26 + $0x3a8] sm:$0xff] %v781_v53 }
  0x4d   : > { %784 = vst [vmem:[%s3154_s26 + $0x3b0] sm:$0xff] %v783_v54  ;;  %786 = vst [vmem:[%s3154_s26 + $0x3b8] sm:$0xff] %v785_v55  ;;  %v787_v56 = vld [vmem:[%s3146_s25 + $0x780] sm:$0xff]  ;;  %v789_v57 = vld [vmem:[%s3146_s25 + $0x790] sm:$0xff] }
  0x4e   : > { %v791_v58 = vld [vmem:[%s3146_s25 + $0x7a0] sm:$0xff]  ;;  %788 = vst [vmem:[%s3154_s26 + $0x3c0] sm:$0xff] %v787_v56  ;;  %790 = vst [vmem:[%s3154_s26 + $0x3c8] sm:$0xff] %v789_v57  ;;  %v793_v59 = vld [vmem:[%s3146_s25 + $0x7b0] sm:$0xff] }
  0x4f   : > { %792 = vst [vmem:[%s3154_s26 + $0x3d0] sm:$0xff] %v791_v58  ;;  %v795_v60 = vld [vmem:[%s3146_s25 + $0x7c0] sm:$0xff]  ;;  %v797_v61 = vld [vmem:[%s3146_s25 + $0x7d0] sm:$0xff]  ;;  %794 = vst [vmem:[%s3154_s26 + $0x3d8] sm:$0xff] %v793_v59 }
  0x50   : > { %796 = vst [vmem:[%s3154_s26 + $0x3e0] sm:$0xff] %v795_v60  ;;  %798 = vst [vmem:[%s3154_s26 + $0x3e8] sm:$0xff] %v797_v61  ;;  %v799_v62 = vld [vmem:[%s3146_s25 + $0x7e0] sm:$0xff]  ;;  %v801_v63 = vld [vmem:[%s3146_s25 + $0x7f0] sm:$0xff] }
  0x51   : > { %v803_v0 = vld [vmem:[%s3146_s25 + $0x800] sm:$0xff]  ;;  %800 = vst [vmem:[%s3154_s26 + $0x3f0] sm:$0xff] %v799_v62  ;;  %802 = vst [vmem:[%s3154_s26 + $0x3f8] sm:$0xff] %v801_v63  ;;  %v805_v1 = vld [vmem:[%s3146_s25 + $0x810] sm:$0xff] }
  0x52   : > { %804 = vst [vmem:[%s3154_s26 + $0x400] sm:$0xff] %v803_v0  ;;  %v807_v2 = vld [vmem:[%s3146_s25 + $0x820] sm:$0xff]  ;;  %v809_v3 = vld [vmem:[%s3146_s25 + $0x830] sm:$0xff]  ;;  %806 = vst [vmem:[%s3154_s26 + $0x408] sm:$0xff] %v805_v1 }
  0x53   : > { %808 = vst [vmem:[%s3154_s26 + $0x410] sm:$0xff] %v807_v2  ;;  %810 = vst [vmem:[%s3154_s26 + $0x418] sm:$0xff] %v809_v3  ;;  %v811_v4 = vld [vmem:[%s3146_s25 + $0x840] sm:$0xff]  ;;  %v813_v5 = vld [vmem:[%s3146_s25 + $0x850] sm:$0xff] }
  0x54   : > { %v815_v6 = vld [vmem:[%s3146_s25 + $0x860] sm:$0xff]  ;;  %812 = vst [vmem:[%s3154_s26 + $0x420] sm:$0xff] %v811_v4  ;;  %814 = vst [vmem:[%s3154_s26 + $0x428] sm:$0xff] %v813_v5  ;;  %v817_v7 = vld [vmem:[%s3146_s25 + $0x870] sm:$0xff] }
  0x55   : > { %816 = vst [vmem:[%s3154_s26 + $0x430] sm:$0xff] %v815_v6  ;;  %v819_v8 = vld [vmem:[%s3146_s25 + $0x880] sm:$0xff]  ;;  %v821_v9 = vld [vmem:[%s3146_s25 + $0x890] sm:$0xff]  ;;  %818 = vst [vmem:[%s3154_s26 + $0x438] sm:$0xff] %v817_v7 }
  0x56   : > { %820 = vst [vmem:[%s3154_s26 + $0x440] sm:$0xff] %v819_v8  ;;  %822 = vst [vmem:[%s3154_s26 + $0x448] sm:$0xff] %v821_v9  ;;  %v823_v10 = vld [vmem:[%s3146_s25 + $0x8a0] sm:$0xff]  ;;  %v825_v11 = vld [vmem:[%s3146_s25 + $0x8b0] sm:$0xff] }
  0x57   : > { %v827_v12 = vld [vmem:[%s3146_s25 + $0x8c0] sm:$0xff]  ;;  %824 = vst [vmem:[%s3154_s26 + $0x450] sm:$0xff] %v823_v10  ;;  %826 = vst [vmem:[%s3154_s26 + $0x458] sm:$0xff] %v825_v11  ;;  %v829_v13 = vld [vmem:[%s3146_s25 + $0x8d0] sm:$0xff] }
  0x58   : > { %828 = vst [vmem:[%s3154_s26 + $0x460] sm:$0xff] %v827_v12  ;;  %v831_v14 = vld [vmem:[%s3146_s25 + $0x8e0] sm:$0xff]  ;;  %v833_v15 = vld [vmem:[%s3146_s25 + $0x8f0] sm:$0xff]  ;;  %830 = vst [vmem:[%s3154_s26 + $0x468] sm:$0xff] %v829_v13 }
  0x59   : > { %832 = vst [vmem:[%s3154_s26 + $0x470] sm:$0xff] %v831_v14  ;;  %834 = vst [vmem:[%s3154_s26 + $0x478] sm:$0xff] %v833_v15  ;;  %v835_v16 = vld [vmem:[%s3146_s25 + $0x900] sm:$0xff]  ;;  %v837_v17 = vld [vmem:[%s3146_s25 + $0x910] sm:$0xff] }
  0x5a   : > { %v839_v18 = vld [vmem:[%s3146_s25 + $0x920] sm:$0xff]  ;;  %836 = vst [vmem:[%s3154_s26 + $0x480] sm:$0xff] %v835_v16  ;;  %838 = vst [vmem:[%s3154_s26 + $0x488] sm:$0xff] %v837_v17  ;;  %v841_v19 = vld [vmem:[%s3146_s25 + $0x930] sm:$0xff] }
  0x5b   : > { %840 = vst [vmem:[%s3154_s26 + $0x490] sm:$0xff] %v839_v18  ;;  %v843_v20 = vld [vmem:[%s3146_s25 + $0x940] sm:$0xff]  ;;  %v845_v21 = vld [vmem:[%s3146_s25 + $0x950] sm:$0xff]  ;;  %842 = vst [vmem:[%s3154_s26 + $0x498] sm:$0xff] %v841_v19 }
  0x5c   : > { %844 = vst [vmem:[%s3154_s26 + $0x4a0] sm:$0xff] %v843_v20  ;;  %846 = vst [vmem:[%s3154_s26 + $0x4a8] sm:$0xff] %v845_v21  ;;  %v847_v22 = vld [vmem:[%s3146_s25 + $0x960] sm:$0xff]  ;;  %v849_v23 = vld [vmem:[%s3146_s25 + $0x970] sm:$0xff] }
  0x5d   : > { %v851_v24 = vld [vmem:[%s3146_s25 + $0x980] sm:$0xff]  ;;  %848 = vst [vmem:[%s3154_s26 + $0x4b0] sm:$0xff] %v847_v22  ;;  %850 = vst [vmem:[%s3154_s26 + $0x4b8] sm:$0xff] %v849_v23  ;;  %v853_v25 = vld [vmem:[%s3146_s25 + $0x990] sm:$0xff] }
  0x5e   : > { %852 = vst [vmem:[%s3154_s26 + $0x4c0] sm:$0xff] %v851_v24  ;;  %v855_v26 = vld [vmem:[%s3146_s25 + $0x9a0] sm:$0xff]  ;;  %v857_v27 = vld [vmem:[%s3146_s25 + $0x9b0] sm:$0xff]  ;;  %854 = vst [vmem:[%s3154_s26 + $0x4c8] sm:$0xff] %v853_v25 }
  0x5f   : > { %856 = vst [vmem:[%s3154_s26 + $0x4d0] sm:$0xff] %v855_v26  ;;  %858 = vst [vmem:[%s3154_s26 + $0x4d8] sm:$0xff] %v857_v27  ;;  %v859_v28 = vld [vmem:[%s3146_s25 + $0x9c0] sm:$0xff]  ;;  %v861_v29 = vld [vmem:[%s3146_s25 + $0x9d0] sm:$0xff] }
  0x60   : > { %v863_v30 = vld [vmem:[%s3146_s25 + $0x9e0] sm:$0xff]  ;;  %860 = vst [vmem:[%s3154_s26 + $0x4e0] sm:$0xff] %v859_v28  ;;  %862 = vst [vmem:[%s3154_s26 + $0x4e8] sm:$0xff] %v861_v29  ;;  %v865_v31 = vld [vmem:[%s3146_s25 + $0x9f0] sm:$0xff] }
  0x61   : > { %864 = vst [vmem:[%s3154_s26 + $0x4f0] sm:$0xff] %v863_v30  ;;  %v867_v32 = vld [vmem:[%s3146_s25 + $0xa00] sm:$0xff]  ;;  %v869_v33 = vld [vmem:[%s3146_s25 + $0xa10] sm:$0xff]  ;;  %866 = vst [vmem:[%s3154_s26 + $0x4f8] sm:$0xff] %v865_v31 }
  0x62   : > { %868 = vst [vmem:[%s3154_s26 + $0x500] sm:$0xff] %v867_v32  ;;  %870 = vst [vmem:[%s3154_s26 + $0x508] sm:$0xff] %v869_v33  ;;  %v871_v34 = vld [vmem:[%s3146_s25 + $0xa20] sm:$0xff]  ;;  %v873_v35 = vld [vmem:[%s3146_s25 + $0xa30] sm:$0xff] }
  0x63   : > { %v875_v36 = vld [vmem:[%s3146_s25 + $0xa40] sm:$0xff]  ;;  %872 = vst [vmem:[%s3154_s26 + $0x510] sm:$0xff] %v871_v34  ;;  %874 = vst [vmem:[%s3154_s26 + $0x518] sm:$0xff] %v873_v35  ;;  %v877_v37 = vld [vmem:[%s3146_s25 + $0xa50] sm:$0xff] }
  0x64   : > { %876 = vst [vmem:[%s3154_s26 + $0x520] sm:$0xff] %v875_v36  ;;  %v879_v38 = vld [vmem:[%s3146_s25 + $0xa60] sm:$0xff]  ;;  %v881_v39 = vld [vmem:[%s3146_s25 + $0xa70] sm:$0xff]  ;;  %878 = vst [vmem:[%s3154_s26 + $0x528] sm:$0xff] %v877_v37 }
  0x65   : > { %880 = vst [vmem:[%s3154_s26 + $0x530] sm:$0xff] %v879_v38  ;;  %882 = vst [vmem:[%s3154_s26 + $0x538] sm:$0xff] %v881_v39  ;;  %v883_v40 = vld [vmem:[%s3146_s25 + $0xa80] sm:$0xff]  ;;  %v885_v41 = vld [vmem:[%s3146_s25 + $0xa90] sm:$0xff] }
  0x66   : > { %v887_v42 = vld [vmem:[%s3146_s25 + $0xaa0] sm:$0xff]  ;;  %884 = vst [vmem:[%s3154_s26 + $0x540] sm:$0xff] %v883_v40  ;;  %886 = vst [vmem:[%s3154_s26 + $0x548] sm:$0xff] %v885_v41  ;;  %v889_v43 = vld [vmem:[%s3146_s25 + $0xab0] sm:$0xff] }
  0x67   : > { %888 = vst [vmem:[%s3154_s26 + $0x550] sm:$0xff] %v887_v42  ;;  %v891_v44 = vld [vmem:[%s3146_s25 + $0xac0] sm:$0xff]  ;;  %v893_v45 = vld [vmem:[%s3146_s25 + $0xad0] sm:$0xff]  ;;  %890 = vst [vmem:[%s3154_s26 + $0x558] sm:$0xff] %v889_v43 }
  0x68   : > { %892 = vst [vmem:[%s3154_s26 + $0x560] sm:$0xff] %v891_v44  ;;  %894 = vst [vmem:[%s3154_s26 + $0x568] sm:$0xff] %v893_v45  ;;  %v895_v46 = vld [vmem:[%s3146_s25 + $0xae0] sm:$0xff]  ;;  %v897_v47 = vld [vmem:[%s3146_s25 + $0xaf0] sm:$0xff] }
  0x69   : > { %v899_v48 = vld [vmem:[%s3146_s25 + $0xb00] sm:$0xff]  ;;  %896 = vst [vmem:[%s3154_s26 + $0x570] sm:$0xff] %v895_v46  ;;  %898 = vst [vmem:[%s3154_s26 + $0x578] sm:$0xff] %v897_v47  ;;  %v901_v49 = vld [vmem:[%s3146_s25 + $0xb10] sm:$0xff] }
  0x6a   : > { %900 = vst [vmem:[%s3154_s26 + $0x580] sm:$0xff] %v899_v48  ;;  %v903_v50 = vld [vmem:[%s3146_s25 + $0xb20] sm:$0xff]  ;;  %v905_v51 = vld [vmem:[%s3146_s25 + $0xb30] sm:$0xff]  ;;  %902 = vst [vmem:[%s3154_s26 + $0x588] sm:$0xff] %v901_v49 }
  0x6b   : > { %904 = vst [vmem:[%s3154_s26 + $0x590] sm:$0xff] %v903_v50  ;;  %906 = vst [vmem:[%s3154_s26 + $0x598] sm:$0xff] %v905_v51  ;;  %v907_v52 = vld [vmem:[%s3146_s25 + $0xb40] sm:$0xff]  ;;  %v909_v53 = vld [vmem:[%s3146_s25 + $0xb50] sm:$0xff] }
  0x6c   : > { %v911_v54 = vld [vmem:[%s3146_s25 + $0xb60] sm:$0xff]  ;;  %908 = vst [vmem:[%s3154_s26 + $0x5a0] sm:$0xff] %v907_v52  ;;  %910 = vst [vmem:[%s3154_s26 + $0x5a8] sm:$0xff] %v909_v53  ;;  %v913_v55 = vld [vmem:[%s3146_s25 + $0xb70] sm:$0xff] }
  0x6d   : > { %912 = vst [vmem:[%s3154_s26 + $0x5b0] sm:$0xff] %v911_v54  ;;  %v915_v56 = vld [vmem:[%s3146_s25 + $0xb80] sm:$0xff]  ;;  %v917_v57 = vld [vmem:[%s3146_s25 + $0xb90] sm:$0xff]  ;;  %914 = vst [vmem:[%s3154_s26 + $0x5b8] sm:$0xff] %v913_v55 }
  0x6e   : > { %916 = vst [vmem:[%s3154_s26 + $0x5c0] sm:$0xff] %v915_v56  ;;  %918 = vst [vmem:[%s3154_s26 + $0x5c8] sm:$0xff] %v917_v57  ;;  %v919_v58 = vld [vmem:[%s3146_s25 + $0xba0] sm:$0xff]  ;;  %v921_v59 = vld [vmem:[%s3146_s25 + $0xbb0] sm:$0xff] }
  0x6f   : > { %v923_v60 = vld [vmem:[%s3146_s25 + $0xbc0] sm:$0xff]  ;;  %920 = vst [vmem:[%s3154_s26 + $0x5d0] sm:$0xff] %v919_v58  ;;  %922 = vst [vmem:[%s3154_s26 + $0x5d8] sm:$0xff] %v921_v59  ;;  %v925_v61 = vld [vmem:[%s3146_s25 + $0xbd0] sm:$0xff] }
  0x70   : > { %924 = vst [vmem:[%s3154_s26 + $0x5e0] sm:$0xff] %v923_v60  ;;  %v927_v62 = vld [vmem:[%s3146_s25 + $0xbe0] sm:$0xff]  ;;  %v929_v63 = vld [vmem:[%s3146_s25 + $0xbf0] sm:$0xff]  ;;  %926 = vst [vmem:[%s3154_s26 + $0x5e8] sm:$0xff] %v925_v61 }
  0x71   : > { %928 = vst [vmem:[%s3154_s26 + $0x5f0] sm:$0xff] %v927_v62  ;;  %930 = vst [vmem:[%s3154_s26 + $0x5f8] sm:$0xff] %v929_v63 }
  0x72 PF: > { %p2507_p5 = scmp.ge.s32.totalorder %s3089_s14, 1  ;;  %p935_p6 = scmp.lt.s32.totalorder %s3089_s14, 3 }
  0x74   : > { %p936_p7 = pnand %p2507_p5, %p935_p6 }
  0x75   : > { %s942_s27 = sand.u32 (!%p936_p7), 1, %s3081_s12   ;;  %v3540_v0 = vld [vmem:[%s3803_s0] sm:$0xff] (!%p936_p7)  ;;  %v3545_v1 = vld [vmem:[%s3803_s0 + $0x18] sm:$0xff] (!%p936_p7)  ;;  %s2508_s22 = sshll.u32 (!%p936_p7), %s2501_s15, 1 }
  0x76   : > { %939 = sbr.rel (%p936_p7) target bundleno = 538 (0x21a), region = 66  ;;  %v2511_v2 = vcombine.high (!%p936_p7), %v3540_v0, %v3540_v0  ;;  %v2517_v3 = vcombine.high (!%p936_p7), %v3545_v1, %v3545_v1  ;;  %p967_p8 = scmp.lt.s32.totalorder (!%p936_p7), %s2508_s22, 3 }
  0x77   : > { %s2740_s5 = smul.u32 (!%p936_p7), 1536, %s942_s27 }
  0x78   : > { %2210 = vmatprep.mubr.bf16.mxu1 (!%p936_p7), %v2511_v2  ;;  %2333 = vmatprep.mubr.bf16.mxu0 (!%p936_p7), %v2517_v3 }
  0x79   : > { %s3551_s6 = scalar_lea.vmem (!%p936_p7), [#allocation2], %s2740_s5 }
  0x7a   : > { %v2767_v4 = vld [vmem:[%s3551_s6 + $0x4] ss:$8 sps:$4 sm:$0xff] (!%p936_p7)   ;;  %v2771_v6 = vld [vmem:[%s3551_s6] ss:$8 sps:$4 sm:$0xff] (!%p936_p7)   ;;  %v2773_v8 = vld [vmem:[%s3551_s6 + $0x14] ss:$8 sps:$4 sm:$0xff] (!%p936_p7)  }
  0x7b   : > { %v2769_v5 = vld [vmem:[%s3551_s6 + $0x304] ss:$8 sps:$4 sm:$0xff] (!%p936_p7)   ;;  %2178 = vmatprep.subr.bf16.mxu1 (!%p936_p7), %v2767_v4  ;;  %v2772_v7 = vld [vmem:[%s3551_s6 + $0x300] ss:$8 sps:$4 sm:$0xff] (!%p936_p7)   ;;  %v2775_v9 = vld [vmem:[%s3551_s6 + $0x314] ss:$8 sps:$4 sm:$0xff] (!%p936_p7)  }
  0x7c   : > { %2301 = vmatprep.subr.bf16.mxu0 (!%p936_p7), %v2769_v5  ;;  %2179 = vmatpush1.bf16.msra.mxu1 (!%p936_p7), %v2771_v6  ;;  %v2777_v10 = vld [vmem:[%s3551_s6 + $0x10] ss:$8 sps:$4 sm:$0xff] (!%p936_p7)   ;;  %v2779_v12 = vld [vmem:[%s3551_s6 + $0x24] ss:$8 sps:$4 sm:$0xff] (!%p936_p7)   ;;  %v2783_v14 = vld [vmem:[%s3551_s6 + $0x20] ss:$8 sps:$4 sm:$0xff] (!%p936_p7)  }
  0x7d   : > { %2302 = vmatpush1.bf16.msra.mxu0 %v2772_v7  ;;  %2180 = vmatprep.subr.bf16.mxu1 %v2773_v8  ;;  %v2778_v11 = vld [vmem:[%s3551_s6 + $0x310] ss:$8 sps:$4 sm:$0xff]   ;;  %v2781_v13 = vld [vmem:[%s3551_s6 + $0x324] ss:$8 sps:$4 sm:$0xff]   ;;  %v2784_v15 = vld [vmem:[%s3551_s6 + $0x320] ss:$8 sps:$4 sm:$0xff]   ;;  %v2510_v8 = vcombine.low %v3540_v0, %v3540_v0 }
  0x7e   : > { %2303 = vmatprep.subr.bf16.mxu0 %v2775_v9  ;;  %v2785_v16 = vld [vmem:[%s3551_s6 + $0x34] ss:$8 sps:$4 sm:$0xff]   ;;  %v2789_v18 = vld [vmem:[%s3551_s6 + $0x30] ss:$8 sps:$4 sm:$0xff]   ;;  %v2791_v20 = vld [vmem:[%s3551_s6 + $0x44] ss:$8 sps:$4 sm:$0xff]  }
  0x7f   : > { %v2787_v17 = vld [vmem:[%s3551_s6 + $0x334] ss:$8 sps:$4 sm:$0xff]   ;;  %v2790_v19 = vld [vmem:[%s3551_s6 + $0x330] ss:$8 sps:$4 sm:$0xff]   ;;  %v2793_v21 = vld [vmem:[%s3551_s6 + $0x344] ss:$8 sps:$4 sm:$0xff]  }
  0x80   : > { %2181 = vmatpush1.bf16.msra.mxu1 %v2777_v10  ;;  %v2795_v22 = vld [vmem:[%s3551_s6 + $0x40] ss:$8 sps:$4 sm:$0xff]   ;;  %v2797_v24 = vld [vmem:[%s3551_s6 + $0x54] ss:$8 sps:$4 sm:$0xff]   ;;  %v2801_v26 = vld [vmem:[%s3551_s6 + $0x50] ss:$8 sps:$4 sm:$0xff]   ;;  %v2516_v10 = vcombine.low %v3545_v1, %v3545_v1 }
  0x81   : > { %2304 = vmatpush1.bf16.msra.mxu0 %v2778_v11  ;;  %2182 = vmatprep.subr.bf16.mxu1 %v2779_v12  ;;  %v2796_v23 = vld [vmem:[%s3551_s6 + $0x340] ss:$8 sps:$4 sm:$0xff]   ;;  %v2799_v25 = vld [vmem:[%s3551_s6 + $0x354] ss:$8 sps:$4 sm:$0xff]   ;;  %v2802_v27 = vld [vmem:[%s3551_s6 + $0x350] ss:$8 sps:$4 sm:$0xff]  }
  0x82   : > { %2305 = vmatprep.subr.bf16.mxu0 %v2781_v13  ;;  %v2803_v28 = vld [vmem:[%s3551_s6 + $0x64] ss:$8 sps:$4 sm:$0xff]   ;;  %v2807_v30 = vld [vmem:[%s3551_s6 + $0x60] ss:$8 sps:$4 sm:$0xff]   ;;  %v2809_v32 = vld [vmem:[%s3551_s6 + $0x74] ss:$8 sps:$4 sm:$0xff]  }
  0x83   : > { %v2805_v29 = vld [vmem:[%s3551_s6 + $0x364] ss:$8 sps:$4 sm:$0xff]   ;;  %v2808_v31 = vld [vmem:[%s3551_s6 + $0x360] ss:$8 sps:$4 sm:$0xff]   ;;  %v2811_v33 = vld [vmem:[%s3551_s6 + $0x374] ss:$8 sps:$4 sm:$0xff]  }
  0x84   : > { %2183 = vmatpush1.bf16.msra.mxu1 %v2783_v14  ;;  %v2813_v34 = vld [vmem:[%s3551_s6 + $0x70] ss:$8 sps:$4 sm:$0xff]   ;;  %v2815_v36 = vld [vmem:[%s3551_s6 + $0x84] ss:$8 sps:$4 sm:$0xff]   ;;  %v2819_v38 = vld [vmem:[%s3551_s6 + $0x80] ss:$8 sps:$4 sm:$0xff]  }
  0x85   : > { %2306 = vmatpush1.bf16.msra.mxu0 %v2784_v15  ;;  %2184 = vmatprep.subr.bf16.mxu1 %v2785_v16  ;;  %v2814_v35 = vld [vmem:[%s3551_s6 + $0x370] ss:$8 sps:$4 sm:$0xff]   ;;  %v2817_v37 = vld [vmem:[%s3551_s6 + $0x384] ss:$8 sps:$4 sm:$0xff]   ;;  %v2820_v39 = vld [vmem:[%s3551_s6 + $0x380] ss:$8 sps:$4 sm:$0xff]  }
  0x86   : > { %2307 = vmatprep.subr.bf16.mxu0 %v2787_v17  ;;  %v2821_v40 = vld [vmem:[%s3551_s6 + $0x94] ss:$8 sps:$4 sm:$0xff]   ;;  %v2825_v42 = vld [vmem:[%s3551_s6 + $0x90] ss:$8 sps:$4 sm:$0xff]   ;;  %v2827_v44 = vld [vmem:[%s3551_s6 + $0xa4] ss:$8 sps:$4 sm:$0xff]  }
  0x87   : > { %v2823_v41 = vld [vmem:[%s3551_s6 + $0x394] ss:$8 sps:$4 sm:$0xff]   ;;  %v2826_v43 = vld [vmem:[%s3551_s6 + $0x390] ss:$8 sps:$4 sm:$0xff]   ;;  %v2829_v45 = vld [vmem:[%s3551_s6 + $0x3a4] ss:$8 sps:$4 sm:$0xff]  }
  0x88   : > { %2185 = vmatpush1.bf16.msra.mxu1 %v2789_v18  ;;  %v2831_v46 = vld [vmem:[%s3551_s6 + $0xa0] ss:$8 sps:$4 sm:$0xff]   ;;  %v2833_v48 = vld [vmem:[%s3551_s6 + $0xb4] ss:$8 sps:$4 sm:$0xff]   ;;  %v2837_v50 = vld [vmem:[%s3551_s6 + $0xb0] ss:$8 sps:$4 sm:$0xff]  }
  0x89   : > { %2308 = vmatpush1.bf16.msra.mxu0 %v2790_v19  ;;  %2186 = vmatprep.subr.bf16.mxu1 %v2791_v20  ;;  %v2832_v47 = vld [vmem:[%s3551_s6 + $0x3a0] ss:$8 sps:$4 sm:$0xff]   ;;  %v2835_v49 = vld [vmem:[%s3551_s6 + $0x3b4] ss:$8 sps:$4 sm:$0xff]   ;;  %v2838_v51 = vld [vmem:[%s3551_s6 + $0x3b0] ss:$8 sps:$4 sm:$0xff]  }
  0x8a   : > { %2309 = vmatprep.subr.bf16.mxu0 %v2793_v21  ;;  %v2839_v52 = vld [vmem:[%s3551_s6 + $0xc4] ss:$8 sps:$4 sm:$0xff]   ;;  %v2843_v54 = vld [vmem:[%s3551_s6 + $0xc0] ss:$8 sps:$4 sm:$0xff]   ;;  %v2845_v56 = vld [vmem:[%s3551_s6 + $0xd4] ss:$8 sps:$4 sm:$0xff]  }
  0x8b   : > { %v2841_v53 = vld [vmem:[%s3551_s6 + $0x3c4] ss:$8 sps:$4 sm:$0xff]   ;;  %v2844_v55 = vld [vmem:[%s3551_s6 + $0x3c0] ss:$8 sps:$4 sm:$0xff]   ;;  %v2847_v57 = vld [vmem:[%s3551_s6 + $0x3d4] ss:$8 sps:$4 sm:$0xff]  }
  0x8c   : > { %2187 = vmatpush1.bf16.msra.mxu1 %v2795_v22  ;;  %v2849_v58 = vld [vmem:[%s3551_s6 + $0xd0] ss:$8 sps:$4 sm:$0xff]   ;;  %v2851_v60 = vld [vmem:[%s3551_s6 + $0xe4] ss:$8 sps:$4 sm:$0xff]   ;;  %v2855_v62 = vld [vmem:[%s3551_s6 + $0xe0] ss:$8 sps:$4 sm:$0xff]  }
  0x8d   : > { %2310 = vmatpush1.bf16.msra.mxu0 %v2796_v23  ;;  %2188 = vmatprep.subr.bf16.mxu1 %v2797_v24  ;;  %v2850_v59 = vld [vmem:[%s3551_s6 + $0x3d0] ss:$8 sps:$4 sm:$0xff]   ;;  %v2853_v61 = vld [vmem:[%s3551_s6 + $0x3e4] ss:$8 sps:$4 sm:$0xff]   ;;  %v2856_v63 = vld [vmem:[%s3551_s6 + $0x3e0] ss:$8 sps:$4 sm:$0xff]  }
  0x8e   : > { %2311 = vmatprep.subr.bf16.mxu0 %v2799_v25  ;;  %v2857_v2 = vld [vmem:[%s3551_s6 + $0xf4] ss:$8 sps:$4 sm:$0xff]   ;;  %v2861_v4 = vld [vmem:[%s3551_s6 + $0xf0] ss:$8 sps:$4 sm:$0xff]   ;;  %v2867_v6 = vld [vmem:[%s3551_s6 + $0x104] ss:$8 sps:$4 sm:$0xff]  }
  0x8f   : > { %v2859_v3 = vld [vmem:[%s3551_s6 + $0x3f4] ss:$8 sps:$4 sm:$0xff]   ;;  %v2862_v5 = vld [vmem:[%s3551_s6 + $0x3f0] ss:$8 sps:$4 sm:$0xff]   ;;  %v2872_v7 = vld [vmem:[%s3551_s6 + $0x404] ss:$8 sps:$4 sm:$0xff]  }
  0x90   : > { %2189 = vmatpush1.bf16.msra.mxu1 %v2801_v26  ;;  %v2865_v9 = vld [vmem:[%s3551_s6 + $0x100] ss:$8 sps:$4 sm:$0xff]   ;;  %v2875_v12 = vld [vmem:[%s3551_s6 + $0x114] ss:$8 sps:$4 sm:$0xff]   ;;  %v2873_v14 = vld [vmem:[%s3551_s6 + $0x110] ss:$8 sps:$4 sm:$0xff]  }
  0x91   : > { %2312 = vmatpush1.bf16.msra.mxu0 %v2802_v27  ;;  %2190 = vmatprep.subr.bf16.mxu1 %v2803_v28  ;;  %v2870_v11 = vld [vmem:[%s3551_s6 + $0x400] ss:$8 sps:$4 sm:$0xff]   ;;  %v2878_v13 = vld [vmem:[%s3551_s6 + $0x414] ss:$8 sps:$4 sm:$0xff]   ;;  %v2876_v0 = vld [vmem:[%s3551_s6 + $0x410] ss:$8 sps:$4 sm:$0xff]  }
  0x92   : > { %2313 = vmatprep.subr.bf16.mxu0 %v2805_v29  ;;  %v2881_v1 = vld [vmem:[%s3551_s6 + $0x124] ss:$8 sps:$4 sm:$0xff]   ;;  %v3091_v16 = vmov 0   ;;  %v2879_v17 = vld [vmem:[%s3551_s6 + $0x120] ss:$8 sps:$4 sm:$0xff]   ;;  %s3811_s22 = smov (!%p967_p8, %s2508_s22), 3 }
  0x93   : > { %v2884_v15 = vld [vmem:[%s3551_s6 + $0x424] ss:$8 sps:$4 sm:$0xff]   ;;  %2766 = vset.pattern.permute.xlu0 %v3091_v16  ;;  %v2882_v18 = vld [vmem:[%s3551_s6 + $0x420] ss:$8 sps:$4 sm:$0xff]   ;;  %v2887_v19 = vld [vmem:[%s3551_s6 + $0x134] ss:$8 sps:$4 sm:$0xff]  }
  0x94   : > { %2191 = vmatpush1.bf16.msra.mxu1 %v2807_v30  ;;  %v2890_v20 = vld [vmem:[%s3551_s6 + $0x434] ss:$8 sps:$4 sm:$0xff]   ;;  %v2885_v21 = vld [vmem:[%s3551_s6 + $0x130] ss:$8 sps:$4 sm:$0xff]   ;;  %v2893_v23 = vld [vmem:[%s3551_s6 + $0x144] ss:$8 sps:$4 sm:$0xff]  }
  0x95   : > { %2314 = vmatpush1.bf16.msra.mxu0 %v2808_v31  ;;  %2192 = vmatprep.subr.bf16.mxu1 %v2809_v32  ;;  %v2888_v22 = vld [vmem:[%s3551_s6 + $0x430] ss:$8 sps:$4 sm:$0xff]   ;;  %v2896_v24 = vld [vmem:[%s3551_s6 + $0x444] ss:$8 sps:$4 sm:$0xff]   ;;  %v2891_v25 = vld [vmem:[%s3551_s6 + $0x140] ss:$8 sps:$4 sm:$0xff]  }
  0x96   : > { %2315 = vmatprep.subr.bf16.mxu0 %v2811_v33  ;;  %v2894_v26 = vld [vmem:[%s3551_s6 + $0x440] ss:$8 sps:$4 sm:$0xff]   ;;  %v2899_v27 = vld [vmem:[%s3551_s6 + $0x154] ss:$8 sps:$4 sm:$0xff]   ;;  %v2897_v29 = vld [vmem:[%s3551_s6 + $0x150] ss:$8 sps:$4 sm:$0xff]  }
  0x97   : > { %v2902_v28 = vld [vmem:[%s3551_s6 + $0x454] ss:$8 sps:$4 sm:$0xff]   ;;  %v2900_v30 = vld [vmem:[%s3551_s6 + $0x450] ss:$8 sps:$4 sm:$0xff]   ;;  %v2905_v31 = vld [vmem:[%s3551_s6 + $0x164] ss:$8 sps:$4 sm:$0xff]  }
  0x98   : > { %2193 = vmatpush1.bf16.msra.mxu1 %v2813_v34  ;;  %v2908_v32 = vld [vmem:[%s3551_s6 + $0x464] ss:$8 sps:$4 sm:$0xff]   ;;  %v2970_v16 = vld [vmem:[%s3551_s6 + $0x500] ss:$8 sps:$4 sm:$0xff]   ;;  %s2509_s23 = sshll.u32 %s3811_s22, 2 }
  0x99   : > { %2316 = vmatpush1.bf16.msra.mxu0 %v2814_v35  ;;  %2194 = vmatprep.subr.bf16.mxu1 %v2815_v36  ;;  %v3650_v33 = vld [vmem:[%s3803_s0 + $0x8] sm:$0xff]  ;;  %v3657_v35 = vld [vmem:[%s3803_s0 + $0x20] sm:$0xff]  ;;  %s970_s24 = scalar_lea.vmem %s3806_s3, %s2509_s23 }
  0x9a   : > { %2317 = vmatprep.subr.bf16.mxu0 %v2817_v37  ;;  %v2513_v34 = vcombine.high %v3650_v33, %v3650_v33  ;;  %v2903_v36 = vld [vmem:[%s3551_s6 + $0x160] ss:$8 sps:$4 sm:$0xff]  }
  0x9b   : > { %v2906_v37 = vld [vmem:[%s3551_s6 + $0x460] ss:$8 sps:$4 sm:$0xff]  }
  0x9c   : > { %2195 = vmatpush1.bf16.msra.mxu1 %v2819_v38  ;;  %v2519_v38 = vcombine.high %v3657_v35, %v3657_v35 }
  0x9d   : > { %2318 = vmatpush1.bf16.msra.mxu0 %v2820_v39  ;;  %2196 = vmatprep.subr.bf16.mxu1 %v2821_v40  ;;  %v2911_v39 = vld [vmem:[%s3551_s6 + $0x174] ss:$8 sps:$4 sm:$0xff]  }
  0x9e   : > { %2319 = vmatprep.subr.bf16.mxu0 %v2823_v41  ;;  %v2914_v40 = vld [vmem:[%s3551_s6 + $0x474] ss:$8 sps:$4 sm:$0xff]   ;;  %v2909_v41 = vld [vmem:[%s3551_s6 + $0x170] ss:$8 sps:$4 sm:$0xff]  }
  0xa0   : > { %2197 = vmatpush1.bf16.msra.mxu1 %v2825_v42  ;;  %v2912_v42 = vld [vmem:[%s3551_s6 + $0x470] ss:$8 sps:$4 sm:$0xff]  }
  0xa1   : > { %2320 = vmatpush1.bf16.msra.mxu0 %v2826_v43  ;;  %2198 = vmatprep.subr.bf16.mxu1 %v2827_v44  ;;  %v2917_v43 = vld [vmem:[%s3551_s6 + $0x184] ss:$8 sps:$4 sm:$0xff]  }
  0xa2   : > { %2321 = vmatprep.subr.bf16.mxu0 %v2829_v45  ;;  %v2920_v44 = vld [vmem:[%s3551_s6 + $0x484] ss:$8 sps:$4 sm:$0xff]   ;;  %v2915_v45 = vld [vmem:[%s3551_s6 + $0x180] ss:$8 sps:$4 sm:$0xff]  }
  0xa4   : > { %2199 = vmatpush1.bf16.msra.mxu1 %v2831_v46  ;;  %v2918_v46 = vld [vmem:[%s3551_s6 + $0x480] ss:$8 sps:$4 sm:$0xff]  }
  0xa5   : > { %2322 = vmatpush1.bf16.msra.mxu0 %v2832_v47  ;;  %2200 = vmatprep.subr.bf16.mxu1 %v2833_v48  ;;  %v2923_v47 = vld [vmem:[%s3551_s6 + $0x194] ss:$8 sps:$4 sm:$0xff]  }
  0xa6   : > { %2323 = vmatprep.subr.bf16.mxu0 %v2835_v49  ;;  %v2926_v48 = vld [vmem:[%s3551_s6 + $0x494] ss:$8 sps:$4 sm:$0xff]   ;;  %v2921_v49 = vld [vmem:[%s3551_s6 + $0x190] ss:$8 sps:$4 sm:$0xff]  }
  0xa8   : > { %2201 = vmatpush1.bf16.msra.mxu1 %v2837_v50  ;;  %v2924_v50 = vld [vmem:[%s3551_s6 + $0x490] ss:$8 sps:$4 sm:$0xff]  }
  0xa9   : > { %2324 = vmatpush1.bf16.msra.mxu0 %v2838_v51  ;;  %2202 = vmatprep.subr.bf16.mxu1 %v2839_v52  ;;  %v2929_v51 = vld [vmem:[%s3551_s6 + $0x1a4] ss:$8 sps:$4 sm:$0xff]  }
  0xaa   : > { %2325 = vmatprep.subr.bf16.mxu0 %v2841_v53  ;;  %v2932_v52 = vld [vmem:[%s3551_s6 + $0x4a4] ss:$8 sps:$4 sm:$0xff]   ;;  %v2927_v53 = vld [vmem:[%s3551_s6 + $0x1a0] ss:$8 sps:$4 sm:$0xff]  }
  0xac   : > { %2203 = vmatpush1.bf16.msra.mxu1 %v2843_v54  ;;  %v2930_v54 = vld [vmem:[%s3551_s6 + $0x4a0] ss:$8 sps:$4 sm:$0xff]  }
  0xad   : > { %2326 = vmatpush1.bf16.msra.mxu0 %v2844_v55  ;;  %2204 = vmatprep.subr.bf16.mxu1 %v2845_v56  ;;  %v2935_v55 = vld [vmem:[%s3551_s6 + $0x1b4] ss:$8 sps:$4 sm:$0xff]  }
  0xae   : > { %2327 = vmatprep.subr.bf16.mxu0 %v2847_v57  ;;  %v2938_v56 = vld [vmem:[%s3551_s6 + $0x4b4] ss:$8 sps:$4 sm:$0xff]   ;;  %v2933_v57 = vld [vmem:[%s3551_s6 + $0x1b0] ss:$8 sps:$4 sm:$0xff]  }
  0xb0   : > { %2205 = vmatpush1.bf16.msra.mxu1 %v2849_v58  ;;  %v2936_v58 = vld [vmem:[%s3551_s6 + $0x4b0] ss:$8 sps:$4 sm:$0xff]  }
  0xb1   : > { %2328 = vmatpush1.bf16.msra.mxu0 %v2850_v59  ;;  %2206 = vmatprep.subr.bf16.mxu1 %v2851_v60  ;;  %v2941_v59 = vld [vmem:[%s3551_s6 + $0x1c4] ss:$8 sps:$4 sm:$0xff]  }
  0xb2   : > { %2329 = vmatprep.subr.bf16.mxu0 %v2853_v61  ;;  %v2944_v60 = vld [vmem:[%s3551_s6 + $0x4c4] ss:$8 sps:$4 sm:$0xff]   ;;  %v2939_v61 = vld [vmem:[%s3551_s6 + $0x1c0] ss:$8 sps:$4 sm:$0xff]  }
  0xb4   : > { %2207 = vmatpush1.bf16.msra.mxu1 %v2855_v62  ;;  %v2942_v62 = vld [vmem:[%s3551_s6 + $0x4c0] ss:$8 sps:$4 sm:$0xff]  }
  0xb5   : > { %2330 = vmatpush1.bf16.msra.mxu0 %v2856_v63  ;;  %2208 = vmatprep.subr.bf16.mxu1 %v2857_v2  ;;  %v2947_v63 = vld [vmem:[%s3551_s6 + $0x1d4] ss:$8 sps:$4 sm:$0xff]  }
  0xb6   : > { %2331 = vmatprep.subr.bf16.mxu0 %v2859_v3  ;;  %v2950_v2 = vld [vmem:[%s3551_s6 + $0x4d4] ss:$8 sps:$4 sm:$0xff]   ;;  %v2945_v3 = vld [vmem:[%s3551_s6 + $0x1d0] ss:$8 sps:$4 sm:$0xff]  }
  0xb8   : > { %2209 = vmatpush1.bf16.msra.mxu1 %v2861_v4  ;;  %v2948_v4 = vld [vmem:[%s3551_s6 + $0x4d0] ss:$8 sps:$4 sm:$0xff]  }
  0xb9   : > { %2332 = vmatpush1.bf16.msra.mxu0 %v2862_v5  ;;  %2219 = vmatprep.subr.bf16.mxu1 %v2867_v6  ;;  %v2953_v5 = vld [vmem:[%s3551_s6 + $0x1e4] ss:$8 sps:$4 sm:$0xff]  }
  0xba   : > { %2342 = vmatprep.subr.bf16.mxu0 %v2872_v7  ;;  %v2956_v6 = vld [vmem:[%s3551_s6 + $0x4e4] ss:$8 sps:$4 sm:$0xff]   ;;  %v2951_v7 = vld [vmem:[%s3551_s6 + $0x1e0] ss:$8 sps:$4 sm:$0xff]  }
  0xbb   : > { %2211 = vmatmul.mubr.bf16.vlgmr.msra.gmra.mrb[0].mxu1 %v2510_v8  ;;  %v2954_v8 = vld [vmem:[%s3551_s6 + $0x4e0] ss:$8 sps:$4 sm:$0xff]  }
  0xbc   : > { %2334 = vmatmul.mubr.bf16.vlgmr.msra.gmra.mrb[0].mxu0 %v2516_v10  ;;  %2220 = vmatpush1.bf16.msra.mxu1 %v2865_v9  ;;  %v2959_v9 = vld [vmem:[%s3551_s6 + $0x1f4] ss:$8 sps:$4 sm:$0xff]  }
  0xbd   : > { %2343 = vmatpush1.bf16.msra.mxu0 %v2870_v11  ;;  %2221 = vmatprep.subr.bf16.mxu1 %v2875_v12  ;;  %v2962_v10 = vld [vmem:[%s3551_s6 + $0x4f4] ss:$8 sps:$4 sm:$0xff]   ;;  %v2957_v11 = vld [vmem:[%s3551_s6 + $0x1f0] ss:$8 sps:$4 sm:$0xff]  }
  0xbe   : > { %2344 = vmatprep.subr.bf16.mxu0 %v2878_v13  ;;  %2251 = vmatprep.mubr.bf16.mxu1 %v2513_v34  ;;  %v2960_v12 = vld [vmem:[%s3551_s6 + $0x4f0] ss:$8 sps:$4 sm:$0xff]   ;;  %v2967_v13 = vld [vmem:[%s3551_s6 + $0x204] ss:$8 sps:$4 sm:$0xff]  }
  0xbf   : > { %2374 = vmatprep.mubr.bf16.mxu0 %v2519_v38  ;;  %v2993_v34 = vld [vmem:[%s3551_s6 + $0x244] ss:$8 sps:$4 sm:$0xff]   ;;  %v2999_v38 = vld [vmem:[%s3551_s6 + $0x254] ss:$8 sps:$4 sm:$0xff]  }
  0xc0   : > { %2222 = vmatpush1.bf16.msra.mxu1 %v2873_v14  ;;  %v2972_v14 = vld [vmem:[%s3551_s6 + $0x504] ss:$8 sps:$4 sm:$0xff]  }
  0xc1   : > { %2345 = vmatpush1.bf16.msra.mxu0 %v2876_v0  ;;  %2223 = vmatprep.subr.bf16.mxu1 %v2881_v1  ;;  %v2512_v0 = vcombine.low %v3650_v33, %v3650_v33  ;;  %v2965_v1 = vld [vmem:[%s3551_s6 + $0x200] ss:$8 sps:$4 sm:$0xff]   ;;  %v2988_v33 = vld [vmem:[%s3551_s6 + $0x530] ss:$8 sps:$4 sm:$0xff]  }
  0xc2   : > { %2346 = vmatprep.subr.bf16.mxu0 %v2884_v15  ;;  %v2518_v15 = vcombine.low %v3657_v35, %v3657_v35  ;;  %v2996_v35 = vld [vmem:[%s3551_s6 + $0x544] ss:$8 sps:$4 sm:$0xff]  }
  0xc4   : > { %2224 = vmatpush1.bf16.msra.mxu1 %v2879_v17  ;;  %v2975_v17 = vld [vmem:[%s3551_s6 + $0x214] ss:$8 sps:$4 sm:$0xff]  }
  0xc5   : > { %2347 = vmatpush1.bf16.msra.mxu0 %v2882_v18  ;;  %2225 = vmatprep.subr.bf16.mxu1 %v2887_v19  ;;  %v3711_v18 = vld [vmem:[%s3803_s0 + $0x10] sm:$0xff] }
  0xc6   : > { %2348 = vmatprep.subr.bf16.mxu0 %v2890_v20  ;;  %v2978_v19 = vld [vmem:[%s3551_s6 + $0x514] ss:$8 sps:$4 sm:$0xff]   ;;  %v3717_v20 = vld [vmem:[%s3803_s0 + $0x28] sm:$0xff] }
  0xc8   : > { %2226 = vmatpush1.bf16.msra.mxu1 %v2885_v21  ;;  %v1170_v21 = vld [vmem:[%s3805_s2] sm:$0xff] }
  0xc9   : > { %2349 = vmatpush1.bf16.msra.mxu0 %v2888_v22  ;;  %2227 = vmatprep.subr.bf16.mxu1 %v2893_v23  ;;  %v2515_v22 = vcombine.high %v3711_v18, %v3711_v18  ;;  %v2521_v23 = vcombine.high %v3717_v20, %v3717_v20 }
  0xca   : > { %2350 = vmatprep.subr.bf16.mxu0 %v2896_v24  ;;  %1173 = vperm.xlu0 %2766, %v1170_v21   ;;  %v2973_v24 = vld [vmem:[%s3551_s6 + $0x210] ss:$8 sps:$4 sm:$0xff]   ;;  %v2520_v21 = vcombine.low %v3717_v20, %v3717_v20 }
  0xcc   : > { %2228 = vmatpush1.bf16.msra.mxu1 %v2891_v25  ;;  %v2976_v25 = vld [vmem:[%s3551_s6 + $0x510] ss:$8 sps:$4 sm:$0xff]  }
  0xcd   : > { %2351 = vmatpush1.bf16.msra.mxu0 %v2894_v26  ;;  %2229 = vmatprep.subr.bf16.mxu1 %v2899_v27  ;;  %v2981_v26 = vld [vmem:[%s3551_s6 + $0x224] ss:$8 sps:$4 sm:$0xff]  }
  0xce   : > { %2352 = vmatprep.subr.bf16.mxu0 %v2902_v28  ;;  %v2984_v27 = vld [vmem:[%s3551_s6 + $0x524] ss:$8 sps:$4 sm:$0xff]   ;;  %v2979_v28 = vld [vmem:[%s3551_s6 + $0x220] ss:$8 sps:$4 sm:$0xff]  }
  0xd0   : > { %2230 = vmatpush1.bf16.msra.mxu1 %v2897_v29  ;;  %v2982_v29 = vld [vmem:[%s3551_s6 + $0x520] ss:$8 sps:$4 sm:$0xff]  }
  0xd1   : > { %2353 = vmatpush1.bf16.msra.mxu0 %v2900_v30  ;;  %2231 = vmatprep.subr.bf16.mxu1 %v2905_v31  ;;  %v2987_v30 = vld [vmem:[%s3551_s6 + $0x234] ss:$8 sps:$4 sm:$0xff]  }
  0xd2   : > { %2354 = vmatprep.subr.bf16.mxu0 %v2908_v32  ;;  %v2990_v31 = vld [vmem:[%s3551_s6 + $0x534] ss:$8 sps:$4 sm:$0xff]   ;;  %v2985_v32 = vld [vmem:[%s3551_s6 + $0x230] ss:$8 sps:$4 sm:$0xff]  }
  0xd4   : > { %2232 = vmatpush1.bf16.msra.mxu1 %v2903_v36  ;;  %v2991_v36 = vld [vmem:[%s3551_s6 + $0x240] ss:$8 sps:$4 sm:$0xff]  }
  0xd5   : > { %2355 = vmatpush1.bf16.msra.mxu0 %v2906_v37  ;;  %2233 = vmatprep.subr.bf16.mxu1 %v2911_v39  ;;  %v2994_v37 = vld [vmem:[%s3551_s6 + $0x540] ss:$8 sps:$4 sm:$0xff]   ;;  %v3002_v39 = vld [vmem:[%s3551_s6 + $0x554] ss:$8 sps:$4 sm:$0xff]  }
  0xd6   : > { %2356 = vmatprep.subr.bf16.mxu0 %v2914_v40  ;;  %v2997_v40 = vld [vmem:[%s3551_s6 + $0x250] ss:$8 sps:$4 sm:$0xff]  }
  0xd8   : > { %2234 = vmatpush1.bf16.msra.mxu1 %v2909_v41  ;;  %v3000_v41 = vld [vmem:[%s3551_s6 + $0x550] ss:$8 sps:$4 sm:$0xff]  }
  0xd9   : > { %2357 = vmatpush1.bf16.msra.mxu0 %v2912_v42  ;;  %2235 = vmatprep.subr.bf16.mxu1 %v2917_v43  ;;  %v3005_v42 = vld [vmem:[%s3551_s6 + $0x264] ss:$8 sps:$4 sm:$0xff]  }
  0xda   : > { %2358 = vmatprep.subr.bf16.mxu0 %v2920_v44  ;;  %v3008_v43 = vld [vmem:[%s3551_s6 + $0x564] ss:$8 sps:$4 sm:$0xff]   ;;  %v3003_v44 = vld [vmem:[%s3551_s6 + $0x260] ss:$8 sps:$4 sm:$0xff]  }
  0xdc   : > { %2236 = vmatpush1.bf16.msra.mxu1 %v2915_v45  ;;  %v3006_v45 = vld [vmem:[%s3551_s6 + $0x560] ss:$8 sps:$4 sm:$0xff]  }
  0xdd   : > { %2359 = vmatpush1.bf16.msra.mxu0 %v2918_v46  ;;  %2237 = vmatprep.subr.bf16.mxu1 %v2923_v47  ;;  %v3011_v46 = vld [vmem:[%s3551_s6 + $0x274] ss:$8 sps:$4 sm:$0xff]  }
  0xde   : > { %2360 = vmatprep.subr.bf16.mxu0 %v2926_v48  ;;  %v3014_v47 = vld [vmem:[%s3551_s6 + $0x574] ss:$8 sps:$4 sm:$0xff]   ;;  %v3009_v48 = vld [vmem:[%s3551_s6 + $0x270] ss:$8 sps:$4 sm:$0xff]  }
  0xe0   : > { %2238 = vmatpush1.bf16.msra.mxu1 %v2921_v49  ;;  %v3012_v49 = vld [vmem:[%s3551_s6 + $0x570] ss:$8 sps:$4 sm:$0xff]  }
  0xe1   : > { %2361 = vmatpush1.bf16.msra.mxu0 %v2924_v50  ;;  %2239 = vmatprep.subr.bf16.mxu1 %v2929_v51  ;;  %v3017_v50 = vld [vmem:[%s3551_s6 + $0x284] ss:$8 sps:$4 sm:$0xff]  }
  0xe2   : > { %2362 = vmatprep.subr.bf16.mxu0 %v2932_v52  ;;  %v3020_v51 = vld [vmem:[%s3551_s6 + $0x584] ss:$8 sps:$4 sm:$0xff]   ;;  %v3015_v52 = vld [vmem:[%s3551_s6 + $0x280] ss:$8 sps:$4 sm:$0xff]  }
  0xe4   : > { %2240 = vmatpush1.bf16.msra.mxu1 %v2927_v53  ;;  %v3018_v53 = vld [vmem:[%s3551_s6 + $0x580] ss:$8 sps:$4 sm:$0xff]  }
  0xe5   : > { %2363 = vmatpush1.bf16.msra.mxu0 %v2930_v54  ;;  %2241 = vmatprep.subr.bf16.mxu1 %v2935_v55  ;;  %v3023_v54 = vld [vmem:[%s3551_s6 + $0x294] ss:$8 sps:$4 sm:$0xff]  }
  0xe6   : > { %2364 = vmatprep.subr.bf16.mxu0 %v2938_v56  ;;  %v3026_v55 = vld [vmem:[%s3551_s6 + $0x594] ss:$8 sps:$4 sm:$0xff]   ;;  %v3021_v56 = vld [vmem:[%s3551_s6 + $0x290] ss:$8 sps:$4 sm:$0xff]  }
  0xe8   : > { %2242 = vmatpush1.bf16.msra.mxu1 %v2933_v57  ;;  %v3024_v57 = vld [vmem:[%s3551_s6 + $0x590] ss:$8 sps:$4 sm:$0xff]  }
  0xe9   : > { %2365 = vmatpush1.bf16.msra.mxu0 %v2936_v58  ;;  %2243 = vmatprep.subr.bf16.mxu1 %v2941_v59  ;;  %v3029_v58 = vld [vmem:[%s3551_s6 + $0x2a4] ss:$8 sps:$4 sm:$0xff]  }
  0xea   : > { %2366 = vmatprep.subr.bf16.mxu0 %v2944_v60  ;;  %v3032_v59 = vld [vmem:[%s3551_s6 + $0x5a4] ss:$8 sps:$4 sm:$0xff]   ;;  %v3027_v60 = vld [vmem:[%s3551_s6 + $0x2a0] ss:$8 sps:$4 sm:$0xff]  }
  0xec   : > { %2244 = vmatpush1.bf16.msra.mxu1 %v2939_v61  ;;  %v3030_v61 = vld [vmem:[%s3551_s6 + $0x5a0] ss:$8 sps:$4 sm:$0xff]  }
  0xed   : > { %2367 = vmatpush1.bf16.msra.mxu0 %v2942_v62  ;;  %2245 = vmatprep.subr.bf16.mxu1 %v2947_v63  ;;  %v3035_v62 = vld [vmem:[%s3551_s6 + $0x2b4] ss:$8 sps:$4 sm:$0xff]  }
  0xee   : > { %2368 = vmatprep.subr.bf16.mxu0 %v2950_v2  ;;  %v3038_v63 = vld [vmem:[%s3551_s6 + $0x5b4] ss:$8 sps:$4 sm:$0xff]   ;;  %v3033_v2 = vld [vmem:[%s3551_s6 + $0x2b0] ss:$8 sps:$4 sm:$0xff]  }
  0xf0   : > { %2246 = vmatpush1.bf16.msra.mxu1 %v2945_v3  ;;  %v3036_v3 = vld [vmem:[%s3551_s6 + $0x5b0] ss:$8 sps:$4 sm:$0xff]  }
  0xf1   : > { %2369 = vmatpush1.bf16.msra.mxu0 %v2948_v4  ;;  %2247 = vmatprep.subr.bf16.mxu1 %v2953_v5  ;;  %v3041_v4 = vld [vmem:[%s3551_s6 + $0x2c4] ss:$8 sps:$4 sm:$0xff]  }
  0xf2   : > { %2370 = vmatprep.subr.bf16.mxu0 %v2956_v6  ;;  %v3044_v5 = vld [vmem:[%s3551_s6 + $0x5c4] ss:$8 sps:$4 sm:$0xff]   ;;  %v3039_v6 = vld [vmem:[%s3551_s6 + $0x2c0] ss:$8 sps:$4 sm:$0xff]  }
  0xf4   : > { %2248 = vmatpush1.bf16.msra.mxu1 %v2951_v7  ;;  %v3042_v7 = vld [vmem:[%s3551_s6 + $0x5c0] ss:$8 sps:$4 sm:$0xff]  }
  0xf5   : > { %2371 = vmatpush1.bf16.msra.mxu0 %v2954_v8  ;;  %2249 = vmatprep.subr.bf16.mxu1 %v2959_v9  ;;  %v3047_v8 = vld [vmem:[%s3551_s6 + $0x2d4] ss:$8 sps:$4 sm:$0xff]  }
  0xf6   : > { %2372 = vmatprep.subr.bf16.mxu0 %v2962_v10  ;;  %v3050_v9 = vld [vmem:[%s3551_s6 + $0x5d4] ss:$8 sps:$4 sm:$0xff]   ;;  %v3045_v10 = vld [vmem:[%s3551_s6 + $0x2d0] ss:$8 sps:$4 sm:$0xff]  }
  0xf8   : > { %2250 = vmatpush1.bf16.msra.mxu1 %v2957_v11  ;;  %v3048_v11 = vld [vmem:[%s3551_s6 + $0x5d0] ss:$8 sps:$4 sm:$0xff]  }
  0xf9   : > { %2373 = vmatpush1.bf16.msra.mxu0 %v2960_v12  ;;  %2260 = vmatprep.subr.bf16.mxu1 %v2967_v13  ;;  %v3053_v12 = vld [vmem:[%s3551_s6 + $0x2e4] ss:$8 sps:$4 sm:$0xff]  }
  0xfa   : > { %2383 = vmatprep.subr.bf16.mxu0 %v2972_v14  ;;  %v3056_v13 = vld [vmem:[%s3551_s6 + $0x5e4] ss:$8 sps:$4 sm:$0xff]   ;;  %v3051_v14 = vld [vmem:[%s3551_s6 + $0x2e0] ss:$8 sps:$4 sm:$0xff]  }
  0xfb   : > { %2252 = vmatmul.mubr.bf16.vlgmr.msra.gmra.mrb[0].mxu1 %v2512_v0  ;;  %v3054_v0 = vld [vmem:[%s3551_s6 + $0x5e0] ss:$8 sps:$4 sm:$0xff]  }
  0xfc   : > { %2375 = vmatmul.mubr.bf16.vlgmr.msra.gmra.mrb[0].mxu0 %v2518_v15  ;;  %2261 = vmatpush1.bf16.msra.mxu1 %v2965_v1  ;;  %v3059_v1 = vld [vmem:[%s3551_s6 + $0x2f4] ss:$8 sps:$4 sm:$0xff]  }
  0xfd   : > { %2384 = vmatpush1.bf16.msra.mxu0 %v2970_v16  ;;  %2262 = vmatprep.subr.bf16.mxu1 %v2975_v17  ;;  %v3062_v15 = vld [vmem:[%s3551_s6 + $0x5f4] ss:$8 sps:$4 sm:$0xff]   ;;  %v3057_v16 = vld [vmem:[%s3551_s6 + $0x2f0] ss:$8 sps:$4 sm:$0xff]  }
  0xfe   : > { %2385 = vmatprep.subr.bf16.mxu0 %v2978_v19  ;;  %2292 = vmatprep.mubr.bf16.mxu1 %v2515_v22  ;;  %v3060_v17 = vld [vmem:[%s3551_s6 + $0x5f0] ss:$8 sps:$4 sm:$0xff]   ;;  %v2514_v19 = vcombine.low %v3711_v18, %v3711_v18 }
  0xff   : > { %2415 = vmatprep.mubr.bf16.mxu0 %v2521_v23 }
 0x100   : > { %2263 = vmatpush1.bf16.msra.mxu1 %v2973_v24 }
 0x101   : > { %2386 = vmatpush1.bf16.msra.mxu0 %v2976_v25  ;;  %2264 = vmatprep.subr.bf16.mxu1 %v2981_v26 }
 0x102   : > { %2387 = vmatprep.subr.bf16.mxu0 %v2984_v27 }
 0x104   : > { %2265 = vmatpush1.bf16.msra.mxu1 %v2979_v28 }
 0x105   : > { %2388 = vmatpush1.bf16.msra.mxu0 %v2982_v29  ;;  %2266 = vmatprep.subr.bf16.mxu1 %v2987_v30 }
 0x106   : > { %2389 = vmatprep.subr.bf16.mxu0 %v2990_v31 }
 0x108   : > { %2267 = vmatpush1.bf16.msra.mxu1 %v2985_v32 }
 0x109   : > { %2390 = vmatpush1.bf16.msra.mxu0 %v2988_v33  ;;  %2268 = vmatprep.subr.bf16.mxu1 %v2993_v34 }
 0x10a   : > { %2391 = vmatprep.subr.bf16.mxu0 %v2996_v35 }
 0x10c   : > { %2269 = vmatpush1.bf16.msra.mxu1 %v2991_v36 }
 0x10d   : > { %2392 = vmatpush1.bf16.msra.mxu0 %v2994_v37  ;;  %2270 = vmatprep.subr.bf16.mxu1 %v2999_v38 }
 0x10e   : > { %2393 = vmatprep.subr.bf16.mxu0 %v3002_v39 }
 0x110   : > { %2271 = vmatpush1.bf16.msra.mxu1 %v2997_v40 }
 0x111   : > { %2394 = vmatpush1.bf16.msra.mxu0 %v3000_v41  ;;  %2272 = vmatprep.subr.bf16.mxu1 %v3005_v42 }
 0x112   : > { %2395 = vmatprep.subr.bf16.mxu0 %v3008_v43 }
 0x114   : > { %2273 = vmatpush1.bf16.msra.mxu1 %v3003_v44 }
 0x115   : > { %2396 = vmatpush1.bf16.msra.mxu0 %v3006_v45  ;;  %2274 = vmatprep.subr.bf16.mxu1 %v3011_v46 }
 0x116   : > { %2397 = vmatprep.subr.bf16.mxu0 %v3014_v47 }
 0x118   : > { %2275 = vmatpush1.bf16.msra.mxu1 %v3009_v48 }
 0x119   : > { %2398 = vmatpush1.bf16.msra.mxu0 %v3012_v49  ;;  %2276 = vmatprep.subr.bf16.mxu1 %v3017_v50 }
 0x11a   : > { %2399 = vmatprep.subr.bf16.mxu0 %v3020_v51 }
 0x11c   : > { %2277 = vmatpush1.bf16.msra.mxu1 %v3015_v52 }
 0x11d   : > { %2400 = vmatpush1.bf16.msra.mxu0 %v3018_v53  ;;  %2278 = vmatprep.subr.bf16.mxu1 %v3023_v54 }
 0x11e   : > { %2401 = vmatprep.subr.bf16.mxu0 %v3026_v55 }
 0x120   : > { %2279 = vmatpush1.bf16.msra.mxu1 %v3021_v56 }
 0x121   : > { %2402 = vmatpush1.bf16.msra.mxu0 %v3024_v57  ;;  %2280 = vmatprep.subr.bf16.mxu1 %v3029_v58 }
 0x122   : > { %2403 = vmatprep.subr.bf16.mxu0 %v3032_v59 }
 0x124   : > { %2281 = vmatpush1.bf16.msra.mxu1 %v3027_v60 }
 0x125   : > { %2404 = vmatpush1.bf16.msra.mxu0 %v3030_v61  ;;  %2282 = vmatprep.subr.bf16.mxu1 %v3035_v62 }
 0x126   : > { %2405 = vmatprep.subr.bf16.mxu0 %v3038_v63 }
 0x128   : > { %2283 = vmatpush1.bf16.msra.mxu1 %v3033_v2 }
 0x129   : > { %2406 = vmatpush1.bf16.msra.mxu0 %v3036_v3  ;;  %2284 = vmatprep.subr.bf16.mxu1 %v3041_v4 }
 0x12a   : > { %2407 = vmatprep.subr.bf16.mxu0 %v3044_v5 }
 0x12c   : > { %2285 = vmatpush1.bf16.msra.mxu1 %v3039_v6 }
 0x12d   : > { %2408 = vmatpush1.bf16.msra.mxu0 %v3042_v7  ;;  %2286 = vmatprep.subr.bf16.mxu1 %v3047_v8 }
 0x12e   : > { %2409 = vmatprep.subr.bf16.mxu0 %v3050_v9 }
 0x130   : > { %2287 = vmatpush1.bf16.msra.mxu1 %v3045_v10 }
 0x131   : > { %2410 = vmatpush1.bf16.msra.mxu0 %v3048_v11  ;;  %2288 = vmatprep.subr.bf16.mxu1 %v3053_v12 }
 0x132   : > { %2411 = vmatprep.subr.bf16.mxu0 %v3056_v13 }
 0x134   : > { %2289 = vmatpush1.bf16.msra.mxu1 %v3051_v14 }
 0x135   : > { %2412 = vmatpush1.bf16.msra.mxu0 %v3054_v0  ;;  %2290 = vmatprep.subr.bf16.mxu1 %v3059_v1 }
 0x136   : > { %2413 = vmatprep.subr.bf16.mxu0 %v3062_v15 }
 0x138   : > { %2291 = vmatpush1.bf16.msra.mxu1 %v3057_v16 }
 0x139   : > { %2414 = vmatpush1.bf16.msra.mxu0 %v3060_v17 }
 0x13b   : > { %2293 = vmatmul.mubr.bf16.vlgmr.msra.gmra.mrb[0].mxu1 %v2514_v19 }
 0x13c   : > { %2416 = vmatmul.mubr.bf16.vlgmr.msra.gmra.mrb[0].mxu0 %v2520_v21 }
 0x149   : > { %v1174_v22 = vpop.permute.xlu0 %1173 }
 0x20e   : > { %v2294_v23 = vpop.f32.mrb[0].mxu1 }
 0x20f   : > { %v2417_v24 = vpop.f32.mrb[0].mxu0  ;;  %v2719_v25 = vadd.f32 %v2294_v23, %v1174_v22  ;;  %v2296_v26 = vpop.f32.mrb[1].mxu1 }
 0x210   : > { %v2419_v27 = vpop.f32.mrb[1].mxu0  ;;  %v2721_v28 = vadd.f32 %v2296_v26, %v1174_v22  ;;  %v2298_v29 = vpop.f32.mrb[2].mxu1 }
 0x211   : > { %v2421_v18 = vpop.f32.mrb[2].mxu0  ;;  %v2720_v30 = vadd.f32 %v2719_v25, %v2417_v24  ;;  %v2299_v31 = vpop.f32.mrb[3].mxu1 }
 0x212   : > { %v2422_v20 = vpop.f32.mrb[3].mxu0  ;;  %v2722_v32 = vadd.f32 %v2721_v28, %v2419_v27 }
 0x213   : > { %vm2424_vm0 = vcmp.ge.f32.partialorder %v2720_v30, 0.0  ;;  %v2426_v33 = vmul.f32 0.01, %v2720_v30 }
 0x214   : > { %vm2425_vm1 = vcmp.ge.f32.partialorder %v2722_v32, 0.0  ;;  %v2427_v34 = vmul.f32 0.01, %v2722_v32 }
 0x215   : > { %v2428_v35 = vsel %vm2424_vm0, %v2720_v30, %v2426_v33 }
 0x216   : > { %v2429_v36 = vsel %vm2425_vm1, %v2722_v32, %v2427_v34 }
 0x217   : > { %v2718_v37 = vpack.c.bf16 %v2429_v36, %v2428_v35 }
 0x219   : > { %2438 = vst [vmem:[%s970_s24] sm:$0xff] %v2718_v37 }
 0x21a PF: > { %p10_p9 = scmp.ge.s32.totalorder %s3129_s16, 4   ;;  %s3807_s12 = smov %s3085_s13 }
 0x21b   : > { %s3808_s13 = smov %s3138_s19  ;;  %s3809_s14 = smov %s3129_s16 }
 0x21c   :  { %12 = sbr.rel (!%p10_p9) target bundleno = 2 (0x2), region = 105 }

// kernel: videobert_forward.15
= control target key start
LH: loop header
LB: loop body
LE: loop exit
PB: predicated region body
PF: predicated region fallthrough
CT: control target
= control target key end

     0   :  { %s2549_s12 = smov 0   ;;  %s2551_s13 = smov 0   ;;  %s3220_s0 = inlined_call_operand.vmem [shape: bf16[3,384], index: 0, kind: input, shape index: {}]   ;;  %s3221_s1 = inlined_call_operand.vmem [shape: bf16[384,2048], index: 1, kind: input, shape index: {}]   ;;  %s3222_s2 = inlined_call_operand.vmem [shape: f32[3,1], index: 2, kind: input, shape index: {}]   ;;  %s3223_s3 = inlined_call_operand.vmem [shape: f32[3,2048], index: 3, kind: output, shape index: {}]  }
   0x1   :  { %s2553_s14 = smov 0  }
   0x2 LB: > { %s2213_s15 = sadd.s32 4294967295, %s2525_s14   ;;  %s2566_s16 = sadd.s32 1, %s2525_s14   ;;  %s2525_s14 = sphi %s2553_s14, %s3226_s14   ;;  %s2521_s13 = sphi %s2551_s13, %s3225_s13   ;;  %s2517_s12 = sphi %s2549_s12, %s3224_s12  }
   0x3   : > { %s38_s17 = ssub.s32 %s2525_s14, %s2566_s16  ;;  %s41_s18 = sadd.s32 1, %s2521_s13 }
   0x4   : > { %p39_p0 = scmp.eq.s32.totalorder %s38_s17, 0  ;;  %p48_p1 = scmp.ne.s32.totalorder %s2521_s13, %s2517_s12 }
   0x5   : > { %p49_p2 = scmp.eq.s32.totalorder %s2525_s14, 0  ;;  %p2216_p4 = scmp.ge.s32.totalorder %s2525_s14, 2 }
   0x6   : > { %s2575_s19 = scalar_select %p39_p0, %s2521_s13, %s41_s18  }
   0x7   : > { %p50_p3 = por %p49_p2, %p48_p1  ;;  %127 = sbr.rel (%p2216_p4) target bundleno = 115 (0x73), region = 24 }
   0xe   : > { %130 = sbr.rel (!%p50_p3) target bundleno = 115 (0x73), region = 28  ;;  %s132_s20 = sand.u32 (%p50_p3), 1, %s2521_s13  }
   0xf   : > { %s2416_s21 = sshll.u32 (%p50_p3), %s2525_s14, 5  ;;  %s2441_s22 = smul.u32 (%p50_p3), 1536, %s132_s20 }
  0x10   : > { %s2583_s25 = scalar_lea.vmem (%p50_p3), %s3221_s1, %s2416_s21 }
  0x11   : > { %v150_v0 = vld [vmem:[%s2583_s25] sm:$0xff] (%p50_p3)  ;;  %v152_v1 = vld [vmem:[%s2583_s25 + $0x8] sm:$0xff] (%p50_p3)  ;;  %v154_v2 = vld [vmem:[%s2583_s25 + $0x10] sm:$0xff] (%p50_p3)  ;;  %s2591_s26 = scalar_lea.vmem (%p50_p3), [#allocation2], %s2441_s22 }
  0x12   : > { %v156_v3 = vld [vmem:[%s2583_s25 + $0x18] sm:$0xff] (%p50_p3)  ;;  %v158_v4 = vld [vmem:[%s2583_s25 + $0x40] sm:$0xff] (%p50_p3)  ;;  %v160_v5 = vld [vmem:[%s2583_s25 + $0x48] sm:$0xff] (%p50_p3)  ;;  %151 = vst [vmem:[%s2591_s26] sm:$0xff] (%p50_p3), %v150_v0 }
  0x13   : > { %153 = vst [vmem:[%s2591_s26 + $0x8] sm:$0xff] (%p50_p3), %v152_v1  ;;  %155 = vst [vmem:[%s2591_s26 + $0x10] sm:$0xff] (%p50_p3), %v154_v2  ;;  %v162_v6 = vld [vmem:[%s2583_s25 + $0x50] sm:$0xff] (%p50_p3)  ;;  %v164_v7 = vld [vmem:[%s2583_s25 + $0x58] sm:$0xff] (%p50_p3) }
  0x14   : > { %157 = vst [vmem:[%s2591_s26 + $0x18] sm:$0xff] (%p50_p3), %v156_v3  ;;  %159 = vst [vmem:[%s2591_s26 + $0x20] sm:$0xff] (%p50_p3), %v158_v4  ;;  %v166_v8 = vld [vmem:[%s2583_s25 + $0x80] sm:$0xff] (%p50_p3)  ;;  %v168_v9 = vld [vmem:[%s2583_s25 + $0x88] sm:$0xff] (%p50_p3) }
  0x15   : > { %161 = vst [vmem:[%s2591_s26 + $0x28] sm:$0xff] %v160_v5  ;;  %163 = vst [vmem:[%s2591_s26 + $0x30] sm:$0xff] %v162_v6  ;;  %v170_v10 = vld [vmem:[%s2583_s25 + $0x90] sm:$0xff]  ;;  %v172_v11 = vld [vmem:[%s2583_s25 + $0x98] sm:$0xff] }
  0x16   : > { %165 = vst [vmem:[%s2591_s26 + $0x38] sm:$0xff] %v164_v7  ;;  %167 = vst [vmem:[%s2591_s26 + $0x40] sm:$0xff] %v166_v8  ;;  %v174_v12 = vld [vmem:[%s2583_s25 + $0xc0] sm:$0xff]  ;;  %v176_v13 = vld [vmem:[%s2583_s25 + $0xc8] sm:$0xff] }
  0x17   : > { %169 = vst [vmem:[%s2591_s26 + $0x48] sm:$0xff] %v168_v9  ;;  %171 = vst [vmem:[%s2591_s26 + $0x50] sm:$0xff] %v170_v10  ;;  %v178_v14 = vld [vmem:[%s2583_s25 + $0xd0] sm:$0xff]  ;;  %v180_v15 = vld [vmem:[%s2583_s25 + $0xd8] sm:$0xff] }
  0x18   : > { %173 = vst [vmem:[%s2591_s26 + $0x58] sm:$0xff] %v172_v11  ;;  %175 = vst [vmem:[%s2591_s26 + $0x60] sm:$0xff] %v174_v12  ;;  %v182_v16 = vld [vmem:[%s2583_s25 + $0x100] sm:$0xff]  ;;  %v184_v17 = vld [vmem:[%s2583_s25 + $0x108] sm:$0xff] }
  0x19   : > { %177 = vst [vmem:[%s2591_s26 + $0x68] sm:$0xff] %v176_v13  ;;  %179 = vst [vmem:[%s2591_s26 + $0x70] sm:$0xff] %v178_v14  ;;  %v186_v18 = vld [vmem:[%s2583_s25 + $0x110] sm:$0xff]  ;;  %v188_v19 = vld [vmem:[%s2583_s25 + $0x118] sm:$0xff] }
  0x1a   : > { %181 = vst [vmem:[%s2591_s26 + $0x78] sm:$0xff] %v180_v15  ;;  %183 = vst [vmem:[%s2591_s26 + $0x80] sm:$0xff] %v182_v16  ;;  %v190_v20 = vld [vmem:[%s2583_s25 + $0x140] sm:$0xff]  ;;  %v192_v21 = vld [vmem:[%s2583_s25 + $0x148] sm:$0xff] }
  0x1b   : > { %185 = vst [vmem:[%s2591_s26 + $0x88] sm:$0xff] %v184_v17  ;;  %187 = vst [vmem:[%s2591_s26 + $0x90] sm:$0xff] %v186_v18  ;;  %v194_v22 = vld [vmem:[%s2583_s25 + $0x150] sm:$0xff]  ;;  %v196_v23 = vld [vmem:[%s2583_s25 + $0x158] sm:$0xff] }
  0x1c   : > { %189 = vst [vmem:[%s2591_s26 + $0x98] sm:$0xff] %v188_v19  ;;  %191 = vst [vmem:[%s2591_s26 + $0xa0] sm:$0xff] %v190_v20  ;;  %v198_v24 = vld [vmem:[%s2583_s25 + $0x180] sm:$0xff]  ;;  %v200_v25 = vld [vmem:[%s2583_s25 + $0x188] sm:$0xff] }
  0x1d   : > { %193 = vst [vmem:[%s2591_s26 + $0xa8] sm:$0xff] %v192_v21  ;;  %195 = vst [vmem:[%s2591_s26 + $0xb0] sm:$0xff] %v194_v22  ;;  %v202_v26 = vld [vmem:[%s2583_s25 + $0x190] sm:$0xff]  ;;  %v204_v27 = vld [vmem:[%s2583_s25 + $0x198] sm:$0xff] }
  0x1e   : > { %197 = vst [vmem:[%s2591_s26 + $0xb8] sm:$0xff] %v196_v23  ;;  %199 = vst [vmem:[%s2591_s26 + $0xc0] sm:$0xff] %v198_v24  ;;  %v206_v28 = vld [vmem:[%s2583_s25 + $0x1c0] sm:$0xff]  ;;  %v208_v29 = vld [vmem:[%s2583_s25 + $0x1c8] sm:$0xff] }
  0x1f   : > { %201 = vst [vmem:[%s2591_s26 + $0xc8] sm:$0xff] %v200_v25  ;;  %203 = vst [vmem:[%s2591_s26 + $0xd0] sm:$0xff] %v202_v26  ;;  %v210_v30 = vld [vmem:[%s2583_s25 + $0x1d0] sm:$0xff]  ;;  %v212_v31 = vld [vmem:[%s2583_s25 + $0x1d8] sm:$0xff] }
  0x20   : > { %205 = vst [vmem:[%s2591_s26 + $0xd8] sm:$0xff] %v204_v27  ;;  %207 = vst [vmem:[%s2591_s26 + $0xe0] sm:$0xff] %v206_v28  ;;  %v214_v32 = vld [vmem:[%s2583_s25 + $0x200] sm:$0xff]  ;;  %v216_v33 = vld [vmem:[%s2583_s25 + $0x208] sm:$0xff] }
  0x21   : > { %209 = vst [vmem:[%s2591_s26 + $0xe8] sm:$0xff] %v208_v29  ;;  %211 = vst [vmem:[%s2591_s26 + $0xf0] sm:$0xff] %v210_v30  ;;  %v218_v34 = vld [vmem:[%s2583_s25 + $0x210] sm:$0xff]  ;;  %v220_v35 = vld [vmem:[%s2583_s25 + $0x218] sm:$0xff] }
  0x22   : > { %213 = vst [vmem:[%s2591_s26 + $0xf8] sm:$0xff] %v212_v31  ;;  %215 = vst [vmem:[%s2591_s26 + $0x100] sm:$0xff] %v214_v32  ;;  %v222_v36 = vld [vmem:[%s2583_s25 + $0x240] sm:$0xff]  ;;  %v224_v37 = vld [vmem:[%s2583_s25 + $0x248] sm:$0xff] }
  0x23   : > { %217 = vst [vmem:[%s2591_s26 + $0x108] sm:$0xff] %v216_v33  ;;  %219 = vst [vmem:[%s2591_s26 + $0x110] sm:$0xff] %v218_v34  ;;  %v226_v38 = vld [vmem:[%s2583_s25 + $0x250] sm:$0xff]  ;;  %v228_v39 = vld [vmem:[%s2583_s25 + $0x258] sm:$0xff] }
  0x24   : > { %221 = vst [vmem:[%s2591_s26 + $0x118] sm:$0xff] %v220_v35  ;;  %223 = vst [vmem:[%s2591_s26 + $0x120] sm:$0xff] %v222_v36  ;;  %v230_v40 = vld [vmem:[%s2583_s25 + $0x280] sm:$0xff]  ;;  %v232_v41 = vld [vmem:[%s2583_s25 + $0x288] sm:$0xff] }
  0x25   : > { %225 = vst [vmem:[%s2591_s26 + $0x128] sm:$0xff] %v224_v37  ;;  %227 = vst [vmem:[%s2591_s26 + $0x130] sm:$0xff] %v226_v38  ;;  %v234_v42 = vld [vmem:[%s2583_s25 + $0x290] sm:$0xff]  ;;  %v236_v43 = vld [vmem:[%s2583_s25 + $0x298] sm:$0xff] }
  0x26   : > { %229 = vst [vmem:[%s2591_s26 + $0x138] sm:$0xff] %v228_v39  ;;  %231 = vst [vmem:[%s2591_s26 + $0x140] sm:$0xff] %v230_v40  ;;  %v238_v44 = vld [vmem:[%s2583_s25 + $0x2c0] sm:$0xff]  ;;  %v240_v45 = vld [vmem:[%s2583_s25 + $0x2c8] sm:$0xff] }
  0x27   : > { %233 = vst [vmem:[%s2591_s26 + $0x148] sm:$0xff] %v232_v41  ;;  %235 = vst [vmem:[%s2591_s26 + $0x150] sm:$0xff] %v234_v42  ;;  %v242_v46 = vld [vmem:[%s2583_s25 + $0x2d0] sm:$0xff]  ;;  %v244_v47 = vld [vmem:[%s2583_s25 + $0x2d8] sm:$0xff] }
  0x28   : > { %237 = vst [vmem:[%s2591_s26 + $0x158] sm:$0xff] %v236_v43  ;;  %239 = vst [vmem:[%s2591_s26 + $0x160] sm:$0xff] %v238_v44  ;;  %v246_v48 = vld [vmem:[%s2583_s25 + $0x300] sm:$0xff]  ;;  %v248_v49 = vld [vmem:[%s2583_s25 + $0x308] sm:$0xff] }
  0x29   : > { %241 = vst [vmem:[%s2591_s26 + $0x168] sm:$0xff] %v240_v45  ;;  %243 = vst [vmem:[%s2591_s26 + $0x170] sm:$0xff] %v242_v46  ;;  %v250_v50 = vld [vmem:[%s2583_s25 + $0x310] sm:$0xff]  ;;  %v252_v51 = vld [vmem:[%s2583_s25 + $0x318] sm:$0xff] }
  0x2a   : > { %245 = vst [vmem:[%s2591_s26 + $0x178] sm:$0xff] %v244_v47  ;;  %247 = vst [vmem:[%s2591_s26 + $0x180] sm:$0xff] %v246_v48  ;;  %v254_v52 = vld [vmem:[%s2583_s25 + $0x340] sm:$0xff]  ;;  %v256_v53 = vld [vmem:[%s2583_s25 + $0x348] sm:$0xff] }
  0x2b   : > { %249 = vst [vmem:[%s2591_s26 + $0x188] sm:$0xff] %v248_v49  ;;  %251 = vst [vmem:[%s2591_s26 + $0x190] sm:$0xff] %v250_v50  ;;  %v258_v54 = vld [vmem:[%s2583_s25 + $0x350] sm:$0xff]  ;;  %v260_v55 = vld [vmem:[%s2583_s25 + $0x358] sm:$0xff] }
  0x2c   : > { %253 = vst [vmem:[%s2591_s26 + $0x198] sm:$0xff] %v252_v51  ;;  %255 = vst [vmem:[%s2591_s26 + $0x1a0] sm:$0xff] %v254_v52  ;;  %v262_v56 = vld [vmem:[%s2583_s25 + $0x380] sm:$0xff]  ;;  %v264_v57 = vld [vmem:[%s2583_s25 + $0x388] sm:$0xff] }
  0x2d   : > { %257 = vst [vmem:[%s2591_s26 + $0x1a8] sm:$0xff] %v256_v53  ;;  %259 = vst [vmem:[%s2591_s26 + $0x1b0] sm:$0xff] %v258_v54  ;;  %v266_v58 = vld [vmem:[%s2583_s25 + $0x390] sm:$0xff]  ;;  %v268_v59 = vld [vmem:[%s2583_s25 + $0x398] sm:$0xff] }
  0x2e   : > { %261 = vst [vmem:[%s2591_s26 + $0x1b8] sm:$0xff] %v260_v55  ;;  %263 = vst [vmem:[%s2591_s26 + $0x1c0] sm:$0xff] %v262_v56  ;;  %v270_v60 = vld [vmem:[%s2583_s25 + $0x3c0] sm:$0xff]  ;;  %v272_v61 = vld [vmem:[%s2583_s25 + $0x3c8] sm:$0xff] }
  0x2f   : > { %265 = vst [vmem:[%s2591_s26 + $0x1c8] sm:$0xff] %v264_v57  ;;  %267 = vst [vmem:[%s2591_s26 + $0x1d0] sm:$0xff] %v266_v58  ;;  %v274_v62 = vld [vmem:[%s2583_s25 + $0x3d0] sm:$0xff]  ;;  %v276_v63 = vld [vmem:[%s2583_s25 + $0x3d8] sm:$0xff] }
  0x30   : > { %269 = vst [vmem:[%s2591_s26 + $0x1d8] sm:$0xff] %v268_v59  ;;  %271 = vst [vmem:[%s2591_s26 + $0x1e0] sm:$0xff] %v270_v60  ;;  %v278_v0 = vld [vmem:[%s2583_s25 + $0x400] sm:$0xff]  ;;  %v280_v1 = vld [vmem:[%s2583_s25 + $0x408] sm:$0xff] }
  0x31   : > { %273 = vst [vmem:[%s2591_s26 + $0x1e8] sm:$0xff] %v272_v61  ;;  %275 = vst [vmem:[%s2591_s26 + $0x1f0] sm:$0xff] %v274_v62  ;;  %v282_v2 = vld [vmem:[%s2583_s25 + $0x410] sm:$0xff]  ;;  %v284_v3 = vld [vmem:[%s2583_s25 + $0x418] sm:$0xff] }
  0x32   : > { %277 = vst [vmem:[%s2591_s26 + $0x1f8] sm:$0xff] %v276_v63  ;;  %279 = vst [vmem:[%s2591_s26 + $0x200] sm:$0xff] %v278_v0  ;;  %v286_v4 = vld [vmem:[%s2583_s25 + $0x440] sm:$0xff]  ;;  %v288_v5 = vld [vmem:[%s2583_s25 + $0x448] sm:$0xff] }
  0x33   : > { %281 = vst [vmem:[%s2591_s26 + $0x208] sm:$0xff] %v280_v1  ;;  %283 = vst [vmem:[%s2591_s26 + $0x210] sm:$0xff] %v282_v2  ;;  %v290_v6 = vld [vmem:[%s2583_s25 + $0x450] sm:$0xff]  ;;  %v292_v7 = vld [vmem:[%s2583_s25 + $0x458] sm:$0xff] }
  0x34   : > { %285 = vst [vmem:[%s2591_s26 + $0x218] sm:$0xff] %v284_v3  ;;  %287 = vst [vmem:[%s2591_s26 + $0x220] sm:$0xff] %v286_v4  ;;  %v294_v8 = vld [vmem:[%s2583_s25 + $0x480] sm:$0xff]  ;;  %v296_v9 = vld [vmem:[%s2583_s25 + $0x488] sm:$0xff] }
  0x35   : > { %289 = vst [vmem:[%s2591_s26 + $0x228] sm:$0xff] %v288_v5  ;;  %291 = vst [vmem:[%s2591_s26 + $0x230] sm:$0xff] %v290_v6  ;;  %v298_v10 = vld [vmem:[%s2583_s25 + $0x490] sm:$0xff]  ;;  %v300_v11 = vld [vmem:[%s2583_s25 + $0x498] sm:$0xff] }
  0x36   : > { %293 = vst [vmem:[%s2591_s26 + $0x238] sm:$0xff] %v292_v7  ;;  %295 = vst [vmem:[%s2591_s26 + $0x240] sm:$0xff] %v294_v8  ;;  %v302_v12 = vld [vmem:[%s2583_s25 + $0x4c0] sm:$0xff]  ;;  %v304_v13 = vld [vmem:[%s2583_s25 + $0x4c8] sm:$0xff] }
  0x37   : > { %297 = vst [vmem:[%s2591_s26 + $0x248] sm:$0xff] %v296_v9  ;;  %299 = vst [vmem:[%s2591_s26 + $0x250] sm:$0xff] %v298_v10  ;;  %v306_v14 = vld [vmem:[%s2583_s25 + $0x4d0] sm:$0xff]  ;;  %v308_v15 = vld [vmem:[%s2583_s25 + $0x4d8] sm:$0xff] }
  0x38   : > { %301 = vst [vmem:[%s2591_s26 + $0x258] sm:$0xff] %v300_v11  ;;  %303 = vst [vmem:[%s2591_s26 + $0x260] sm:$0xff] %v302_v12  ;;  %v310_v16 = vld [vmem:[%s2583_s25 + $0x500] sm:$0xff]  ;;  %v312_v17 = vld [vmem:[%s2583_s25 + $0x508] sm:$0xff] }
  0x39   : > { %305 = vst [vmem:[%s2591_s26 + $0x268] sm:$0xff] %v304_v13  ;;  %307 = vst [vmem:[%s2591_s26 + $0x270] sm:$0xff] %v306_v14  ;;  %v314_v18 = vld [vmem:[%s2583_s25 + $0x510] sm:$0xff]  ;;  %v316_v19 = vld [vmem:[%s2583_s25 + $0x518] sm:$0xff] }
  0x3a   : > { %309 = vst [vmem:[%s2591_s26 + $0x278] sm:$0xff] %v308_v15  ;;  %311 = vst [vmem:[%s2591_s26 + $0x280] sm:$0xff] %v310_v16  ;;  %v318_v20 = vld [vmem:[%s2583_s25 + $0x540] sm:$0xff]  ;;  %v320_v21 = vld [vmem:[%s2583_s25 + $0x548] sm:$0xff] }
  0x3b   : > { %313 = vst [vmem:[%s2591_s26 + $0x288] sm:$0xff] %v312_v17  ;;  %315 = vst [vmem:[%s2591_s26 + $0x290] sm:$0xff] %v314_v18  ;;  %v322_v22 = vld [vmem:[%s2583_s25 + $0x550] sm:$0xff]  ;;  %v324_v23 = vld [vmem:[%s2583_s25 + $0x558] sm:$0xff] }
  0x3c   : > { %317 = vst [vmem:[%s2591_s26 + $0x298] sm:$0xff] %v316_v19  ;;  %319 = vst [vmem:[%s2591_s26 + $0x2a0] sm:$0xff] %v318_v20  ;;  %v326_v24 = vld [vmem:[%s2583_s25 + $0x580] sm:$0xff]  ;;  %v328_v25 = vld [vmem:[%s2583_s25 + $0x588] sm:$0xff] }
  0x3d   : > { %321 = vst [vmem:[%s2591_s26 + $0x2a8] sm:$0xff] %v320_v21  ;;  %323 = vst [vmem:[%s2591_s26 + $0x2b0] sm:$0xff] %v322_v22  ;;  %v330_v26 = vld [vmem:[%s2583_s25 + $0x590] sm:$0xff]  ;;  %v332_v27 = vld [vmem:[%s2583_s25 + $0x598] sm:$0xff] }
  0x3e   : > { %325 = vst [vmem:[%s2591_s26 + $0x2b8] sm:$0xff] %v324_v23  ;;  %327 = vst [vmem:[%s2591_s26 + $0x2c0] sm:$0xff] %v326_v24  ;;  %v334_v28 = vld [vmem:[%s2583_s25 + $0x5c0] sm:$0xff]  ;;  %v336_v29 = vld [vmem:[%s2583_s25 + $0x5c8] sm:$0xff] }
  0x3f   : > { %329 = vst [vmem:[%s2591_s26 + $0x2c8] sm:$0xff] %v328_v25  ;;  %331 = vst [vmem:[%s2591_s26 + $0x2d0] sm:$0xff] %v330_v26  ;;  %v338_v30 = vld [vmem:[%s2583_s25 + $0x5d0] sm:$0xff]  ;;  %v340_v31 = vld [vmem:[%s2583_s25 + $0x5d8] sm:$0xff] }
  0x40   : > { %333 = vst [vmem:[%s2591_s26 + $0x2d8] sm:$0xff] %v332_v27  ;;  %335 = vst [vmem:[%s2591_s26 + $0x2e0] sm:$0xff] %v334_v28  ;;  %v342_v32 = vld [vmem:[%s2583_s25 + $0x600] sm:$0xff]  ;;  %v344_v33 = vld [vmem:[%s2583_s25 + $0x608] sm:$0xff] }
  0x41   : > { %337 = vst [vmem:[%s2591_s26 + $0x2e8] sm:$0xff] %v336_v29  ;;  %339 = vst [vmem:[%s2591_s26 + $0x2f0] sm:$0xff] %v338_v30  ;;  %v346_v34 = vld [vmem:[%s2583_s25 + $0x610] sm:$0xff]  ;;  %v348_v35 = vld [vmem:[%s2583_s25 + $0x618] sm:$0xff] }
  0x42   : > { %341 = vst [vmem:[%s2591_s26 + $0x2f8] sm:$0xff] %v340_v31  ;;  %343 = vst [vmem:[%s2591_s26 + $0x300] sm:$0xff] %v342_v32  ;;  %v350_v36 = vld [vmem:[%s2583_s25 + $0x640] sm:$0xff]  ;;  %v352_v37 = vld [vmem:[%s2583_s25 + $0x648] sm:$0xff] }
  0x43   : > { %345 = vst [vmem:[%s2591_s26 + $0x308] sm:$0xff] %v344_v33  ;;  %347 = vst [vmem:[%s2591_s26 + $0x310] sm:$0xff] %v346_v34  ;;  %v354_v38 = vld [vmem:[%s2583_s25 + $0x650] sm:$0xff]  ;;  %v356_v39 = vld [vmem:[%s2583_s25 + $0x658] sm:$0xff] }
  0x44   : > { %349 = vst [vmem:[%s2591_s26 + $0x318] sm:$0xff] %v348_v35  ;;  %351 = vst [vmem:[%s2591_s26 + $0x320] sm:$0xff] %v350_v36  ;;  %v358_v40 = vld [vmem:[%s2583_s25 + $0x680] sm:$0xff]  ;;  %v360_v41 = vld [vmem:[%s2583_s25 + $0x688] sm:$0xff] }
  0x45   : > { %353 = vst [vmem:[%s2591_s26 + $0x328] sm:$0xff] %v352_v37  ;;  %355 = vst [vmem:[%s2591_s26 + $0x330] sm:$0xff] %v354_v38  ;;  %v362_v42 = vld [vmem:[%s2583_s25 + $0x690] sm:$0xff]  ;;  %v364_v43 = vld [vmem:[%s2583_s25 + $0x698] sm:$0xff] }
  0x46   : > { %357 = vst [vmem:[%s2591_s26 + $0x338] sm:$0xff] %v356_v39  ;;  %359 = vst [vmem:[%s2591_s26 + $0x340] sm:$0xff] %v358_v40  ;;  %v366_v44 = vld [vmem:[%s2583_s25 + $0x6c0] sm:$0xff]  ;;  %v368_v45 = vld [vmem:[%s2583_s25 + $0x6c8] sm:$0xff] }
  0x47   : > { %361 = vst [vmem:[%s2591_s26 + $0x348] sm:$0xff] %v360_v41  ;;  %363 = vst [vmem:[%s2591_s26 + $0x350] sm:$0xff] %v362_v42  ;;  %v370_v46 = vld [vmem:[%s2583_s25 + $0x6d0] sm:$0xff]  ;;  %v372_v47 = vld [vmem:[%s2583_s25 + $0x6d8] sm:$0xff] }
  0x48   : > { %365 = vst [vmem:[%s2591_s26 + $0x358] sm:$0xff] %v364_v43  ;;  %367 = vst [vmem:[%s2591_s26 + $0x360] sm:$0xff] %v366_v44  ;;  %v374_v48 = vld [vmem:[%s2583_s25 + $0x700] sm:$0xff]  ;;  %v376_v49 = vld [vmem:[%s2583_s25 + $0x708] sm:$0xff] }
  0x49   : > { %369 = vst [vmem:[%s2591_s26 + $0x368] sm:$0xff] %v368_v45  ;;  %371 = vst [vmem:[%s2591_s26 + $0x370] sm:$0xff] %v370_v46  ;;  %v378_v50 = vld [vmem:[%s2583_s25 + $0x710] sm:$0xff]  ;;  %v380_v51 = vld [vmem:[%s2583_s25 + $0x718] sm:$0xff] }
  0x4a   : > { %373 = vst [vmem:[%s2591_s26 + $0x378] sm:$0xff] %v372_v47  ;;  %375 = vst [vmem:[%s2591_s26 + $0x380] sm:$0xff] %v374_v48  ;;  %v382_v52 = vld [vmem:[%s2583_s25 + $0x740] sm:$0xff]  ;;  %v384_v53 = vld [vmem:[%s2583_s25 + $0x748] sm:$0xff] }
  0x4b   : > { %377 = vst [vmem:[%s2591_s26 + $0x388] sm:$0xff] %v376_v49  ;;  %379 = vst [vmem:[%s2591_s26 + $0x390] sm:$0xff] %v378_v50  ;;  %v386_v54 = vld [vmem:[%s2583_s25 + $0x750] sm:$0xff]  ;;  %v388_v55 = vld [vmem:[%s2583_s25 + $0x758] sm:$0xff] }
  0x4c   : > { %381 = vst [vmem:[%s2591_s26 + $0x398] sm:$0xff] %v380_v51  ;;  %383 = vst [vmem:[%s2591_s26 + $0x3a0] sm:$0xff] %v382_v52  ;;  %v390_v56 = vld [vmem:[%s2583_s25 + $0x780] sm:$0xff]  ;;  %v392_v57 = vld [vmem:[%s2583_s25 + $0x788] sm:$0xff] }
  0x4d   : > { %385 = vst [vmem:[%s2591_s26 + $0x3a8] sm:$0xff] %v384_v53  ;;  %387 = vst [vmem:[%s2591_s26 + $0x3b0] sm:$0xff] %v386_v54  ;;  %v394_v58 = vld [vmem:[%s2583_s25 + $0x790] sm:$0xff]  ;;  %v396_v59 = vld [vmem:[%s2583_s25 + $0x798] sm:$0xff] }
  0x4e   : > { %389 = vst [vmem:[%s2591_s26 + $0x3b8] sm:$0xff] %v388_v55  ;;  %391 = vst [vmem:[%s2591_s26 + $0x3c0] sm:$0xff] %v390_v56  ;;  %v398_v60 = vld [vmem:[%s2583_s25 + $0x7c0] sm:$0xff]  ;;  %v400_v61 = vld [vmem:[%s2583_s25 + $0x7c8] sm:$0xff] }
  0x4f   : > { %393 = vst [vmem:[%s2591_s26 + $0x3c8] sm:$0xff] %v392_v57  ;;  %395 = vst [vmem:[%s2591_s26 + $0x3d0] sm:$0xff] %v394_v58  ;;  %v402_v62 = vld [vmem:[%s2583_s25 + $0x7d0] sm:$0xff]  ;;  %v404_v63 = vld [vmem:[%s2583_s25 + $0x7d8] sm:$0xff] }
  0x50   : > { %397 = vst [vmem:[%s2591_s26 + $0x3d8] sm:$0xff] %v396_v59  ;;  %399 = vst [vmem:[%s2591_s26 + $0x3e0] sm:$0xff] %v398_v60  ;;  %v406_v0 = vld [vmem:[%s2583_s25 + $0x800] sm:$0xff]  ;;  %v408_v1 = vld [vmem:[%s2583_s25 + $0x808] sm:$0xff] }
  0x51   : > { %401 = vst [vmem:[%s2591_s26 + $0x3e8] sm:$0xff] %v400_v61  ;;  %403 = vst [vmem:[%s2591_s26 + $0x3f0] sm:$0xff] %v402_v62  ;;  %v410_v2 = vld [vmem:[%s2583_s25 + $0x810] sm:$0xff]  ;;  %v412_v3 = vld [vmem:[%s2583_s25 + $0x818] sm:$0xff] }
  0x52   : > { %405 = vst [vmem:[%s2591_s26 + $0x3f8] sm:$0xff] %v404_v63  ;;  %407 = vst [vmem:[%s2591_s26 + $0x400] sm:$0xff] %v406_v0  ;;  %v414_v4 = vld [vmem:[%s2583_s25 + $0x840] sm:$0xff]  ;;  %v416_v5 = vld [vmem:[%s2583_s25 + $0x848] sm:$0xff] }
  0x53   : > { %409 = vst [vmem:[%s2591_s26 + $0x408] sm:$0xff] %v408_v1  ;;  %411 = vst [vmem:[%s2591_s26 + $0x410] sm:$0xff] %v410_v2  ;;  %v418_v6 = vld [vmem:[%s2583_s25 + $0x850] sm:$0xff]  ;;  %v420_v7 = vld [vmem:[%s2583_s25 + $0x858] sm:$0xff] }
  0x54   : > { %413 = vst [vmem:[%s2591_s26 + $0x418] sm:$0xff] %v412_v3  ;;  %415 = vst [vmem:[%s2591_s26 + $0x420] sm:$0xff] %v414_v4  ;;  %v422_v8 = vld [vmem:[%s2583_s25 + $0x880] sm:$0xff]  ;;  %v424_v9 = vld [vmem:[%s2583_s25 + $0x888] sm:$0xff] }
  0x55   : > { %417 = vst [vmem:[%s2591_s26 + $0x428] sm:$0xff] %v416_v5  ;;  %419 = vst [vmem:[%s2591_s26 + $0x430] sm:$0xff] %v418_v6  ;;  %v426_v10 = vld [vmem:[%s2583_s25 + $0x890] sm:$0xff]  ;;  %v428_v11 = vld [vmem:[%s2583_s25 + $0x898] sm:$0xff] }
  0x56   : > { %421 = vst [vmem:[%s2591_s26 + $0x438] sm:$0xff] %v420_v7  ;;  %423 = vst [vmem:[%s2591_s26 + $0x440] sm:$0xff] %v422_v8  ;;  %v430_v12 = vld [vmem:[%s2583_s25 + $0x8c0] sm:$0xff]  ;;  %v432_v13 = vld [vmem:[%s2583_s25 + $0x8c8] sm:$0xff] }
  0x57   : > { %425 = vst [vmem:[%s2591_s26 + $0x448] sm:$0xff] %v424_v9  ;;  %427 = vst [vmem:[%s2591_s26 + $0x450] sm:$0xff] %v426_v10  ;;  %v434_v14 = vld [vmem:[%s2583_s25 + $0x8d0] sm:$0xff]  ;;  %v436_v15 = vld [vmem:[%s2583_s25 + $0x8d8] sm:$0xff] }
  0x58   : > { %429 = vst [vmem:[%s2591_s26 + $0x458] sm:$0xff] %v428_v11  ;;  %431 = vst [vmem:[%s2591_s26 + $0x460] sm:$0xff] %v430_v12  ;;  %v438_v16 = vld [vmem:[%s2583_s25 + $0x900] sm:$0xff]  ;;  %v440_v17 = vld [vmem:[%s2583_s25 + $0x908] sm:$0xff] }
  0x59   : > { %433 = vst [vmem:[%s2591_s26 + $0x468] sm:$0xff] %v432_v13  ;;  %435 = vst [vmem:[%s2591_s26 + $0x470] sm:$0xff] %v434_v14  ;;  %v442_v18 = vld [vmem:[%s2583_s25 + $0x910] sm:$0xff]  ;;  %v444_v19 = vld [vmem:[%s2583_s25 + $0x918] sm:$0xff] }
  0x5a   : > { %437 = vst [vmem:[%s2591_s26 + $0x478] sm:$0xff] %v436_v15  ;;  %439 = vst [vmem:[%s2591_s26 + $0x480] sm:$0xff] %v438_v16  ;;  %v446_v20 = vld [vmem:[%s2583_s25 + $0x940] sm:$0xff]  ;;  %v448_v21 = vld [vmem:[%s2583_s25 + $0x948] sm:$0xff] }
  0x5b   : > { %441 = vst [vmem:[%s2591_s26 + $0x488] sm:$0xff] %v440_v17  ;;  %443 = vst [vmem:[%s2591_s26 + $0x490] sm:$0xff] %v442_v18  ;;  %v450_v22 = vld [vmem:[%s2583_s25 + $0x950] sm:$0xff]  ;;  %v452_v23 = vld [vmem:[%s2583_s25 + $0x958] sm:$0xff] }
  0x5c   : > { %445 = vst [vmem:[%s2591_s26 + $0x498] sm:$0xff] %v444_v19  ;;  %447 = vst [vmem:[%s2591_s26 + $0x4a0] sm:$0xff] %v446_v20  ;;  %v454_v24 = vld [vmem:[%s2583_s25 + $0x980] sm:$0xff]  ;;  %v456_v25 = vld [vmem:[%s2583_s25 + $0x988] sm:$0xff] }
  0x5d   : > { %449 = vst [vmem:[%s2591_s26 + $0x4a8] sm:$0xff] %v448_v21  ;;  %451 = vst [vmem:[%s2591_s26 + $0x4b0] sm:$0xff] %v450_v22  ;;  %v458_v26 = vld [vmem:[%s2583_s25 + $0x990] sm:$0xff]  ;;  %v460_v27 = vld [vmem:[%s2583_s25 + $0x998] sm:$0xff] }
  0x5e   : > { %453 = vst [vmem:[%s2591_s26 + $0x4b8] sm:$0xff] %v452_v23  ;;  %455 = vst [vmem:[%s2591_s26 + $0x4c0] sm:$0xff] %v454_v24  ;;  %v462_v28 = vld [vmem:[%s2583_s25 + $0x9c0] sm:$0xff]  ;;  %v464_v29 = vld [vmem:[%s2583_s25 + $0x9c8] sm:$0xff] }
  0x5f   : > { %457 = vst [vmem:[%s2591_s26 + $0x4c8] sm:$0xff] %v456_v25  ;;  %459 = vst [vmem:[%s2591_s26 + $0x4d0] sm:$0xff] %v458_v26  ;;  %v466_v30 = vld [vmem:[%s2583_s25 + $0x9d0] sm:$0xff]  ;;  %v468_v31 = vld [vmem:[%s2583_s25 + $0x9d8] sm:$0xff] }
  0x60   : > { %461 = vst [vmem:[%s2591_s26 + $0x4d8] sm:$0xff] %v460_v27  ;;  %463 = vst [vmem:[%s2591_s26 + $0x4e0] sm:$0xff] %v462_v28  ;;  %v470_v32 = vld [vmem:[%s2583_s25 + $0xa00] sm:$0xff]  ;;  %v472_v33 = vld [vmem:[%s2583_s25 + $0xa08] sm:$0xff] }
  0x61   : > { %465 = vst [vmem:[%s2591_s26 + $0x4e8] sm:$0xff] %v464_v29  ;;  %467 = vst [vmem:[%s2591_s26 + $0x4f0] sm:$0xff] %v466_v30  ;;  %v474_v34 = vld [vmem:[%s2583_s25 + $0xa10] sm:$0xff]  ;;  %v476_v35 = vld [vmem:[%s2583_s25 + $0xa18] sm:$0xff] }
  0x62   : > { %469 = vst [vmem:[%s2591_s26 + $0x4f8] sm:$0xff] %v468_v31  ;;  %471 = vst [vmem:[%s2591_s26 + $0x500] sm:$0xff] %v470_v32  ;;  %v478_v36 = vld [vmem:[%s2583_s25 + $0xa40] sm:$0xff]  ;;  %v480_v37 = vld [vmem:[%s2583_s25 + $0xa48] sm:$0xff] }
  0x63   : > { %473 = vst [vmem:[%s2591_s26 + $0x508] sm:$0xff] %v472_v33  ;;  %475 = vst [vmem:[%s2591_s26 + $0x510] sm:$0xff] %v474_v34  ;;  %v482_v38 = vld [vmem:[%s2583_s25 + $0xa50] sm:$0xff]  ;;  %v484_v39 = vld [vmem:[%s2583_s25 + $0xa58] sm:$0xff] }
  0x64   : > { %477 = vst [vmem:[%s2591_s26 + $0x518] sm:$0xff] %v476_v35  ;;  %479 = vst [vmem:[%s2591_s26 + $0x520] sm:$0xff] %v478_v36  ;;  %v486_v40 = vld [vmem:[%s2583_s25 + $0xa80] sm:$0xff]  ;;  %v488_v41 = vld [vmem:[%s2583_s25 + $0xa88] sm:$0xff] }
  0x65   : > { %481 = vst [vmem:[%s2591_s26 + $0x528] sm:$0xff] %v480_v37  ;;  %483 = vst [vmem:[%s2591_s26 + $0x530] sm:$0xff] %v482_v38  ;;  %v490_v42 = vld [vmem:[%s2583_s25 + $0xa90] sm:$0xff]  ;;  %v492_v43 = vld [vmem:[%s2583_s25 + $0xa98] sm:$0xff] }
  0x66   : > { %485 = vst [vmem:[%s2591_s26 + $0x538] sm:$0xff] %v484_v39  ;;  %487 = vst [vmem:[%s2591_s26 + $0x540] sm:$0xff] %v486_v40  ;;  %v494_v44 = vld [vmem:[%s2583_s25 + $0xac0] sm:$0xff]  ;;  %v496_v45 = vld [vmem:[%s2583_s25 + $0xac8] sm:$0xff] }
  0x67   : > { %489 = vst [vmem:[%s2591_s26 + $0x548] sm:$0xff] %v488_v41  ;;  %491 = vst [vmem:[%s2591_s26 + $0x550] sm:$0xff] %v490_v42  ;;  %v498_v46 = vld [vmem:[%s2583_s25 + $0xad0] sm:$0xff]  ;;  %v500_v47 = vld [vmem:[%s2583_s25 + $0xad8] sm:$0xff] }
  0x68   : > { %493 = vst [vmem:[%s2591_s26 + $0x558] sm:$0xff] %v492_v43  ;;  %495 = vst [vmem:[%s2591_s26 + $0x560] sm:$0xff] %v494_v44  ;;  %v502_v48 = vld [vmem:[%s2583_s25 + $0xb00] sm:$0xff]  ;;  %v504_v49 = vld [vmem:[%s2583_s25 + $0xb08] sm:$0xff] }
  0x69   : > { %497 = vst [vmem:[%s2591_s26 + $0x568] sm:$0xff] %v496_v45  ;;  %499 = vst [vmem:[%s2591_s26 + $0x570] sm:$0xff] %v498_v46  ;;  %v506_v50 = vld [vmem:[%s2583_s25 + $0xb10] sm:$0xff]  ;;  %v508_v51 = vld [vmem:[%s2583_s25 + $0xb18] sm:$0xff] }
  0x6a   : > { %501 = vst [vmem:[%s2591_s26 + $0x578] sm:$0xff] %v500_v47  ;;  %503 = vst [vmem:[%s2591_s26 + $0x580] sm:$0xff] %v502_v48  ;;  %v510_v52 = vld [vmem:[%s2583_s25 + $0xb40] sm:$0xff]  ;;  %v512_v53 = vld [vmem:[%s2583_s25 + $0xb48] sm:$0xff] }
  0x6b   : > { %505 = vst [vmem:[%s2591_s26 + $0x588] sm:$0xff] %v504_v49  ;;  %507 = vst [vmem:[%s2591_s26 + $0x590] sm:$0xff] %v506_v50  ;;  %v514_v54 = vld [vmem:[%s2583_s25 + $0xb50] sm:$0xff]  ;;  %v516_v55 = vld [vmem:[%s2583_s25 + $0xb58] sm:$0xff] }
  0x6c   : > { %509 = vst [vmem:[%s2591_s26 + $0x598] sm:$0xff] %v508_v51  ;;  %511 = vst [vmem:[%s2591_s26 + $0x5a0] sm:$0xff] %v510_v52  ;;  %v518_v56 = vld [vmem:[%s2583_s25 + $0xb80] sm:$0xff]  ;;  %v520_v57 = vld [vmem:[%s2583_s25 + $0xb88] sm:$0xff] }
  0x6d   : > { %513 = vst [vmem:[%s2591_s26 + $0x5a8] sm:$0xff] %v512_v53  ;;  %515 = vst [vmem:[%s2591_s26 + $0x5b0] sm:$0xff] %v514_v54  ;;  %v522_v58 = vld [vmem:[%s2583_s25 + $0xb90] sm:$0xff]  ;;  %v524_v59 = vld [vmem:[%s2583_s25 + $0xb98] sm:$0xff] }
  0x6e   : > { %517 = vst [vmem:[%s2591_s26 + $0x5b8] sm:$0xff] %v516_v55  ;;  %519 = vst [vmem:[%s2591_s26 + $0x5c0] sm:$0xff] %v518_v56  ;;  %v526_v60 = vld [vmem:[%s2583_s25 + $0xbc0] sm:$0xff]  ;;  %v528_v61 = vld [vmem:[%s2583_s25 + $0xbc8] sm:$0xff] }
  0x6f   : > { %521 = vst [vmem:[%s2591_s26 + $0x5c8] sm:$0xff] %v520_v57  ;;  %523 = vst [vmem:[%s2591_s26 + $0x5d0] sm:$0xff] %v522_v58  ;;  %v530_v62 = vld [vmem:[%s2583_s25 + $0xbd0] sm:$0xff]  ;;  %v532_v63 = vld [vmem:[%s2583_s25 + $0xbd8] sm:$0xff] }
  0x70   : > { %525 = vst [vmem:[%s2591_s26 + $0x5d8] sm:$0xff] %v524_v59  ;;  %527 = vst [vmem:[%s2591_s26 + $0x5e0] sm:$0xff] %v526_v60 }
  0x71   : > { %529 = vst [vmem:[%s2591_s26 + $0x5e8] sm:$0xff] %v528_v61  ;;  %531 = vst [vmem:[%s2591_s26 + $0x5f0] sm:$0xff] %v530_v62 }
  0x72   : > { %533 = vst [vmem:[%s2591_s26 + $0x5f8] sm:$0xff] %v532_v63 }
  0x73 PF: > { %p2219_p5 = scmp.ge.s32.totalorder %s2525_s14, 1  ;;  %p538_p6 = scmp.lt.s32.totalorder %s2525_s14, 3 }
  0x75   : > { %p539_p7 = pnand %p2219_p5, %p538_p6 }
  0x76   : > { %s545_s27 = sand.u32 (!%p539_p7), 1, %s2517_s12   ;;  %v780_v0 = vlaneseq (!%p539_p7)  ;;  %v2527_v1 = vmov (!%p539_p7), 1983009808   ;;  %v2528_v3 = vmov (!%p539_p7), 0   ;;  %v576_v4 = vld [vmem:[%s3220_s0] sm:$0x3f] (!%p539_p7) }
  0x77   : > { %542 = sbr.rel (%p539_p7) target bundleno = 567 (0x237), region = 51  ;;  %v778_v2 = vunpack.c.l.s4 (!%p539_p7), %v2527_v1  ;;  %2469 = vset.pattern.permute.xlu0 (!%p539_p7), %v2528_v3  ;;  %v776_v7 = vcombine.high (!%p539_p7), %v576_v4, %v576_v4  ;;  %s2220_s7 = sshll.u32 (!%p539_p7), %s2213_s15, 3 }
  0x78   : > { %s2442_s28 = smul.u32 (!%p539_p7), 1536, %s545_s27  ;;  %v781_v5 = vshrl.u32 (!%p539_p7), %v780_v0, 7  ;;  %p570_p8 = scmp.lt.s32.totalorder (!%p539_p7), %s2220_s7, 15 }
  0x79   : > { %v779_v6 = vunpack.c.0.s8 (!%p539_p7), %v778_v2 }
  0x7a   : > { %s2978_s4 = scalar_lea.vmem (!%p539_p7), [#allocation2], %s2442_s28 }
  0x7b   : > { %v577_v8 = vld [vmem:[%s2978_s4] sm:$0xff] (!%p539_p7)  ;;  %v578_v10 = vld [vmem:[%s2978_s4 + $0x8] sm:$0xff] (!%p539_p7)  ;;  %v782_v16 = vsub.s32 (!%p539_p7), %v779_v6, %v781_v5 }
  0x7c   : > { %v581_v9 = vld [vmem:[%s2978_s4 + $0x20] sm:$0xff] (!%p539_p7)  ;;  %v582_v12 = vld [vmem:[%s2978_s4 + $0x28] sm:$0xff] (!%p539_p7) }
  0x7d   : > { %v2223_v11 = vcombine.high (!%p539_p7), %v577_v8, %v581_v9  ;;  %v2222_v13 = vcombine.low (!%p539_p7), %v577_v8, %v581_v9  ;;  %v585_v14 = vld [vmem:[%s2978_s4 + $0x40] sm:$0xff] (!%p539_p7)  ;;  %v2225_v17 = vcombine.high (!%p539_p7), %v578_v10, %v582_v12  ;;  %v2224_v18 = vcombine.low (!%p539_p7), %v578_v10, %v582_v12  ;;  %v586_v20 = vld [vmem:[%s2978_s4 + $0x48] sm:$0xff] (!%p539_p7) }
  0x7e   : > { %v589_v15 = vld [vmem:[%s2978_s4 + $0x60] sm:$0xff]  ;;  %v590_v21 = vld [vmem:[%s2978_s4 + $0x68] sm:$0xff]  ;;  %v2992_v27 = vrot.slane %v576_v4, %v782_v16  ;;  %v2994_v28 = vrot.slane %v776_v7, %v782_v16  ;;  %s3228_s7 = smov (!%p570_p8, %s2220_s7), 15 }
  0x7f   : > { %v2231_v19 = vcombine.high %v585_v14, %v589_v15  ;;  %v593_v22 = vld [vmem:[%s2978_s4 + $0x80] sm:$0xff]  ;;  %1755 = vmatprep.subr.bf16.mxu0 %v2223_v11  ;;  %v2233_v23 = vcombine.high %v586_v20, %v590_v21  ;;  %v594_v25 = vld [vmem:[%s2978_s4 + $0x88] sm:$0xff]  ;;  %1837 = vmatprep.subr.bf16.mxu1 %v2225_v17  ;;  %v2230_v29 = vcombine.low %v585_v14, %v589_v15  ;;  %s2221_s8 = sshll.u32 %s3228_s7, 2 }
  0x80   : > { %v597_v24 = vld [vmem:[%s2978_s4 + $0xa0] sm:$0xff]  ;;  %v598_v26 = vld [vmem:[%s2978_s4 + $0xa8] sm:$0xff]  ;;  %1756 = vmatpush1.bf16.msra.mxu0 %v2222_v13  ;;  %1838 = vmatpush1.bf16.msra.mxu1 %v2224_v18  ;;  %v2232_v30 = vcombine.low %v586_v20, %v590_v21  ;;  %v3002_v37 = vcombine.high %v2992_v27, %v2992_v27  ;;  %s3204_s11 = scalar_lea.vmem %s3223_s3, %s2221_s8 }
  0x81   : > { %1757 = vmatprep.subr.bf16.mxu0 %v2231_v19  ;;  %v2239_v31 = vcombine.high %v593_v22, %v597_v24  ;;  %1839 = vmatprep.subr.bf16.mxu1 %v2233_v23  ;;  %v2241_v32 = vcombine.high %v594_v25, %v598_v26  ;;  %v601_v33 = vld [vmem:[%s2978_s4 + $0xc0] sm:$0xff]  ;;  %v602_v35 = vld [vmem:[%s2978_s4 + $0xc8] sm:$0xff]  ;;  %v2238_v38 = vcombine.low %v593_v22, %v597_v24 }
  0x82   : > { %v605_v34 = vld [vmem:[%s2978_s4 + $0xe0] sm:$0xff]  ;;  %v606_v36 = vld [vmem:[%s2978_s4 + $0xe8] sm:$0xff]  ;;  %v2240_v39 = vcombine.low %v594_v25, %v598_v26  ;;  %1787 = vmatprep.mubr.bf16.mxu0 %v3002_v37  ;;  %1869 = vmatprep.mubr.bf16.mxu1 %v3002_v37 }
  0x83   : > { %v2247_v40 = vcombine.high %v601_v33, %v605_v34  ;;  %v2249_v41 = vcombine.high %v602_v35, %v606_v36  ;;  %v609_v42 = vld [vmem:[%s2978_s4 + $0x100] sm:$0xff]  ;;  %v610_v44 = vld [vmem:[%s2978_s4 + $0x108] sm:$0xff]  ;;  %v2246_v46 = vcombine.low %v601_v33, %v605_v34  ;;  %v2248_v47 = vcombine.low %v602_v35, %v606_v36 }
  0x84   : > { %1758 = vmatpush1.bf16.msra.mxu0 %v2230_v29  ;;  %1840 = vmatpush1.bf16.msra.mxu1 %v2232_v30  ;;  %v613_v43 = vld [vmem:[%s2978_s4 + $0x120] sm:$0xff]  ;;  %v614_v45 = vld [vmem:[%s2978_s4 + $0x128] sm:$0xff] }
  0x85   : > { %1759 = vmatprep.subr.bf16.mxu0 %v2239_v31  ;;  %1841 = vmatprep.subr.bf16.mxu1 %v2241_v32  ;;  %v2255_v48 = vcombine.high %v609_v42, %v613_v43  ;;  %v2257_v49 = vcombine.high %v610_v44, %v614_v45  ;;  %v617_v50 = vld [vmem:[%s2978_s4 + $0x140] sm:$0xff]  ;;  %v618_v52 = vld [vmem:[%s2978_s4 + $0x148] sm:$0xff]  ;;  %v2254_v54 = vcombine.low %v609_v42, %v613_v43 }
  0x86   : > { %v621_v51 = vld [vmem:[%s2978_s4 + $0x160] sm:$0xff]  ;;  %v622_v53 = vld [vmem:[%s2978_s4 + $0x168] sm:$0xff]  ;;  %v2256_v55 = vcombine.low %v610_v44, %v614_v45 }
  0x87   : > { %v2263_v56 = vcombine.high %v617_v50, %v621_v51  ;;  %v2265_v57 = vcombine.high %v618_v52, %v622_v53  ;;  %v625_v58 = vld [vmem:[%s2978_s4 + $0x180] sm:$0xff]  ;;  %v626_v60 = vld [vmem:[%s2978_s4 + $0x188] sm:$0xff]  ;;  %v2262_v62 = vcombine.low %v617_v50, %v621_v51  ;;  %v2264_v63 = vcombine.low %v618_v52, %v622_v53 }
  0x88   : > { %1760 = vmatpush1.bf16.msra.mxu0 %v2238_v38  ;;  %1842 = vmatpush1.bf16.msra.mxu1 %v2240_v39  ;;  %v629_v59 = vld [vmem:[%s2978_s4 + $0x1a0] sm:$0xff]  ;;  %v630_v61 = vld [vmem:[%s2978_s4 + $0x1a8] sm:$0xff] }
  0x89   : > { %1761 = vmatprep.subr.bf16.mxu0 %v2247_v40  ;;  %1843 = vmatprep.subr.bf16.mxu1 %v2249_v41  ;;  %v2271_v0 = vcombine.high %v625_v58, %v629_v59  ;;  %v2273_v1 = vcombine.high %v626_v60, %v630_v61  ;;  %v633_v2 = vld [vmem:[%s2978_s4 + $0x1c0] sm:$0xff]  ;;  %v634_v5 = vld [vmem:[%s2978_s4 + $0x1c8] sm:$0xff]  ;;  %v2270_v7 = vcombine.low %v625_v58, %v629_v59 }
  0x8a   : > { %v637_v4 = vld [vmem:[%s2978_s4 + $0x1e0] sm:$0xff]  ;;  %v638_v6 = vld [vmem:[%s2978_s4 + $0x1e8] sm:$0xff]  ;;  %v2272_v8 = vcombine.low %v626_v60, %v630_v61 }
  0x8b   : > { %v2279_v9 = vcombine.high %v633_v2, %v637_v4  ;;  %v2281_v10 = vcombine.high %v634_v5, %v638_v6  ;;  %v641_v11 = vld [vmem:[%s2978_s4 + $0x200] sm:$0xff]  ;;  %v642_v13 = vld [vmem:[%s2978_s4 + $0x208] sm:$0xff]  ;;  %v2278_v15 = vcombine.low %v633_v2, %v637_v4  ;;  %v2280_v16 = vcombine.low %v634_v5, %v638_v6 }
  0x8c   : > { %1762 = vmatpush1.bf16.msra.mxu0 %v2246_v46  ;;  %1844 = vmatpush1.bf16.msra.mxu1 %v2248_v47  ;;  %v645_v12 = vld [vmem:[%s2978_s4 + $0x220] sm:$0xff]  ;;  %v646_v14 = vld [vmem:[%s2978_s4 + $0x228] sm:$0xff] }
  0x8d   : > { %1763 = vmatprep.subr.bf16.mxu0 %v2255_v48  ;;  %1845 = vmatprep.subr.bf16.mxu1 %v2257_v49  ;;  %v2287_v17 = vcombine.high %v641_v11, %v645_v12  ;;  %v2289_v18 = vcombine.high %v642_v13, %v646_v14  ;;  %v649_v19 = vld [vmem:[%s2978_s4 + $0x240] sm:$0xff]  ;;  %v650_v21 = vld [vmem:[%s2978_s4 + $0x248] sm:$0xff]  ;;  %v2286_v23 = vcombine.low %v641_v11, %v645_v12 }
  0x8e   : > { %v653_v20 = vld [vmem:[%s2978_s4 + $0x260] sm:$0xff]  ;;  %v654_v22 = vld [vmem:[%s2978_s4 + $0x268] sm:$0xff]  ;;  %v2288_v24 = vcombine.low %v642_v13, %v646_v14 }
  0x8f   : > { %v2295_v25 = vcombine.high %v649_v19, %v653_v20  ;;  %v2297_v26 = vcombine.high %v650_v21, %v654_v22  ;;  %v657_v29 = vld [vmem:[%s2978_s4 + $0x280] sm:$0xff]  ;;  %v658_v31 = vld [vmem:[%s2978_s4 + $0x288] sm:$0xff]  ;;  %v2294_v33 = vcombine.low %v649_v19, %v653_v20  ;;  %v2296_v34 = vcombine.low %v650_v21, %v654_v22 }
  0x90   : > { %1764 = vmatpush1.bf16.msra.mxu0 %v2254_v54  ;;  %1846 = vmatpush1.bf16.msra.mxu1 %v2256_v55  ;;  %v661_v30 = vld [vmem:[%s2978_s4 + $0x2a0] sm:$0xff]  ;;  %v662_v32 = vld [vmem:[%s2978_s4 + $0x2a8] sm:$0xff] }
  0x91   : > { %1765 = vmatprep.subr.bf16.mxu0 %v2263_v56  ;;  %1847 = vmatprep.subr.bf16.mxu1 %v2265_v57  ;;  %v2303_v35 = vcombine.high %v657_v29, %v661_v30  ;;  %v2305_v36 = vcombine.high %v658_v31, %v662_v32  ;;  %v665_v38 = vld [vmem:[%s2978_s4 + $0x2c0] sm:$0xff]  ;;  %v666_v40 = vld [vmem:[%s2978_s4 + $0x2c8] sm:$0xff]  ;;  %v2302_v42 = vcombine.low %v657_v29, %v661_v30 }
  0x92   : > { %v669_v39 = vld [vmem:[%s2978_s4 + $0x2e0] sm:$0xff]  ;;  %v670_v41 = vld [vmem:[%s2978_s4 + $0x2e8] sm:$0xff]  ;;  %v2304_v43 = vcombine.low %v658_v31, %v662_v32 }
  0x93   : > { %v2311_v44 = vcombine.high %v665_v38, %v669_v39  ;;  %v2313_v45 = vcombine.high %v666_v40, %v670_v41  ;;  %v673_v46 = vld [vmem:[%s2978_s4 + $0x300] sm:$0xff]  ;;  %v674_v48 = vld [vmem:[%s2978_s4 + $0x308] sm:$0xff]  ;;  %v2310_v50 = vcombine.low %v665_v38, %v669_v39  ;;  %v2312_v51 = vcombine.low %v666_v40, %v670_v41 }
  0x94   : > { %1766 = vmatpush1.bf16.msra.mxu0 %v2262_v62  ;;  %1848 = vmatpush1.bf16.msra.mxu1 %v2264_v63  ;;  %v677_v47 = vld [vmem:[%s2978_s4 + $0x320] sm:$0xff]  ;;  %v678_v49 = vld [vmem:[%s2978_s4 + $0x328] sm:$0xff] }
  0x95   : > { %1767 = vmatprep.subr.bf16.mxu0 %v2271_v0  ;;  %1849 = vmatprep.subr.bf16.mxu1 %v2273_v1  ;;  %v2319_v52 = vcombine.high %v673_v46, %v677_v47  ;;  %v2321_v53 = vcombine.high %v674_v48, %v678_v49  ;;  %v681_v54 = vld [vmem:[%s2978_s4 + $0x340] sm:$0xff]  ;;  %v682_v56 = vld [vmem:[%s2978_s4 + $0x348] sm:$0xff]  ;;  %v2318_v58 = vcombine.low %v673_v46, %v677_v47 }
  0x96   : > { %v685_v55 = vld [vmem:[%s2978_s4 + $0x360] sm:$0xff]  ;;  %v686_v57 = vld [vmem:[%s2978_s4 + $0x368] sm:$0xff]  ;;  %v2320_v59 = vcombine.low %v674_v48, %v678_v49 }
  0x97   : > { %v2327_v60 = vcombine.high %v681_v54, %v685_v55  ;;  %v2329_v61 = vcombine.high %v682_v56, %v686_v57  ;;  %v689_v62 = vld [vmem:[%s2978_s4 + $0x380] sm:$0xff]  ;;  %v690_v0 = vld [vmem:[%s2978_s4 + $0x388] sm:$0xff]  ;;  %v2326_v2 = vcombine.low %v681_v54, %v685_v55  ;;  %v2328_v4 = vcombine.low %v682_v56, %v686_v57 }
  0x98   : > { %1768 = vmatpush1.bf16.msra.mxu0 %v2270_v7  ;;  %1850 = vmatpush1.bf16.msra.mxu1 %v2272_v8  ;;  %v693_v63 = vld [vmem:[%s2978_s4 + $0x3a0] sm:$0xff]  ;;  %v694_v1 = vld [vmem:[%s2978_s4 + $0x3a8] sm:$0xff] }
  0x99   : > { %1769 = vmatprep.subr.bf16.mxu0 %v2279_v9  ;;  %1851 = vmatprep.subr.bf16.mxu1 %v2281_v10  ;;  %v2335_v5 = vcombine.high %v689_v62, %v693_v63  ;;  %v2337_v6 = vcombine.high %v690_v0, %v694_v1  ;;  %v697_v7 = vld [vmem:[%s2978_s4 + $0x3c0] sm:$0xff]  ;;  %v698_v9 = vld [vmem:[%s2978_s4 + $0x3c8] sm:$0xff]  ;;  %v2334_v11 = vcombine.low %v689_v62, %v693_v63 }
  0x9a   : > { %v701_v8 = vld [vmem:[%s2978_s4 + $0x3e0] sm:$0xff]  ;;  %v702_v10 = vld [vmem:[%s2978_s4 + $0x3e8] sm:$0xff]  ;;  %v2336_v12 = vcombine.low %v690_v0, %v694_v1 }
  0x9b   : > { %v2343_v13 = vcombine.high %v697_v7, %v701_v8  ;;  %v2345_v14 = vcombine.high %v698_v9, %v702_v10  ;;  %v2342_v19 = vcombine.low %v697_v7, %v701_v8  ;;  %v769_v20 = vld [vmem:[%s3222_s2] sm:$0x7]  ;;  %v2344_v21 = vcombine.low %v698_v9, %v702_v10  ;;  %v718_v29 = vld [vmem:[%s2978_s4 + $0x468] sm:$0xff] }
  0x9c   : > { %1770 = vmatpush1.bf16.msra.mxu0 %v2278_v15  ;;  %1852 = vmatpush1.bf16.msra.mxu1 %v2280_v16  ;;  %v705_v15 = vld [vmem:[%s2978_s4 + $0x400] sm:$0xff]  ;;  %v726_v38 = vld [vmem:[%s2978_s4 + $0x4a8] sm:$0xff] }
  0x9d   : > { %1771 = vmatprep.subr.bf16.mxu0 %v2287_v17  ;;  %1853 = vmatprep.subr.bf16.mxu1 %v2289_v18  ;;  %v709_v16 = vld [vmem:[%s2978_s4 + $0x420] sm:$0xff]  ;;  %v706_v17 = vld [vmem:[%s2978_s4 + $0x408] sm:$0xff] }
  0x9e   : > { %v710_v18 = vld [vmem:[%s2978_s4 + $0x428] sm:$0xff]  ;;  %v2351_v22 = vcombine.high %v705_v15, %v709_v16  ;;  %772 = vperm.xlu0 %2469, %v769_v20   ;;  %v2350_v30 = vcombine.low %v705_v15, %v709_v16  ;;  %v579_v20 = vld [vmem:[%s2978_s4 + $0x10] sm:$0xff] }
  0x9f   : > { %v2352_v31 = vcombine.low %v706_v17, %v710_v18  ;;  %v734_v46 = vld [vmem:[%s2978_s4 + $0x4e8] sm:$0xff] }
  0xa0   : > { %1772 = vmatpush1.bf16.msra.mxu0 %v2286_v23  ;;  %1854 = vmatpush1.bf16.msra.mxu1 %v2288_v24  ;;  %v2353_v23 = vcombine.high %v706_v17, %v710_v18  ;;  %v713_v24 = vld [vmem:[%s2978_s4 + $0x440] sm:$0xff]  ;;  %v742_v54 = vld [vmem:[%s2978_s4 + $0x528] sm:$0xff] }
  0xa1   : > { %1773 = vmatprep.subr.bf16.mxu0 %v2295_v25  ;;  %1855 = vmatprep.subr.bf16.mxu1 %v2297_v26  ;;  %v717_v25 = vld [vmem:[%s2978_s4 + $0x460] sm:$0xff]  ;;  %v714_v26 = vld [vmem:[%s2978_s4 + $0x448] sm:$0xff] }
  0xa2   : > { %v2359_v32 = vcombine.high %v713_v24, %v717_v25  ;;  %v2358_v39 = vcombine.low %v713_v24, %v717_v25  ;;  %v2360_v40 = vcombine.low %v714_v26, %v718_v29  ;;  %v750_v62 = vld [vmem:[%s2978_s4 + $0x568] sm:$0xff] }
  0xa3   : > { %v758_v7 = vld [vmem:[%s2978_s4 + $0x5a8] sm:$0xff] }
  0xa4   : > { %1774 = vmatpush1.bf16.msra.mxu0 %v2294_v33  ;;  %1856 = vmatpush1.bf16.msra.mxu1 %v2296_v34  ;;  %v2361_v33 = vcombine.high %v714_v26, %v718_v29  ;;  %v721_v34 = vld [vmem:[%s2978_s4 + $0x480] sm:$0xff]  ;;  %v766_v15 = vld [vmem:[%s2978_s4 + $0x5e8] sm:$0xff] }
  0xa5   : > { %1775 = vmatprep.subr.bf16.mxu0 %v2303_v35  ;;  %1857 = vmatprep.subr.bf16.mxu1 %v2305_v36  ;;  %v725_v35 = vld [vmem:[%s2978_s4 + $0x4a0] sm:$0xff]  ;;  %v722_v36 = vld [vmem:[%s2978_s4 + $0x488] sm:$0xff] }
  0xa6   : > { %v2367_v41 = vcombine.high %v721_v34, %v725_v35  ;;  %v2366_v47 = vcombine.low %v721_v34, %v725_v35  ;;  %v2368_v48 = vcombine.low %v722_v36, %v726_v38 }
  0xa8   : > { %1776 = vmatpush1.bf16.msra.mxu0 %v2302_v42  ;;  %1858 = vmatpush1.bf16.msra.mxu1 %v2304_v43  ;;  %v2369_v42 = vcombine.high %v722_v36, %v726_v38  ;;  %v729_v43 = vld [vmem:[%s2978_s4 + $0x4c0] sm:$0xff] }
  0xa9   : > { %1777 = vmatprep.subr.bf16.mxu0 %v2311_v44  ;;  %1859 = vmatprep.subr.bf16.mxu1 %v2313_v45  ;;  %v733_v44 = vld [vmem:[%s2978_s4 + $0x4e0] sm:$0xff]  ;;  %v730_v45 = vld [vmem:[%s2978_s4 + $0x4c8] sm:$0xff] }
  0xaa   : > { %v2375_v49 = vcombine.high %v729_v43, %v733_v44  ;;  %v2374_v55 = vcombine.low %v729_v43, %v733_v44  ;;  %v2376_v56 = vcombine.low %v730_v45, %v734_v46 }
  0xac   : > { %1778 = vmatpush1.bf16.msra.mxu0 %v2310_v50  ;;  %1860 = vmatpush1.bf16.msra.mxu1 %v2312_v51  ;;  %v2377_v50 = vcombine.high %v730_v45, %v734_v46  ;;  %v737_v51 = vld [vmem:[%s2978_s4 + $0x500] sm:$0xff] }
  0xad   : > { %1779 = vmatprep.subr.bf16.mxu0 %v2319_v52  ;;  %1861 = vmatprep.subr.bf16.mxu1 %v2321_v53  ;;  %v741_v52 = vld [vmem:[%s2978_s4 + $0x520] sm:$0xff]  ;;  %v738_v53 = vld [vmem:[%s2978_s4 + $0x508] sm:$0xff] }
  0xae   : > { %v2383_v57 = vcombine.high %v737_v51, %v741_v52  ;;  %v2382_v63 = vcombine.low %v737_v51, %v741_v52  ;;  %v2384_v0 = vcombine.low %v738_v53, %v742_v54 }
  0xb0   : > { %1780 = vmatpush1.bf16.msra.mxu0 %v2318_v58  ;;  %1862 = vmatpush1.bf16.msra.mxu1 %v2320_v59  ;;  %v2385_v58 = vcombine.high %v738_v53, %v742_v54  ;;  %v745_v59 = vld [vmem:[%s2978_s4 + $0x540] sm:$0xff] }
  0xb1   : > { %1781 = vmatprep.subr.bf16.mxu0 %v2327_v60  ;;  %1863 = vmatprep.subr.bf16.mxu1 %v2329_v61  ;;  %v749_v60 = vld [vmem:[%s2978_s4 + $0x560] sm:$0xff]  ;;  %v746_v61 = vld [vmem:[%s2978_s4 + $0x548] sm:$0xff] }
  0xb2   : > { %v2391_v1 = vcombine.high %v745_v59, %v749_v60  ;;  %v2390_v8 = vcombine.low %v745_v59, %v749_v60  ;;  %v2392_v9 = vcombine.low %v746_v61, %v750_v62 }
  0xb4   : > { %1782 = vmatpush1.bf16.msra.mxu0 %v2326_v2  ;;  %1864 = vmatpush1.bf16.msra.mxu1 %v2328_v4  ;;  %v2393_v2 = vcombine.high %v746_v61, %v750_v62  ;;  %v753_v4 = vld [vmem:[%s2978_s4 + $0x580] sm:$0xff]  ;;  %v619_v62 = vld [vmem:[%s2978_s4 + $0x150] sm:$0xff] }
  0xb5   : > { %1783 = vmatprep.subr.bf16.mxu0 %v2335_v5  ;;  %1865 = vmatprep.subr.bf16.mxu1 %v2337_v6  ;;  %v757_v5 = vld [vmem:[%s2978_s4 + $0x5a0] sm:$0xff]  ;;  %v754_v6 = vld [vmem:[%s2978_s4 + $0x588] sm:$0xff] }
  0xb6   : > { %v2399_v10 = vcombine.high %v753_v4, %v757_v5  ;;  %v2398_v16 = vcombine.low %v753_v4, %v757_v5  ;;  %v2400_v17 = vcombine.low %v754_v6, %v758_v7 }
  0xb8   : > { %1784 = vmatpush1.bf16.msra.mxu0 %v2334_v11  ;;  %1866 = vmatpush1.bf16.msra.mxu1 %v2336_v12  ;;  %v2401_v11 = vcombine.high %v754_v6, %v758_v7  ;;  %v761_v12 = vld [vmem:[%s2978_s4 + $0x5c0] sm:$0xff]  ;;  %v627_v7 = vld [vmem:[%s2978_s4 + $0x190] sm:$0xff] }
  0xb9   : > { %1785 = vmatprep.subr.bf16.mxu0 %v2343_v13  ;;  %1867 = vmatprep.subr.bf16.mxu1 %v2345_v14  ;;  %v765_v13 = vld [vmem:[%s2978_s4 + $0x5e0] sm:$0xff]  ;;  %v762_v14 = vld [vmem:[%s2978_s4 + $0x5c8] sm:$0xff] }
  0xba   : > { %v2407_v18 = vcombine.high %v761_v12, %v765_v13  ;;  %v2406_v24 = vcombine.low %v761_v12, %v765_v13  ;;  %v2408_v25 = vcombine.low %v762_v14, %v766_v15 }
  0xbc   : > { %1786 = vmatpush1.bf16.msra.mxu0 %v2342_v19  ;;  %1868 = vmatpush1.bf16.msra.mxu1 %v2344_v21  ;;  %v2409_v19 = vcombine.high %v762_v14, %v766_v15  ;;  %v583_v21 = vld [vmem:[%s2978_s4 + $0x30] sm:$0xff] }
  0xbd   : > { %1796 = vmatprep.subr.bf16.mxu0 %v2351_v22  ;;  %1878 = vmatprep.subr.bf16.mxu1 %v2353_v23  ;;  %v580_v22 = vld [vmem:[%s2978_s4 + $0x18] sm:$0xff]  ;;  %v2227_v26 = vcombine.high %v579_v20, %v583_v21  ;;  %v2226_v34 = vcombine.low %v579_v20, %v583_v21  ;;  %v635_v15 = vld [vmem:[%s2978_s4 + $0x1d0] sm:$0xff] }
  0xbe   : > { %v584_v23 = vld [vmem:[%s2978_s4 + $0x38] sm:$0xff] }
  0xbf   : > { %1788 = vmatmul.mubr.bf16.vlgmr.msra.gmra.mrb[0].mxu0 %v2992_v27  ;;  %1870 = vmatmul.mubr.bf16.vlgmr.msra.gmra.mrb[0].mxu1 %v2992_v27  ;;  %v2229_v29 = vcombine.high %v580_v22, %v584_v23  ;;  %v2228_v35 = vcombine.low %v580_v22, %v584_v23  ;;  %v643_v23 = vld [vmem:[%s2978_s4 + $0x210] sm:$0xff] }
  0xc0   : > { %1797 = vmatpush1.bf16.msra.mxu0 %v2350_v30  ;;  %1879 = vmatpush1.bf16.msra.mxu1 %v2352_v31  ;;  %v587_v30 = vld [vmem:[%s2978_s4 + $0x50] sm:$0xff] }
  0xc1   : > { %1798 = vmatprep.subr.bf16.mxu0 %v2359_v32  ;;  %1880 = vmatprep.subr.bf16.mxu1 %v2361_v33  ;;  %v591_v31 = vld [vmem:[%s2978_s4 + $0x70] sm:$0xff]  ;;  %v588_v32 = vld [vmem:[%s2978_s4 + $0x58] sm:$0xff] }
  0xc2   : > { %1828 = vmatprep.mubr.bf16.mxu0 %v2528_v3  ;;  %1910 = vmatprep.mubr.bf16.mxu1 %v2528_v3  ;;  %v592_v33 = vld [vmem:[%s2978_s4 + $0x78] sm:$0xff]  ;;  %v2235_v36 = vcombine.high %v587_v30, %v591_v31  ;;  %v2234_v43 = vcombine.low %v587_v30, %v591_v31 }
  0xc3   : > { %v2237_v38 = vcombine.high %v588_v32, %v592_v33  ;;  %v2236_v44 = vcombine.low %v588_v32, %v592_v33  ;;  %v651_v33 = vld [vmem:[%s2978_s4 + $0x250] sm:$0xff] }
  0xc4   : > { %1799 = vmatpush1.bf16.msra.mxu0 %v2358_v39  ;;  %1881 = vmatpush1.bf16.msra.mxu1 %v2360_v40  ;;  %v595_v39 = vld [vmem:[%s2978_s4 + $0x90] sm:$0xff] }
  0xc5   : > { %1800 = vmatprep.subr.bf16.mxu0 %v2367_v41  ;;  %1882 = vmatprep.subr.bf16.mxu1 %v2369_v42  ;;  %v599_v40 = vld [vmem:[%s2978_s4 + $0xb0] sm:$0xff]  ;;  %v596_v41 = vld [vmem:[%s2978_s4 + $0x98] sm:$0xff] }
  0xc6   : > { %v600_v42 = vld [vmem:[%s2978_s4 + $0xb8] sm:$0xff]  ;;  %v2243_v45 = vcombine.high %v595_v39, %v599_v40  ;;  %v2242_v51 = vcombine.low %v595_v39, %v599_v40 }
  0xc7   : > { %v2245_v46 = vcombine.high %v596_v41, %v600_v42  ;;  %v2244_v52 = vcombine.low %v596_v41, %v600_v42  ;;  %v659_v42 = vld [vmem:[%s2978_s4 + $0x290] sm:$0xff] }
  0xc8   : > { %1801 = vmatpush1.bf16.msra.mxu0 %v2366_v47  ;;  %1883 = vmatpush1.bf16.msra.mxu1 %v2368_v48  ;;  %v603_v47 = vld [vmem:[%s2978_s4 + $0xd0] sm:$0xff] }
  0xc9   : > { %1802 = vmatprep.subr.bf16.mxu0 %v2375_v49  ;;  %1884 = vmatprep.subr.bf16.mxu1 %v2377_v50  ;;  %v607_v48 = vld [vmem:[%s2978_s4 + $0xf0] sm:$0xff]  ;;  %v604_v49 = vld [vmem:[%s2978_s4 + $0xd8] sm:$0xff] }
  0xca   : > { %v608_v50 = vld [vmem:[%s2978_s4 + $0xf8] sm:$0xff]  ;;  %v2251_v53 = vcombine.high %v603_v47, %v607_v48  ;;  %v2250_v59 = vcombine.low %v603_v47, %v607_v48 }
  0xcb   : > { %v2253_v54 = vcombine.high %v604_v49, %v608_v50 }
  0xcc   : > { %1803 = vmatpush1.bf16.msra.mxu0 %v2374_v55  ;;  %1885 = vmatpush1.bf16.msra.mxu1 %v2376_v56  ;;  %v611_v55 = vld [vmem:[%s2978_s4 + $0x110] sm:$0xff] }
  0xcd   : > { %1804 = vmatprep.subr.bf16.mxu0 %v2383_v57  ;;  %1886 = vmatprep.subr.bf16.mxu1 %v2385_v58  ;;  %v615_v56 = vld [vmem:[%s2978_s4 + $0x130] sm:$0xff]  ;;  %v612_v57 = vld [vmem:[%s2978_s4 + $0x118] sm:$0xff] }
  0xce   : > { %v616_v58 = vld [vmem:[%s2978_s4 + $0x138] sm:$0xff]  ;;  %v2259_v60 = vcombine.high %v611_v55, %v615_v56 }
  0xcf   : > { %v2261_v61 = vcombine.high %v612_v57, %v616_v58  ;;  %v2260_v4 = vcombine.low %v612_v57, %v616_v58  ;;  %v675_v58 = vld [vmem:[%s2978_s4 + $0x310] sm:$0xff] }
  0xd0   : > { %1805 = vmatpush1.bf16.msra.mxu0 %v2382_v63  ;;  %1887 = vmatpush1.bf16.msra.mxu1 %v2384_v0  ;;  %v623_v63 = vld [vmem:[%s2978_s4 + $0x170] sm:$0xff]  ;;  %v620_v0 = vld [vmem:[%s2978_s4 + $0x158] sm:$0xff] }
  0xd1   : > { %1806 = vmatprep.subr.bf16.mxu0 %v2391_v1  ;;  %1888 = vmatprep.subr.bf16.mxu1 %v2393_v2  ;;  %v624_v1 = vld [vmem:[%s2978_s4 + $0x178] sm:$0xff]  ;;  %v2258_v2 = vcombine.low %v611_v55, %v615_v56  ;;  %v2267_v5 = vcombine.high %v619_v62, %v623_v63 }
  0xd2   : > { %v2269_v6 = vcombine.high %v620_v0, %v624_v1  ;;  %v2268_v12 = vcombine.low %v620_v0, %v624_v1  ;;  %v683_v1 = vld [vmem:[%s2978_s4 + $0x350] sm:$0xff] }
  0xd4   : > { %1807 = vmatpush1.bf16.msra.mxu0 %v2390_v8  ;;  %1889 = vmatpush1.bf16.msra.mxu1 %v2392_v9  ;;  %v631_v8 = vld [vmem:[%s2978_s4 + $0x1b0] sm:$0xff]  ;;  %v628_v9 = vld [vmem:[%s2978_s4 + $0x198] sm:$0xff] }
  0xd5   : > { %1808 = vmatprep.subr.bf16.mxu0 %v2399_v10  ;;  %1890 = vmatprep.subr.bf16.mxu1 %v2401_v11  ;;  %v632_v10 = vld [vmem:[%s2978_s4 + $0x1b8] sm:$0xff]  ;;  %v2266_v11 = vcombine.low %v619_v62, %v623_v63  ;;  %v2275_v13 = vcombine.high %v627_v7, %v631_v8 }
  0xd6   : > { %v2277_v14 = vcombine.high %v628_v9, %v632_v10  ;;  %v2276_v20 = vcombine.low %v628_v9, %v632_v10  ;;  %v691_v10 = vld [vmem:[%s2978_s4 + $0x390] sm:$0xff] }
  0xd8   : > { %1809 = vmatpush1.bf16.msra.mxu0 %v2398_v16  ;;  %1891 = vmatpush1.bf16.msra.mxu1 %v2400_v17  ;;  %v639_v16 = vld [vmem:[%s2978_s4 + $0x1f0] sm:$0xff]  ;;  %v636_v17 = vld [vmem:[%s2978_s4 + $0x1d8] sm:$0xff] }
  0xd9   : > { %1810 = vmatprep.subr.bf16.mxu0 %v2407_v18  ;;  %1892 = vmatprep.subr.bf16.mxu1 %v2409_v19  ;;  %v640_v18 = vld [vmem:[%s2978_s4 + $0x1f8] sm:$0xff]  ;;  %v2274_v19 = vcombine.low %v627_v7, %v631_v8  ;;  %v2283_v21 = vcombine.high %v635_v15, %v639_v16 }
  0xda   : > { %v2285_v22 = vcombine.high %v636_v17, %v640_v18  ;;  %v2284_v30 = vcombine.low %v636_v17, %v640_v18  ;;  %v699_v18 = vld [vmem:[%s2978_s4 + $0x3d0] sm:$0xff] }
  0xdc   : > { %1811 = vmatpush1.bf16.msra.mxu0 %v2406_v24  ;;  %1893 = vmatpush1.bf16.msra.mxu1 %v2408_v25  ;;  %v647_v24 = vld [vmem:[%s2978_s4 + $0x230] sm:$0xff]  ;;  %v644_v25 = vld [vmem:[%s2978_s4 + $0x218] sm:$0xff] }
  0xdd   : > { %1919 = vmatprep.subr.bf16.mxu0 %v2227_v26  ;;  %2001 = vmatprep.subr.bf16.mxu1 %v2229_v29  ;;  %v648_v26 = vld [vmem:[%s2978_s4 + $0x238] sm:$0xff]  ;;  %v2282_v29 = vcombine.low %v635_v15, %v639_v16  ;;  %v2291_v31 = vcombine.high %v643_v23, %v647_v24 }
  0xde   : > { %v2293_v32 = vcombine.high %v644_v25, %v648_v26  ;;  %v2292_v39 = vcombine.low %v644_v25, %v648_v26  ;;  %v707_v26 = vld [vmem:[%s2978_s4 + $0x410] sm:$0xff] }
  0xdf   : > { %1829 = vmatmul.mubr.bf16.vlgmr.msra.gmra.mrb[0].mxu0 %v2994_v28  ;;  %1911 = vmatmul.mubr.bf16.vlgmr.msra.gmra.mrb[0].mxu1 %v2994_v28 }
  0xe0   : > { %1920 = vmatpush1.bf16.msra.mxu0 %v2226_v34  ;;  %2002 = vmatpush1.bf16.msra.mxu1 %v2228_v35  ;;  %v655_v34 = vld [vmem:[%s2978_s4 + $0x270] sm:$0xff]  ;;  %v652_v35 = vld [vmem:[%s2978_s4 + $0x258] sm:$0xff] }
  0xe1   : > { %1921 = vmatprep.subr.bf16.mxu0 %v2235_v36  ;;  %2003 = vmatprep.subr.bf16.mxu1 %v2237_v38  ;;  %v656_v36 = vld [vmem:[%s2978_s4 + $0x278] sm:$0xff]  ;;  %v2290_v38 = vcombine.low %v643_v23, %v647_v24  ;;  %v2299_v40 = vcombine.high %v651_v33, %v655_v34 }
  0xe2   : > { %1951 = vmatprep.mubr.bf16.mxu0 %v3002_v37  ;;  %2033 = vmatprep.mubr.bf16.mxu1 %v3002_v37  ;;  %v2252_v37 = vcombine.low %v604_v49, %v608_v50  ;;  %v2301_v41 = vcombine.high %v652_v35, %v656_v36  ;;  %v2300_v47 = vcombine.low %v652_v35, %v656_v36  ;;  %v667_v50 = vld [vmem:[%s2978_s4 + $0x2d0] sm:$0xff] }
  0xe3   : > { %v715_v36 = vld [vmem:[%s2978_s4 + $0x450] sm:$0xff] }
  0xe4   : > { %1922 = vmatpush1.bf16.msra.mxu0 %v2234_v43  ;;  %2004 = vmatpush1.bf16.msra.mxu1 %v2236_v44  ;;  %v663_v43 = vld [vmem:[%s2978_s4 + $0x2b0] sm:$0xff]  ;;  %v660_v44 = vld [vmem:[%s2978_s4 + $0x298] sm:$0xff] }
  0xe5   : > { %1923 = vmatprep.subr.bf16.mxu0 %v2243_v45  ;;  %2005 = vmatprep.subr.bf16.mxu1 %v2245_v46  ;;  %v664_v45 = vld [vmem:[%s2978_s4 + $0x2b8] sm:$0xff]  ;;  %v2298_v46 = vcombine.low %v651_v33, %v655_v34  ;;  %v2307_v48 = vcombine.high %v659_v42, %v663_v43 }
  0xe6   : > { %v2309_v49 = vcombine.high %v660_v44, %v664_v45  ;;  %v2308_v55 = vcombine.low %v660_v44, %v664_v45  ;;  %v723_v45 = vld [vmem:[%s2978_s4 + $0x490] sm:$0xff] }
  0xe8   : > { %1924 = vmatpush1.bf16.msra.mxu0 %v2242_v51  ;;  %2006 = vmatpush1.bf16.msra.mxu1 %v2244_v52  ;;  %v671_v51 = vld [vmem:[%s2978_s4 + $0x2f0] sm:$0xff]  ;;  %v668_v52 = vld [vmem:[%s2978_s4 + $0x2d8] sm:$0xff] }
  0xe9   : > { %1925 = vmatprep.subr.bf16.mxu0 %v2251_v53  ;;  %2007 = vmatprep.subr.bf16.mxu1 %v2253_v54  ;;  %v672_v53 = vld [vmem:[%s2978_s4 + $0x2f8] sm:$0xff]  ;;  %v2306_v54 = vcombine.low %v659_v42, %v663_v43  ;;  %v2315_v56 = vcombine.high %v667_v50, %v671_v51 }
  0xea   : > { %v2317_v57 = vcombine.high %v668_v52, %v672_v53  ;;  %v2316_v62 = vcombine.low %v668_v52, %v672_v53  ;;  %v731_v53 = vld [vmem:[%s2978_s4 + $0x4d0] sm:$0xff] }
  0xec   : > { %1926 = vmatpush1.bf16.msra.mxu0 %v2250_v59  ;;  %2008 = vmatpush1.bf16.msra.mxu1 %v2252_v37  ;;  %v679_v59 = vld [vmem:[%s2978_s4 + $0x330] sm:$0xff]  ;;  %v676_v37 = vld [vmem:[%s2978_s4 + $0x318] sm:$0xff] }
  0xed   : > { %1927 = vmatprep.subr.bf16.mxu0 %v2259_v60  ;;  %2009 = vmatprep.subr.bf16.mxu1 %v2261_v61  ;;  %v680_v60 = vld [vmem:[%s2978_s4 + $0x338] sm:$0xff]  ;;  %v2314_v61 = vcombine.low %v667_v50, %v671_v51  ;;  %v2323_v63 = vcombine.high %v675_v58, %v679_v59 }
  0xee   : > { %v2325_v0 = vcombine.high %v676_v37, %v680_v60  ;;  %v2324_v7 = vcombine.low %v676_v37, %v680_v60  ;;  %v739_v37 = vld [vmem:[%s2978_s4 + $0x510] sm:$0xff] }
  0xef   : > { %v743_v60 = vld [vmem:[%s2978_s4 + $0x530] sm:$0xff] }
  0xf0   : > { %1928 = vmatpush1.bf16.msra.mxu0 %v2258_v2  ;;  %2010 = vmatpush1.bf16.msra.mxu1 %v2260_v4  ;;  %v687_v2 = vld [vmem:[%s2978_s4 + $0x370] sm:$0xff]  ;;  %v684_v4 = vld [vmem:[%s2978_s4 + $0x358] sm:$0xff] }
  0xf1   : > { %1929 = vmatprep.subr.bf16.mxu0 %v2267_v5  ;;  %2011 = vmatprep.subr.bf16.mxu1 %v2269_v6  ;;  %v688_v5 = vld [vmem:[%s2978_s4 + $0x378] sm:$0xff]  ;;  %v2322_v6 = vcombine.low %v675_v58, %v679_v59  ;;  %v2331_v8 = vcombine.high %v683_v1, %v687_v2 }
  0xf2   : > { %v2333_v9 = vcombine.high %v684_v4, %v688_v5  ;;  %v2332_v15 = vcombine.low %v684_v4, %v688_v5  ;;  %v751_v4 = vld [vmem:[%s2978_s4 + $0x570] sm:$0xff]  ;;  %v748_v5 = vld [vmem:[%s2978_s4 + $0x558] sm:$0xff] }
  0xf4   : > { %1930 = vmatpush1.bf16.msra.mxu0 %v2266_v11  ;;  %2012 = vmatpush1.bf16.msra.mxu1 %v2268_v12  ;;  %v695_v11 = vld [vmem:[%s2978_s4 + $0x3b0] sm:$0xff]  ;;  %v692_v12 = vld [vmem:[%s2978_s4 + $0x398] sm:$0xff] }
  0xf5   : > { %1931 = vmatprep.subr.bf16.mxu0 %v2275_v13  ;;  %2013 = vmatprep.subr.bf16.mxu1 %v2277_v14  ;;  %v696_v13 = vld [vmem:[%s2978_s4 + $0x3b8] sm:$0xff]  ;;  %v2330_v14 = vcombine.low %v683_v1, %v687_v2  ;;  %v2339_v16 = vcombine.high %v691_v10, %v695_v11  ;;  %v747_v2 = vld [vmem:[%s2978_s4 + $0x550] sm:$0xff] }
  0xf6   : > { %v2341_v17 = vcombine.high %v692_v12, %v696_v13  ;;  %v2340_v23 = vcombine.low %v692_v12, %v696_v13  ;;  %v759_v12 = vld [vmem:[%s2978_s4 + $0x5b0] sm:$0xff]  ;;  %v756_v13 = vld [vmem:[%s2978_s4 + $0x598] sm:$0xff] }
  0xf8   : > { %1932 = vmatpush1.bf16.msra.mxu0 %v2274_v19  ;;  %2014 = vmatpush1.bf16.msra.mxu1 %v2276_v20  ;;  %v703_v19 = vld [vmem:[%s2978_s4 + $0x3f0] sm:$0xff]  ;;  %v700_v20 = vld [vmem:[%s2978_s4 + $0x3d8] sm:$0xff] }
  0xf9   : > { %1933 = vmatprep.subr.bf16.mxu0 %v2283_v21  ;;  %2015 = vmatprep.subr.bf16.mxu1 %v2285_v22  ;;  %v704_v21 = vld [vmem:[%s2978_s4 + $0x3f8] sm:$0xff]  ;;  %v2338_v22 = vcombine.low %v691_v10, %v695_v11  ;;  %v2347_v24 = vcombine.high %v699_v18, %v703_v19  ;;  %v755_v11 = vld [vmem:[%s2978_s4 + $0x590] sm:$0xff] }
  0xfa   : > { %v2349_v25 = vcombine.high %v700_v20, %v704_v21  ;;  %v2348_v33 = vcombine.low %v700_v20, %v704_v21  ;;  %v767_v20 = vld [vmem:[%s2978_s4 + $0x5f0] sm:$0xff]  ;;  %v764_v21 = vld [vmem:[%s2978_s4 + $0x5d8] sm:$0xff] }
  0xfc   : > { %1934 = vmatpush1.bf16.msra.mxu0 %v2282_v29  ;;  %2016 = vmatpush1.bf16.msra.mxu1 %v2284_v30  ;;  %v711_v29 = vld [vmem:[%s2978_s4 + $0x430] sm:$0xff]  ;;  %v708_v30 = vld [vmem:[%s2978_s4 + $0x418] sm:$0xff] }
  0xfd   : > { %1935 = vmatprep.subr.bf16.mxu0 %v2291_v31  ;;  %2017 = vmatprep.subr.bf16.mxu1 %v2293_v32  ;;  %v712_v31 = vld [vmem:[%s2978_s4 + $0x438] sm:$0xff]  ;;  %v2346_v32 = vcombine.low %v699_v18, %v703_v19  ;;  %v2355_v34 = vcombine.high %v707_v26, %v711_v29  ;;  %v763_v19 = vld [vmem:[%s2978_s4 + $0x5d0] sm:$0xff] }
  0xfe   : > { %v2357_v35 = vcombine.high %v708_v30, %v712_v31  ;;  %v2356_v42 = vcombine.low %v708_v30, %v712_v31 }
 0x100   : > { %1936 = vmatpush1.bf16.msra.mxu0 %v2290_v38  ;;  %2018 = vmatpush1.bf16.msra.mxu1 %v2292_v39  ;;  %v719_v38 = vld [vmem:[%s2978_s4 + $0x470] sm:$0xff]  ;;  %v716_v39 = vld [vmem:[%s2978_s4 + $0x458] sm:$0xff] }
 0x101   : > { %1937 = vmatprep.subr.bf16.mxu0 %v2299_v40  ;;  %2019 = vmatprep.subr.bf16.mxu1 %v2301_v41  ;;  %v720_v40 = vld [vmem:[%s2978_s4 + $0x478] sm:$0xff]  ;;  %v2354_v41 = vcombine.low %v707_v26, %v711_v29  ;;  %v2363_v43 = vcombine.high %v715_v36, %v719_v38  ;;  %v2410_v29 = vcombine.low %v763_v19, %v767_v20 }
 0x102   : > { %v2365_v44 = vcombine.high %v716_v39, %v720_v40  ;;  %v2364_v50 = vcombine.low %v716_v39, %v720_v40 }
 0x104   : > { %1938 = vmatpush1.bf16.msra.mxu0 %v2298_v46  ;;  %2020 = vmatpush1.bf16.msra.mxu1 %v2300_v47  ;;  %v727_v46 = vld [vmem:[%s2978_s4 + $0x4b0] sm:$0xff]  ;;  %v724_v47 = vld [vmem:[%s2978_s4 + $0x498] sm:$0xff] }
 0x105   : > { %1939 = vmatprep.subr.bf16.mxu0 %v2307_v48  ;;  %2021 = vmatprep.subr.bf16.mxu1 %v2309_v49  ;;  %v728_v48 = vld [vmem:[%s2978_s4 + $0x4b8] sm:$0xff]  ;;  %v2362_v49 = vcombine.low %v715_v36, %v719_v38  ;;  %v2371_v51 = vcombine.high %v723_v45, %v727_v46 }
 0x106   : > { %v2373_v52 = vcombine.high %v724_v47, %v728_v48 }
 0x108   : > { %1940 = vmatpush1.bf16.msra.mxu0 %v2306_v54  ;;  %2022 = vmatpush1.bf16.msra.mxu1 %v2308_v55  ;;  %v735_v54 = vld [vmem:[%s2978_s4 + $0x4f0] sm:$0xff]  ;;  %v732_v55 = vld [vmem:[%s2978_s4 + $0x4d8] sm:$0xff] }
 0x109   : > { %1941 = vmatprep.subr.bf16.mxu0 %v2315_v56  ;;  %2023 = vmatprep.subr.bf16.mxu1 %v2317_v57  ;;  %v736_v56 = vld [vmem:[%s2978_s4 + $0x4f8] sm:$0xff]  ;;  %v2372_v57 = vcombine.low %v724_v47, %v728_v48  ;;  %v2379_v58 = vcombine.high %v731_v53, %v735_v54 }
 0x10a   : > { %v2381_v59 = vcombine.high %v732_v55, %v736_v56 }
 0x10c   : > { %1942 = vmatpush1.bf16.msra.mxu0 %v2314_v61  ;;  %2024 = vmatpush1.bf16.msra.mxu1 %v2316_v62  ;;  %v740_v61 = vld [vmem:[%s2978_s4 + $0x518] sm:$0xff] }
 0x10d   : > { %1943 = vmatprep.subr.bf16.mxu0 %v2323_v63  ;;  %2025 = vmatprep.subr.bf16.mxu1 %v2325_v0  ;;  %v744_v62 = vld [vmem:[%s2978_s4 + $0x538] sm:$0xff]  ;;  %v2378_v63 = vcombine.low %v731_v53, %v735_v54  ;;  %v2387_v0 = vcombine.high %v739_v37, %v743_v60 }
 0x10e   : > { %v2389_v1 = vcombine.high %v740_v61, %v744_v62 }
 0x110   : > { %1944 = vmatpush1.bf16.msra.mxu0 %v2322_v6  ;;  %2026 = vmatpush1.bf16.msra.mxu1 %v2324_v7  ;;  %v752_v6 = vld [vmem:[%s2978_s4 + $0x578] sm:$0xff]  ;;  %v2386_v7 = vcombine.low %v739_v37, %v743_v60 }
 0x111   : > { %1945 = vmatprep.subr.bf16.mxu0 %v2331_v8  ;;  %2027 = vmatprep.subr.bf16.mxu1 %v2333_v9  ;;  %v2388_v8 = vcombine.low %v740_v61, %v744_v62  ;;  %v2395_v9 = vcombine.high %v747_v2, %v751_v4  ;;  %v2397_v10 = vcombine.high %v748_v5, %v752_v6 }
 0x114   : > { %1946 = vmatpush1.bf16.msra.mxu0 %v2330_v14  ;;  %2028 = vmatpush1.bf16.msra.mxu1 %v2332_v15  ;;  %v760_v14 = vld [vmem:[%s2978_s4 + $0x5b8] sm:$0xff]  ;;  %v2394_v15 = vcombine.low %v747_v2, %v751_v4 }
 0x115   : > { %1947 = vmatprep.subr.bf16.mxu0 %v2339_v16  ;;  %2029 = vmatprep.subr.bf16.mxu1 %v2341_v17  ;;  %v2396_v16 = vcombine.low %v748_v5, %v752_v6  ;;  %v2403_v17 = vcombine.high %v755_v11, %v759_v12  ;;  %v2405_v18 = vcombine.high %v756_v13, %v760_v14 }
 0x118   : > { %1948 = vmatpush1.bf16.msra.mxu0 %v2338_v22  ;;  %2030 = vmatpush1.bf16.msra.mxu1 %v2340_v23  ;;  %v768_v22 = vld [vmem:[%s2978_s4 + $0x5f8] sm:$0xff]  ;;  %v2402_v23 = vcombine.low %v755_v11, %v759_v12 }
 0x119   : > { %1949 = vmatprep.subr.bf16.mxu0 %v2347_v24  ;;  %2031 = vmatprep.subr.bf16.mxu1 %v2349_v25  ;;  %v2404_v24 = vcombine.low %v756_v13, %v760_v14  ;;  %v2411_v25 = vcombine.high %v763_v19, %v767_v20  ;;  %v2413_v26 = vcombine.high %v764_v21, %v768_v22 }
 0x11a   : > { %v2412_v30 = vcombine.low %v764_v21, %v768_v22 }
 0x11c   : > { %1950 = vmatpush1.bf16.msra.mxu0 %v2346_v32  ;;  %2032 = vmatpush1.bf16.msra.mxu1 %v2348_v33 }
 0x11d   : > { %1960 = vmatprep.subr.bf16.mxu0 %v2355_v34  ;;  %2042 = vmatprep.subr.bf16.mxu1 %v2357_v35  ;;  %v773_v31 = vpop.permute.xlu0 %772 }
 0x11f   : > { %1952 = vmatmul.mubr.bf16.vlgmr.msra.gmra.mrb[4].mxu0 %v2992_v27  ;;  %2034 = vmatmul.mubr.bf16.vlgmr.msra.gmra.mrb[4].mxu1 %v2992_v27  ;;  %v2370_v27 = vcombine.low %v723_v45, %v727_v46 }
 0x120   : > { %1961 = vmatpush1.bf16.msra.mxu0 %v2354_v41  ;;  %2043 = vmatpush1.bf16.msra.mxu1 %v2356_v42 }
 0x121   : > { %1962 = vmatprep.subr.bf16.mxu0 %v2363_v43  ;;  %2044 = vmatprep.subr.bf16.mxu1 %v2365_v44 }
 0x122   : > { %1992 = vmatprep.mubr.bf16.mxu0 %v2528_v3  ;;  %2074 = vmatprep.mubr.bf16.mxu1 %v2528_v3  ;;  %v2380_v3 = vcombine.low %v732_v55, %v736_v56 }
 0x124   : > { %1963 = vmatpush1.bf16.msra.mxu0 %v2362_v49  ;;  %2045 = vmatpush1.bf16.msra.mxu1 %v2364_v50 }
 0x125   : > { %1964 = vmatprep.subr.bf16.mxu0 %v2371_v51  ;;  %2046 = vmatprep.subr.bf16.mxu1 %v2373_v52 }
 0x128   : > { %1965 = vmatpush1.bf16.msra.mxu0 %v2370_v27  ;;  %2047 = vmatpush1.bf16.msra.mxu1 %v2372_v57 }
 0x129   : > { %1966 = vmatprep.subr.bf16.mxu0 %v2379_v58  ;;  %2048 = vmatprep.subr.bf16.mxu1 %v2381_v59 }
 0x12c   : > { %1967 = vmatpush1.bf16.msra.mxu0 %v2378_v63  ;;  %2049 = vmatpush1.bf16.msra.mxu1 %v2380_v3 }
 0x12d   : > { %1968 = vmatprep.subr.bf16.mxu0 %v2387_v0  ;;  %2050 = vmatprep.subr.bf16.mxu1 %v2389_v1 }
 0x130   : > { %1969 = vmatpush1.bf16.msra.mxu0 %v2386_v7  ;;  %2051 = vmatpush1.bf16.msra.mxu1 %v2388_v8 }
 0x131   : > { %1970 = vmatprep.subr.bf16.mxu0 %v2395_v9  ;;  %2052 = vmatprep.subr.bf16.mxu1 %v2397_v10 }
 0x134   : > { %1971 = vmatpush1.bf16.msra.mxu0 %v2394_v15  ;;  %2053 = vmatpush1.bf16.msra.mxu1 %v2396_v16 }
 0x135   : > { %1972 = vmatprep.subr.bf16.mxu0 %v2403_v17  ;;  %2054 = vmatprep.subr.bf16.mxu1 %v2405_v18 }
 0x138   : > { %1973 = vmatpush1.bf16.msra.mxu0 %v2402_v23  ;;  %2055 = vmatpush1.bf16.msra.mxu1 %v2404_v24 }
 0x139   : > { %1974 = vmatprep.subr.bf16.mxu0 %v2411_v25  ;;  %2056 = vmatprep.subr.bf16.mxu1 %v2413_v26 }
 0x13c   : > { %1975 = vmatpush1.bf16.msra.mxu0 %v2410_v29  ;;  %2057 = vmatpush1.bf16.msra.mxu1 %v2412_v30 }
 0x13f   : > { %1993 = vmatmul.mubr.bf16.vlgmr.msra.gmra.mrb[4].mxu0 %v2994_v28  ;;  %2075 = vmatmul.mubr.bf16.vlgmr.msra.gmra.mrb[4].mxu1 %v2994_v28 }
 0x1b2   : > { %v1830_v32 = vpop.f32.mrb[0].mxu0  ;;  %v1912_v34 = vpop.f32.mrb[0].mxu1 }
 0x1b3   : > { %v2417_v33 = vadd.f32 %v1830_v32, %v773_v31  ;;  %v1832_v35 = vpop.f32.mrb[1].mxu0  ;;  %v2419_v36 = vadd.f32 %v1912_v34, %v773_v31  ;;  %v1914_v39 = vpop.f32.mrb[1].mxu1 }
 0x1b4   : > { %v2418_v38 = vadd.f32 %v1832_v35, %v773_v31  ;;  %v1834_v40 = vpop.f32.mrb[2].mxu0  ;;  %v2420_v42 = vadd.f32 %v1914_v39, %v773_v31  ;;  %v1916_v43 = vpop.f32.mrb[2].mxu1 }
 0x1b5   : > { %v2083_v41 = vsub.f32 0.0, %v2417_v33  ;;  %v1835_v44 = vpop.f32.mrb[3].mxu0  ;;  %v2085_v45 = vsub.f32 0.0, %v2419_v36  ;;  %v1917_v47 = vpop.f32.mrb[3].mxu1 }
 0x1b6   : > { %v2084_v46 = vsub.f32 0.0, %v2418_v38  ;;  %v2086_v49 = vsub.f32 0.0, %v2420_v42 }
 0x1b7   : > { %v2091_v48 = vmul.f32 1.442695, %v2083_v41  ;;  %v2095_v28 = vmul.f32 1.442695, %v2085_v45 }
 0x1b8   : > { %v2093_v50 = vmul.f32 1.442695, %v2084_v46  ;;  %v2097_v51 = vmul.f32 1.442695, %v2086_v49 }
 0x1b9   : > { %2471 = vpow2.f32 %v2091_v48 }
 0x1ba   : > { %2473 = vpow2.f32 %v2095_v28 }
 0x1bb   : > { %2475 = vpow2.f32 %v2093_v50 }
 0x1bc   : > { %2477 = vpow2.f32 %v2097_v51 }
 0x1c3   : > { %v2472_v52 = vpop.eup %2471 }
 0x1c4   : > { %v2474_v53 = vpop.eup %2473  ;;  %v2107_v54 = vadd.f32 1.0, %v2472_v52 }
 0x1c5   : > { %v2476_v55 = vpop.eup %2475  ;;  %v2109_v56 = vadd.f32 1.0, %v2474_v53 }
 0x1c6   : > { %v2478_v27 = vpop.eup %2477  ;;  %2479 = vrcp.f32 %v2107_v54  ;;  %v2108_v57 = vadd.f32 1.0, %v2476_v55 }
 0x1c7   : > { %2481 = vrcp.f32 %v2109_v56  ;;  %v2110_v58 = vadd.f32 1.0, %v2478_v27 }
 0x1c8   : > { %2483 = vrcp.f32 %v2108_v57 }
 0x1c9   : > { %2485 = vrcp.f32 %v2110_v58 }
 0x1d0   : > { %v2480_v59 = vpop.eup %2479 }
 0x1d1   : > { %v2482_v37 = vpop.eup %2481 }
 0x1d2   : > { %v2484_v60 = vpop.eup %2483 }
 0x1d3   : > { %v2486_v61 = vpop.eup %2485  ;;  %v2139_v62 = vcombine.low %v2480_v59, %v2484_v60 }
 0x1d4   : > { %v2140_v63 = vcombine.low %v2482_v37, %v2486_v61 }
 0x1d5   : > { %2147 = vst [vmem:[%s3204_s11] sm:$0x77] %v2139_v62 }
 0x1d6   : > { %2148 = vst [vmem:[%s3204_s11 + $0x8] sm:$0x77] %v2140_v63 }
 0x212   : > { %v1994_v3 = vpop.f32.mrb[4].mxu0  ;;  %v2076_v1 = vpop.f32.mrb[4].mxu1 }
 0x213   : > { %v2421_v0 = vadd.f32 %v1994_v3, %v773_v31  ;;  %v1996_v2 = vpop.f32.mrb[5].mxu0  ;;  %v2423_v4 = vadd.f32 %v2076_v1, %v773_v31  ;;  %v2078_v6 = vpop.f32.mrb[5].mxu1 }
 0x214   : > { %v2422_v5 = vadd.f32 %v1996_v2, %v773_v31  ;;  %v1998_v7 = vpop.f32.mrb[6].mxu0  ;;  %v2424_v9 = vadd.f32 %v2078_v6, %v773_v31  ;;  %v2080_v10 = vpop.f32.mrb[6].mxu1 }
 0x215   : > { %v2087_v8 = vsub.f32 0.0, %v2421_v0  ;;  %v1999_v11 = vpop.f32.mrb[7].mxu0  ;;  %v2089_v12 = vsub.f32 0.0, %v2423_v4  ;;  %v2081_v14 = vpop.f32.mrb[7].mxu1 }
 0x216   : > { %v2088_v13 = vsub.f32 0.0, %v2422_v5  ;;  %v2090_v16 = vsub.f32 0.0, %v2424_v9 }
 0x217   : > { %v2099_v15 = vmul.f32 1.442695, %v2087_v8  ;;  %v2103_v17 = vmul.f32 1.442695, %v2089_v12 }
 0x218   : > { %v2101_v18 = vmul.f32 1.442695, %v2088_v13  ;;  %v2105_v19 = vmul.f32 1.442695, %v2090_v16 }
 0x219   : > { %2487 = vpow2.f32 %v2099_v15 }
 0x21a   : > { %2489 = vpow2.f32 %v2103_v17 }
 0x21b   : > { %2491 = vpow2.f32 %v2101_v18 }
 0x21c   : > { %2493 = vpow2.f32 %v2105_v19 }
 0x223   : > { %v2488_v20 = vpop.eup %2487 }
 0x224   : > { %v2490_v21 = vpop.eup %2489  ;;  %v2111_v22 = vadd.f32 1.0, %v2488_v20 }
 0x225   : > { %v2492_v23 = vpop.eup %2491  ;;  %v2113_v24 = vadd.f32 1.0, %v2490_v21 }
 0x226   : > { %v2494_v25 = vpop.eup %2493  ;;  %2495 = vrcp.f32 %v2111_v22  ;;  %v2112_v26 = vadd.f32 1.0, %v2492_v23 }
 0x227   : > { %2497 = vrcp.f32 %v2113_v24  ;;  %v2114_v29 = vadd.f32 1.0, %v2494_v25 }
 0x228   : > { %2499 = vrcp.f32 %v2112_v26 }
 0x229   : > { %2501 = vrcp.f32 %v2114_v29 }
 0x230   : > { %v2496_v30 = vpop.eup %2495 }
 0x231   : > { %v2498_v31 = vpop.eup %2497 }
 0x232   : > { %v2500_v32 = vpop.eup %2499 }
 0x233   : > { %v2502_v33 = vpop.eup %2501  ;;  %v2141_v34 = vcombine.low %v2496_v30, %v2500_v32 }
 0x234   : > { %v2142_v35 = vcombine.low %v2498_v31, %v2502_v33 }
 0x235   : > { %2149 = vst [vmem:[%s3204_s11 + $0x10] sm:$0x77] %v2141_v34 }
 0x236   : > { %2150 = vst [vmem:[%s3204_s11 + $0x18] sm:$0x77] %v2142_v35 }
 0x237 PF: > { %p10_p9 = scmp.ge.s32.totalorder %s2566_s16, 4   ;;  %s3224_s12 = smov %s2521_s13 }
 0x238   : > { %s3225_s13 = smov %s2575_s19  ;;  %s3226_s14 = smov %s2566_s16 }
 0x239   :  { %12 = sbr.rel (!%p10_p9) target bundleno = 2 (0x2), region = 90 }

</bundles_post_ra>
